<compile_context>
chip_gen: v7x
topology: tpu7x:2x2x1
jax: 0.10.0
libtpu: 0.0.40
codegen_flags: <defaults>
</compile_context>

<pallas_src>
import functools
import numpy as np
import jax
import jax.numpy as jnp
from jax.experimental import pallas as pl
from jax.experimental.pallas import tpu as pltpu

LANE = 128
IN_CH = 3
NUM_EMB = 104

# (cin, cmid, cout, stride, kernel, SE)
BLOCK_CFG = [
    (16, 16, 16, 2, 3, True),
    (16, 72, 24, 2, 3, False),
    (24, 88, 24, 1, 3, False),
    (24, 96, 40, 2, 5, True),
    (40, 240, 40, 1, 5, True),
    (40, 240, 40, 1, 5, True),
    (40, 120, 48, 1, 5, True),
]


def _rup(x, m=LANE):
    return ((x + m - 1) // m) * m


VMEM_SPEC = pl.BlockSpec(memory_space=pltpu.MemorySpace.VMEM)


# ----------------------------- Pallas kernels -----------------------------

def _first_conv_kernel(p_ref, w_ref, b_ref, o_ref):
    # p: (M, 128) im2col patches (K=27 zero-padded to 128), w: (128, 128), b: (1, 128)
    y = jnp.dot(p_ref[...], w_ref[...], preferred_element_type=jnp.float32) + b_ref[...]
    o_ref[...] = jnp.clip(y, 0.0, 6.0)                           # ReLU6


def _block_kernel(*refs, kk, m, has_se, shortcut, center):
    """One whole inverted-residual block: expand + DW + (SE) + project + (residual)."""
    if has_se:
        (p_ref, mask_ref, we_ref, be_ref, wdw_ref, bdw_ref,
         w1_ref, b1_ref, w2_ref, b2_ref, pool_ref, bcast_ref,
         wp_ref, bp_ref, o_ref) = refs
    else:
        (p_ref, mask_ref, we_ref, be_ref, wdw_ref, bdw_ref,
         wp_ref, bp_ref, o_ref) = refs

    # Expand 1x1 conv (+folded BN + ReLU6) applied to all kk taps in ONE matmul.
    # p_ref: (kk*m, Cin_pad) tap-major patches of the block input.
    e = jnp.dot(p_ref[...], we_ref[...], preferred_element_type=jnp.float32) + be_ref[...]
    # mask zeroes taps that fall into the depthwise conv's spatial zero-padding
    # (the expand nonlinearity does NOT commute with zero-padding, the mask fixes that).
    e = jnp.clip(e, 0.0, 6.0) * mask_ref[...]                    # (kk*m, Cmid_pad)

    # Depthwise conv (+folded BN + ReLU6): weighted sum over the kk taps (VPU).
    acc = e[0:m, :] * wdw_ref[0]
    for tap in range(1, kk):
        acc = acc + e[tap * m:(tap + 1) * m, :] * wdw_ref[tap]
    dw = jnp.clip(acc + bdw_ref[...], 0.0, 6.0)                  # (m, Cmid_pad)

    if has_se:
        # Squeeze-excite: per-batch GAP / broadcast expressed as tiny constant matmuls.
        pooled = jnp.dot(pool_ref[...], dw, preferred_element_type=jnp.float32)      # (N, Cmid)
        h = jnp.dot(pooled, w1_ref[...], preferred_element_type=jnp.float32) + b1_ref[...]
        h = jnp.maximum(h, 0.0)                                                       # ReLU
        s = jnp.dot(h, w2_ref[...], preferred_element_type=jnp.float32) + b2_ref[...]
        s = jnp.clip(s + 3.0, 0.0, 6.0) * (1.0 / 6.0)                                 # Hardsigmoid
        dw = dw * jnp.dot(bcast_ref[...], s, preferred_element_type=jnp.float32)      # (m, Cmid)

    # Project 1x1 conv (+folded BN, no activation) and fused residual add.
    out = jnp.dot(dw, wp_ref[...], preferred_element_type=jnp.float32) + bp_ref[...]
    if shortcut:
        out = out + p_ref[pl.ds(center * m, m), :]               # center tap == block input
    o_ref[...] = out


def _head_kernel(x_ref, pool_ref, w1_ref, b1_ref, w2_ref, b2_ref, o_ref):
    # adaptive-avg-pool(1) + Linear + Hardswish + (Dropout=identity) + Linear
    pooled = jnp.dot(pool_ref[...], x_ref[...], preferred_element_type=jnp.float32)   # (N, 128)
    h = jnp.dot(pooled, w1_ref[...], preferred_element_type=jnp.float32) + b1_ref[...]
    h = h * (jnp.clip(h + 3.0, 0.0, 6.0) * (1.0 / 6.0))                                # Hardswish
    # TODO(synk): nn.Dropout(0.3) is identity in eval mode; training RNG mask not implemented.
    o_ref[...] = jnp.dot(h, w2_ref[...], preferred_element_type=jnp.float32) + b2_ref[...]


# ------------------------------- JAX glue ----------------------------------

def _patches_tap_major(x, k, stride):
    """x: (N,H,W,Cpad) -> tap-major patches (k*k*N*Ho*Wo, Cpad), validity mask, Ho, Wo."""
    N, H, W, C = x.shape
    pad = (k - 1) // 2
    Ho = (H + 2 * pad - k) // stride + 1
    Wo = (W + 2 * pad - k) // stride + 1
    xp = jnp.pad(x, ((0, 0), (pad, pad), (pad, pad), (0, 0)))
    oh = np.arange(Ho) * stride - pad
    ow = np.arange(Wo) * stride - pad
    taps, masks = [], []
    for dy in range(k):
        for dx in range(k):
            t = xp[:, dy:dy + (Ho - 1) * stride + 1:stride,
                      dx:dx + (Wo - 1) * stride + 1:stride, :]
            taps.append(t.reshape(N * Ho * Wo, C))
            v = np.outer((oh + dy >= 0) & (oh + dy < H),
                         (ow + dx >= 0) & (ow + dx < W)).astype(np.float32)
            masks.append(np.broadcast_to(v[None], (N, Ho, Wo)).reshape(N * Ho * Wo, 1))
    patches = jnp.concatenate(taps, axis=0)                       # (kk*M, Cpad)
    mask = jnp.asarray(np.concatenate(masks, axis=0))             # (kk*M, 1) compile-time const
    return patches, mask, Ho, Wo


def _pool_mats(nbatch, hw):
    """(N, N*hw) mean-pool matrix and (N*hw, N) broadcast-back matrix (constants)."""
    sel = np.zeros((nbatch * hw, nbatch), np.float32)
    for n in range(nbatch):
        sel[n * hw:(n + 1) * hw, n] = 1.0
    return jnp.asarray(sel.T / hw), jnp.asarray(sel)


def _first_conv(x, prm):
    N, H, W, C = x.shape
    k, pad = 3, 1
    Ho, Wo = H, W
    xp = jnp.pad(x, ((0, 0), (pad, pad), (pad, pad), (0, 0)))
    cols = [xp[:, dy:dy + Ho, dx:dx + Wo, :] for dy in range(k) for dx in range(k)]
    p = jnp.concatenate(cols, axis=-1).reshape(N * Ho * Wo, k * k * C)
    p = jnp.pad(p, ((0, 0), (0, LANE - k * k * C)))               # lane-pad K: 27 -> 128
    out = pl.pallas_call(
        _first_conv_kernel,
        out_shape=jax.ShapeDtypeStruct((N * Ho * Wo, LANE), jnp.float32),
        in_specs=[VMEM_SPEC] * 3,
        out_specs=VMEM_SPEC,
    )(p, prm['w'], prm['b'])
    return out.reshape(N, Ho, Wo, LANE)


def _mbv3_block(x, blk, cfg):
    cin, cmid, cout, stride, k, se_flag = cfg
    N = x.shape[0]
    patches, mask, Ho, Wo = _patches_tap_major(x, k, stride)
    m = N * Ho * Wo
    kk = k * k
    shortcut = (cin == cout and stride == 1)
    center = (k // 2) * k + (k // 2)

    args = [patches, mask, blk['we'], blk['be'], blk['wd'], blk['bd']]
    if se_flag:
        pool, bcast = _pool_mats(N, Ho * Wo)
        args += [blk['w1'], blk['b1'], blk['w2'], blk['b2'], pool, bcast]
    args += [blk['wp'], blk['bp']]

    out = pl.pallas_call(
        functools.partial(_block_kernel, kk=kk, m=m, has_se=se_flag,
                          shortcut=shortcut, center=center),
        out_shape=jax.ShapeDtypeStruct((m, LANE), jnp.float32),
        in_specs=[VMEM_SPEC] * len(args),
        out_specs=VMEM_SPEC,
    )(*args)
    return out.reshape(N, Ho, Wo, LANE)


def _head(x, prm):
    N, Ho, Wo, C = x.shape
    pool, _ = _pool_mats(N, Ho * Wo)
    out = pl.pallas_call(
        _head_kernel,
        out_shape=jax.ShapeDtypeStruct((N, prm['w2'].shape[1]), jnp.float32),
        in_specs=[VMEM_SPEC] * 6,
        out_specs=VMEM_SPEC,
    )(x.reshape(N * Ho * Wo, C), pool, prm['w1'], prm['b1'], prm['w2'], prm['b2'])
    return out[:, :NUM_EMB]


def mobilenet_v3_like(params, x_nchw):
    x = jnp.transpose(x_nchw, (0, 2, 3, 1)).astype(jnp.float32)   # NCHW -> NHWC
    x = _first_conv(x, params['first'])
    for cfg, blk in zip(BLOCK_CFG, params['blocks']):
        x = _mbv3_block(x, blk, cfg)
    return _head(x, params['head'])


# --------------------------- parameter init --------------------------------
# BN is folded (scale into weights, bias separate); everything is zero-padded
# to lane-dense (multiple-of-128) channel counts.  Padded lanes stay exactly 0
# through the whole network because weights/biases are zero there.

def _fold_bn(key, c):
    kg, kb, km, kv = jax.random.split(key, 4)
    gamma = 1.0 + 0.1 * jax.random.normal(kg, (c,), jnp.float32)
    beta = 0.1 * jax.random.normal(kb, (c,), jnp.float32)
    mean = 0.1 * jax.random.normal(km, (c,), jnp.float32)
    var = jax.random.uniform(kv, (c,), jnp.float32, 0.5, 1.5)
    scale = gamma / jnp.sqrt(var + 1e-5)
    bias = beta - mean * scale
    return scale, bias


def _pad2(w, rows, cols):
    return jnp.pad(w, ((0, rows - w.shape[0]), (0, cols - w.shape[1])))


def _init_convbn(key, k_in, c_out, k_in_pad, c_out_pad):
    kw, kbn = jax.random.split(key)
    w = jax.random.normal(kw, (k_in, c_out), jnp.float32) / np.sqrt(k_in)
    scale, bias = _fold_bn(kbn, c_out)
    return {'w': _pad2(w * scale[None, :], k_in_pad, c_out_pad),
            'b': _pad2(bias[None, :], 1, c_out_pad)}


def _init_dwbn(key, kk, c, c_pad):
    kw, kbn = jax.random.split(key)
    w = jax.random.normal(kw, (kk, c), jnp.float32) / np.sqrt(kk)
    scale, bias = _fold_bn(kbn, c)
    return {'w': _pad2(w * scale[None, :], kk, c_pad).reshape(kk, 1, c_pad),
            'b': _pad2(bias[None, :], 1, c_pad)}


def _init_se(key, c, c_pad, cr_pad=LANE):
    cr = c // 4
    k1, k2, k3, k4 = jax.random.split(key, 4)
    w1 = jax.random.normal(k1, (c, cr), jnp.float32) / np.sqrt(c)
    b1 = 0.1 * jax.random.normal(k2, (1, cr), jnp.float32)
    w2 = jax.random.normal(k3, (cr, c), jnp.float32) / np.sqrt(cr)
    b2 = 0.1 * jax.random.normal(k4, (1, c), jnp.float32)
    return {'w1': _pad2(w1, c_pad, cr_pad), 'b1': _pad2(b1, 1, cr_pad),
            'w2': _pad2(w2, cr_pad, c_pad), 'b2': _pad2(b2, 1, c_pad)}


def _init_head(key, c_in=48, hidden=480, num_out=NUM_EMB):
    hid_pad, out_pad = _rup(hidden), _rup(num_out)
    k1, k2, k3, k4 = jax.random.split(key, 4)
    w1 = jax.random.normal(k1, (c_in, hidden), jnp.float32) / np.sqrt(c_in)
    b1 = 0.1 * jax.random.normal(k2, (1, hidden), jnp.float32)
    w2 = jax.random.normal(k3, (hidden, num_out), jnp.float32) / np.sqrt(hidden)
    b2 = 0.1 * jax.random.normal(k4, (1, num_out), jnp.float32)
    return {'w1': _pad2(w1, LANE, hid_pad), 'b1': _pad2(b1, 1, hid_pad),
            'w2': _pad2(w2, hid_pad, out_pad), 'b2': _pad2(b2, 1, out_pad)}


def init_params(key):
    keys = jax.random.split(key, 2 + len(BLOCK_CFG))
    params = {'first': _init_convbn(keys[0], 9 * IN_CH, 16, LANE, LANE)}
    blocks = []
    for i, (cin, cmid, cout, stride, k, se_flag) in enumerate(BLOCK_CFG):
        cp = _rup(cmid)
        bk = jax.random.split(keys[1 + i], 4)
        ex = _init_convbn(bk[0], cin, cmid, LANE, cp)
        dw = _init_dwbn(bk[1], k * k, cmid, cp)
        pj = _init_convbn(bk[2], cmid, cout, cp, LANE)
        blk = {'we': ex['w'], 'be': ex['b'],
               'wd': dw['w'], 'bd': dw['b'],
               'wp': pj['w'], 'bp': pj['b']}
        if se_flag:
            blk.update(_init_se(bk[3], cmid, cp))
        blocks.append(blk)
    params['blocks'] = blocks
    params['head'] = _init_head(keys[-1])
    return params


# --------------------------------- main -------------------------------------

if __name__ == "__main__":
    key = jax.random.PRNGKey(0)
    kx, kp = jax.random.split(key)
    x = jax.random.normal(kx, (2, IN_CH, 16, 16), jnp.float32)   # NCHW, like PyTorch
    params = init_params(kp)

    model = jax.jit(mobilenet_v3_like)
    out = jax.block_until_ready(model(params, x))
    assert out.shape == (2, NUM_EMB), out.shape
    assert bool(jnp.all(jnp.isfinite(out)))
    print("KERNEL_OK")
</pallas_src>

<mosaic_0001>
module attributes {stable_mosaic.version = 11 : i64} {
  func.func @_first_conv_kernel(%arg0: memref<512x128xf32, #tpu.memory_space<vmem>>, %arg1: memref<128x128xf32, #tpu.memory_space<vmem>>, %arg2: memref<1x128xf32, #tpu.memory_space<vmem>>, %arg3: memref<512x128xf32, #tpu.memory_space<vmem>>) attributes {dimension_semantics = [], scalar_prefetch = 0 : i64, scratch_operands = 0 : i64, tpu.core_type = #tpu.core_type<tc>} {
    %c0 = arith.constant 0 : index
    %c0_0 = arith.constant 0 : index
    %0 = vector.load %arg0[%c0, %c0_0] : memref<512x128xf32, #tpu.memory_space<vmem>>, vector<512x128xf32>
    %c0_1 = arith.constant 0 : index
    %c0_2 = arith.constant 0 : index
    %1 = vector.load %arg1[%c0_1, %c0_2] : memref<128x128xf32, #tpu.memory_space<vmem>>, vector<128x128xf32>
    %cst = arith.constant dense<0.000000e+00> : vector<512x128xf32>
    %2 = tpu.matmul %0, %1, %cst {dimension_numbers = #tpu.dot_dimension_numbers<[1], [0], [0], [1], [0, 0, 1, 1], [], []>} : vector<512x128xf32>, vector<128x128xf32>, vector<512x128xf32> -> vector<512x128xf32>
    %c0_3 = arith.constant 0 : index
    %c0_4 = arith.constant 0 : index
    %3 = vector.load %arg2[%c0_3, %c0_4] : memref<1x128xf32, #tpu.memory_space<vmem>>, vector<1x128xf32>
    %4 = vector.broadcast %3 : vector<1x128xf32> to vector<512x128xf32>
    %5 = arith.addf %2, %4 : vector<512x128xf32>
    %cst_5 = arith.constant 0.000000e+00 : f32
    %cst_6 = arith.constant 6.000000e+00 : f32
    %6 = vector.broadcast %cst_5 : f32 to vector<512x128xf32>
    %7 = arith.maximumf %6, %5 : vector<512x128xf32>
    %8 = vector.broadcast %cst_6 : f32 to vector<512x128xf32>
    %9 = arith.minimumf %8, %7 : vector<512x128xf32>
    %c0_7 = arith.constant 0 : index
    %c0_8 = arith.constant 0 : index
    %10 = vector.load %arg3[%c0_7, %c0_8] : memref<512x128xf32, #tpu.memory_space<vmem>>, vector<512x128xf32>
    tpu.vector_store %arg3[%c0_7, %c0_8], %9 {strides = array<i32>} : memref<512x128xf32, #tpu.memory_space<vmem>>, vector<512x128xf32>,
    return
  }
}

module attributes {stable_mosaic.version = 11 : i64} {
  func.func @_block_kernel(%arg0: memref<1152x128xf32, #tpu.memory_space<vmem>>, %arg1: memref<1152x1xf32, #tpu.memory_space<vmem>>, %arg2: memref<128x128xf32, #tpu.memory_space<vmem>>, %arg3: memref<1x128xf32, #tpu.memory_space<vmem>>, %arg4: memref<9x1x128xf32, #tpu.memory_space<vmem>>, %arg5: memref<1x128xf32, #tpu.memory_space<vmem>>, %arg6: memref<128x128xf32, #tpu.memory_space<vmem>>, %arg7: memref<1x128xf32, #tpu.memory_space<vmem>>, %arg8: memref<128x128xf32, #tpu.memory_space<vmem>>, %arg9: memref<1x128xf32, #tpu.memory_space<vmem>>, %arg10: memref<2x128xf32, #tpu.memory_space<vmem>>, %arg11: memref<128x2xf32, #tpu.memory_space<vmem>>, %arg12: memref<128x128xf32, #tpu.memory_space<vmem>>, %arg13: memref<1x128xf32, #tpu.memory_space<vmem>>, %arg14: memref<128x128xf32, #tpu.memory_space<vmem>>) attributes {dimension_semantics = [], scalar_prefetch = 0 : i64, scratch_operands = 0 : i64, tpu.core_type = #tpu.core_type<tc>} {
    %c0 = arith.constant 0 : index
    %c0_0 = arith.constant 0 : index
    %0 = vector.load %arg0[%c0, %c0_0] : memref<1152x128xf32, #tpu.memory_space<vmem>>, vector<1152x128xf32>
    %c0_1 = arith.constant 0 : index
    %c0_2 = arith.constant 0 : index
    %1 = vector.load %arg2[%c0_1, %c0_2] : memref<128x128xf32, #tpu.memory_space<vmem>>, vector<128x128xf32>
    %cst = arith.constant dense<0.000000e+00> : vector<1152x128xf32>
    %2 = tpu.matmul %0, %1, %cst {dimension_numbers = #tpu.dot_dimension_numbers<[1], [0], [0], [1], [0, 0, 1, 1], [], []>} : vector<1152x128xf32>, vector<128x128xf32>, vector<1152x128xf32> -> vector<1152x128xf32>
    %c0_3 = arith.constant 0 : index
    %c0_4 = arith.constant 0 : index
    %3 = vector.load %arg3[%c0_3, %c0_4] : memref<1x128xf32, #tpu.memory_space<vmem>>, vector<1x128xf32>
    %4 = vector.broadcast %3 : vector<1x128xf32> to vector<1152x128xf32>
    %5 = arith.addf %2, %4 : vector<1152x128xf32>
    %cst_5 = arith.constant 0.000000e+00 : f32
    %cst_6 = arith.constant 6.000000e+00 : f32
    %6 = vector.broadcast %cst_5 : f32 to vector<1152x128xf32>
    %7 = arith.maximumf %6, %5 : vector<1152x128xf32>
    %8 = vector.broadcast %cst_6 : f32 to vector<1152x128xf32>
    %9 = arith.minimumf %8, %7 : vector<1152x128xf32>
    %c0_7 = arith.constant 0 : index
    %c0_8 = arith.constant 0 : index
    %10 = vector.load %arg1[%c0_7, %c0_8] : memref<1152x1xf32, #tpu.memory_space<vmem>>, vector<1152x1xf32>
    %11 = vector.broadcast %10 : vector<1152x1xf32> to vector<1152x128xf32>
    %12 = arith.mulf %9, %11 : vector<1152x128xf32>
    %13 = vector.extract_strided_slice %12 {offsets = [0, 0], sizes = [128, 128], strides = [1, 1]} : vector<1152x128xf32> to vector<128x128xf32>
    %c0_9 = arith.constant 0 : index
    %c0_10 = arith.constant 0 : index
    %c0_11 = arith.constant 0 : index
    %14 = vector.load %arg4[%c0_9, %c0_10, %c0_11] : memref<9x1x128xf32, #tpu.memory_space<vmem>>, vector<1x1x128xf32>
    %15 = vector.shape_cast %14 : vector<1x1x128xf32> to vector<1x128xf32>
    %16 = vector.broadcast %15 : vector<1x128xf32> to vector<128x128xf32>
    %17 = arith.mulf %13, %16 : vector<128x128xf32>
    %18 = vector.extract_strided_slice %12 {offsets = [128, 0], sizes = [128, 128], strides = [1, 1]} : vector<1152x128xf32> to vector<128x128xf32>
    %c1 = arith.constant 1 : index
    %c0_12 = arith.constant 0 : index
    %c0_13 = arith.constant 0 : index
    %19 = vector.load %arg4[%c1, %c0_12, %c0_13] : memref<9x1x128xf32, #tpu.memory_space<vmem>>, vector<1x1x128xf32>
    %20 = vector.shape_cast %19 : vector<1x1x128xf32> to vector<1x128xf32>
    %21 = vector.broadcast %20 : vector<1x128xf32> to vector<128x128xf32>
    %22 = arith.mulf %18, %21 : vector<128x128xf32>
    %23 = arith.addf %17, %22 : vector<128x128xf32>
    %24 = vector.extract_strided_slice %12 {offsets = [256, 0], sizes = [128, 128], strides = [1, 1]} : vector<1152x128xf32> to vector<128x128xf32>
    %c2 = arith.constant 2 : index
    %c0_14 = arith.constant 0 : index
    %c0_15 = arith.constant 0 : index
    %25 = vector.load %arg4[%c2, %c0_14, %c0_15] : memref<9x1x128xf32, #tpu.memory_space<vmem>>, vector<1x1x128xf32>
    %26 = vector.shape_cast %25 : vector<1x1x128xf32> to vector<1x128xf32>
    %27 = vector.broadcast %26 : vector<1x128xf32> to vector<128x128xf32>
    %28 = arith.mulf %24, %27 : vector<128x128xf32>
    %29 = arith.addf %23, %28 : vector<128x128xf32>
    %30 = vector.extract_strided_slice %12 {offsets = [384, 0], sizes = [128, 128], strides = [1, 1]} : vector<1152x128xf32> to vector<128x128xf32>
    %c3 = arith.constant 3 : index
    %c0_16 = arith.constant 0 : index
    %c0_17 = arith.constant 0 : index
    %31 = vector.load %arg4[%c3, %c0_16, %c0_17] : memref<9x1x128xf32, #tpu.memory_space<vmem>>, vector<1x1x128xf32>
    %32 = vector.shape_cast %31 : vector<1x1x128xf32> to vector<1x128xf32>
    %33 = vector.broadcast %32 : vector<1x128xf32> to vector<128x128xf32>
    %34 = arith.mulf %30, %33 : vector<128x128xf32>
    %35 = arith.addf %29, %34 : vector<128x128xf32>
    %36 = vector.extract_strided_slice %12 {offsets = [512, 0], sizes = [128, 128], strides = [1, 1]} : vector<1152x128xf32> to vector<128x128xf32>
    %c4 = arith.constant 4 : index
    %c0_18 = arith.constant 0 : index
    %c0_19 = arith.constant 0 : index
    %37 = vector.load %arg4[%c4, %c0_18, %c0_19] : memref<9x1x128xf32, #tpu.memory_space<vmem>>, vector<1x1x128xf32>
    %38 = vector.shape_cast %37 : vector<1x1x128xf32> to vector<1x128xf32>
    %39 = vector.broadcast %38 : vector<1x128xf32> to vector<128x128xf32>
    %40 = arith.mulf %36, %39 : vector<128x128xf32>
    %41 = arith.addf %35, %40 : vector<128x128xf32>
    %42 = vector.extract_strided_slice %12 {offsets = [640, 0], sizes = [128, 128], strides = [1, 1]} : vector<1152x128xf32> to vector<128x128xf32>
    %c5 = arith.constant 5 : index
    %c0_20 = arith.constant 0 : index
    %c0_21 = arith.constant 0 : index
    %43 = vector.load %arg4[%c5, %c0_20, %c0_21] : memref<9x1x128xf32, #tpu.memory_space<vmem>>, vector<1x1x128xf32>
    %44 = vector.shape_cast %43 : vector<1x1x128xf32> to vector<1x128xf32>
    %45 = vector.broadcast %44 : vector<1x128xf32> to vector<128x128xf32>
    %46 = arith.mulf %42, %45 : vector<128x128xf32>
    %47 = arith.addf %41, %46 : vector<128x128xf32>
    %48 = vector.extract_strided_slice %12 {offsets = [768, 0], sizes = [128, 128], strides = [1, 1]} : vector<1152x128xf32> to vector<128x128xf32>
    %c6 = arith.constant 6 : index
    %c0_22 = arith.constant 0 : index
    %c0_23 = arith.constant 0 : index
    %49 = vector.load %arg4[%c6, %c0_22, %c0_23] : memref<9x1x128xf32, #tpu.memory_space<vmem>>, vector<1x1x128xf32>
    %50 = vector.shape_cast %49 : vector<1x1x128xf32> to vector<1x128xf32>
    %51 = vector.broadcast %50 : vector<1x128xf32> to vector<128x128xf32>
    %52 = arith.mulf %48, %51 : vector<128x128xf32>
    %53 = arith.addf %47, %52 : vector<128x128xf32>
    %54 = vector.extract_strided_slice %12 {offsets = [896, 0], sizes = [128, 128], strides = [1, 1]} : vector<1152x128xf32> to vector<128x128xf32>
    %c7 = arith.constant 7 : index
    %c0_24 = arith.constant 0 : index
    %c0_25 = arith.constant 0 : index
    %55 = vector.load %arg4[%c7, %c0_24, %c0_25] : memref<9x1x128xf32, #tpu.memory_space<vmem>>, vector<1x1x128xf32>
    %56 = vector.shape_cast %55 : vector<1x1x128xf32> to vector<1x128xf32>
    %57 = vector.broadcast %56 : vector<1x128xf32> to vector<128x128xf32>
    %58 = arith.mulf %54, %57 : vector<128x128xf32>
    %59 = arith.addf %53, %58 : vector<128x128xf32>
    %60 = vector.extract_strided_slice %12 {offsets = [1024, 0], sizes = [128, 128], strides = [1, 1]} : vector<1152x128xf32> to vector<128x128xf32>
    %c8 = arith.constant 8 : index
    %c0_26 = arith.constant 0 : index
    %c0_27 = arith.constant 0 : index
    %61 = vector.load %arg4[%c8, %c0_26, %c0_27] : memref<9x1x128xf32, #tpu.memory_space<vmem>>, vector<1x1x128xf32>
    %62 = vector.shape_cast %61 : vector<1x1x128xf32> to vector<1x128xf32>
    %63 = vector.broadcast %62 : vector<1x128xf32> to vector<128x128xf32>
    %64 = arith.mulf %60, %63 : vector<128x128xf32>
    %65 = arith.addf %59, %64 : vector<128x128xf32>
    %c0_28 = arith.constant 0 : index
    %c0_29 = arith.constant 0 : index
    %66 = vector.load %arg5[%c0_28, %c0_29] : memref<1x128xf32, #tpu.memory_space<vmem>>, vector<1x128xf32>
    %67 = vector.broadcast %66 : vector<1x128xf32> to vector<128x128xf32>
    %68 = arith.addf %65, %67 : vector<128x128xf32>
    %cst_30 = arith.constant 0.000000e+00 : f32
    %cst_31 = arith.constant 6.000000e+00 : f32
    %69 = vector.broadcast %cst_30 : f32 to vector<128x128xf32>
    %70 = arith.maximumf %69, %68 : vector<128x128xf32>
    %71 = vector.broadcast %cst_31 : f32 to vector<128x128xf32>
    %72 = arith.minimumf %71, %70 : vector<128x128xf32>
    %c0_32 = arith.constant 0 : index
    %c0_33 = arith.constant 0 : index
    %73 = vector.load %arg10[%c0_32, %c0_33] : memref<2x128xf32, #tpu.memory_space<vmem>>, vector<2x128xf32>
    %cst_34 = arith.constant dense<0.000000e+00> : vector<2x128xf32>
    %74 = tpu.matmul %73, %72, %cst_34 {dimension_numbers = #tpu.dot_dimension_numbers<[1], [0], [0], [1], [0, 0, 1, 1], [], []>} : vector<2x128xf32>, vector<128x128xf32>, vector<2x128xf32> -> vector<2x128xf32>
    %c0_35 = arith.constant 0 : index
    %c0_36 = arith.constant 0 : index
    %75 = vector.load %arg6[%c0_35, %c0_36] : memref<128x128xf32, #tpu.memory_space<vmem>>, vector<128x128xf32>
    %cst_37 = arith.constant dense<0.000000e+00> : vector<2x128xf32>
    %76 = tpu.matmul %74, %75, %cst_37 {dimension_numbers = #tpu.dot_dimension_numbers<[1], [0], [0], [1], [0, 0, 1, 1], [], []>} : vector<2x128xf32>, vector<128x128xf32>, vector<2x128xf32> -> vector<2x128xf32>
    %c0_38 = arith.constant 0 : index
    %c0_39 = arith.constant 0 : index
    %77 = vector.load %arg7[%c0_38, %c0_39] : memref<1x128xf32, #tpu.memory_space<vmem>>, vector<1x128xf32>
    %78 = vector.broadcast %77 : vector<1x128xf32> to vector<2x128xf32>
    %79 = arith.addf %76, %78 : vector<2x128xf32>
    %cst_40 = arith.constant 0.000000e+00 : f32
    %80 = vector.broadcast %cst_40 : f32 to vector<2x128xf32>
    %81 = arith.maximumf %79, %80 : vector<2x128xf32>
    %c0_41 = arith.constant 0 : index
    %c0_42 = arith.constant 0 : index
    %82 = vector.load %arg8[%c0_41, %c0_42] : memref<128x128xf32, #tpu.memory_space<vmem>>, vector<128x128xf32>
    %cst_43 = arith.constant dense<0.000000e+00> : vector<2x128xf32>
    %83 = tpu.matmul %81, %82, %cst_43 {dimension_numbers = #tpu.dot_dimension_numbers<[1], [0], [0], [1], [0, 0, 1, 1], [], []>} : vector<2x128xf32>, vector<128x128xf32>, vector<2x128xf32> -> vector<2x128xf32>
    %c0_44 = arith.constant 0 : index
    %c0_45 = arith.constant 0 : index
    %84 = vector.load %arg9[%c0_44, %c0_45] : memref<1x128xf32, #tpu.memory_space<vmem>>, vector<1x128xf32>
    %85 = vector.broadcast %84 : vector<1x128xf32> to vector<2x128xf32>
    %86 = arith.addf %83, %85 : vector<2x128xf32>
    %cst_46 = arith.constant 3.000000e+00 : f32
    %87 = vector.broadcast %cst_46 : f32 to vector<2x128xf32>
    %88 = arith.addf %86, %87 : vector<2x128xf32>
    %cst_47 = arith.constant 0.000000e+00 : f32
    %cst_48 = arith.constant 6.000000e+00 : f32
    %89 = vector.broadcast %cst_47 : f32 to vector<2x128xf32>
    %90 = arith.maximumf %89, %88 : vector<2x128xf32>
    %91 = vector.broadcast %cst_48 : f32 to vector<2x128xf32>
    %92 = arith.minimumf %91, %90 : vector<2x128xf32>
    %cst_49 = arith.constant 0.166666672 : f32
    %93 = vector.broadcast %cst_49 : f32 to vector<2x128xf32>
    %94 = arith.mulf %92, %93 : vector<2x128xf32>
    %c0_50 = arith.constant 0 : index
    %c0_51 = arith.constant 0 : index
    %95 = vector.load %arg11[%c0_50, %c0_51] : memref<128x2xf32, #tpu.memory_space<vmem>>, vector<128x2xf32>
    %cst_52 = arith.constant dense<0.000000e+00> : vector<128x128xf32>
    %96 = tpu.matmul %95, %94, %cst_52 {dimension_numbers = #tpu.dot_dimension_numbers<[1], [0], [0], [1], [0, 0, 1, 1], [], []>} : vector<128x2xf32>, vector<2x128xf32>, vector<128x128xf32> -> vector<128x128xf32>
    %97 = arith.mulf %72, %96 : vector<128x128xf32>
    %c0_53 = arith.constant 0 : index
    %c0_54 = arith.constant 0 : index
    %98 = vector.load %arg12[%c0_53, %c0_54] : memref<128x128xf32, #tpu.memory_space<vmem>>, vector<128x128xf32>
    %cst_55 = arith.constant dense<0.000000e+00> : vector<128x128xf32>
    %99 = tpu.matmul %97, %98, %cst_55 {dimension_numbers = #tpu.dot_dimension_numbers<[1], [0], [0], [1], [0, 0, 1, 1], [], []>} : vector<128x128xf32>, vector<128x128xf32>, vector<128x128xf32> -> vector<128x128xf32>
    %c0_56 = arith.constant 0 : index
    %c0_57 = arith.constant 0 : index
    %100 = vector.load %arg13[%c0_56, %c0_57] : memref<1x128xf32, #tpu.memory_space<vmem>>, vector<1x128xf32>
    %101 = vector.broadcast %100 : vector<1x128xf32> to vector<128x128xf32>
    %102 = arith.addf %99, %101 : vector<128x128xf32>
    %c0_58 = arith.constant 0 : index
    %c0_59 = arith.constant 0 : index
    %103 = vector.load %arg14[%c0_58, %c0_59] : memref<128x128xf32, #tpu.memory_space<vmem>>, vector<128x128xf32>
    tpu.vector_store %arg14[%c0_58, %c0_59], %102 {strides = array<i32>} : memref<128x128xf32, #tpu.memory_space<vmem>>, vector<128x128xf32>,
    return
  }
}

module attributes {stable_mosaic.version = 11 : i64} {
  func.func @_block_kernel(%arg0: memref<288x128xf32, #tpu.memory_space<vmem>>, %arg1: memref<288x1xf32, #tpu.memory_space<vmem>>, %arg2: memref<128x128xf32, #tpu.memory_space<vmem>>, %arg3: memref<1x128xf32, #tpu.memory_space<vmem>>, %arg4: memref<9x1x128xf32, #tpu.memory_space<vmem>>, %arg5: memref<1x128xf32, #tpu.memory_space<vmem>>, %arg6: memref<128x128xf32, #tpu.memory_space<vmem>>, %arg7: memref<1x128xf32, #tpu.memory_space<vmem>>, %arg8: memref<32x128xf32, #tpu.memory_space<vmem>>) attributes {dimension_semantics = [], scalar_prefetch = 0 : i64, scratch_operands = 0 : i64, tpu.core_type = #tpu.core_type<tc>} {
    %c0 = arith.constant 0 : index
    %c0_0 = arith.constant 0 : index
    %0 = vector.load %arg0[%c0, %c0_0] : memref<288x128xf32, #tpu.memory_space<vmem>>, vector<288x128xf32>
    %c0_1 = arith.constant 0 : index
    %c0_2 = arith.constant 0 : index
    %1 = vector.load %arg2[%c0_1, %c0_2] : memref<128x128xf32, #tpu.memory_space<vmem>>, vector<128x128xf32>
    %cst = arith.constant dense<0.000000e+00> : vector<288x128xf32>
    %2 = tpu.matmul %0, %1, %cst {dimension_numbers = #tpu.dot_dimension_numbers<[1], [0], [0], [1], [0, 0, 1, 1], [], []>} : vector<288x128xf32>, vector<128x128xf32>, vector<288x128xf32> -> vector<288x128xf32>
    %c0_3 = arith.constant 0 : index
    %c0_4 = arith.constant 0 : index
    %3 = vector.load %arg3[%c0_3, %c0_4] : memref<1x128xf32, #tpu.memory_space<vmem>>, vector<1x128xf32>
    %4 = vector.broadcast %3 : vector<1x128xf32> to vector<288x128xf32>
    %5 = arith.addf %2, %4 : vector<288x128xf32>
    %cst_5 = arith.constant 0.000000e+00 : f32
    %cst_6 = arith.constant 6.000000e+00 : f32
    %6 = vector.broadcast %cst_5 : f32 to vector<288x128xf32>
    %7 = arith.maximumf %6, %5 : vector<288x128xf32>
    %8 = vector.broadcast %cst_6 : f32 to vector<288x128xf32>
    %9 = arith.minimumf %8, %7 : vector<288x128xf32>
    %c0_7 = arith.constant 0 : index
    %c0_8 = arith.constant 0 : index
    %10 = vector.load %arg1[%c0_7, %c0_8] : memref<288x1xf32, #tpu.memory_space<vmem>>, vector<288x1xf32>
    %11 = vector.broadcast %10 : vector<288x1xf32> to vector<288x128xf32>
    %12 = arith.mulf %9, %11 : vector<288x128xf32>
    %13 = vector.extract_strided_slice %12 {offsets = [0, 0], sizes = [32, 128], strides = [1, 1]} : vector<288x128xf32> to vector<32x128xf32>
    %c0_9 = arith.constant 0 : index
    %c0_10 = arith.constant 0 : index
    %c0_11 = arith.constant 0 : index
    %14 = vector.load %arg4[%c0_9, %c0_10, %c0_11] : memref<9x1x128xf32, #tpu.memory_space<vmem>>, vector<1x1x128xf32>
    %15 = vector.shape_cast %14 : vector<1x1x128xf32> to vector<1x128xf32>
    %16 = vector.broadcast %15 : vector<1x128xf32> to vector<32x128xf32>
    %17 = arith.mulf %13, %16 : vector<32x128xf32>
    %18 = vector.extract_strided_slice %12 {offsets = [32, 0], sizes = [32, 128], strides = [1, 1]} : vector<288x128xf32> to vector<32x128xf32>
    %c1 = arith.constant 1 : index
    %c0_12 = arith.constant 0 : index
    %c0_13 = arith.constant 0 : index
    %19 = vector.load %arg4[%c1, %c0_12, %c0_13] : memref<9x1x128xf32, #tpu.memory_space<vmem>>, vector<1x1x128xf32>
    %20 = vector.shape_cast %19 : vector<1x1x128xf32> to vector<1x128xf32>
    %21 = vector.broadcast %20 : vector<1x128xf32> to vector<32x128xf32>
    %22 = arith.mulf %18, %21 : vector<32x128xf32>
    %23 = arith.addf %17, %22 : vector<32x128xf32>
    %24 = vector.extract_strided_slice %12 {offsets = [64, 0], sizes = [32, 128], strides = [1, 1]} : vector<288x128xf32> to vector<32x128xf32>
    %c2 = arith.constant 2 : index
    %c0_14 = arith.constant 0 : index
    %c0_15 = arith.constant 0 : index
    %25 = vector.load %arg4[%c2, %c0_14, %c0_15] : memref<9x1x128xf32, #tpu.memory_space<vmem>>, vector<1x1x128xf32>
    %26 = vector.shape_cast %25 : vector<1x1x128xf32> to vector<1x128xf32>
    %27 = vector.broadcast %26 : vector<1x128xf32> to vector<32x128xf32>
    %28 = arith.mulf %24, %27 : vector<32x128xf32>
    %29 = arith.addf %23, %28 : vector<32x128xf32>
    %30 = vector.extract_strided_slice %12 {offsets = [96, 0], sizes = [32, 128], strides = [1, 1]} : vector<288x128xf32> to vector<32x128xf32>
    %c3 = arith.constant 3 : index
    %c0_16 = arith.constant 0 : index
    %c0_17 = arith.constant 0 : index
    %31 = vector.load %arg4[%c3, %c0_16, %c0_17] : memref<9x1x128xf32, #tpu.memory_space<vmem>>, vector<1x1x128xf32>
    %32 = vector.shape_cast %31 : vector<1x1x128xf32> to vector<1x128xf32>
    %33 = vector.broadcast %32 : vector<1x128xf32> to vector<32x128xf32>
    %34 = arith.mulf %30, %33 : vector<32x128xf32>
    %35 = arith.addf %29, %34 : vector<32x128xf32>
    %36 = vector.extract_strided_slice %12 {offsets = [128, 0], sizes = [32, 128], strides = [1, 1]} : vector<288x128xf32> to vector<32x128xf32>
    %c4 = arith.constant 4 : index
    %c0_18 = arith.constant 0 : index
    %c0_19 = arith.constant 0 : index
    %37 = vector.load %arg4[%c4, %c0_18, %c0_19] : memref<9x1x128xf32, #tpu.memory_space<vmem>>, vector<1x1x128xf32>
    %38 = vector.shape_cast %37 : vector<1x1x128xf32> to vector<1x128xf32>
    %39 = vector.broadcast %38 : vector<1x128xf32> to vector<32x128xf32>
    %40 = arith.mulf %36, %39 : vector<32x128xf32>
    %41 = arith.addf %35, %40 : vector<32x128xf32>
    %42 = vector.extract_strided_slice %12 {offsets = [160, 0], sizes = [32, 128], strides = [1, 1]} : vector<288x128xf32> to vector<32x128xf32>
    %c5 = arith.constant 5 : index
    %c0_20 = arith.constant 0 : index
    %c0_21 = arith.constant 0 : index
    %43 = vector.load %arg4[%c5, %c0_20, %c0_21] : memref<9x1x128xf32, #tpu.memory_space<vmem>>, vector<1x1x128xf32>
    %44 = vector.shape_cast %43 : vector<1x1x128xf32> to vector<1x128xf32>
    %45 = vector.broadcast %44 : vector<1x128xf32> to vector<32x128xf32>
    %46 = arith.mulf %42, %45 : vector<32x128xf32>
    %47 = arith.addf %41, %46 : vector<32x128xf32>
    %48 = vector.extract_strided_slice %12 {offsets = [192, 0], sizes = [32, 128], strides = [1, 1]} : vector<288x128xf32> to vector<32x128xf32>
    %c6 = arith.constant 6 : index
    %c0_22 = arith.constant 0 : index
    %c0_23 = arith.constant 0 : index
    %49 = vector.load %arg4[%c6, %c0_22, %c0_23] : memref<9x1x128xf32, #tpu.memory_space<vmem>>, vector<1x1x128xf32>
    %50 = vector.shape_cast %49 : vector<1x1x128xf32> to vector<1x128xf32>
    %51 = vector.broadcast %50 : vector<1x128xf32> to vector<32x128xf32>
    %52 = arith.mulf %48, %51 : vector<32x128xf32>
    %53 = arith.addf %47, %52 : vector<32x128xf32>
    %54 = vector.extract_strided_slice %12 {offsets = [224, 0], sizes = [32, 128], strides = [1, 1]} : vector<288x128xf32> to vector<32x128xf32>
    %c7 = arith.constant 7 : index
    %c0_24 = arith.constant 0 : index
    %c0_25 = arith.constant 0 : index
    %55 = vector.load %arg4[%c7, %c0_24, %c0_25] : memref<9x1x128xf32, #tpu.memory_space<vmem>>, vector<1x1x128xf32>
    %56 = vector.shape_cast %55 : vector<1x1x128xf32> to vector<1x128xf32>
    %57 = vector.broadcast %56 : vector<1x128xf32> to vector<32x128xf32>
    %58 = arith.mulf %54, %57 : vector<32x128xf32>
    %59 = arith.addf %53, %58 : vector<32x128xf32>
    %60 = vector.extract_strided_slice %12 {offsets = [256, 0], sizes = [32, 128], strides = [1, 1]} : vector<288x128xf32> to vector<32x128xf32>
    %c8 = arith.constant 8 : index
    %c0_26 = arith.constant 0 : index
    %c0_27 = arith.constant 0 : index
    %61 = vector.load %arg4[%c8, %c0_26, %c0_27] : memref<9x1x128xf32, #tpu.memory_space<vmem>>, vector<1x1x128xf32>
    %62 = vector.shape_cast %61 : vector<1x1x128xf32> to vector<1x128xf32>
    %63 = vector.broadcast %62 : vector<1x128xf32> to vector<32x128xf32>
    %64 = arith.mulf %60, %63 : vector<32x128xf32>
    %65 = arith.addf %59, %64 : vector<32x128xf32>
    %c0_28 = arith.constant 0 : index
    %c0_29 = arith.constant 0 : index
    %66 = vector.load %arg5[%c0_28, %c0_29] : memref<1x128xf32, #tpu.memory_space<vmem>>, vector<1x128xf32>
    %67 = vector.broadcast %66 : vector<1x128xf32> to vector<32x128xf32>
    %68 = arith.addf %65, %67 : vector<32x128xf32>
    %cst_30 = arith.constant 0.000000e+00 : f32
    %cst_31 = arith.constant 6.000000e+00 : f32
    %69 = vector.broadcast %cst_30 : f32 to vector<32x128xf32>
    %70 = arith.maximumf %69, %68 : vector<32x128xf32>
    %71 = vector.broadcast %cst_31 : f32 to vector<32x128xf32>
    %72 = arith.minimumf %71, %70 : vector<32x128xf32>
    %c0_32 = arith.constant 0 : index
    %c0_33 = arith.constant 0 : index
    %73 = vector.load %arg6[%c0_32, %c0_33] : memref<128x128xf32, #tpu.memory_space<vmem>>, vector<128x128xf32>
    %cst_34 = arith.constant dense<0.000000e+00> : vector<32x128xf32>
    %74 = tpu.matmul %72, %73, %cst_34 {dimension_numbers = #tpu.dot_dimension_numbers<[1], [0], [0], [1], [0, 0, 1, 1], [], []>} : vector<32x128xf32>, vector<128x128xf32>, vector<32x128xf32> -> vector<32x128xf32>
    %c0_35 = arith.constant 0 : index
    %c0_36 = arith.constant 0 : index
    %75 = vector.load %arg7[%c0_35, %c0_36] : memref<1x128xf32, #tpu.memory_space<vmem>>, vector<1x128xf32>
    %76 = vector.broadcast %75 : vector<1x128xf32> to vector<32x128xf32>
    %77 = arith.addf %74, %76 : vector<32x128xf32>
    %c128 = arith.constant 128 : index
    %c0_37 = arith.constant 0 : index
    %78 = vector.load %arg0[%c128, %c0_37] : memref<288x128xf32, #tpu.memory_space<vmem>>, vector<32x128xf32>
    %79 = arith.addf %77, %78 : vector<32x128xf32>
    %c0_38 = arith.constant 0 : index
    %c0_39 = arith.constant 0 : index
    %80 = vector.load %arg8[%c0_38, %c0_39] : memref<32x128xf32, #tpu.memory_space<vmem>>, vector<32x128xf32>
    tpu.vector_store %arg8[%c0_38, %c0_39], %79 {strides = array<i32>} : memref<32x128xf32, #tpu.memory_space<vmem>>, vector<32x128xf32>,
    return
  }
}

module attributes {stable_mosaic.version = 11 : i64} {
  func.func @_block_kernel(%arg0: memref<288x128xf32, #tpu.memory_space<vmem>>, %arg1: memref<288x1xf32, #tpu.memory_space<vmem>>, %arg2: memref<128x128xf32, #tpu.memory_space<vmem>>, %arg3: memref<1x128xf32, #tpu.memory_space<vmem>>, %arg4: memref<9x1x128xf32, #tpu.memory_space<vmem>>, %arg5: memref<1x128xf32, #tpu.memory_space<vmem>>, %arg6: memref<128x128xf32, #tpu.memory_space<vmem>>, %arg7: memref<1x128xf32, #tpu.memory_space<vmem>>, %arg8: memref<32x128xf32, #tpu.memory_space<vmem>>) attributes {dimension_semantics = [], scalar_prefetch = 0 : i64, scratch_operands = 0 : i64, tpu.core_type = #tpu.core_type<tc>} {
    %c0 = arith.constant 0 : index
    %c0_0 = arith.constant 0 : index
    %0 = vector.load %arg0[%c0, %c0_0] : memref<288x128xf32, #tpu.memory_space<vmem>>, vector<288x128xf32>
    %c0_1 = arith.constant 0 : index
    %c0_2 = arith.constant 0 : index
    %1 = vector.load %arg2[%c0_1, %c0_2] : memref<128x128xf32, #tpu.memory_space<vmem>>, vector<128x128xf32>
    %cst = arith.constant dense<0.000000e+00> : vector<288x128xf32>
    %2 = tpu.matmul %0, %1, %cst {dimension_numbers = #tpu.dot_dimension_numbers<[1], [0], [0], [1], [0, 0, 1, 1], [], []>} : vector<288x128xf32>, vector<128x128xf32>, vector<288x128xf32> -> vector<288x128xf32>
    %c0_3 = arith.constant 0 : index
    %c0_4 = arith.constant 0 : index
    %3 = vector.load %arg3[%c0_3, %c0_4] : memref<1x128xf32, #tpu.memory_space<vmem>>, vector<1x128xf32>
    %4 = vector.broadcast %3 : vector<1x128xf32> to vector<288x128xf32>
    %5 = arith.addf %2, %4 : vector<288x128xf32>
    %cst_5 = arith.constant 0.000000e+00 : f32
    %cst_6 = arith.constant 6.000000e+00 : f32
    %6 = vector.broadcast %cst_5 : f32 to vector<288x128xf32>
    %7 = arith.maximumf %6, %5 : vector<288x128xf32>
    %8 = vector.broadcast %cst_6 : f32 to vector<288x128xf32>
    %9 = arith.minimumf %8, %7 : vector<288x128xf32>
    %c0_7 = arith.constant 0 : index
    %c0_8 = arith.constant 0 : index
    %10 = vector.load %arg1[%c0_7, %c0_8] : memref<288x1xf32, #tpu.memory_space<vmem>>, vector<288x1xf32>
    %11 = vector.broadcast %10 : vector<288x1xf32> to vector<288x128xf32>
    %12 = arith.mulf %9, %11 : vector<288x128xf32>
    %13 = vector.extract_strided_slice %12 {offsets = [0, 0], sizes = [32, 128], strides = [1, 1]} : vector<288x128xf32> to vector<32x128xf32>
    %c0_9 = arith.constant 0 : index
    %c0_10 = arith.constant 0 : index
    %c0_11 = arith.constant 0 : index
    %14 = vector.load %arg4[%c0_9, %c0_10, %c0_11] : memref<9x1x128xf32, #tpu.memory_space<vmem>>, vector<1x1x128xf32>
    %15 = vector.shape_cast %14 : vector<1x1x128xf32> to vector<1x128xf32>
    %16 = vector.broadcast %15 : vector<1x128xf32> to vector<32x128xf32>
    %17 = arith.mulf %13, %16 : vector<32x128xf32>
    %18 = vector.extract_strided_slice %12 {offsets = [32, 0], sizes = [32, 128], strides = [1, 1]} : vector<288x128xf32> to vector<32x128xf32>
    %c1 = arith.constant 1 : index
    %c0_12 = arith.constant 0 : index
    %c0_13 = arith.constant 0 : index
    %19 = vector.load %arg4[%c1, %c0_12, %c0_13] : memref<9x1x128xf32, #tpu.memory_space<vmem>>, vector<1x1x128xf32>
    %20 = vector.shape_cast %19 : vector<1x1x128xf32> to vector<1x128xf32>
    %21 = vector.broadcast %20 : vector<1x128xf32> to vector<32x128xf32>
    %22 = arith.mulf %18, %21 : vector<32x128xf32>
    %23 = arith.addf %17, %22 : vector<32x128xf32>
    %24 = vector.extract_strided_slice %12 {offsets = [64, 0], sizes = [32, 128], strides = [1, 1]} : vector<288x128xf32> to vector<32x128xf32>
    %c2 = arith.constant 2 : index
    %c0_14 = arith.constant 0 : index
    %c0_15 = arith.constant 0 : index
    %25 = vector.load %arg4[%c2, %c0_14, %c0_15] : memref<9x1x128xf32, #tpu.memory_space<vmem>>, vector<1x1x128xf32>
    %26 = vector.shape_cast %25 : vector<1x1x128xf32> to vector<1x128xf32>
    %27 = vector.broadcast %26 : vector<1x128xf32> to vector<32x128xf32>
    %28 = arith.mulf %24, %27 : vector<32x128xf32>
    %29 = arith.addf %23, %28 : vector<32x128xf32>
    %30 = vector.extract_strided_slice %12 {offsets = [96, 0], sizes = [32, 128], strides = [1, 1]} : vector<288x128xf32> to vector<32x128xf32>
    %c3 = arith.constant 3 : index
    %c0_16 = arith.constant 0 : index
    %c0_17 = arith.constant 0 : index
    %31 = vector.load %arg4[%c3, %c0_16, %c0_17] : memref<9x1x128xf32, #tpu.memory_space<vmem>>, vector<1x1x128xf32>
    %32 = vector.shape_cast %31 : vector<1x1x128xf32> to vector<1x128xf32>
    %33 = vector.broadcast %32 : vector<1x128xf32> to vector<32x128xf32>
    %34 = arith.mulf %30, %33 : vector<32x128xf32>
    %35 = arith.addf %29, %34 : vector<32x128xf32>
    %36 = vector.extract_strided_slice %12 {offsets = [128, 0], sizes = [32, 128], strides = [1, 1]} : vector<288x128xf32> to vector<32x128xf32>
    %c4 = arith.constant 4 : index
    %c0_18 = arith.constant 0 : index
    %c0_19 = arith.constant 0 : index
    %37 = vector.load %arg4[%c4, %c0_18, %c0_19] : memref<9x1x128xf32, #tpu.memory_space<vmem>>, vector<1x1x128xf32>
    %38 = vector.shape_cast %37 : vector<1x1x128xf32> to vector<1x128xf32>
    %39 = vector.broadcast %38 : vector<1x128xf32> to vector<32x128xf32>
    %40 = arith.mulf %36, %39 : vector<32x128xf32>
    %41 = arith.addf %35, %40 : vector<32x128xf32>
    %42 = vector.extract_strided_slice %12 {offsets = [160, 0], sizes = [32, 128], strides = [1, 1]} : vector<288x128xf32> to vector<32x128xf32>
    %c5 = arith.constant 5 : index
    %c0_20 = arith.constant 0 : index
    %c0_21 = arith.constant 0 : index
    %43 = vector.load %arg4[%c5, %c0_20, %c0_21] : memref<9x1x128xf32, #tpu.memory_space<vmem>>, vector<1x1x128xf32>
    %44 = vector.shape_cast %43 : vector<1x1x128xf32> to vector<1x128xf32>
    %45 = vector.broadcast %44 : vector<1x128xf32> to vector<32x128xf32>
    %46 = arith.mulf %42, %45 : vector<32x128xf32>
    %47 = arith.addf %41, %46 : vector<32x128xf32>
    %48 = vector.extract_strided_slice %12 {offsets = [192, 0], sizes = [32, 128], strides = [1, 1]} : vector<288x128xf32> to vector<32x128xf32>
    %c6 = arith.constant 6 : index
    %c0_22 = arith.constant 0 : index
    %c0_23 = arith.constant 0 : index
    %49 = vector.load %arg4[%c6, %c0_22, %c0_23] : memref<9x1x128xf32, #tpu.memory_space<vmem>>, vector<1x1x128xf32>
    %50 = vector.shape_cast %49 : vector<1x1x128xf32> to vector<1x128xf32>
    %51 = vector.broadcast %50 : vector<1x128xf32> to vector<32x128xf32>
    %52 = arith.mulf %48, %51 : vector<32x128xf32>
    %53 = arith.addf %47, %52 : vector<32x128xf32>
    %54 = vector.extract_strided_slice %12 {offsets = [224, 0], sizes = [32, 128], strides = [1, 1]} : vector<288x128xf32> to vector<32x128xf32>
    %c7 = arith.constant 7 : index
    %c0_24 = arith.constant 0 : index
    %c0_25 = arith.constant 0 : index
    %55 = vector.load %arg4[%c7, %c0_24, %c0_25] : memref<9x1x128xf32, #tpu.memory_space<vmem>>, vector<1x1x128xf32>
    %56 = vector.shape_cast %55 : vector<1x1x128xf32> to vector<1x128xf32>
    %57 = vector.broadcast %56 : vector<1x128xf32> to vector<32x128xf32>
    %58 = arith.mulf %54, %57 : vector<32x128xf32>
    %59 = arith.addf %53, %58 : vector<32x128xf32>
    %60 = vector.extract_strided_slice %12 {offsets = [256, 0], sizes = [32, 128], strides = [1, 1]} : vector<288x128xf32> to vector<32x128xf32>
    %c8 = arith.constant 8 : index
    %c0_26 = arith.constant 0 : index
    %c0_27 = arith.constant 0 : index
    %61 = vector.load %arg4[%c8, %c0_26, %c0_27] : memref<9x1x128xf32, #tpu.memory_space<vmem>>, vector<1x1x128xf32>
    %62 = vector.shape_cast %61 : vector<1x1x128xf32> to vector<1x128xf32>
    %63 = vector.broadcast %62 : vector<1x128xf32> to vector<32x128xf32>
    %64 = arith.mulf %60, %63 : vector<32x128xf32>
    %65 = arith.addf %59, %64 : vector<32x128xf32>
    %c0_28 = arith.constant 0 : index
    %c0_29 = arith.constant 0 : index
    %66 = vector.load %arg5[%c0_28, %c0_29] : memref<1x128xf32, #tpu.memory_space<vmem>>, vector<1x128xf32>
    %67 = vector.broadcast %66 : vector<1x128xf32> to vector<32x128xf32>
    %68 = arith.addf %65, %67 : vector<32x128xf32>
    %cst_30 = arith.constant 0.000000e+00 : f32
    %cst_31 = arith.constant 6.000000e+00 : f32
    %69 = vector.broadcast %cst_30 : f32 to vector<32x128xf32>
    %70 = arith.maximumf %69, %68 : vector<32x128xf32>
    %71 = vector.broadcast %cst_31 : f32 to vector<32x128xf32>
    %72 = arith.minimumf %71, %70 : vector<32x128xf32>
    %c0_32 = arith.constant 0 : index
    %c0_33 = arith.constant 0 : index
    %73 = vector.load %arg6[%c0_32, %c0_33] : memref<128x128xf32, #tpu.memory_space<vmem>>, vector<128x128xf32>
    %cst_34 = arith.constant dense<0.000000e+00> : vector<32x128xf32>
    %74 = tpu.matmul %72, %73, %cst_34 {dimension_numbers = #tpu.dot_dimension_numbers<[1], [0], [0], [1], [0, 0, 1, 1], [], []>} : vector<32x128xf32>, vector<128x128xf32>, vector<32x128xf32> -> vector<32x128xf32>
    %c0_35 = arith.constant 0 : index
    %c0_36 = arith.constant 0 : index
    %75 = vector.load %arg7[%c0_35, %c0_36] : memref<1x128xf32, #tpu.memory_space<vmem>>, vector<1x128xf32>
    %76 = vector.broadcast %75 : vector<1x128xf32> to vector<32x128xf32>
    %77 = arith.addf %74, %76 : vector<32x128xf32>
    %c0_37 = arith.constant 0 : index
    %c0_38 = arith.constant 0 : index
    %78 = vector.load %arg8[%c0_37, %c0_38] : memref<32x128xf32, #tpu.memory_space<vmem>>, vector<32x128xf32>
    tpu.vector_store %arg8[%c0_37, %c0_38], %77 {strides = array<i32>} : memref<32x128xf32, #tpu.memory_space<vmem>>, vector<32x128xf32>,
    return
  }
}

module attributes {stable_mosaic.version = 11 : i64} {
  func.func @_block_kernel(%arg0: memref<200x128xf32, #tpu.memory_space<vmem>>, %arg1: memref<200x1xf32, #tpu.memory_space<vmem>>, %arg2: memref<128x128xf32, #tpu.memory_space<vmem>>, %arg3: memref<1x128xf32, #tpu.memory_space<vmem>>, %arg4: memref<25x1x128xf32, #tpu.memory_space<vmem>>, %arg5: memref<1x128xf32, #tpu.memory_space<vmem>>, %arg6: memref<128x128xf32, #tpu.memory_space<vmem>>, %arg7: memref<1x128xf32, #tpu.memory_space<vmem>>, %arg8: memref<128x128xf32, #tpu.memory_space<vmem>>, %arg9: memref<1x128xf32, #tpu.memory_space<vmem>>, %arg10: memref<2x8xf32, #tpu.memory_space<vmem>>, %arg11: memref<8x2xf32, #tpu.memory_space<vmem>>, %arg12: memref<128x128xf32, #tpu.memory_space<vmem>>, %arg13: memref<1x128xf32, #tpu.memory_space<vmem>>, %arg14: memref<8x128xf32, #tpu.memory_space<vmem>>) attributes {dimension_semantics = [], scalar_prefetch = 0 : i64, scratch_operands = 0 : i64, tpu.core_type = #tpu.core_type<tc>} {
    %c0 = arith.constant 0 : index
    %c0_0 = arith.constant 0 : index
    %0 = vector.load %arg0[%c0, %c0_0] : memref<200x128xf32, #tpu.memory_space<vmem>>, vector<200x128xf32>
    %c0_1 = arith.constant 0 : index
    %c0_2 = arith.constant 0 : index
    %1 = vector.load %arg2[%c0_1, %c0_2] : memref<128x128xf32, #tpu.memory_space<vmem>>, vector<128x128xf32>
    %cst = arith.constant dense<0.000000e+00> : vector<200x128xf32>
    %2 = tpu.matmul %0, %1, %cst {dimension_numbers = #tpu.dot_dimension_numbers<[1], [0], [0], [1], [0, 0, 1, 1], [], []>} : vector<200x128xf32>, vector<128x128xf32>, vector<200x128xf32> -> vector<200x128xf32>
    %c0_3 = arith.constant 0 : index
    %c0_4 = arith.constant 0 : index
    %3 = vector.load %arg3[%c0_3, %c0_4] : memref<1x128xf32, #tpu.memory_space<vmem>>, vector<1x128xf32>
    %4 = vector.broadcast %3 : vector<1x128xf32> to vector<200x128xf32>
    %5 = arith.addf %2, %4 : vector<200x128xf32>
    %cst_5 = arith.constant 0.000000e+00 : f32
    %cst_6 = arith.constant 6.000000e+00 : f32
    %6 = vector.broadcast %cst_5 : f32 to vector<200x128xf32>
    %7 = arith.maximumf %6, %5 : vector<200x128xf32>
    %8 = vector.broadcast %cst_6 : f32 to vector<200x128xf32>
    %9 = arith.minimumf %8, %7 : vector<200x128xf32>
    %c0_7 = arith.constant 0 : index
    %c0_8 = arith.constant 0 : index
    %10 = vector.load %arg1[%c0_7, %c0_8] : memref<200x1xf32, #tpu.memory_space<vmem>>, vector<200x1xf32>
    %11 = vector.broadcast %10 : vector<200x1xf32> to vector<200x128xf32>
    %12 = arith.mulf %9, %11 : vector<200x128xf32>
    %13 = vector.extract_strided_slice %12 {offsets = [0, 0], sizes = [8, 128], strides = [1, 1]} : vector<200x128xf32> to vector<8x128xf32>
    %c0_9 = arith.constant 0 : index
    %c0_10 = arith.constant 0 : index
    %c0_11 = arith.constant 0 : index
    %14 = vector.load %arg4[%c0_9, %c0_10, %c0_11] : memref<25x1x128xf32, #tpu.memory_space<vmem>>, vector<1x1x128xf32>
    %15 = vector.shape_cast %14 : vector<1x1x128xf32> to vector<1x128xf32>
    %16 = vector.broadcast %15 : vector<1x128xf32> to vector<8x128xf32>
    %17 = arith.mulf %13, %16 : vector<8x128xf32>
    %18 = vector.extract_strided_slice %12 {offsets = [8, 0], sizes = [8, 128], strides = [1, 1]} : vector<200x128xf32> to vector<8x128xf32>
    %c1 = arith.constant 1 : index
    %c0_12 = arith.constant 0 : index
    %c0_13 = arith.constant 0 : index
    %19 = vector.load %arg4[%c1, %c0_12, %c0_13] : memref<25x1x128xf32, #tpu.memory_space<vmem>>, vector<1x1x128xf32>
    %20 = vector.shape_cast %19 : vector<1x1x128xf32> to vector<1x128xf32>
    %21 = vector.broadcast %20 : vector<1x128xf32> to vector<8x128xf32>
    %22 = arith.mulf %18, %21 : vector<8x128xf32>
    %23 = arith.addf %17, %22 : vector<8x128xf32>
    %24 = vector.extract_strided_slice %12 {offsets = [16, 0], sizes = [8, 128], strides = [1, 1]} : vector<200x128xf32> to vector<8x128xf32>
    %c2 = arith.constant 2 : index
    %c0_14 = arith.constant 0 : index
    %c0_15 = arith.constant 0 : index
    %25 = vector.load %arg4[%c2, %c0_14, %c0_15] : memref<25x1x128xf32, #tpu.memory_space<vmem>>, vector<1x1x128xf32>
    %26 = vector.shape_cast %25 : vector<1x1x128xf32> to vector<1x128xf32>
    %27 = vector.broadcast %26 : vector<1x128xf32> to vector<8x128xf32>
    %28 = arith.mulf %24, %27 : vector<8x128xf32>
    %29 = arith.addf %23, %28 : vector<8x128xf32>
    %30 = vector.extract_strided_slice %12 {offsets = [24, 0], sizes = [8, 128], strides = [1, 1]} : vector<200x128xf32> to vector<8x128xf32>
    %c3 = arith.constant 3 : index
    %c0_16 = arith.constant 0 : index
    %c0_17 = arith.constant 0 : index
    %31 = vector.load %arg4[%c3, %c0_16, %c0_17] : memref<25x1x128xf32, #tpu.memory_space<vmem>>, vector<1x1x128xf32>
    %32 = vector.shape_cast %31 : vector<1x1x128xf32> to vector<1x128xf32>
    %33 = vector.broadcast %32 : vector<1x128xf32> to vector<8x128xf32>
    %34 = arith.mulf %30, %33 : vector<8x128xf32>
    %35 = arith.addf %29, %34 : vector<8x128xf32>
    %36 = vector.extract_strided_slice %12 {offsets = [32, 0], sizes = [8, 128], strides = [1, 1]} : vector<200x128xf32> to vector<8x128xf32>
    %c4 = arith.constant 4 : index
    %c0_18 = arith.constant 0 : index
    %c0_19 = arith.constant 0 : index
    %37 = vector.load %arg4[%c4, %c0_18, %c0_19] : memref<25x1x128xf32, #tpu.memory_space<vmem>>, vector<1x1x128xf32>
    %38 = vector.shape_cast %37 : vector<1x1x128xf32> to vector<1x128xf32>
    %39 = vector.broadcast %38 : vector<1x128xf32> to vector<8x128xf32>
    %40 = arith.mulf %36, %39 : vector<8x128xf32>
    %41 = arith.addf %35, %40 : vector<8x128xf32>
    %42 = vector.extract_strided_slice %12 {offsets = [40, 0], sizes = [8, 128], strides = [1, 1]} : vector<200x128xf32> to vector<8x128xf32>
    %c5 = arith.constant 5 : index
    %c0_20 = arith.constant 0 : index
    %c0_21 = arith.constant 0 : index
    %43 = vector.load %arg4[%c5, %c0_20, %c0_21] : memref<25x1x128xf32, #tpu.memory_space<vmem>>, vector<1x1x128xf32>
    %44 = vector.shape_cast %43 : vector<1x1x128xf32> to vector<1x128xf32>
    %45 = vector.broadcast %44 : vector<1x128xf32> to vector<8x128xf32>
    %46 = arith.mulf %42, %45 : vector<8x128xf32>
    %47 = arith.addf %41, %46 : vector<8x128xf32>
    %48 = vector.extract_strided_slice %12 {offsets = [48, 0], sizes = [8, 128], strides = [1, 1]} : vector<200x128xf32> to vector<8x128xf32>
    %c6 = arith.constant 6 : index
    %c0_22 = arith.constant 0 : index
    %c0_23 = arith.constant 0 : index
    %49 = vector.load %arg4[%c6, %c0_22, %c0_23] : memref<25x1x128xf32, #tpu.memory_space<vmem>>, vector<1x1x128xf32>
    %50 = vector.shape_cast %49 : vector<1x1x128xf32> to vector<1x128xf32>
    %51 = vector.broadcast %50 : vector<1x128xf32> to vector<8x128xf32>
    %52 = arith.mulf %48, %51 : vector<8x128xf32>
    %53 = arith.addf %47, %52 : vector<8x128xf32>
    %54 = vector.extract_strided_slice %12 {offsets = [56, 0], sizes = [8, 128], strides = [1, 1]} : vector<200x128xf32> to vector<8x128xf32>
    %c7 = arith.constant 7 : index
    %c0_24 = arith.constant 0 : index
    %c0_25 = arith.constant 0 : index
    %55 = vector.load %arg4[%c7, %c0_24, %c0_25] : memref<25x1x128xf32, #tpu.memory_space<vmem>>, vector<1x1x128xf32>
    %56 = vector.shape_cast %55 : vector<1x1x128xf32> to vector<1x128xf32>
    %57 = vector.broadcast %56 : vector<1x128xf32> to vector<8x128xf32>
    %58 = arith.mulf %54, %57 : vector<8x128xf32>
    %59 = arith.addf %53, %58 : vector<8x128xf32>
    %60 = vector.extract_strided_slice %12 {offsets = [64, 0], sizes = [8, 128], strides = [1, 1]} : vector<200x128xf32> to vector<8x128xf32>
    %c8 = arith.constant 8 : index
    %c0_26 = arith.constant 0 : index
    %c0_27 = arith.constant 0 : index
    %61 = vector.load %arg4[%c8, %c0_26, %c0_27] : memref<25x1x128xf32, #tpu.memory_space<vmem>>, vector<1x1x128xf32>
    %62 = vector.shape_cast %61 : vector<1x1x128xf32> to vector<1x128xf32>
    %63 = vector.broadcast %62 : vector<1x128xf32> to vector<8x128xf32>
    %64 = arith.mulf %60, %63 : vector<8x128xf32>
    %65 = arith.addf %59, %64 : vector<8x128xf32>
    %66 = vector.extract_strided_slice %12 {offsets = [72, 0], sizes = [8, 128], strides = [1, 1]} : vector<200x128xf32> to vector<8x128xf32>
    %c9 = arith.constant 9 : index
    %c0_28 = arith.constant 0 : index
    %c0_29 = arith.constant 0 : index
    %67 = vector.load %arg4[%c9, %c0_28, %c0_29] : memref<25x1x128xf32, #tpu.memory_space<vmem>>, vector<1x1x128xf32>
    %68 = vector.shape_cast %67 : vector<1x1x128xf32> to vector<1x128xf32>
    %69 = vector.broadcast %68 : vector<1x128xf32> to vector<8x128xf32>
    %70 = arith.mulf %66, %69 : vector<8x128xf32>
    %71 = arith.addf %65, %70 : vector<8x128xf32>
    %72 = vector.extract_strided_slice %12 {offsets = [80, 0], sizes = [8, 128], strides = [1, 1]} : vector<200x128xf32> to vector<8x128xf32>
    %c10 = arith.constant 10 : index
    %c0_30 = arith.constant 0 : index
    %c0_31 = arith.constant 0 : index
    %73 = vector.load %arg4[%c10, %c0_30, %c0_31] : memref<25x1x128xf32, #tpu.memory_space<vmem>>, vector<1x1x128xf32>
    %74 = vector.shape_cast %73 : vector<1x1x128xf32> to vector<1x128xf32>
    %75 = vector.broadcast %74 : vector<1x128xf32> to vector<8x128xf32>
    %76 = arith.mulf %72, %75 : vector<8x128xf32>
    %77 = arith.addf %71, %76 : vector<8x128xf32>
    %78 = vector.extract_strided_slice %12 {offsets = [88, 0], sizes = [8, 128], strides = [1, 1]} : vector<200x128xf32> to vector<8x128xf32>
    %c11 = arith.constant 11 : index
    %c0_32 = arith.constant 0 : index
    %c0_33 = arith.constant 0 : index
    %79 = vector.load %arg4[%c11, %c0_32, %c0_33] : memref<25x1x128xf32, #tpu.memory_space<vmem>>, vector<1x1x128xf32>
    %80 = vector.shape_cast %79 : vector<1x1x128xf32> to vector<1x128xf32>
    %81 = vector.broadcast %80 : vector<1x128xf32> to vector<8x128xf32>
    %82 = arith.mulf %78, %81 : vector<8x128xf32>
    %83 = arith.addf %77, %82 : vector<8x128xf32>
    %84 = vector.extract_strided_slice %12 {offsets = [96, 0], sizes = [8, 128], strides = [1, 1]} : vector<200x128xf32> to vector<8x128xf32>
    %c12 = arith.constant 12 : index
    %c0_34 = arith.constant 0 : index
    %c0_35 = arith.constant 0 : index
    %85 = vector.load %arg4[%c12, %c0_34, %c0_35] : memref<25x1x128xf32, #tpu.memory_space<vmem>>, vector<1x1x128xf32>
    %86 = vector.shape_cast %85 : vector<1x1x128xf32> to vector<1x128xf32>
    %87 = vector.broadcast %86 : vector<1x128xf32> to vector<8x128xf32>
    %88 = arith.mulf %84, %87 : vector<8x128xf32>
    %89 = arith.addf %83, %88 : vector<8x128xf32>
    %90 = vector.extract_strided_slice %12 {offsets = [104, 0], sizes = [8, 128], strides = [1, 1]} : vector<200x128xf32> to vector<8x128xf32>
    %c13 = arith.constant 13 : index
    %c0_36 = arith.constant 0 : index
    %c0_37 = arith.constant 0 : index
    %91 = vector.load %arg4[%c13, %c0_36, %c0_37] : memref<25x1x128xf32, #tpu.memory_space<vmem>>, vector<1x1x128xf32>
    %92 = vector.shape_cast %91 : vector<1x1x128xf32> to vector<1x128xf32>
    %93 = vector.broadcast %92 : vector<1x128xf32> to vector<8x128xf32>
    %94 = arith.mulf %90, %93 : vector<8x128xf32>
    %95 = arith.addf %89, %94 : vector<8x128xf32>
    %96 = vector.extract_strided_slice %12 {offsets = [112, 0], sizes = [8, 128], strides = [1, 1]} : vector<200x128xf32> to vector<8x128xf32>
    %c14 = arith.constant 14 : index
    %c0_38 = arith.constant 0 : index
    %c0_39 = arith.constant 0 : index
    %97 = vector.load %arg4[%c14, %c0_38, %c0_39] : memref<25x1x128xf32, #tpu.memory_space<vmem>>, vector<1x1x128xf32>
    %98 = vector.shape_cast %97 : vector<1x1x128xf32> to vector<1x128xf32>
    %99 = vector.broadcast %98 : vector<1x128xf32> to vector<8x128xf32>
    %100 = arith.mulf %96, %99 : vector<8x128xf32>
    %101 = arith.addf %95, %100 : vector<8x128xf32>
    %102 = vector.extract_strided_slice %12 {offsets = [120, 0], sizes = [8, 128], strides = [1, 1]} : vector<200x128xf32> to vector<8x128xf32>
    %c15 = arith.constant 15 : index
    %c0_40 = arith.constant 0 : index
    %c0_41 = arith.constant 0 : index
    %103 = vector.load %arg4[%c15, %c0_40, %c0_41] : memref<25x1x128xf32, #tpu.memory_space<vmem>>, vector<1x1x128xf32>
    %104 = vector.shape_cast %103 : vector<1x1x128xf32> to vector<1x128xf32>
    %105 = vector.broadcast %104 : vector<1x128xf32> to vector<8x128xf32>
    %106 = arith.mulf %102, %105 : vector<8x128xf32>
    %107 = arith.addf %101, %106 : vector<8x128xf32>
    %108 = vector.extract_strided_slice %12 {offsets = [128, 0], sizes = [8, 128], strides = [1, 1]} : vector<200x128xf32> to vector<8x128xf32>
    %c16 = arith.constant 16 : index
    %c0_42 = arith.constant 0 : index
    %c0_43 = arith.constant 0 : index
    %109 = vector.load %arg4[%c16, %c0_42, %c0_43] : memref<25x1x128xf32, #tpu.memory_space<vmem>>, vector<1x1x128xf32>
    %110 = vector.shape_cast %109 : vector<1x1x128xf32> to vector<1x128xf32>
    %111 = vector.broadcast %110 : vector<1x128xf32> to vector<8x128xf32>
    %112 = arith.mulf %108, %111 : vector<8x128xf32>
    %113 = arith.addf %107, %112 : vector<8x128xf32>
    %114 = vector.extract_strided_slice %12 {offsets = [136, 0], sizes = [8, 128], strides = [1, 1]} : vector<200x128xf32> to vector<8x128xf32>
    %c17 = arith.constant 17 : index
    %c0_44 = arith.constant 0 : index
    %c0_45 = arith.constant 0 : index
    %115 = vector.load %arg4[%c17, %c0_44, %c0_45] : memref<25x1x128xf32, #tpu.memory_space<vmem>>, vector<1x1x128xf32>
    %116 = vector.shape_cast %115 : vector<1x1x128xf32> to vector<1x128xf32>
    %117 = vector.broadcast %116 : vector<1x128xf32> to vector<8x128xf32>
    %118 = arith.mulf %114, %117 : vector<8x128xf32>
    %119 = arith.addf %113, %118 : vector<8x128xf32>
    %120 = vector.extract_strided_slice %12 {offsets = [144, 0], sizes = [8, 128], strides = [1, 1]} : vector<200x128xf32> to vector<8x128xf32>
    %c18 = arith.constant 18 : index
    %c0_46 = arith.constant 0 : index
    %c0_47 = arith.constant 0 : index
    %121 = vector.load %arg4[%c18, %c0_46, %c0_47] : memref<25x1x128xf32, #tpu.memory_space<vmem>>, vector<1x1x128xf32>
    %122 = vector.shape_cast %121 : vector<1x1x128xf32> to vector<1x128xf32>
    %123 = vector.broadcast %122 : vector<1x128xf32> to vector<8x128xf32>
    %124 = arith.mulf %120, %123 : vector<8x128xf32>
    %125 = arith.addf %119, %124 : vector<8x128xf32>
    %126 = vector.extract_strided_slice %12 {offsets = [152, 0], sizes = [8, 128], strides = [1, 1]} : vector<200x128xf32> to vector<8x128xf32>
    %c19 = arith.constant 19 : index
    %c0_48 = arith.constant 0 : index
    %c0_49 = arith.constant 0 : index
    %127 = vector.load %arg4[%c19, %c0_48, %c0_49] : memref<25x1x128xf32, #tpu.memory_space<vmem>>, vector<1x1x128xf32>
    %128 = vector.shape_cast %127 : vector<1x1x128xf32> to vector<1x128xf32>
    %129 = vector.broadcast %128 : vector<1x128xf32> to vector<8x128xf32>
    %130 = arith.mulf %126, %129 : vector<8x128xf32>
    %131 = arith.addf %125, %130 : vector<8x128xf32>
    %132 = vector.extract_strided_slice %12 {offsets = [160, 0], sizes = [8, 128], strides = [1, 1]} : vector<200x128xf32> to vector<8x128xf32>
    %c20 = arith.constant 20 : index
    %c0_50 = arith.constant 0 : index
    %c0_51 = arith.constant 0 : index
    %133 = vector.load %arg4[%c20, %c0_50, %c0_51] : memref<25x1x128xf32, #tpu.memory_space<vmem>>, vector<1x1x128xf32>
    %134 = vector.shape_cast %133 : vector<1x1x128xf32> to vector<1x128xf32>
    %135 = vector.broadcast %134 : vector<1x128xf32> to vector<8x128xf32>
    %136 = arith.mulf %132, %135 : vector<8x128xf32>
    %137 = arith.addf %131, %136 : vector<8x128xf32>
    %138 = vector.extract_strided_slice %12 {offsets = [168, 0], sizes = [8, 128], strides = [1, 1]} : vector<200x128xf32> to vector<8x128xf32>
    %c21 = arith.constant 21 : index
    %c0_52 = arith.constant 0 : index
    %c0_53 = arith.constant 0 : index
    %139 = vector.load %arg4[%c21, %c0_52, %c0_53] : memref<25x1x128xf32, #tpu.memory_space<vmem>>, vector<1x1x128xf32>
    %140 = vector.shape_cast %139 : vector<1x1x128xf32> to vector<1x128xf32>
    %141 = vector.broadcast %140 : vector<1x128xf32> to vector<8x128xf32>
    %142 = arith.mulf %138, %141 : vector<8x128xf32>
    %143 = arith.addf %137, %142 : vector<8x128xf32>
    %144 = vector.extract_strided_slice %12 {offsets = [176, 0], sizes = [8, 128], strides = [1, 1]} : vector<200x128xf32> to vector<8x128xf32>
    %c22 = arith.constant 22 : index
    %c0_54 = arith.constant 0 : index
    %c0_55 = arith.constant 0 : index
    %145 = vector.load %arg4[%c22, %c0_54, %c0_55] : memref<25x1x128xf32, #tpu.memory_space<vmem>>, vector<1x1x128xf32>
    %146 = vector.shape_cast %145 : vector<1x1x128xf32> to vector<1x128xf32>
    %147 = vector.broadcast %146 : vector<1x128xf32> to vector<8x128xf32>
    %148 = arith.mulf %144, %147 : vector<8x128xf32>
    %149 = arith.addf %143, %148 : vector<8x128xf32>
    %150 = vector.extract_strided_slice %12 {offsets = [184, 0], sizes = [8, 128], strides = [1, 1]} : vector<200x128xf32> to vector<8x128xf32>
    %c23 = arith.constant 23 : index
    %c0_56 = arith.constant 0 : index
    %c0_57 = arith.constant 0 : index
    %151 = vector.load %arg4[%c23, %c0_56, %c0_57] : memref<25x1x128xf32, #tpu.memory_space<vmem>>, vector<1x1x128xf32>
    %152 = vector.shape_cast %151 : vector<1x1x128xf32> to vector<1x128xf32>
    %153 = vector.broadcast %152 : vector<1x128xf32> to vector<8x128xf32>
    %154 = arith.mulf %150, %153 : vector<8x128xf32>
    %155 = arith.addf %149, %154 : vector<8x128xf32>
    %156 = vector.extract_strided_slice %12 {offsets = [192, 0], sizes = [8, 128], strides = [1, 1]} : vector<200x128xf32> to vector<8x128xf32>
    %c24 = arith.constant 24 : index
    %c0_58 = arith.constant 0 : index
    %c0_59 = arith.constant 0 : index
    %157 = vector.load %arg4[%c24, %c0_58, %c0_59] : memref<25x1x128xf32, #tpu.memory_space<vmem>>, vector<1x1x128xf32>
    %158 = vector.shape_cast %157 : vector<1x1x128xf32> to vector<1x128xf32>
    %159 = vector.broadcast %158 : vector<1x128xf32> to vector<8x128xf32>
    %160 = arith.mulf %156, %159 : vector<8x128xf32>
    %161 = arith.addf %155, %160 : vector<8x128xf32>
    %c0_60 = arith.constant 0 : index
    %c0_61 = arith.constant 0 : index
    %162 = vector.load %arg5[%c0_60, %c0_61] : memref<1x128xf32, #tpu.memory_space<vmem>>, vector<1x128xf32>
    %163 = vector.broadcast %162 : vector<1x128xf32> to vector<8x128xf32>
    %164 = arith.addf %161, %163 : vector<8x128xf32>
    %cst_62 = arith.constant 0.000000e+00 : f32
    %cst_63 = arith.constant 6.000000e+00 : f32
    %165 = vector.broadcast %cst_62 : f32 to vector<8x128xf32>
    %166 = arith.maximumf %165, %164 : vector<8x128xf32>
    %167 = vector.broadcast %cst_63 : f32 to vector<8x128xf32>
    %168 = arith.minimumf %167, %166 : vector<8x128xf32>
    %c0_64 = arith.constant 0 : index
    %c0_65 = arith.constant 0 : index
    %169 = vector.load %arg10[%c0_64, %c0_65] : memref<2x8xf32, #tpu.memory_space<vmem>>, vector<2x8xf32>
    %cst_66 = arith.constant dense<0.000000e+00> : vector<2x128xf32>
    %170 = tpu.matmul %169, %168, %cst_66 {dimension_numbers = #tpu.dot_dimension_numbers<[1], [0], [0], [1], [0, 0, 1, 1], [], []>} : vector<2x8xf32>, vector<8x128xf32>, vector<2x128xf32> -> vector<2x128xf32>
    %c0_67 = arith.constant 0 : index
    %c0_68 = arith.constant 0 : index
    %171 = vector.load %arg6[%c0_67, %c0_68] : memref<128x128xf32, #tpu.memory_space<vmem>>, vector<128x128xf32>
    %cst_69 = arith.constant dense<0.000000e+00> : vector<2x128xf32>
    %172 = tpu.matmul %170, %171, %cst_69 {dimension_numbers = #tpu.dot_dimension_numbers<[1], [0], [0], [1], [0, 0, 1, 1], [], []>} : vector<2x128xf32>, vector<128x128xf32>, vector<2x128xf32> -> vector<2x128xf32>
    %c0_70 = arith.constant 0 : index
    %c0_71 = arith.constant 0 : index
    %173 = vector.load %arg7[%c0_70, %c0_71] : memref<1x128xf32, #tpu.memory_space<vmem>>, vector<1x128xf32>
    %174 = vector.broadcast %173 : vector<1x128xf32> to vector<2x128xf32>
    %175 = arith.addf %172, %174 : vector<2x128xf32>
    %cst_72 = arith.constant 0.000000e+00 : f32
    %176 = vector.broadcast %cst_72 : f32 to vector<2x128xf32>
    %177 = arith.maximumf %175, %176 : vector<2x128xf32>
    %c0_73 = arith.constant 0 : index
    %c0_74 = arith.constant 0 : index
    %178 = vector.load %arg8[%c0_73, %c0_74] : memref<128x128xf32, #tpu.memory_space<vmem>>, vector<128x128xf32>
    %cst_75 = arith.constant dense<0.000000e+00> : vector<2x128xf32>
    %179 = tpu.matmul %177, %178, %cst_75 {dimension_numbers = #tpu.dot_dimension_numbers<[1], [0], [0], [1], [0, 0, 1, 1], [], []>} : vector<2x128xf32>, vector<128x128xf32>, vector<2x128xf32> -> vector<2x128xf32>
    %c0_76 = arith.constant 0 : index
    %c0_77 = arith.constant 0 : index
    %180 = vector.load %arg9[%c0_76, %c0_77] : memref<1x128xf32, #tpu.memory_space<vmem>>, vector<1x128xf32>
    %181 = vector.broadcast %180 : vector<1x128xf32> to vector<2x128xf32>
    %182 = arith.addf %179, %181 : vector<2x128xf32>
    %cst_78 = arith.constant 3.000000e+00 : f32
    %183 = vector.broadcast %cst_78 : f32 to vector<2x128xf32>
    %184 = arith.addf %182, %183 : vector<2x128xf32>
    %cst_79 = arith.constant 0.000000e+00 : f32
    %cst_80 = arith.constant 6.000000e+00 : f32
    %185 = vector.broadcast %cst_79 : f32 to vector<2x128xf32>
    %186 = arith.maximumf %185, %184 : vector<2x128xf32>
    %187 = vector.broadcast %cst_80 : f32 to vector<2x128xf32>
    %188 = arith.minimumf %187, %186 : vector<2x128xf32>
    %cst_81 = arith.constant 0.166666672 : f32
    %189 = vector.broadcast %cst_81 : f32 to vector<2x128xf32>
    %190 = arith.mulf %188, %189 : vector<2x128xf32>
    %c0_82 = arith.constant 0 : index
    %c0_83 = arith.constant 0 : index
    %191 = vector.load %arg11[%c0_82, %c0_83] : memref<8x2xf32, #tpu.memory_space<vmem>>, vector<8x2xf32>
    %cst_84 = arith.constant dense<0.000000e+00> : vector<8x128xf32>
    %192 = tpu.matmul %191, %190, %cst_84 {dimension_numbers = #tpu.dot_dimension_numbers<[1], [0], [0], [1], [0, 0, 1, 1], [], []>} : vector<8x2xf32>, vector<2x128xf32>, vector<8x128xf32> -> vector<8x128xf32>
    %193 = arith.mulf %168, %192 : vector<8x128xf32>
    %c0_85 = arith.constant 0 : index
    %c0_86 = arith.constant 0 : index
    %194 = vector.load %arg12[%c0_85, %c0_86] : memref<128x128xf32, #tpu.memory_space<vmem>>, vector<128x128xf32>
    %cst_87 = arith.constant dense<0.000000e+00> : vector<8x128xf32>
    %195 = tpu.matmul %193, %194, %cst_87 {dimension_numbers = #tpu.dot_dimension_numbers<[1], [0], [0], [1], [0, 0, 1, 1], [], []>} : vector<8x128xf32>, vector<128x128xf32>, vector<8x128xf32> -> vector<8x128xf32>
    %c0_88 = arith.constant 0 : index
    %c0_89 = arith.constant 0 : index
    %196 = vector.load %arg13[%c0_88, %c0_89] : memref<1x128xf32, #tpu.memory_space<vmem>>, vector<1x128xf32>
    %197 = vector.broadcast %196 : vector<1x128xf32> to vector<8x128xf32>
    %198 = arith.addf %195, %197 : vector<8x128xf32>
    %c0_90 = arith.constant 0 : index
    %c0_91 = arith.constant 0 : index
    %199 = vector.load %arg14[%c0_90, %c0_91] : memref<8x128xf32, #tpu.memory_space<vmem>>, vector<8x128xf32>
    tpu.vector_store %arg14[%c0_90, %c0_91], %198 {strides = array<i32>} : memref<8x128xf32, #tpu.memory_space<vmem>>, vector<8x128xf32>,
    return
  }
}

module attributes {stable_mosaic.version = 11 : i64} {
  func.func @_head_kernel(%arg0: memref<8x128xf32, #tpu.memory_space<vmem>>, %arg1: memref<2x8xf32, #tpu.memory_space<vmem>>, %arg2: memref<128x512xf32, #tpu.memory_space<vmem>>, %arg3: memref<1x512xf32, #tpu.memory_space<vmem>>, %arg4: memref<512x128xf32, #tpu.memory_space<vmem>>, %arg5: memref<1x128xf32, #tpu.memory_space<vmem>>, %arg6: memref<2x128xf32, #tpu.memory_space<vmem>>) attributes {dimension_semantics = [], scalar_prefetch = 0 : i64, scratch_operands = 0 : i64, tpu.core_type = #tpu.core_type<tc>} {
    %c0 = arith.constant 0 : index
    %c0_0 = arith.constant 0 : index
    %0 = vector.load %arg1[%c0, %c0_0] : memref<2x8xf32, #tpu.memory_space<vmem>>, vector<2x8xf32>
    %c0_1 = arith.constant 0 : index
    %c0_2 = arith.constant 0 : index
    %1 = vector.load %arg0[%c0_1, %c0_2] : memref<8x128xf32, #tpu.memory_space<vmem>>, vector<8x128xf32>
    %cst = arith.constant dense<0.000000e+00> : vector<2x128xf32>
    %2 = tpu.matmul %0, %1, %cst {dimension_numbers = #tpu.dot_dimension_numbers<[1], [0], [0], [1], [0, 0, 1, 1], [], []>} : vector<2x8xf32>, vector<8x128xf32>, vector<2x128xf32> -> vector<2x128xf32>
    %c0_3 = arith.constant 0 : index
    %c0_4 = arith.constant 0 : index
    %3 = vector.load %arg2[%c0_3, %c0_4] : memref<128x512xf32, #tpu.memory_space<vmem>>, vector<128x512xf32>
    %cst_5 = arith.constant dense<0.000000e+00> : vector<2x512xf32>
    %4 = tpu.matmul %2, %3, %cst_5 {dimension_numbers = #tpu.dot_dimension_numbers<[1], [0], [0], [1], [0, 0, 1, 1], [], []>} : vector<2x128xf32>, vector<128x512xf32>, vector<2x512xf32> -> vector<2x512xf32>
    %c0_6 = arith.constant 0 : index
    %c0_7 = arith.constant 0 : index
    %5 = vector.load %arg3[%c0_6, %c0_7] : memref<1x512xf32, #tpu.memory_space<vmem>>, vector<1x512xf32>
    %6 = vector.broadcast %5 : vector<1x512xf32> to vector<2x512xf32>
    %7 = arith.addf %4, %6 : vector<2x512xf32>
    %cst_8 = arith.constant 3.000000e+00 : f32
    %8 = vector.broadcast %cst_8 : f32 to vector<2x512xf32>
    %9 = arith.addf %7, %8 : vector<2x512xf32>
    %cst_9 = arith.constant 0.000000e+00 : f32
    %cst_10 = arith.constant 6.000000e+00 : f32
    %10 = vector.broadcast %cst_9 : f32 to vector<2x512xf32>
    %11 = arith.maximumf %10, %9 : vector<2x512xf32>
    %12 = vector.broadcast %cst_10 : f32 to vector<2x512xf32>
    %13 = arith.minimumf %12, %11 : vector<2x512xf32>
    %cst_11 = arith.constant 0.166666672 : f32
    %14 = vector.broadcast %cst_11 : f32 to vector<2x512xf32>
    %15 = arith.mulf %13, %14 : vector<2x512xf32>
    %16 = arith.mulf %7, %15 : vector<2x512xf32>
    %c0_12 = arith.constant 0 : index
    %c0_13 = arith.constant 0 : index
    %17 = vector.load %arg4[%c0_12, %c0_13] : memref<512x128xf32, #tpu.memory_space<vmem>>, vector<512x128xf32>
    %cst_14 = arith.constant dense<0.000000e+00> : vector<2x128xf32>
    %18 = tpu.matmul %16, %17, %cst_14 {dimension_numbers = #tpu.dot_dimension_numbers<[1], [0], [0], [1], [0, 0, 1, 1], [], []>} : vector<2x512xf32>, vector<512x128xf32>, vector<2x128xf32> -> vector<2x128xf32>
    %c0_15 = arith.constant 0 : index
    %c0_16 = arith.constant 0 : index
    %19 = vector.load %arg5[%c0_15, %c0_16] : memref<1x128xf32, #tpu.memory_space<vmem>>, vector<1x128xf32>
    %20 = vector.broadcast %19 : vector<1x128xf32> to vector<2x128xf32>
    %21 = arith.addf %18, %20 : vector<2x128xf32>
    %c0_17 = arith.constant 0 : index
    %c0_18 = arith.constant 0 : index
    %22 = vector.load %arg6[%c0_17, %c0_18] : memref<2x128xf32, #tpu.memory_space<vmem>>, vector<2x128xf32>
    tpu.vector_store %arg6[%c0_17, %c0_18], %21 {strides = array<i32>} : memref<2x128xf32, #tpu.memory_space<vmem>>, vector<2x128xf32>,
    return
  }
}

module attributes {stable_mosaic.version = 11 : i64} {
  func.func @_block_kernel(%arg0: memref<200x128xf32, #tpu.memory_space<vmem>>, %arg1: memref<200x1xf32, #tpu.memory_space<vmem>>, %arg2: memref<128x256xf32, #tpu.memory_space<vmem>>, %arg3: memref<1x256xf32, #tpu.memory_space<vmem>>, %arg4: memref<25x1x256xf32, #tpu.memory_space<vmem>>, %arg5: memref<1x256xf32, #tpu.memory_space<vmem>>, %arg6: memref<256x128xf32, #tpu.memory_space<vmem>>, %arg7: memref<1x128xf32, #tpu.memory_space<vmem>>, %arg8: memref<128x256xf32, #tpu.memory_space<vmem>>, %arg9: memref<1x256xf32, #tpu.memory_space<vmem>>, %arg10: memref<2x8xf32, #tpu.memory_space<vmem>>, %arg11: memref<8x2xf32, #tpu.memory_space<vmem>>, %arg12: memref<256x128xf32, #tpu.memory_space<vmem>>, %arg13: memref<1x128xf32, #tpu.memory_space<vmem>>, %arg14: memref<8x128xf32, #tpu.memory_space<vmem>>) attributes {dimension_semantics = [], scalar_prefetch = 0 : i64, scratch_operands = 0 : i64, tpu.core_type = #tpu.core_type<tc>} {
    %c0 = arith.constant 0 : index
    %c0_0 = arith.constant 0 : index
    %0 = vector.load %arg0[%c0, %c0_0] : memref<200x128xf32, #tpu.memory_space<vmem>>, vector<200x128xf32>
    %c0_1 = arith.constant 0 : index
    %c0_2 = arith.constant 0 : index
    %1 = vector.load %arg2[%c0_1, %c0_2] : memref<128x256xf32, #tpu.memory_space<vmem>>, vector<128x256xf32>
    %cst = arith.constant dense<0.000000e+00> : vector<200x256xf32>
    %2 = tpu.matmul %0, %1, %cst {dimension_numbers = #tpu.dot_dimension_numbers<[1], [0], [0], [1], [0, 0, 1, 1], [], []>} : vector<200x128xf32>, vector<128x256xf32>, vector<200x256xf32> -> vector<200x256xf32>
    %c0_3 = arith.constant 0 : index
    %c0_4 = arith.constant 0 : index
    %3 = vector.load %arg3[%c0_3, %c0_4] : memref<1x256xf32, #tpu.memory_space<vmem>>, vector<1x256xf32>
    %4 = vector.broadcast %3 : vector<1x256xf32> to vector<200x256xf32>
    %5 = arith.addf %2, %4 : vector<200x256xf32>
    %cst_5 = arith.constant 0.000000e+00 : f32
    %cst_6 = arith.constant 6.000000e+00 : f32
    %6 = vector.broadcast %cst_5 : f32 to vector<200x256xf32>
    %7 = arith.maximumf %6, %5 : vector<200x256xf32>
    %8 = vector.broadcast %cst_6 : f32 to vector<200x256xf32>
    %9 = arith.minimumf %8, %7 : vector<200x256xf32>
    %c0_7 = arith.constant 0 : index
    %c0_8 = arith.constant 0 : index
    %10 = vector.load %arg1[%c0_7, %c0_8] : memref<200x1xf32, #tpu.memory_space<vmem>>, vector<200x1xf32>
    %11 = vector.broadcast %10 : vector<200x1xf32> to vector<200x256xf32>
    %12 = arith.mulf %9, %11 : vector<200x256xf32>
    %13 = vector.extract_strided_slice %12 {offsets = [0, 0], sizes = [8, 256], strides = [1, 1]} : vector<200x256xf32> to vector<8x256xf32>
    %c0_9 = arith.constant 0 : index
    %c0_10 = arith.constant 0 : index
    %c0_11 = arith.constant 0 : index
    %14 = vector.load %arg4[%c0_9, %c0_10, %c0_11] : memref<25x1x256xf32, #tpu.memory_space<vmem>>, vector<1x1x256xf32>
    %15 = vector.shape_cast %14 : vector<1x1x256xf32> to vector<1x256xf32>
    %16 = vector.broadcast %15 : vector<1x256xf32> to vector<8x256xf32>
    %17 = arith.mulf %13, %16 : vector<8x256xf32>
    %18 = vector.extract_strided_slice %12 {offsets = [8, 0], sizes = [8, 256], strides = [1, 1]} : vector<200x256xf32> to vector<8x256xf32>
    %c1 = arith.constant 1 : index
    %c0_12 = arith.constant 0 : index
    %c0_13 = arith.constant 0 : index
    %19 = vector.load %arg4[%c1, %c0_12, %c0_13] : memref<25x1x256xf32, #tpu.memory_space<vmem>>, vector<1x1x256xf32>
    %20 = vector.shape_cast %19 : vector<1x1x256xf32> to vector<1x256xf32>
    %21 = vector.broadcast %20 : vector<1x256xf32> to vector<8x256xf32>
    %22 = arith.mulf %18, %21 : vector<8x256xf32>
    %23 = arith.addf %17, %22 : vector<8x256xf32>
    %24 = vector.extract_strided_slice %12 {offsets = [16, 0], sizes = [8, 256], strides = [1, 1]} : vector<200x256xf32> to vector<8x256xf32>
    %c2 = arith.constant 2 : index
    %c0_14 = arith.constant 0 : index
    %c0_15 = arith.constant 0 : index
    %25 = vector.load %arg4[%c2, %c0_14, %c0_15] : memref<25x1x256xf32, #tpu.memory_space<vmem>>, vector<1x1x256xf32>
    %26 = vector.shape_cast %25 : vector<1x1x256xf32> to vector<1x256xf32>
    %27 = vector.broadcast %26 : vector<1x256xf32> to vector<8x256xf32>
    %28 = arith.mulf %24, %27 : vector<8x256xf32>
    %29 = arith.addf %23, %28 : vector<8x256xf32>
    %30 = vector.extract_strided_slice %12 {offsets = [24, 0], sizes = [8, 256], strides = [1, 1]} : vector<200x256xf32> to vector<8x256xf32>
    %c3 = arith.constant 3 : index
    %c0_16 = arith.constant 0 : index
    %c0_17 = arith.constant 0 : index
    %31 = vector.load %arg4[%c3, %c0_16, %c0_17] : memref<25x1x256xf32, #tpu.memory_space<vmem>>, vector<1x1x256xf32>
    %32 = vector.shape_cast %31 : vector<1x1x256xf32> to vector<1x256xf32>
    %33 = vector.broadcast %32 : vector<1x256xf32> to vector<8x256xf32>
    %34 = arith.mulf %30, %33 : vector<8x256xf32>
    %35 = arith.addf %29, %34 : vector<8x256xf32>
    %36 = vector.extract_strided_slice %12 {offsets = [32, 0], sizes = [8, 256], strides = [1, 1]} : vector<200x256xf32> to vector<8x256xf32>
    %c4 = arith.constant 4 : index
    %c0_18 = arith.constant 0 : index
    %c0_19 = arith.constant 0 : index
    %37 = vector.load %arg4[%c4, %c0_18, %c0_19] : memref<25x1x256xf32, #tpu.memory_space<vmem>>, vector<1x1x256xf32>
    %38 = vector.shape_cast %37 : vector<1x1x256xf32> to vector<1x256xf32>
    %39 = vector.broadcast %38 : vector<1x256xf32> to vector<8x256xf32>
    %40 = arith.mulf %36, %39 : vector<8x256xf32>
    %41 = arith.addf %35, %40 : vector<8x256xf32>
    %42 = vector.extract_strided_slice %12 {offsets = [40, 0], sizes = [8, 256], strides = [1, 1]} : vector<200x256xf32> to vector<8x256xf32>
    %c5 = arith.constant 5 : index
    %c0_20 = arith.constant 0 : index
    %c0_21 = arith.constant 0 : index
    %43 = vector.load %arg4[%c5, %c0_20, %c0_21] : memref<25x1x256xf32, #tpu.memory_space<vmem>>, vector<1x1x256xf32>
    %44 = vector.shape_cast %43 : vector<1x1x256xf32> to vector<1x256xf32>
    %45 = vector.broadcast %44 : vector<1x256xf32> to vector<8x256xf32>
    %46 = arith.mulf %42, %45 : vector<8x256xf32>
    %47 = arith.addf %41, %46 : vector<8x256xf32>
    %48 = vector.extract_strided_slice %12 {offsets = [48, 0], sizes = [8, 256], strides = [1, 1]} : vector<200x256xf32> to vector<8x256xf32>
    %c6 = arith.constant 6 : index
    %c0_22 = arith.constant 0 : index
    %c0_23 = arith.constant 0 : index
    %49 = vector.load %arg4[%c6, %c0_22, %c0_23] : memref<25x1x256xf32, #tpu.memory_space<vmem>>, vector<1x1x256xf32>
    %50 = vector.shape_cast %49 : vector<1x1x256xf32> to vector<1x256xf32>
    %51 = vector.broadcast %50 : vector<1x256xf32> to vector<8x256xf32>
    %52 = arith.mulf %48, %51 : vector<8x256xf32>
    %53 = arith.addf %47, %52 : vector<8x256xf32>
    %54 = vector.extract_strided_slice %12 {offsets = [56, 0], sizes = [8, 256], strides = [1, 1]} : vector<200x256xf32> to vector<8x256xf32>
    %c7 = arith.constant 7 : index
    %c0_24 = arith.constant 0 : index
    %c0_25 = arith.constant 0 : index
    %55 = vector.load %arg4[%c7, %c0_24, %c0_25] : memref<25x1x256xf32, #tpu.memory_space<vmem>>, vector<1x1x256xf32>
    %56 = vector.shape_cast %55 : vector<1x1x256xf32> to vector<1x256xf32>
    %57 = vector.broadcast %56 : vector<1x256xf32> to vector<8x256xf32>
    %58 = arith.mulf %54, %57 : vector<8x256xf32>
    %59 = arith.addf %53, %58 : vector<8x256xf32>
    %60 = vector.extract_strided_slice %12 {offsets = [64, 0], sizes = [8, 256], strides = [1, 1]} : vector<200x256xf32> to vector<8x256xf32>
    %c8 = arith.constant 8 : index
    %c0_26 = arith.constant 0 : index
    %c0_27 = arith.constant 0 : index
    %61 = vector.load %arg4[%c8, %c0_26, %c0_27] : memref<25x1x256xf32, #tpu.memory_space<vmem>>, vector<1x1x256xf32>
    %62 = vector.shape_cast %61 : vector<1x1x256xf32> to vector<1x256xf32>
    %63 = vector.broadcast %62 : vector<1x256xf32> to vector<8x256xf32>
    %64 = arith.mulf %60, %63 : vector<8x256xf32>
    %65 = arith.addf %59, %64 : vector<8x256xf32>
    %66 = vector.extract_strided_slice %12 {offsets = [72, 0], sizes = [8, 256], strides = [1, 1]} : vector<200x256xf32> to vector<8x256xf32>
    %c9 = arith.constant 9 : index
    %c0_28 = arith.constant 0 : index
    %c0_29 = arith.constant 0 : index
    %67 = vector.load %arg4[%c9, %c0_28, %c0_29] : memref<25x1x256xf32, #tpu.memory_space<vmem>>, vector<1x1x256xf32>
    %68 = vector.shape_cast %67 : vector<1x1x256xf32> to vector<1x256xf32>
    %69 = vector.broadcast %68 : vector<1x256xf32> to vector<8x256xf32>
    %70 = arith.mulf %66, %69 : vector<8x256xf32>
    %71 = arith.addf %65, %70 : vector<8x256xf32>
    %72 = vector.extract_strided_slice %12 {offsets = [80, 0], sizes = [8, 256], strides = [1, 1]} : vector<200x256xf32> to vector<8x256xf32>
    %c10 = arith.constant 10 : index
    %c0_30 = arith.constant 0 : index
    %c0_31 = arith.constant 0 : index
    %73 = vector.load %arg4[%c10, %c0_30, %c0_31] : memref<25x1x256xf32, #tpu.memory_space<vmem>>, vector<1x1x256xf32>
    %74 = vector.shape_cast %73 : vector<1x1x256xf32> to vector<1x256xf32>
    %75 = vector.broadcast %74 : vector<1x256xf32> to vector<8x256xf32>
    %76 = arith.mulf %72, %75 : vector<8x256xf32>
    %77 = arith.addf %71, %76 : vector<8x256xf32>
    %78 = vector.extract_strided_slice %12 {offsets = [88, 0], sizes = [8, 256], strides = [1, 1]} : vector<200x256xf32> to vector<8x256xf32>
    %c11 = arith.constant 11 : index
    %c0_32 = arith.constant 0 : index
    %c0_33 = arith.constant 0 : index
    %79 = vector.load %arg4[%c11, %c0_32, %c0_33] : memref<25x1x256xf32, #tpu.memory_space<vmem>>, vector<1x1x256xf32>
    %80 = vector.shape_cast %79 : vector<1x1x256xf32> to vector<1x256xf32>
    %81 = vector.broadcast %80 : vector<1x256xf32> to vector<8x256xf32>
    %82 = arith.mulf %78, %81 : vector<8x256xf32>
    %83 = arith.addf %77, %82 : vector<8x256xf32>
    %84 = vector.extract_strided_slice %12 {offsets = [96, 0], sizes = [8, 256], strides = [1, 1]} : vector<200x256xf32> to vector<8x256xf32>
    %c12 = arith.constant 12 : index
    %c0_34 = arith.constant 0 : index
    %c0_35 = arith.constant 0 : index
    %85 = vector.load %arg4[%c12, %c0_34, %c0_35] : memref<25x1x256xf32, #tpu.memory_space<vmem>>, vector<1x1x256xf32>
    %86 = vector.shape_cast %85 : vector<1x1x256xf32> to vector<1x256xf32>
    %87 = vector.broadcast %86 : vector<1x256xf32> to vector<8x256xf32>
    %88 = arith.mulf %84, %87 : vector<8x256xf32>
    %89 = arith.addf %83, %88 : vector<8x256xf32>
    %90 = vector.extract_strided_slice %12 {offsets = [104, 0], sizes = [8, 256], strides = [1, 1]} : vector<200x256xf32> to vector<8x256xf32>
    %c13 = arith.constant 13 : index
    %c0_36 = arith.constant 0 : index
    %c0_37 = arith.constant 0 : index
    %91 = vector.load %arg4[%c13, %c0_36, %c0_37] : memref<25x1x256xf32, #tpu.memory_space<vmem>>, vector<1x1x256xf32>
    %92 = vector.shape_cast %91 : vector<1x1x256xf32> to vector<1x256xf32>
    %93 = vector.broadcast %92 : vector<1x256xf32> to vector<8x256xf32>
    %94 = arith.mulf %90, %93 : vector<8x256xf32>
    %95 = arith.addf %89, %94 : vector<8x256xf32>
    %96 = vector.extract_strided_slice %12 {offsets = [112, 0], sizes = [8, 256], strides = [1, 1]} : vector<200x256xf32> to vector<8x256xf32>
    %c14 = arith.constant 14 : index
    %c0_38 = arith.constant 0 : index
    %c0_39 = arith.constant 0 : index
    %97 = vector.load %arg4[%c14, %c0_38, %c0_39] : memref<25x1x256xf32, #tpu.memory_space<vmem>>, vector<1x1x256xf32>
    %98 = vector.shape_cast %97 : vector<1x1x256xf32> to vector<1x256xf32>
    %99 = vector.broadcast %98 : vector<1x256xf32> to vector<8x256xf32>
    %100 = arith.mulf %96, %99 : vector<8x256xf32>
    %101 = arith.addf %95, %100 : vector<8x256xf32>
    %102 = vector.extract_strided_slice %12 {offsets = [120, 0], sizes = [8, 256], strides = [1, 1]} : vector<200x256xf32> to vector<8x256xf32>
    %c15 = arith.constant 15 : index
    %c0_40 = arith.constant 0 : index
    %c0_41 = arith.constant 0 : index
    %103 = vector.load %arg4[%c15, %c0_40, %c0_41] : memref<25x1x256xf32, #tpu.memory_space<vmem>>, vector<1x1x256xf32>
    %104 = vector.shape_cast %103 : vector<1x1x256xf32> to vector<1x256xf32>
    %105 = vector.broadcast %104 : vector<1x256xf32> to vector<8x256xf32>
    %106 = arith.mulf %102, %105 : vector<8x256xf32>
    %107 = arith.addf %101, %106 : vector<8x256xf32>
    %108 = vector.extract_strided_slice %12 {offsets = [128, 0], sizes = [8, 256], strides = [1, 1]} : vector<200x256xf32> to vector<8x256xf32>
    %c16 = arith.constant 16 : index
    %c0_42 = arith.constant 0 : index
    %c0_43 = arith.constant 0 : index
    %109 = vector.load %arg4[%c16, %c0_42, %c0_43] : memref<25x1x256xf32, #tpu.memory_space<vmem>>, vector<1x1x256xf32>
    %110 = vector.shape_cast %109 : vector<1x1x256xf32> to vector<1x256xf32>
    %111 = vector.broadcast %110 : vector<1x256xf32> to vector<8x256xf32>
    %112 = arith.mulf %108, %111 : vector<8x256xf32>
    %113 = arith.addf %107, %112 : vector<8x256xf32>
    %114 = vector.extract_strided_slice %12 {offsets = [136, 0], sizes = [8, 256], strides = [1, 1]} : vector<200x256xf32> to vector<8x256xf32>
    %c17 = arith.constant 17 : index
    %c0_44 = arith.constant 0 : index
    %c0_45 = arith.constant 0 : index
    %115 = vector.load %arg4[%c17, %c0_44, %c0_45] : memref<25x1x256xf32, #tpu.memory_space<vmem>>, vector<1x1x256xf32>
    %116 = vector.shape_cast %115 : vector<1x1x256xf32> to vector<1x256xf32>
    %117 = vector.broadcast %116 : vector<1x256xf32> to vector<8x256xf32>
    %118 = arith.mulf %114, %117 : vector<8x256xf32>
    %119 = arith.addf %113, %118 : vector<8x256xf32>
    %120 = vector.extract_strided_slice %12 {offsets = [144, 0], sizes = [8, 256], strides = [1, 1]} : vector<200x256xf32> to vector<8x256xf32>
    %c18 = arith.constant 18 : index
    %c0_46 = arith.constant 0 : index
    %c0_47 = arith.constant 0 : index
    %121 = vector.load %arg4[%c18, %c0_46, %c0_47] : memref<25x1x256xf32, #tpu.memory_space<vmem>>, vector<1x1x256xf32>
    %122 = vector.shape_cast %121 : vector<1x1x256xf32> to vector<1x256xf32>
    %123 = vector.broadcast %122 : vector<1x256xf32> to vector<8x256xf32>
    %124 = arith.mulf %120, %123 : vector<8x256xf32>
    %125 = arith.addf %119, %124 : vector<8x256xf32>
    %126 = vector.extract_strided_slice %12 {offsets = [152, 0], sizes = [8, 256], strides = [1, 1]} : vector<200x256xf32> to vector<8x256xf32>
    %c19 = arith.constant 19 : index
    %c0_48 = arith.constant 0 : index
    %c0_49 = arith.constant 0 : index
    %127 = vector.load %arg4[%c19, %c0_48, %c0_49] : memref<25x1x256xf32, #tpu.memory_space<vmem>>, vector<1x1x256xf32>
    %128 = vector.shape_cast %127 : vector<1x1x256xf32> to vector<1x256xf32>
    %129 = vector.broadcast %128 : vector<1x256xf32> to vector<8x256xf32>
    %130 = arith.mulf %126, %129 : vector<8x256xf32>
    %131 = arith.addf %125, %130 : vector<8x256xf32>
    %132 = vector.extract_strided_slice %12 {offsets = [160, 0], sizes = [8, 256], strides = [1, 1]} : vector<200x256xf32> to vector<8x256xf32>
    %c20 = arith.constant 20 : index
    %c0_50 = arith.constant 0 : index
    %c0_51 = arith.constant 0 : index
    %133 = vector.load %arg4[%c20, %c0_50, %c0_51] : memref<25x1x256xf32, #tpu.memory_space<vmem>>, vector<1x1x256xf32>
    %134 = vector.shape_cast %133 : vector<1x1x256xf32> to vector<1x256xf32>
    %135 = vector.broadcast %134 : vector<1x256xf32> to vector<8x256xf32>
    %136 = arith.mulf %132, %135 : vector<8x256xf32>
    %137 = arith.addf %131, %136 : vector<8x256xf32>
    %138 = vector.extract_strided_slice %12 {offsets = [168, 0], sizes = [8, 256], strides = [1, 1]} : vector<200x256xf32> to vector<8x256xf32>
    %c21 = arith.constant 21 : index
    %c0_52 = arith.constant 0 : index
    %c0_53 = arith.constant 0 : index
    %139 = vector.load %arg4[%c21, %c0_52, %c0_53] : memref<25x1x256xf32, #tpu.memory_space<vmem>>, vector<1x1x256xf32>
    %140 = vector.shape_cast %139 : vector<1x1x256xf32> to vector<1x256xf32>
    %141 = vector.broadcast %140 : vector<1x256xf32> to vector<8x256xf32>
    %142 = arith.mulf %138, %141 : vector<8x256xf32>
    %143 = arith.addf %137, %142 : vector<8x256xf32>
    %144 = vector.extract_strided_slice %12 {offsets = [176, 0], sizes = [8, 256], strides = [1, 1]} : vector<200x256xf32> to vector<8x256xf32>
    %c22 = arith.constant 22 : index
    %c0_54 = arith.constant 0 : index
    %c0_55 = arith.constant 0 : index
    %145 = vector.load %arg4[%c22, %c0_54, %c0_55] : memref<25x1x256xf32, #tpu.memory_space<vmem>>, vector<1x1x256xf32>
    %146 = vector.shape_cast %145 : vector<1x1x256xf32> to vector<1x256xf32>
    %147 = vector.broadcast %146 : vector<1x256xf32> to vector<8x256xf32>
    %148 = arith.mulf %144, %147 : vector<8x256xf32>
    %149 = arith.addf %143, %148 : vector<8x256xf32>
    %150 = vector.extract_strided_slice %12 {offsets = [184, 0], sizes = [8, 256], strides = [1, 1]} : vector<200x256xf32> to vector<8x256xf32>
    %c23 = arith.constant 23 : index
    %c0_56 = arith.constant 0 : index
    %c0_57 = arith.constant 0 : index
    %151 = vector.load %arg4[%c23, %c0_56, %c0_57] : memref<25x1x256xf32, #tpu.memory_space<vmem>>, vector<1x1x256xf32>
    %152 = vector.shape_cast %151 : vector<1x1x256xf32> to vector<1x256xf32>
    %153 = vector.broadcast %152 : vector<1x256xf32> to vector<8x256xf32>
    %154 = arith.mulf %150, %153 : vector<8x256xf32>
    %155 = arith.addf %149, %154 : vector<8x256xf32>
    %156 = vector.extract_strided_slice %12 {offsets = [192, 0], sizes = [8, 256], strides = [1, 1]} : vector<200x256xf32> to vector<8x256xf32>
    %c24 = arith.constant 24 : index
    %c0_58 = arith.constant 0 : index
    %c0_59 = arith.constant 0 : index
    %157 = vector.load %arg4[%c24, %c0_58, %c0_59] : memref<25x1x256xf32, #tpu.memory_space<vmem>>, vector<1x1x256xf32>
    %158 = vector.shape_cast %157 : vector<1x1x256xf32> to vector<1x256xf32>
    %159 = vector.broadcast %158 : vector<1x256xf32> to vector<8x256xf32>
    %160 = arith.mulf %156, %159 : vector<8x256xf32>
    %161 = arith.addf %155, %160 : vector<8x256xf32>
    %c0_60 = arith.constant 0 : index
    %c0_61 = arith.constant 0 : index
    %162 = vector.load %arg5[%c0_60, %c0_61] : memref<1x256xf32, #tpu.memory_space<vmem>>, vector<1x256xf32>
    %163 = vector.broadcast %162 : vector<1x256xf32> to vector<8x256xf32>
    %164 = arith.addf %161, %163 : vector<8x256xf32>
    %cst_62 = arith.constant 0.000000e+00 : f32
    %cst_63 = arith.constant 6.000000e+00 : f32
    %165 = vector.broadcast %cst_62 : f32 to vector<8x256xf32>
    %166 = arith.maximumf %165, %164 : vector<8x256xf32>
    %167 = vector.broadcast %cst_63 : f32 to vector<8x256xf32>
    %168 = arith.minimumf %167, %166 : vector<8x256xf32>
    %c0_64 = arith.constant 0 : index
    %c0_65 = arith.constant 0 : index
    %169 = vector.load %arg10[%c0_64, %c0_65] : memref<2x8xf32, #tpu.memory_space<vmem>>, vector<2x8xf32>
    %cst_66 = arith.constant dense<0.000000e+00> : vector<2x256xf32>
    %170 = tpu.matmul %169, %168, %cst_66 {dimension_numbers = #tpu.dot_dimension_numbers<[1], [0], [0], [1], [0, 0, 1, 1], [], []>} : vector<2x8xf32>, vector<8x256xf32>, vector<2x256xf32> -> vector<2x256xf32>
    %c0_67 = arith.constant 0 : index
    %c0_68 = arith.constant 0 : index
    %171 = vector.load %arg6[%c0_67, %c0_68] : memref<256x128xf32, #tpu.memory_space<vmem>>, vector<256x128xf32>
    %cst_69 = arith.constant dense<0.000000e+00> : vector<2x128xf32>
    %172 = tpu.matmul %170, %171, %cst_69 {dimension_numbers = #tpu.dot_dimension_numbers<[1], [0], [0], [1], [0, 0, 1, 1], [], []>} : vector<2x256xf32>, vector<256x128xf32>, vector<2x128xf32> -> vector<2x128xf32>
    %c0_70 = arith.constant 0 : index
    %c0_71 = arith.constant 0 : index
    %173 = vector.load %arg7[%c0_70, %c0_71] : memref<1x128xf32, #tpu.memory_space<vmem>>, vector<1x128xf32>
    %174 = vector.broadcast %173 : vector<1x128xf32> to vector<2x128xf32>
    %175 = arith.addf %172, %174 : vector<2x128xf32>
    %cst_72 = arith.constant 0.000000e+00 : f32
    %176 = vector.broadcast %cst_72 : f32 to vector<2x128xf32>
    %177 = arith.maximumf %175, %176 : vector<2x128xf32>
    %c0_73 = arith.constant 0 : index
    %c0_74 = arith.constant 0 : index
    %178 = vector.load %arg8[%c0_73, %c0_74] : memref<128x256xf32, #tpu.memory_space<vmem>>, vector<128x256xf32>
    %cst_75 = arith.constant dense<0.000000e+00> : vector<2x256xf32>
    %179 = tpu.matmul %177, %178, %cst_75 {dimension_numbers = #tpu.dot_dimension_numbers<[1], [0], [0], [1], [0, 0, 1, 1], [], []>} : vector<2x128xf32>, vector<128x256xf32>, vector<2x256xf32> -> vector<2x256xf32>
    %c0_76 = arith.constant 0 : index
    %c0_77 = arith.constant 0 : index
    %180 = vector.load %arg9[%c0_76, %c0_77] : memref<1x256xf32, #tpu.memory_space<vmem>>, vector<1x256xf32>
    %181 = vector.broadcast %180 : vector<1x256xf32> to vector<2x256xf32>
    %182 = arith.addf %179, %181 : vector<2x256xf32>
    %cst_78 = arith.constant 3.000000e+00 : f32
    %183 = vector.broadcast %cst_78 : f32 to vector<2x256xf32>
    %184 = arith.addf %182, %183 : vector<2x256xf32>
    %cst_79 = arith.constant 0.000000e+00 : f32
    %cst_80 = arith.constant 6.000000e+00 : f32
    %185 = vector.broadcast %cst_79 : f32 to vector<2x256xf32>
    %186 = arith.maximumf %185, %184 : vector<2x256xf32>
    %187 = vector.broadcast %cst_80 : f32 to vector<2x256xf32>
    %188 = arith.minimumf %187, %186 : vector<2x256xf32>
    %cst_81 = arith.constant 0.166666672 : f32
    %189 = vector.broadcast %cst_81 : f32 to vector<2x256xf32>
    %190 = arith.mulf %188, %189 : vector<2x256xf32>
    %c0_82 = arith.constant 0 : index
    %c0_83 = arith.constant 0 : index
    %191 = vector.load %arg11[%c0_82, %c0_83] : memref<8x2xf32, #tpu.memory_space<vmem>>, vector<8x2xf32>
    %cst_84 = arith.constant dense<0.000000e+00> : vector<8x256xf32>
    %192 = tpu.matmul %191, %190, %cst_84 {dimension_numbers = #tpu.dot_dimension_numbers<[1], [0], [0], [1], [0, 0, 1, 1], [], []>} : vector<8x2xf32>, vector<2x256xf32>, vector<8x256xf32> -> vector<8x256xf32>
    %193 = arith.mulf %168, %192 : vector<8x256xf32>
    %c0_85 = arith.constant 0 : index
    %c0_86 = arith.constant 0 : index
    %194 = vector.load %arg12[%c0_85, %c0_86] : memref<256x128xf32, #tpu.memory_space<vmem>>, vector<256x128xf32>
    %cst_87 = arith.constant dense<0.000000e+00> : vector<8x128xf32>
    %195 = tpu.matmul %193, %194, %cst_87 {dimension_numbers = #tpu.dot_dimension_numbers<[1], [0], [0], [1], [0, 0, 1, 1], [], []>} : vector<8x256xf32>, vector<256x128xf32>, vector<8x128xf32> -> vector<8x128xf32>
    %c0_88 = arith.constant 0 : index
    %c0_89 = arith.constant 0 : index
    %196 = vector.load %arg13[%c0_88, %c0_89] : memref<1x128xf32, #tpu.memory_space<vmem>>, vector<1x128xf32>
    %197 = vector.broadcast %196 : vector<1x128xf32> to vector<8x128xf32>
    %198 = arith.addf %195, %197 : vector<8x128xf32>
    %c96 = arith.constant 96 : index
    %c0_90 = arith.constant 0 : index
    %199 = vector.load %arg0[%c96, %c0_90] : memref<200x128xf32, #tpu.memory_space<vmem>>, vector<8x128xf32>
    %200 = arith.addf %198, %199 : vector<8x128xf32>
    %c0_91 = arith.constant 0 : index
    %c0_92 = arith.constant 0 : index
    %201 = vector.load %arg14[%c0_91, %c0_92] : memref<8x128xf32, #tpu.memory_space<vmem>>, vector<8x128xf32>
    tpu.vector_store %arg14[%c0_91, %c0_92], %200 {strides = array<i32>} : memref<8x128xf32, #tpu.memory_space<vmem>>, vector<8x128xf32>,
    return
  }
}

</mosaic_0001>

<bundles_post_ra>
// kernel: mobilenet_v3_like.9
= control target key start
LH: loop header
LB: loop body
LE: loop exit
PB: predicated region body
PF: predicated region fallthrough
CT: control target
= control target key end

     0   :  { %s1460_s1 = inlined_call_operand.vmem [shape: f32[128,128], index: 1, kind: input, shape index: {}]   ;;  %s1461_s0 = inlined_call_operand.vmem [shape: f32[512,128], index: 0, kind: input, shape index: {}]   ;;  %s1462_s2 = inlined_call_operand.vmem [shape: f32[1,128], index: 2, kind: input, shape index: {}]   ;;  %s1463_s3 = inlined_call_operand.vmem [shape: f32[512,128], index: 3, kind: output, shape index: {}]  }
   0x1   :  { %v78_v0 = vld [vmem:[%s1460_s1] sm:$0xff]  ;;  %v79_v1 = vld [vmem:[%s1460_s1 + $0x8] sm:$0xff]  ;;  %v80_v2 = vld [vmem:[%s1460_s1 + $0x10] sm:$0xff] }
   0x2   :  { %v891_v3 = vpack.c.bf16 %v79_v1, %v78_v0  ;;  %v81_v4 = vld [vmem:[%s1460_s1 + $0x18] sm:$0xff]  ;;  %v82_v6 = vld [vmem:[%s1460_s1 + $0x20] sm:$0xff]  ;;  %v83_v7 = vld [vmem:[%s1460_s1 + $0x28] sm:$0xff] }
   0x3   :  { %v895_v5 = vpack.c.bf16 %v81_v4, %v80_v2  ;;  %v899_v8 = vpack.c.bf16 %v83_v7, %v82_v6  ;;  %v14_v9 = vld [vmem:[%s1461_s0] sm:$0xff]  ;;  %v84_v11 = vld [vmem:[%s1460_s1 + $0x30] sm:$0xff]  ;;  %v85_v12 = vld [vmem:[%s1460_s1 + $0x38] sm:$0xff] }
   0x4   :  { %892 = vmatprep.subr.bf16.mxu0 %v891_v3  ;;  %923 = vmatprep.subr.bf16.mxu1 %v891_v3  ;;  %v46_v10 = vld [vmem:[%s1461_s0 + $0x100] sm:$0xff]  ;;  %v903_v13 = vpack.c.bf16 %v85_v12, %v84_v11  ;;  %v87_v15 = vld [vmem:[%s1460_s1 + $0x48] sm:$0xff]  ;;  %v88_v17 = vld [vmem:[%s1460_s1 + $0x50] sm:$0xff] }
   0x5   :  { %894 = vmatpush3.bf16.msra.mxu0 %v891_v3  ;;  %931 = vmatpush3.bf16.msra.mxu1 %v891_v3  ;;  %v86_v14 = vld [vmem:[%s1460_s1 + $0x40] sm:$0xff]  ;;  %v89_v18 = vld [vmem:[%s1460_s1 + $0x58] sm:$0xff]  ;;  %v91_v21 = vld [vmem:[%s1460_s1 + $0x68] sm:$0xff] }
   0x6   :  { %896 = vmatprep.subr.bf16.mxu0 %v895_v5  ;;  %924 = vmatprep.subr.bf16.mxu1 %v895_v5  ;;  %v907_v16 = vpack.c.bf16 %v87_v15, %v86_v14  ;;  %v911_v19 = vpack.c.bf16 %v89_v18, %v88_v17  ;;  %v90_v20 = vld [vmem:[%s1460_s1 + $0x60] sm:$0xff]  ;;  %v92_v23 = vld [vmem:[%s1460_s1 + $0x70] sm:$0xff]  ;;  %v93_v24 = vld [vmem:[%s1460_s1 + $0x78] sm:$0xff] }
   0x7   :  { %795 = vmatprep.mubr.f32.mxu0 %v14_v9  ;;  %843 = vmatprep.mubr.f32.mxu1 %v46_v10  ;;  %v915_v22 = vpack.c.bf16 %v91_v21, %v90_v20  ;;  %v919_v25 = vpack.c.bf16 %v93_v24, %v92_v23  ;;  %v15_v26 = vld [vmem:[%s1461_s0 + $0x8] sm:$0xff]  ;;  %v16_v28 = vld [vmem:[%s1461_s0 + $0x10] sm:$0xff]  ;;  %v17_v30 = vld [vmem:[%s1461_s0 + $0x18] sm:$0xff] }
   0x8   :  { %v47_v27 = vld [vmem:[%s1461_s0 + $0x108] sm:$0xff]  ;;  %v48_v29 = vld [vmem:[%s1461_s0 + $0x110] sm:$0xff]  ;;  %v49_v31 = vld [vmem:[%s1461_s0 + $0x118] sm:$0xff] }
   0x9   :  { %898 = vmatpush3.bf16.msra.mxu0 %v895_v5  ;;  %932 = vmatpush3.bf16.msra.mxu1 %v895_v5  ;;  %v18_v32 = vld [vmem:[%s1461_s0 + $0x20] sm:$0xff]  ;;  %v19_v34 = vld [vmem:[%s1461_s0 + $0x28] sm:$0xff]  ;;  %v20_v36 = vld [vmem:[%s1461_s0 + $0x30] sm:$0xff] }
   0xa   :  { %900 = vmatprep.subr.bf16.mxu0 %v899_v8  ;;  %925 = vmatprep.subr.bf16.mxu1 %v899_v8  ;;  %v50_v33 = vld [vmem:[%s1461_s0 + $0x120] sm:$0xff]  ;;  %v51_v35 = vld [vmem:[%s1461_s0 + $0x128] sm:$0xff]  ;;  %v52_v37 = vld [vmem:[%s1461_s0 + $0x130] sm:$0xff] }
   0xb   :  { %v21_v38 = vld [vmem:[%s1461_s0 + $0x38] sm:$0xff]  ;;  %v22_v40 = vld [vmem:[%s1461_s0 + $0x40] sm:$0xff]  ;;  %v23_v42 = vld [vmem:[%s1461_s0 + $0x48] sm:$0xff] }
   0xc   :  { %v53_v39 = vld [vmem:[%s1461_s0 + $0x138] sm:$0xff]  ;;  %v54_v41 = vld [vmem:[%s1461_s0 + $0x140] sm:$0xff]  ;;  %v55_v43 = vld [vmem:[%s1461_s0 + $0x148] sm:$0xff] }
   0xd   :  { %902 = vmatpush3.bf16.msra.mxu0 %v899_v8  ;;  %933 = vmatpush3.bf16.msra.mxu1 %v899_v8  ;;  %v24_v44 = vld [vmem:[%s1461_s0 + $0x50] sm:$0xff]  ;;  %v25_v46 = vld [vmem:[%s1461_s0 + $0x58] sm:$0xff]  ;;  %v26_v48 = vld [vmem:[%s1461_s0 + $0x60] sm:$0xff] }
   0xe   :  { %904 = vmatprep.subr.bf16.mxu0 %v903_v13  ;;  %926 = vmatprep.subr.bf16.mxu1 %v903_v13  ;;  %v56_v45 = vld [vmem:[%s1461_s0 + $0x150] sm:$0xff]  ;;  %v57_v47 = vld [vmem:[%s1461_s0 + $0x158] sm:$0xff]  ;;  %v58_v49 = vld [vmem:[%s1461_s0 + $0x160] sm:$0xff] }
   0xf   :  { %v27_v50 = vld [vmem:[%s1461_s0 + $0x68] sm:$0xff]  ;;  %v28_v52 = vld [vmem:[%s1461_s0 + $0x70] sm:$0xff]  ;;  %v29_v54 = vld [vmem:[%s1461_s0 + $0x78] sm:$0xff] }
  0x10   :  { %v59_v51 = vld [vmem:[%s1461_s0 + $0x168] sm:$0xff]  ;;  %v60_v53 = vld [vmem:[%s1461_s0 + $0x170] sm:$0xff]  ;;  %v61_v55 = vld [vmem:[%s1461_s0 + $0x178] sm:$0xff] }
  0x11   :  { %906 = vmatpush3.bf16.msra.mxu0 %v903_v13  ;;  %934 = vmatpush3.bf16.msra.mxu1 %v903_v13  ;;  %v30_v56 = vld [vmem:[%s1461_s0 + $0x80] sm:$0xff]  ;;  %v31_v58 = vld [vmem:[%s1461_s0 + $0x88] sm:$0xff]  ;;  %v32_v60 = vld [vmem:[%s1461_s0 + $0x90] sm:$0xff] }
  0x12   :  { %908 = vmatprep.subr.bf16.mxu0 %v907_v16  ;;  %927 = vmatprep.subr.bf16.mxu1 %v907_v16  ;;  %v62_v57 = vld [vmem:[%s1461_s0 + $0x180] sm:$0xff]  ;;  %v63_v59 = vld [vmem:[%s1461_s0 + $0x188] sm:$0xff]  ;;  %v64_v61 = vld [vmem:[%s1461_s0 + $0x190] sm:$0xff] }
  0x13   :  { %v33_v62 = vld [vmem:[%s1461_s0 + $0x98] sm:$0xff]  ;;  %v34_v0 = vld [vmem:[%s1461_s0 + $0xa0] sm:$0xff]  ;;  %v35_v2 = vld [vmem:[%s1461_s0 + $0xa8] sm:$0xff] }
  0x14   :  { %v65_v63 = vld [vmem:[%s1461_s0 + $0x198] sm:$0xff]  ;;  %v66_v1 = vld [vmem:[%s1461_s0 + $0x1a0] sm:$0xff]  ;;  %v67_v3 = vld [vmem:[%s1461_s0 + $0x1a8] sm:$0xff] }
  0x15   :  { %910 = vmatpush3.bf16.msra.mxu0 %v907_v16  ;;  %935 = vmatpush3.bf16.msra.mxu1 %v907_v16  ;;  %v36_v4 = vld [vmem:[%s1461_s0 + $0xb0] sm:$0xff]  ;;  %v37_v6 = vld [vmem:[%s1461_s0 + $0xb8] sm:$0xff]  ;;  %v38_v8 = vld [vmem:[%s1461_s0 + $0xc0] sm:$0xff] }
  0x16   :  { %912 = vmatprep.subr.bf16.mxu0 %v911_v19  ;;  %928 = vmatprep.subr.bf16.mxu1 %v911_v19  ;;  %v68_v5 = vld [vmem:[%s1461_s0 + $0x1b0] sm:$0xff]  ;;  %v69_v7 = vld [vmem:[%s1461_s0 + $0x1b8] sm:$0xff]  ;;  %v70_v9 = vld [vmem:[%s1461_s0 + $0x1c0] sm:$0xff] }
  0x17   :  { %v39_v10 = vld [vmem:[%s1461_s0 + $0xc8] sm:$0xff]  ;;  %v40_v12 = vld [vmem:[%s1461_s0 + $0xd0] sm:$0xff]  ;;  %v41_v14 = vld [vmem:[%s1461_s0 + $0xd8] sm:$0xff] }
  0x18   :  { %v71_v11 = vld [vmem:[%s1461_s0 + $0x1c8] sm:$0xff]  ;;  %v72_v13 = vld [vmem:[%s1461_s0 + $0x1d0] sm:$0xff]  ;;  %v73_v15 = vld [vmem:[%s1461_s0 + $0x1d8] sm:$0xff] }
  0x19   :  { %914 = vmatpush3.bf16.msra.mxu0 %v911_v19  ;;  %936 = vmatpush3.bf16.msra.mxu1 %v911_v19  ;;  %v42_v16 = vld [vmem:[%s1461_s0 + $0xe0] sm:$0xff]  ;;  %v43_v18 = vld [vmem:[%s1461_s0 + $0xe8] sm:$0xff]  ;;  %v44_v20 = vld [vmem:[%s1461_s0 + $0xf0] sm:$0xff] }
  0x1a   :  { %916 = vmatprep.subr.bf16.mxu0 %v915_v22  ;;  %929 = vmatprep.subr.bf16.mxu1 %v915_v22  ;;  %v74_v17 = vld [vmem:[%s1461_s0 + $0x1e0] sm:$0xff]  ;;  %v75_v19 = vld [vmem:[%s1461_s0 + $0x1e8] sm:$0xff]  ;;  %v76_v21 = vld [vmem:[%s1461_s0 + $0x1f0] sm:$0xff] }
  0x1b   :  { %v77_v23 = vld [vmem:[%s1461_s0 + $0x1f8] sm:$0xff]  ;;  %v1202_v24 = vld [vmem:[%s1462_s2] ss:$0 sm:$0xff] }
  0x1d   :  { %918 = vmatpush3.bf16.msra.mxu0 %v915_v22  ;;  %937 = vmatpush3.bf16.msra.mxu1 %v915_v22  ;;  %v45_v22 = vld [vmem:[%s1461_s0 + $0xf8] sm:$0xff] }
  0x1e   :  { %920 = vmatprep.subr.bf16.mxu0 %v919_v25  ;;  %930 = vmatprep.subr.bf16.mxu1 %v919_v25 }
  0x21   :  { %922 = vmatpush3.bf16.msra.mxu0 %v919_v25  ;;  %938 = vmatpush3.bf16.msra.mxu1 %v919_v25 }
  0x24   :  { %796 = vmatmul.mubr.f32.vlgmr.msra.gmra.mrb[0].mxu0 %v15_v26  ;;  %844 = vmatmul.mubr.f32.vlgmr.msra.gmra.mrb[0].mxu1 %v47_v27 }
  0x25   :  { %798 = vmatprep.mubr.f32.mxu0 %v16_v28  ;;  %846 = vmatprep.mubr.f32.mxu1 %v48_v29 }
  0x28   :  { %799 = vmatmul.mubr.f32.gmra.mrb[2].mxu0 %v17_v30  ;;  %847 = vmatmul.mubr.f32.gmra.mrb[2].mxu1 %v49_v31 }
  0x29   :  { %801 = vmatprep.mubr.f32.mxu0 %v18_v32  ;;  %849 = vmatprep.mubr.f32.mxu1 %v50_v33 }
  0x2c   :  { %802 = vmatmul.mubr.f32.gmra.mrb[4].mxu0 %v19_v34  ;;  %850 = vmatmul.mubr.f32.gmra.mrb[4].mxu1 %v51_v35 }
  0x2d   :  { %804 = vmatprep.mubr.f32.mxu0 %v20_v36  ;;  %852 = vmatprep.mubr.f32.mxu1 %v52_v37 }
  0x30   :  { %805 = vmatmul.mubr.f32.gmra.mrb[6].mxu0 %v21_v38  ;;  %853 = vmatmul.mubr.f32.gmra.mrb[6].mxu1 %v53_v39 }
  0x31   :  { %807 = vmatprep.mubr.f32.mxu0 %v22_v40  ;;  %855 = vmatprep.mubr.f32.mxu1 %v54_v41 }
  0x34   :  { %808 = vmatmul.mubr.f32.gmra.mrb[8].mxu0 %v23_v42  ;;  %856 = vmatmul.mubr.f32.gmra.mrb[8].mxu1 %v55_v43 }
  0x35   :  { %810 = vmatprep.mubr.f32.mxu0 %v24_v44  ;;  %858 = vmatprep.mubr.f32.mxu1 %v56_v45 }
  0x38   :  { %811 = vmatmul.mubr.f32.gmra.mrb[10].mxu0 %v25_v46  ;;  %859 = vmatmul.mubr.f32.gmra.mrb[10].mxu1 %v57_v47 }
  0x39   :  { %813 = vmatprep.mubr.f32.mxu0 %v26_v48  ;;  %861 = vmatprep.mubr.f32.mxu1 %v58_v49 }
  0x3c   :  { %814 = vmatmul.mubr.f32.gmra.mrb[12].mxu0 %v27_v50  ;;  %862 = vmatmul.mubr.f32.gmra.mrb[12].mxu1 %v59_v51 }
  0x3d   :  { %816 = vmatprep.mubr.f32.mxu0 %v28_v52  ;;  %864 = vmatprep.mubr.f32.mxu1 %v60_v53 }
  0x40   :  { %817 = vmatmul.mubr.f32.gmra.mrb[14].mxu0 %v29_v54  ;;  %865 = vmatmul.mubr.f32.gmra.mrb[14].mxu1 %v61_v55 }
  0x41   :  { %819 = vmatprep.mubr.f32.mxu0 %v30_v56  ;;  %867 = vmatprep.mubr.f32.mxu1 %v62_v57 }
  0x44   :  { %820 = vmatmul.mubr.f32.gmra.mrb[16].mxu0 %v31_v58  ;;  %868 = vmatmul.mubr.f32.gmra.mrb[16].mxu1 %v63_v59 }
  0x45   :  { %822 = vmatprep.mubr.f32.mxu0 %v32_v60  ;;  %870 = vmatprep.mubr.f32.mxu1 %v64_v61 }
  0x48   :  { %823 = vmatmul.mubr.f32.gmra.mrb[18].mxu0 %v33_v62  ;;  %871 = vmatmul.mubr.f32.gmra.mrb[18].mxu1 %v65_v63 }
  0x49   :  { %825 = vmatprep.mubr.f32.mxu0 %v34_v0  ;;  %873 = vmatprep.mubr.f32.mxu1 %v66_v1 }
  0x4c   :  { %826 = vmatmul.mubr.f32.gmra.mrb[20].mxu0 %v35_v2  ;;  %874 = vmatmul.mubr.f32.gmra.mrb[20].mxu1 %v67_v3 }
  0x4d   :  { %828 = vmatprep.mubr.f32.mxu0 %v36_v4  ;;  %876 = vmatprep.mubr.f32.mxu1 %v68_v5 }
  0x50   :  { %829 = vmatmul.mubr.f32.gmra.mrb[22].mxu0 %v37_v6  ;;  %877 = vmatmul.mubr.f32.gmra.mrb[22].mxu1 %v69_v7 }
  0x51   :  { %831 = vmatprep.mubr.f32.mxu0 %v38_v8  ;;  %879 = vmatprep.mubr.f32.mxu1 %v70_v9 }
  0x54   :  { %832 = vmatmul.mubr.f32.gmra.mrb[24].mxu0 %v39_v10  ;;  %880 = vmatmul.mubr.f32.gmra.mrb[24].mxu1 %v71_v11 }
  0x55   :  { %834 = vmatprep.mubr.f32.mxu0 %v40_v12  ;;  %882 = vmatprep.mubr.f32.mxu1 %v72_v13 }
  0x58   :  { %835 = vmatmul.mubr.f32.gmra.mrb[26].mxu0 %v41_v14  ;;  %883 = vmatmul.mubr.f32.gmra.mrb[26].mxu1 %v73_v15 }
  0x59   :  { %837 = vmatprep.mubr.f32.mxu0 %v42_v16  ;;  %885 = vmatprep.mubr.f32.mxu1 %v74_v17 }
  0x5c   :  { %838 = vmatmul.mubr.f32.gmra.mrb[28].mxu0 %v43_v18  ;;  %886 = vmatmul.mubr.f32.gmra.mrb[28].mxu1 %v75_v19 }
  0x5d   :  { %840 = vmatprep.mubr.f32.mxu0 %v44_v20  ;;  %888 = vmatprep.mubr.f32.mxu1 %v76_v21 }
  0x60   :  { %841 = vmatmul.mubr.f32.gmra.mrb[30].mxu0 %v45_v22  ;;  %889 = vmatmul.mubr.f32.gmra.mrb[30].mxu1 %v77_v23 }
  0xf7   :  { %v797_v25 = vpop.f32.mrb[0].mxu0  ;;  %v845_v26 = vpop.f32.mrb[0].mxu1 }
  0xf8   :  { %v173_v27 = vadd.f32 %v797_v25, %v1202_v24  ;;  %v333_v28 = vadd.f32 %v845_v26, %v1202_v24  ;;  %v167_v29 = vpop.f32.mrb[1].mxu0  ;;  %v327_v30 = vpop.f32.mrb[1].mxu1 }
  0xf9   :  { %v168_v31 = vadd.f32 %v1202_v24, %v167_v29  ;;  %v328_v32 = vadd.f32 %v1202_v24, %v327_v30 }
  0xfa   :  { %v487_v33 = vmax.f32 %v173_v27, 0.0  ;;  %v519_v34 = vmax.f32 %v333_v28, 0.0 }
  0xfb   :  { %v486_v35 = vmax.f32 %v168_v31, 0.0  ;;  %v518_v36 = vmax.f32 %v328_v32, 0.0  ;;  %v800_v37 = vpop.f32.mrb[2].mxu0  ;;  %v848_v38 = vpop.f32.mrb[2].mxu1 }
  0xfc   :  { %v551_v39 = vmin.f32 %v487_v33, 6.0  ;;  %v583_v40 = vmin.f32 %v519_v34, 6.0  ;;  %v183_v41 = vadd.f32 %v800_v37, %v1202_v24  ;;  %v343_v42 = vadd.f32 %v848_v38, %v1202_v24  ;;  %v177_v43 = vpop.f32.mrb[3].mxu0  ;;  %v337_v44 = vpop.f32.mrb[3].mxu1 }
  0xfd   :  { %v550_v45 = vmin.f32 %v486_v35, 6.0  ;;  %v582_v46 = vmin.f32 %v518_v36, 6.0  ;;  %v178_v47 = vadd.f32 %v1202_v24, %v177_v43  ;;  %v338_v48 = vadd.f32 %v1202_v24, %v337_v44 }
  0xfe   :  { %615 = vst [vmem:[%s1463_s3 + $0x8] sm:$0xff] %v551_v39  ;;  %647 = vst [vmem:[%s1463_s3 + $0x108] sm:$0xff] %v583_v40  ;;  %v489_v49 = vmax.f32 %v183_v41, 0.0  ;;  %v521_v50 = vmax.f32 %v343_v42, 0.0 }
  0xff   :  { %614 = vst [vmem:[%s1463_s3] sm:$0xff] %v550_v45  ;;  %646 = vst [vmem:[%s1463_s3 + $0x100] sm:$0xff] %v582_v46  ;;  %v488_v51 = vmax.f32 %v178_v47, 0.0  ;;  %v520_v52 = vmax.f32 %v338_v48, 0.0  ;;  %v803_v53 = vpop.f32.mrb[4].mxu0  ;;  %v851_v54 = vpop.f32.mrb[4].mxu1 }
 0x100   :  { %v553_v55 = vmin.f32 %v489_v49, 6.0  ;;  %v585_v56 = vmin.f32 %v521_v50, 6.0  ;;  %v193_v57 = vadd.f32 %v803_v53, %v1202_v24  ;;  %v353_v58 = vadd.f32 %v851_v54, %v1202_v24  ;;  %v187_v59 = vpop.f32.mrb[5].mxu0  ;;  %v347_v60 = vpop.f32.mrb[5].mxu1 }
 0x101   :  { %v552_v61 = vmin.f32 %v488_v51, 6.0  ;;  %v584_v62 = vmin.f32 %v520_v52, 6.0  ;;  %v188_v63 = vadd.f32 %v1202_v24, %v187_v59  ;;  %v348_v0 = vadd.f32 %v1202_v24, %v347_v60 }
 0x102   :  { %617 = vst [vmem:[%s1463_s3 + $0x18] sm:$0xff] %v553_v55  ;;  %649 = vst [vmem:[%s1463_s3 + $0x118] sm:$0xff] %v585_v56  ;;  %v491_v1 = vmax.f32 %v193_v57, 0.0  ;;  %v523_v2 = vmax.f32 %v353_v58, 0.0 }
 0x103   :  { %616 = vst [vmem:[%s1463_s3 + $0x10] sm:$0xff] %v552_v61  ;;  %648 = vst [vmem:[%s1463_s3 + $0x110] sm:$0xff] %v584_v62  ;;  %v490_v3 = vmax.f32 %v188_v63, 0.0  ;;  %v522_v4 = vmax.f32 %v348_v0, 0.0  ;;  %v806_v5 = vpop.f32.mrb[6].mxu0  ;;  %v854_v6 = vpop.f32.mrb[6].mxu1 }
 0x104   :  { %v555_v7 = vmin.f32 %v491_v1, 6.0  ;;  %v587_v8 = vmin.f32 %v523_v2, 6.0  ;;  %v203_v9 = vadd.f32 %v806_v5, %v1202_v24  ;;  %v363_v10 = vadd.f32 %v854_v6, %v1202_v24  ;;  %v197_v11 = vpop.f32.mrb[7].mxu0  ;;  %v357_v12 = vpop.f32.mrb[7].mxu1 }
 0x105   :  { %v554_v13 = vmin.f32 %v490_v3, 6.0  ;;  %v586_v14 = vmin.f32 %v522_v4, 6.0  ;;  %v198_v15 = vadd.f32 %v1202_v24, %v197_v11  ;;  %v358_v16 = vadd.f32 %v1202_v24, %v357_v12 }
 0x106   :  { %619 = vst [vmem:[%s1463_s3 + $0x28] sm:$0xff] %v555_v7  ;;  %651 = vst [vmem:[%s1463_s3 + $0x128] sm:$0xff] %v587_v8  ;;  %v493_v17 = vmax.f32 %v203_v9, 0.0  ;;  %v525_v18 = vmax.f32 %v363_v10, 0.0 }
 0x107   :  { %618 = vst [vmem:[%s1463_s3 + $0x20] sm:$0xff] %v554_v13  ;;  %650 = vst [vmem:[%s1463_s3 + $0x120] sm:$0xff] %v586_v14  ;;  %v492_v19 = vmax.f32 %v198_v15, 0.0  ;;  %v524_v20 = vmax.f32 %v358_v16, 0.0  ;;  %v809_v21 = vpop.f32.mrb[8].mxu0  ;;  %v857_v22 = vpop.f32.mrb[8].mxu1 }
 0x108   :  { %v557_v23 = vmin.f32 %v493_v17, 6.0  ;;  %v589_v25 = vmin.f32 %v525_v18, 6.0  ;;  %v213_v26 = vadd.f32 %v809_v21, %v1202_v24  ;;  %v373_v27 = vadd.f32 %v857_v22, %v1202_v24  ;;  %v207_v28 = vpop.f32.mrb[9].mxu0  ;;  %v367_v29 = vpop.f32.mrb[9].mxu1 }
 0x109   :  { %v556_v30 = vmin.f32 %v492_v19, 6.0  ;;  %v588_v31 = vmin.f32 %v524_v20, 6.0  ;;  %v208_v32 = vadd.f32 %v1202_v24, %v207_v28  ;;  %v368_v33 = vadd.f32 %v1202_v24, %v367_v29 }
 0x10a   :  { %621 = vst [vmem:[%s1463_s3 + $0x38] sm:$0xff] %v557_v23  ;;  %653 = vst [vmem:[%s1463_s3 + $0x138] sm:$0xff] %v589_v25  ;;  %v495_v34 = vmax.f32 %v213_v26, 0.0  ;;  %v527_v35 = vmax.f32 %v373_v27, 0.0 }
 0x10b   :  { %620 = vst [vmem:[%s1463_s3 + $0x30] sm:$0xff] %v556_v30  ;;  %652 = vst [vmem:[%s1463_s3 + $0x130] sm:$0xff] %v588_v31  ;;  %v494_v36 = vmax.f32 %v208_v32, 0.0  ;;  %v526_v37 = vmax.f32 %v368_v33, 0.0  ;;  %v812_v38 = vpop.f32.mrb[10].mxu0  ;;  %v860_v39 = vpop.f32.mrb[10].mxu1 }
 0x10c   :  { %v559_v40 = vmin.f32 %v495_v34, 6.0  ;;  %v591_v41 = vmin.f32 %v527_v35, 6.0  ;;  %v223_v42 = vadd.f32 %v812_v38, %v1202_v24  ;;  %v383_v43 = vadd.f32 %v860_v39, %v1202_v24  ;;  %v217_v44 = vpop.f32.mrb[11].mxu0  ;;  %v377_v45 = vpop.f32.mrb[11].mxu1 }
 0x10d   :  { %v558_v46 = vmin.f32 %v494_v36, 6.0  ;;  %v590_v47 = vmin.f32 %v526_v37, 6.0  ;;  %v218_v48 = vadd.f32 %v1202_v24, %v217_v44  ;;  %v378_v49 = vadd.f32 %v1202_v24, %v377_v45 }
 0x10e   :  { %623 = vst [vmem:[%s1463_s3 + $0x48] sm:$0xff] %v559_v40  ;;  %655 = vst [vmem:[%s1463_s3 + $0x148] sm:$0xff] %v591_v41  ;;  %v497_v50 = vmax.f32 %v223_v42, 0.0  ;;  %v529_v51 = vmax.f32 %v383_v43, 0.0 }
 0x10f   :  { %622 = vst [vmem:[%s1463_s3 + $0x40] sm:$0xff] %v558_v46  ;;  %654 = vst [vmem:[%s1463_s3 + $0x140] sm:$0xff] %v590_v47  ;;  %v496_v52 = vmax.f32 %v218_v48, 0.0  ;;  %v528_v53 = vmax.f32 %v378_v49, 0.0  ;;  %v815_v54 = vpop.f32.mrb[12].mxu0  ;;  %v863_v55 = vpop.f32.mrb[12].mxu1 }
 0x110   :  { %v561_v56 = vmin.f32 %v497_v50, 6.0  ;;  %v593_v57 = vmin.f32 %v529_v51, 6.0  ;;  %v233_v58 = vadd.f32 %v815_v54, %v1202_v24  ;;  %v393_v59 = vadd.f32 %v863_v55, %v1202_v24  ;;  %v227_v60 = vpop.f32.mrb[13].mxu0  ;;  %v387_v61 = vpop.f32.mrb[13].mxu1 }
 0x111   :  { %v560_v62 = vmin.f32 %v496_v52, 6.0  ;;  %v592_v63 = vmin.f32 %v528_v53, 6.0  ;;  %v228_v0 = vadd.f32 %v1202_v24, %v227_v60  ;;  %v388_v1 = vadd.f32 %v1202_v24, %v387_v61 }
 0x112   :  { %625 = vst [vmem:[%s1463_s3 + $0x58] sm:$0xff] %v561_v56  ;;  %657 = vst [vmem:[%s1463_s3 + $0x158] sm:$0xff] %v593_v57  ;;  %v499_v2 = vmax.f32 %v233_v58, 0.0  ;;  %v531_v3 = vmax.f32 %v393_v59, 0.0 }
 0x113   :  { %624 = vst [vmem:[%s1463_s3 + $0x50] sm:$0xff] %v560_v62  ;;  %656 = vst [vmem:[%s1463_s3 + $0x150] sm:$0xff] %v592_v63  ;;  %v498_v4 = vmax.f32 %v228_v0, 0.0  ;;  %v530_v5 = vmax.f32 %v388_v1, 0.0  ;;  %v818_v6 = vpop.f32.mrb[14].mxu0  ;;  %v866_v7 = vpop.f32.mrb[14].mxu1 }
 0x114   :  { %v563_v8 = vmin.f32 %v499_v2, 6.0  ;;  %v595_v9 = vmin.f32 %v531_v3, 6.0  ;;  %v243_v10 = vadd.f32 %v818_v6, %v1202_v24  ;;  %v403_v11 = vadd.f32 %v866_v7, %v1202_v24  ;;  %v237_v12 = vpop.f32.mrb[15].mxu0  ;;  %v397_v13 = vpop.f32.mrb[15].mxu1 }
 0x115   :  { %v562_v14 = vmin.f32 %v498_v4, 6.0  ;;  %v594_v15 = vmin.f32 %v530_v5, 6.0  ;;  %v238_v16 = vadd.f32 %v1202_v24, %v237_v12  ;;  %v398_v17 = vadd.f32 %v1202_v24, %v397_v13 }
 0x116   :  { %627 = vst [vmem:[%s1463_s3 + $0x68] sm:$0xff] %v563_v8  ;;  %659 = vst [vmem:[%s1463_s3 + $0x168] sm:$0xff] %v595_v9  ;;  %v501_v18 = vmax.f32 %v243_v10, 0.0  ;;  %v533_v19 = vmax.f32 %v403_v11, 0.0 }
 0x117   :  { %626 = vst [vmem:[%s1463_s3 + $0x60] sm:$0xff] %v562_v14  ;;  %658 = vst [vmem:[%s1463_s3 + $0x160] sm:$0xff] %v594_v15  ;;  %v500_v20 = vmax.f32 %v238_v16, 0.0  ;;  %v532_v21 = vmax.f32 %v398_v17, 0.0  ;;  %v821_v22 = vpop.f32.mrb[16].mxu0  ;;  %v869_v23 = vpop.f32.mrb[16].mxu1 }
 0x118   :  { %v565_v25 = vmin.f32 %v501_v18, 6.0  ;;  %v597_v26 = vmin.f32 %v533_v19, 6.0  ;;  %v253_v27 = vadd.f32 %v821_v22, %v1202_v24  ;;  %v413_v28 = vadd.f32 %v869_v23, %v1202_v24  ;;  %v247_v29 = vpop.f32.mrb[17].mxu0  ;;  %v407_v30 = vpop.f32.mrb[17].mxu1 }
 0x119   :  { %v564_v31 = vmin.f32 %v500_v20, 6.0  ;;  %v596_v32 = vmin.f32 %v532_v21, 6.0  ;;  %v248_v33 = vadd.f32 %v1202_v24, %v247_v29  ;;  %v408_v34 = vadd.f32 %v1202_v24, %v407_v30 }
 0x11a   :  { %629 = vst [vmem:[%s1463_s3 + $0x78] sm:$0xff] %v565_v25  ;;  %661 = vst [vmem:[%s1463_s3 + $0x178] sm:$0xff] %v597_v26  ;;  %v503_v35 = vmax.f32 %v253_v27, 0.0  ;;  %v535_v36 = vmax.f32 %v413_v28, 0.0 }
 0x11b   :  { %628 = vst [vmem:[%s1463_s3 + $0x70] sm:$0xff] %v564_v31  ;;  %660 = vst [vmem:[%s1463_s3 + $0x170] sm:$0xff] %v596_v32  ;;  %v502_v37 = vmax.f32 %v248_v33, 0.0  ;;  %v534_v38 = vmax.f32 %v408_v34, 0.0  ;;  %v824_v39 = vpop.f32.mrb[18].mxu0  ;;  %v872_v40 = vpop.f32.mrb[18].mxu1 }
 0x11c   :  { %v567_v41 = vmin.f32 %v503_v35, 6.0  ;;  %v599_v42 = vmin.f32 %v535_v36, 6.0  ;;  %v263_v43 = vadd.f32 %v824_v39, %v1202_v24  ;;  %v423_v44 = vadd.f32 %v872_v40, %v1202_v24  ;;  %v257_v45 = vpop.f32.mrb[19].mxu0  ;;  %v417_v46 = vpop.f32.mrb[19].mxu1 }
 0x11d   :  { %v566_v47 = vmin.f32 %v502_v37, 6.0  ;;  %v598_v48 = vmin.f32 %v534_v38, 6.0  ;;  %v258_v49 = vadd.f32 %v1202_v24, %v257_v45  ;;  %v418_v50 = vadd.f32 %v1202_v24, %v417_v46 }
 0x11e   :  { %631 = vst [vmem:[%s1463_s3 + $0x88] sm:$0xff] %v567_v41  ;;  %663 = vst [vmem:[%s1463_s3 + $0x188] sm:$0xff] %v599_v42  ;;  %v505_v51 = vmax.f32 %v263_v43, 0.0  ;;  %v537_v52 = vmax.f32 %v423_v44, 0.0 }
 0x11f   :  { %630 = vst [vmem:[%s1463_s3 + $0x80] sm:$0xff] %v566_v47  ;;  %662 = vst [vmem:[%s1463_s3 + $0x180] sm:$0xff] %v598_v48  ;;  %v504_v53 = vmax.f32 %v258_v49, 0.0  ;;  %v536_v54 = vmax.f32 %v418_v50, 0.0  ;;  %v827_v55 = vpop.f32.mrb[20].mxu0  ;;  %v875_v56 = vpop.f32.mrb[20].mxu1 }
 0x120   :  { %v569_v57 = vmin.f32 %v505_v51, 6.0  ;;  %v601_v58 = vmin.f32 %v537_v52, 6.0  ;;  %v273_v59 = vadd.f32 %v827_v55, %v1202_v24  ;;  %v433_v60 = vadd.f32 %v875_v56, %v1202_v24  ;;  %v267_v61 = vpop.f32.mrb[21].mxu0  ;;  %v427_v62 = vpop.f32.mrb[21].mxu1 }
 0x121   :  { %v568_v63 = vmin.f32 %v504_v53, 6.0  ;;  %v600_v0 = vmin.f32 %v536_v54, 6.0  ;;  %v268_v1 = vadd.f32 %v1202_v24, %v267_v61  ;;  %v428_v2 = vadd.f32 %v1202_v24, %v427_v62 }
 0x122   :  { %633 = vst [vmem:[%s1463_s3 + $0x98] sm:$0xff] %v569_v57  ;;  %665 = vst [vmem:[%s1463_s3 + $0x198] sm:$0xff] %v601_v58  ;;  %v507_v3 = vmax.f32 %v273_v59, 0.0  ;;  %v539_v4 = vmax.f32 %v433_v60, 0.0 }
 0x123   :  { %632 = vst [vmem:[%s1463_s3 + $0x90] sm:$0xff] %v568_v63  ;;  %664 = vst [vmem:[%s1463_s3 + $0x190] sm:$0xff] %v600_v0  ;;  %v506_v5 = vmax.f32 %v268_v1, 0.0  ;;  %v538_v6 = vmax.f32 %v428_v2, 0.0  ;;  %v830_v7 = vpop.f32.mrb[22].mxu0  ;;  %v878_v8 = vpop.f32.mrb[22].mxu1 }
 0x124   :  { %v571_v9 = vmin.f32 %v507_v3, 6.0  ;;  %v603_v10 = vmin.f32 %v539_v4, 6.0  ;;  %v283_v11 = vadd.f32 %v830_v7, %v1202_v24  ;;  %v443_v12 = vadd.f32 %v878_v8, %v1202_v24  ;;  %v277_v13 = vpop.f32.mrb[23].mxu0  ;;  %v437_v14 = vpop.f32.mrb[23].mxu1 }
 0x125   :  { %v570_v15 = vmin.f32 %v506_v5, 6.0  ;;  %v602_v16 = vmin.f32 %v538_v6, 6.0  ;;  %v278_v17 = vadd.f32 %v1202_v24, %v277_v13  ;;  %v438_v18 = vadd.f32 %v1202_v24, %v437_v14 }
 0x126   :  { %635 = vst [vmem:[%s1463_s3 + $0xa8] sm:$0xff] %v571_v9  ;;  %667 = vst [vmem:[%s1463_s3 + $0x1a8] sm:$0xff] %v603_v10  ;;  %v509_v19 = vmax.f32 %v283_v11, 0.0  ;;  %v541_v20 = vmax.f32 %v443_v12, 0.0 }
 0x127   :  { %634 = vst [vmem:[%s1463_s3 + $0xa0] sm:$0xff] %v570_v15  ;;  %666 = vst [vmem:[%s1463_s3 + $0x1a0] sm:$0xff] %v602_v16  ;;  %v508_v21 = vmax.f32 %v278_v17, 0.0  ;;  %v540_v22 = vmax.f32 %v438_v18, 0.0  ;;  %v833_v23 = vpop.f32.mrb[24].mxu0  ;;  %v881_v25 = vpop.f32.mrb[24].mxu1 }
 0x128   :  { %v573_v26 = vmin.f32 %v509_v19, 6.0  ;;  %v605_v27 = vmin.f32 %v541_v20, 6.0  ;;  %v293_v28 = vadd.f32 %v833_v23, %v1202_v24  ;;  %v453_v29 = vadd.f32 %v881_v25, %v1202_v24  ;;  %v287_v30 = vpop.f32.mrb[25].mxu0  ;;  %v447_v31 = vpop.f32.mrb[25].mxu1 }
 0x129   :  { %v572_v32 = vmin.f32 %v508_v21, 6.0  ;;  %v604_v33 = vmin.f32 %v540_v22, 6.0  ;;  %v288_v34 = vadd.f32 %v1202_v24, %v287_v30  ;;  %v448_v35 = vadd.f32 %v1202_v24, %v447_v31 }
 0x12a   :  { %637 = vst [vmem:[%s1463_s3 + $0xb8] sm:$0xff] %v573_v26  ;;  %669 = vst [vmem:[%s1463_s3 + $0x1b8] sm:$0xff] %v605_v27  ;;  %v511_v36 = vmax.f32 %v293_v28, 0.0  ;;  %v543_v37 = vmax.f32 %v453_v29, 0.0 }
 0x12b   :  { %636 = vst [vmem:[%s1463_s3 + $0xb0] sm:$0xff] %v572_v32  ;;  %668 = vst [vmem:[%s1463_s3 + $0x1b0] sm:$0xff] %v604_v33  ;;  %v510_v38 = vmax.f32 %v288_v34, 0.0  ;;  %v542_v39 = vmax.f32 %v448_v35, 0.0  ;;  %v836_v40 = vpop.f32.mrb[26].mxu0  ;;  %v884_v41 = vpop.f32.mrb[26].mxu1 }
 0x12c   :  { %v575_v42 = vmin.f32 %v511_v36, 6.0  ;;  %v607_v43 = vmin.f32 %v543_v37, 6.0  ;;  %v303_v44 = vadd.f32 %v836_v40, %v1202_v24  ;;  %v463_v45 = vadd.f32 %v884_v41, %v1202_v24  ;;  %v297_v46 = vpop.f32.mrb[27].mxu0  ;;  %v457_v47 = vpop.f32.mrb[27].mxu1 }
 0x12d   :  { %v574_v48 = vmin.f32 %v510_v38, 6.0  ;;  %v606_v49 = vmin.f32 %v542_v39, 6.0  ;;  %v298_v50 = vadd.f32 %v1202_v24, %v297_v46  ;;  %v458_v51 = vadd.f32 %v1202_v24, %v457_v47 }
 0x12e   :  { %639 = vst [vmem:[%s1463_s3 + $0xc8] sm:$0xff] %v575_v42  ;;  %671 = vst [vmem:[%s1463_s3 + $0x1c8] sm:$0xff] %v607_v43  ;;  %v513_v52 = vmax.f32 %v303_v44, 0.0  ;;  %v545_v53 = vmax.f32 %v463_v45, 0.0 }
 0x12f   :  { %638 = vst [vmem:[%s1463_s3 + $0xc0] sm:$0xff] %v574_v48  ;;  %670 = vst [vmem:[%s1463_s3 + $0x1c0] sm:$0xff] %v606_v49  ;;  %v512_v54 = vmax.f32 %v298_v50, 0.0  ;;  %v544_v55 = vmax.f32 %v458_v51, 0.0  ;;  %v839_v56 = vpop.f32.mrb[28].mxu0  ;;  %v887_v57 = vpop.f32.mrb[28].mxu1 }
 0x130   :  { %v577_v58 = vmin.f32 %v513_v52, 6.0  ;;  %v609_v59 = vmin.f32 %v545_v53, 6.0  ;;  %v313_v60 = vadd.f32 %v839_v56, %v1202_v24  ;;  %v473_v61 = vadd.f32 %v887_v57, %v1202_v24  ;;  %v307_v62 = vpop.f32.mrb[29].mxu0  ;;  %v467_v63 = vpop.f32.mrb[29].mxu1 }
 0x131   :  { %v576_v0 = vmin.f32 %v512_v54, 6.0  ;;  %v608_v1 = vmin.f32 %v544_v55, 6.0  ;;  %v308_v2 = vadd.f32 %v1202_v24, %v307_v62  ;;  %v468_v3 = vadd.f32 %v1202_v24, %v467_v63 }
 0x132   :  { %641 = vst [vmem:[%s1463_s3 + $0xd8] sm:$0xff] %v577_v58  ;;  %673 = vst [vmem:[%s1463_s3 + $0x1d8] sm:$0xff] %v609_v59  ;;  %v515_v4 = vmax.f32 %v313_v60, 0.0  ;;  %v547_v5 = vmax.f32 %v473_v61, 0.0 }
 0x133   :  { %640 = vst [vmem:[%s1463_s3 + $0xd0] sm:$0xff] %v576_v0  ;;  %672 = vst [vmem:[%s1463_s3 + $0x1d0] sm:$0xff] %v608_v1  ;;  %v514_v6 = vmax.f32 %v308_v2, 0.0  ;;  %v546_v7 = vmax.f32 %v468_v3, 0.0  ;;  %v842_v8 = vpop.f32.mrb[30].mxu0  ;;  %v890_v9 = vpop.f32.mrb[30].mxu1 }
 0x134   :  { %v579_v10 = vmin.f32 %v515_v4, 6.0  ;;  %v611_v11 = vmin.f32 %v547_v5, 6.0  ;;  %v323_v12 = vadd.f32 %v842_v8, %v1202_v24  ;;  %v483_v13 = vadd.f32 %v890_v9, %v1202_v24  ;;  %v317_v14 = vpop.f32.mrb[31].mxu0  ;;  %v477_v15 = vpop.f32.mrb[31].mxu1 }
 0x135   :  { %v578_v16 = vmin.f32 %v514_v6, 6.0  ;;  %v610_v17 = vmin.f32 %v546_v7, 6.0  ;;  %v318_v18 = vadd.f32 %v1202_v24, %v317_v14  ;;  %v478_v19 = vadd.f32 %v1202_v24, %v477_v15 }
 0x136   :  { %643 = vst [vmem:[%s1463_s3 + $0xe8] sm:$0xff] %v579_v10  ;;  %675 = vst [vmem:[%s1463_s3 + $0x1e8] sm:$0xff] %v611_v11  ;;  %v517_v20 = vmax.f32 %v323_v12, 0.0  ;;  %v549_v21 = vmax.f32 %v483_v13, 0.0 }
 0x137   :  { %642 = vst [vmem:[%s1463_s3 + $0xe0] sm:$0xff] %v578_v16  ;;  %674 = vst [vmem:[%s1463_s3 + $0x1e0] sm:$0xff] %v610_v17  ;;  %v516_v22 = vmax.f32 %v318_v18, 0.0  ;;  %v548_v24 = vmax.f32 %v478_v19, 0.0 }
 0x138   :  { %v581_v23 = vmin.f32 %v517_v20, 6.0  ;;  %v613_v25 = vmin.f32 %v549_v21, 6.0 }
 0x139   :  { %v580_v26 = vmin.f32 %v516_v22, 6.0  ;;  %v612_v27 = vmin.f32 %v548_v24, 6.0 }
 0x13a   :  { %645 = vst [vmem:[%s1463_s3 + $0xf8] sm:$0xff] %v581_v23  ;;  %677 = vst [vmem:[%s1463_s3 + $0x1f8] sm:$0xff] %v613_v25 }
 0x13b   :  { %644 = vst [vmem:[%s1463_s3 + $0xf0] sm:$0xff] %v580_v26  ;;  %676 = vst [vmem:[%s1463_s3 + $0x1f0] sm:$0xff] %v612_v27 }

// kernel: mobilenet_v3_like.12
= control target key start
LH: loop header
LB: loop body
LE: loop exit
PB: predicated region body
PF: predicated region fallthrough
CT: control target
= control target key end

     0   :  { %v1238_v3 = vmov 0   ;;  %s1830_s2 = inlined_call_operand.vmem [shape: f32[128,128], index: 2, kind: input, shape index: {}]   ;;  %s1831_s1 = inlined_call_operand.vmem [shape: f32[288,1], index: 1, kind: input, shape index: {}]   ;;  %s1832_s0 = inlined_call_operand.vmem [shape: f32[288,128], index: 0, kind: input, shape index: {}]   ;;  %s1833_s6 = inlined_call_operand.vmem [shape: f32[128,128], index: 6, kind: input, shape index: {}]   ;;  %s1834_s3 = inlined_call_operand.vmem [shape: f32[1,128], index: 3, kind: input, shape index: {}]   ;;  %s1835_s4 = inlined_call_operand.vmem [shape: f32[9,1,128], index: 4, kind: input, shape index: {}]   ;;  %s1836_s5 = inlined_call_operand.vmem [shape: f32[1,128], index: 5, kind: input, shape index: {}]   ;;  %s1837_s7 = inlined_call_operand.vmem [shape: f32[1,128], index: 7, kind: input, shape index: {}]   ;;  %s1838_s8 = inlined_call_operand.vmem [shape: f32[32,128], index: 8, kind: output, shape index: {}]  }
   0x1   :  { %v65_v0 = vld [vmem:[%s1830_s2] sm:$0xff]  ;;  %v66_v1 = vld [vmem:[%s1830_s2 + $0x8] sm:$0xff]  ;;  %v67_v2 = vld [vmem:[%s1830_s2 + $0x10] sm:$0xff]  ;;  %1236 = vset.pattern.permute.xlu0 %v1238_v3  ;;  %1237 = vset.pattern.permute.xlu1 %v1238_v3 }
   0x2   :  { %v1155_v4 = vpack.c.bf16 %v66_v1, %v65_v0  ;;  %v68_v5 = vld [vmem:[%s1830_s2 + $0x18] sm:$0xff]  ;;  %v69_v7 = vld [vmem:[%s1830_s2 + $0x20] sm:$0xff]  ;;  %v70_v8 = vld [vmem:[%s1830_s2 + $0x28] sm:$0xff] }
   0x3   :  { %v1159_v6 = vpack.c.bf16 %v68_v5, %v67_v2  ;;  %v1163_v9 = vpack.c.bf16 %v70_v8, %v69_v7  ;;  %v71_v10 = vld [vmem:[%s1830_s2 + $0x30] sm:$0xff]  ;;  %v405_v11 = vld [vmem:[%s1831_s1] sm:$0xff]  ;;  %v72_v13 = vld [vmem:[%s1830_s2 + $0x38] sm:$0xff] }
   0x4   :  { %1156 = vmatprep.subr.bf16.mxu0 %v1155_v4  ;;  %1219 = vmatprep.subr.bf16.mxu1 %v1155_v4  ;;  %v29_v12 = vld [vmem:[%s1832_s0] sm:$0xff]  ;;  %v406_v15 = vld [vmem:[%s1831_s1 + $0x8] sm:$0xff]  ;;  %v1167_v18 = vpack.c.bf16 %v72_v13, %v71_v10  ;;  %v75_v24 = vld [vmem:[%s1830_s2 + $0x50] sm:$0xff] }
   0x5   :  { %1158 = vmatpush3.bf16.msra.mxu0 %v1155_v4  ;;  %1227 = vmatpush3.bf16.msra.mxu1 %v1155_v4  ;;  %v49_v14 = vld [vmem:[%s1832_s0 + $0xa0] sm:$0xff]  ;;  %v410_v17 = vld [vmem:[%s1831_s1 + $0x28] sm:$0xff]  ;;  %v76_v25 = vld [vmem:[%s1830_s2 + $0x58] sm:$0xff] }
   0x6   :  { %1160 = vmatprep.subr.bf16.mxu0 %v1159_v6  ;;  %1220 = vmatprep.subr.bf16.mxu1 %v1159_v6  ;;  %v409_v16 = vld [vmem:[%s1831_s1 + $0x20] sm:$0xff]  ;;  %v74_v20 = vld [vmem:[%s1830_s2 + $0x48] sm:$0xff]  ;;  %v407_v26 = vld [vmem:[%s1831_s1 + $0x10] sm:$0xff]  ;;  %v1175_v28 = vpack.c.bf16 %v76_v25, %v75_v24 }
   0x7   :  { %443 = vperm.xlu0 %1236, %v405_v11   ;;  %1063 = vmatprep.mubr.f32.mxu0 %v29_v12  ;;  %v73_v19 = vld [vmem:[%s1830_s2 + $0x40] sm:$0xff]  ;;  %v414_v22 = vld [vmem:[%s1831_s1 + $0x48] sm:$0xff]  ;;  %v411_v27 = vld [vmem:[%s1831_s1 + $0x30] sm:$0xff] }
   0x8   :  { %1093 = vmatprep.mubr.f32.mxu1 %v49_v14  ;;  %448 = vperm.xlu1 %1237, %v406_v15   ;;  %v413_v21 = vld [vmem:[%s1831_s1 + $0x40] sm:$0xff]  ;;  %v1171_v23 = vpack.c.bf16 %v74_v20, %v73_v19  ;;  %v78_v30 = vld [vmem:[%s1830_s2 + $0x68] sm:$0xff]  ;;  %v408_v32 = vld [vmem:[%s1831_s1 + $0x18] sm:$0xff] }
   0x9   :  { %1162 = vmatpush3.bf16.msra.mxu0 %v1159_v6  ;;  %1228 = vmatpush3.bf16.msra.mxu1 %v1159_v6  ;;  %v77_v29 = vld [vmem:[%s1830_s2 + $0x60] sm:$0xff]  ;;  %v79_v34 = vld [vmem:[%s1830_s2 + $0x70] sm:$0xff]  ;;  %v80_v35 = vld [vmem:[%s1830_s2 + $0x78] sm:$0xff] }
   0xa   :  { %1164 = vmatprep.subr.bf16.mxu0 %v1163_v9  ;;  %1221 = vmatprep.subr.bf16.mxu1 %v1163_v9  ;;  %v417_v31 = vld [vmem:[%s1831_s1 + $0x60] sm:$0xff]  ;;  %v1179_v33 = vpack.c.bf16 %v78_v30, %v77_v29  ;;  %v412_v36 = vld [vmem:[%s1831_s1 + $0x38] sm:$0xff]  ;;  %v418_v37 = vld [vmem:[%s1831_s1 + $0x68] sm:$0xff]  ;;  %v1183_v38 = vpack.c.bf16 %v80_v35, %v79_v34 }
   0xb   :  { %463 = vperm.xlu0 %1236, %v409_v16   ;;  %v415_v39 = vld [vmem:[%s1831_s1 + $0x50] sm:$0xff]  ;;  %v421_v40 = vld [vmem:[%s1831_s1 + $0x80] sm:$0xff]  ;;  %v416_v41 = vld [vmem:[%s1831_s1 + $0x58] sm:$0xff] }
   0xc   :  { %468 = vperm.xlu1 %1237, %v410_v17   ;;  %v30_v42 = vld [vmem:[%s1832_s0 + $0x8] sm:$0xff]  ;;  %v31_v44 = vld [vmem:[%s1832_s0 + $0x10] sm:$0xff]  ;;  %v32_v48 = vld [vmem:[%s1832_s0 + $0x18] sm:$0xff] }
   0xd   :  { %1166 = vmatpush3.bf16.msra.mxu0 %v1163_v9  ;;  %1229 = vmatpush3.bf16.msra.mxu1 %v1163_v9  ;;  %v50_v43 = vld [vmem:[%s1832_s0 + $0xa8] sm:$0xff]  ;;  %v51_v45 = vld [vmem:[%s1832_s0 + $0xb0] sm:$0xff]  ;;  %v52_v49 = vld [vmem:[%s1832_s0 + $0xb8] sm:$0xff] }
   0xe   :  { %1168 = vmatprep.subr.bf16.mxu0 %v1167_v18  ;;  %1222 = vmatprep.subr.bf16.mxu1 %v1167_v18  ;;  %v422_v46 = vld [vmem:[%s1831_s1 + $0x88] sm:$0xff]  ;;  %v419_v47 = vld [vmem:[%s1831_s1 + $0x70] sm:$0xff]  ;;  %v33_v50 = vld [vmem:[%s1832_s0 + $0x20] sm:$0xff] }
   0xf   :  { %483 = vperm.xlu0 %1236, %v413_v21   ;;  %v53_v51 = vld [vmem:[%s1832_s0 + $0xc0] sm:$0xff]  ;;  %v420_v53 = vld [vmem:[%s1831_s1 + $0x78] sm:$0xff]  ;;  %v34_v54 = vld [vmem:[%s1832_s0 + $0x28] sm:$0xff] }
  0x10   :  { %488 = vperm.xlu1 %1237, %v414_v22   ;;  %v425_v52 = vld [vmem:[%s1831_s1 + $0xa0] sm:$0xff]  ;;  %v54_v55 = vld [vmem:[%s1832_s0 + $0xc8] sm:$0xff]  ;;  %v35_v56 = vld [vmem:[%s1832_s0 + $0x30] sm:$0xff] }
  0x11   :  { %1170 = vmatpush3.bf16.msra.mxu0 %v1167_v18  ;;  %1230 = vmatpush3.bf16.msra.mxu1 %v1167_v18  ;;  %v55_v57 = vld [vmem:[%s1832_s0 + $0xd0] sm:$0xff]  ;;  %v426_v58 = vld [vmem:[%s1831_s1 + $0xa8] sm:$0xff]  ;;  %v36_v60 = vld [vmem:[%s1832_s0 + $0x38] sm:$0xff] }
  0x12   :  { %1172 = vmatprep.subr.bf16.mxu0 %v1171_v23  ;;  %1223 = vmatprep.subr.bf16.mxu1 %v1171_v23  ;;  %v423_v59 = vld [vmem:[%s1831_s1 + $0x90] sm:$0xff]  ;;  %v56_v61 = vld [vmem:[%s1832_s0 + $0xd8] sm:$0xff]  ;;  %v37_v62 = vld [vmem:[%s1832_s0 + $0x40] sm:$0xff] }
  0x13   :  { %453 = vperm.xlu0 %1236, %v407_v26   ;;  %v57_v63 = vld [vmem:[%s1832_s0 + $0xe0] sm:$0xff]  ;;  %v424_v1 = vld [vmem:[%s1831_s1 + $0x98] sm:$0xff]  ;;  %v38_v2 = vld [vmem:[%s1832_s0 + $0x48] sm:$0xff] }
  0x14   :  { %473 = vperm.xlu1 %1237, %v411_v27   ;;  %v429_v0 = vld [vmem:[%s1831_s1 + $0xc0] sm:$0xff]  ;;  %v58_v3 = vld [vmem:[%s1832_s0 + $0xe8] sm:$0xff]  ;;  %v39_v4 = vld [vmem:[%s1832_s0 + $0x50] sm:$0xff] }
  0x15   :  { %1174 = vmatpush3.bf16.msra.mxu0 %v1171_v23  ;;  %1231 = vmatpush3.bf16.msra.mxu1 %v1171_v23  ;;  %v59_v5 = vld [vmem:[%s1832_s0 + $0xf0] sm:$0xff]  ;;  %v430_v6 = vld [vmem:[%s1831_s1 + $0xc8] sm:$0xff]  ;;  %v40_v8 = vld [vmem:[%s1832_s0 + $0x58] sm:$0xff] }
  0x16   :  { %1176 = vmatprep.subr.bf16.mxu0 %v1175_v28  ;;  %1224 = vmatprep.subr.bf16.mxu1 %v1175_v28  ;;  %v427_v7 = vld [vmem:[%s1831_s1 + $0xb0] sm:$0xff]  ;;  %v60_v9 = vld [vmem:[%s1832_s0 + $0xf8] sm:$0xff]  ;;  %v41_v10 = vld [vmem:[%s1832_s0 + $0x60] sm:$0xff] }
  0x17   :  { %503 = vperm.xlu0 %1236, %v417_v31   ;;  %v61_v11 = vld [vmem:[%s1832_s0 + $0x100] sm:$0xff]  ;;  %v428_v13 = vld [vmem:[%s1831_s1 + $0xb8] sm:$0xff]  ;;  %v42_v14 = vld [vmem:[%s1832_s0 + $0x68] sm:$0xff] }
  0x18   :  { %458 = vperm.xlu1 %1237, %v408_v32   ;;  %v433_v12 = vld [vmem:[%s1831_s1 + $0xe0] sm:$0xff]  ;;  %v62_v15 = vld [vmem:[%s1832_s0 + $0x108] sm:$0xff]  ;;  %v43_v16 = vld [vmem:[%s1832_s0 + $0x70] sm:$0xff] }
  0x19   :  { %1178 = vmatpush3.bf16.msra.mxu0 %v1175_v28  ;;  %1232 = vmatpush3.bf16.msra.mxu1 %v1175_v28  ;;  %v63_v17 = vld [vmem:[%s1832_s0 + $0x110] sm:$0xff]  ;;  %v434_v18 = vld [vmem:[%s1831_s1 + $0xe8] sm:$0xff]  ;;  %v44_v20 = vld [vmem:[%s1832_s0 + $0x78] sm:$0xff] }
  0x1a   :  { %1180 = vmatprep.subr.bf16.mxu0 %v1179_v33  ;;  %1225 = vmatprep.subr.bf16.mxu1 %v1179_v33  ;;  %v431_v19 = vld [vmem:[%s1831_s1 + $0xd0] sm:$0xff]  ;;  %v64_v21 = vld [vmem:[%s1832_s0 + $0x118] sm:$0xff]  ;;  %v1518_v22 = vld [vmem:[%s1832_s0 + $0x80] sm:$0xff] }
  0x1b   :  { %478 = vperm.xlu0 %1236, %v412_v36   ;;  %v437_v23 = vld [vmem:[%s1831_s1 + $0x100] sm:$0xff]  ;;  %v432_v24 = vld [vmem:[%s1831_s1 + $0xd8] sm:$0xff]  ;;  %v1530_v25 = vld [vmem:[%s1832_s0 + $0x88] sm:$0xff] }
  0x1c   :  { %508 = vperm.xlu1 %1237, %v418_v37   ;;  %v1535_v26 = vld [vmem:[%s1832_s0 + $0x90] sm:$0xff]  ;;  %v438_v27 = vld [vmem:[%s1831_s1 + $0x108] sm:$0xff]  ;;  %v1548_v29 = vld [vmem:[%s1832_s0 + $0x98] sm:$0xff] }
  0x1d   :  { %1182 = vmatpush3.bf16.msra.mxu0 %v1179_v33  ;;  %1233 = vmatpush3.bf16.msra.mxu1 %v1179_v33  ;;  %1841 = vst [vmem:[#allocation2_spill] sm:$0xff] %v1535_v26  ;;  %v435_v28 = vld [vmem:[%s1831_s1 + $0xf0] sm:$0xff]  ;;  %1842 = vst [vmem:[#allocation3_spill] sm:$0xff] %v1548_v29  ;;  %v436_v30 = vld [vmem:[%s1831_s1 + $0xf8] sm:$0xff] }
  0x1e   :  { %1184 = vmatprep.subr.bf16.mxu0 %v1183_v38  ;;  %1226 = vmatprep.subr.bf16.mxu1 %v1183_v38  ;;  %v439_v31 = vld [vmem:[%s1831_s1 + $0x110] sm:$0xff]  ;;  %v440_v32 = vld [vmem:[%s1831_s1 + $0x118] sm:$0xff]  ;;  %v815_v33 = vld [vmem:[%s1833_s6] sm:$0xff] }
  0x1f   :  { %493 = vperm.xlu0 %1236, %v415_v39   ;;  %v816_v34 = vld [vmem:[%s1833_s6 + $0x8] sm:$0xff]  ;;  %v817_v36 = vld [vmem:[%s1833_s6 + $0x10] sm:$0xff]  ;;  %v818_v37 = vld [vmem:[%s1833_s6 + $0x18] sm:$0xff] }
  0x20   :  { %523 = vperm.xlu1 %1237, %v421_v40   ;;  %v1187_v35 = vpack.c.bf16 %v816_v34, %v815_v33  ;;  %v819_v39 = vld [vmem:[%s1833_s6 + $0x20] sm:$0xff]  ;;  %v820_v40 = vld [vmem:[%s1833_s6 + $0x28] sm:$0xff] }
  0x21   :  { %1186 = vmatpush3.bf16.msra.mxu0 %v1183_v38  ;;  %1234 = vmatpush3.bf16.msra.mxu1 %v1183_v38  ;;  %v1191_v38 = vpack.c.bf16 %v818_v37, %v817_v36 }
  0x22   :  { %1188 = vmatprep.subr.bf16.mxu1 %v1187_v35 }
  0x23   :  { %498 = vperm.xlu0 %1236, %v416_v41   ;;  %v1195_v41 = vpack.c.bf16 %v820_v40, %v819_v39 }
  0x24   :  { %1064 = vmatmul.mubr.f32.vlgmr.msra.gmra.mrb[0].mxu0 %v30_v42  ;;  %1094 = vmatmul.mubr.f32.vlgmr.msra.gmra.mrb[0].mxu1 %v50_v43  ;;  %v821_v42 = vld [vmem:[%s1833_s6 + $0x30] sm:$0xff]  ;;  %v822_v43 = vld [vmem:[%s1833_s6 + $0x38] sm:$0xff] }
  0x25   :  { %1066 = vmatprep.mubr.f32.mxu0 %v31_v44  ;;  %1096 = vmatprep.mubr.f32.mxu1 %v51_v45  ;;  %v1199_v44 = vpack.c.bf16 %v822_v43, %v821_v42  ;;  %v823_v45 = vld [vmem:[%s1833_s6 + $0x40] sm:$0xff] }
  0x26   :  { %528 = vperm.xlu1 %1237, %v422_v46   ;;  %1190 = vmatpush3.bf16.msra.mxu1 %v1187_v35  ;;  %v824_v46 = vld [vmem:[%s1833_s6 + $0x48] sm:$0xff] }
  0x27   :  { %513 = vperm.xlu0 %1236, %v419_v47   ;;  %1192 = vmatprep.subr.bf16.mxu1 %v1191_v38  ;;  %v1203_v47 = vpack.c.bf16 %v824_v46, %v823_v45 }
  0x28   :  { %1067 = vmatmul.mubr.f32.gmra.mrb[2].mxu0 %v32_v48  ;;  %1097 = vmatmul.mubr.f32.gmra.mrb[2].mxu1 %v52_v49  ;;  %v825_v48 = vld [vmem:[%s1833_s6 + $0x50] sm:$0xff]  ;;  %v826_v49 = vld [vmem:[%s1833_s6 + $0x58] sm:$0xff] }
  0x29   :  { %1069 = vmatprep.mubr.f32.mxu0 %v33_v50  ;;  %1099 = vmatprep.mubr.f32.mxu1 %v53_v51  ;;  %v1207_v50 = vpack.c.bf16 %v826_v49, %v825_v48  ;;  %v827_v51 = vld [vmem:[%s1833_s6 + $0x60] sm:$0xff] }
  0x2a   :  { %543 = vperm.xlu1 %1237, %v425_v52   ;;  %1194 = vmatpush3.bf16.msra.mxu1 %v1191_v38  ;;  %v828_v52 = vld [vmem:[%s1833_s6 + $0x68] sm:$0xff] }
  0x2b   :  { %518 = vperm.xlu0 %1236, %v420_v53   ;;  %1196 = vmatprep.subr.bf16.mxu1 %v1195_v41  ;;  %v829_v53 = vld [vmem:[%s1833_s6 + $0x70] sm:$0xff] }
  0x2c   :  { %1070 = vmatmul.mubr.f32.gmra.mrb[4].mxu0 %v34_v54  ;;  %1100 = vmatmul.mubr.f32.gmra.mrb[4].mxu1 %v54_v55  ;;  %v1211_v54 = vpack.c.bf16 %v828_v52, %v827_v51  ;;  %v830_v55 = vld [vmem:[%s1833_s6 + $0x78] sm:$0xff] }
  0x2d   :  { %1072 = vmatprep.mubr.f32.mxu0 %v35_v56  ;;  %1102 = vmatprep.mubr.f32.mxu1 %v55_v57  ;;  %v1215_v56 = vpack.c.bf16 %v830_v55, %v829_v53 }
  0x2e   :  { %548 = vperm.xlu1 %1237, %v426_v58   ;;  %1198 = vmatpush3.bf16.msra.mxu1 %v1195_v41 }
  0x2f   :  { %533 = vperm.xlu0 %1236, %v423_v59   ;;  %1200 = vmatprep.subr.bf16.mxu1 %v1199_v44 }
  0x30   :  { %1073 = vmatmul.mubr.f32.gmra.mrb[6].mxu0 %v36_v60  ;;  %1103 = vmatmul.mubr.f32.gmra.mrb[6].mxu1 %v56_v61 }
  0x31   :  { %1075 = vmatprep.mubr.f32.mxu0 %v37_v62  ;;  %1105 = vmatprep.mubr.f32.mxu1 %v57_v63 }
  0x32   :  { %563 = vperm.xlu1 %1237, %v429_v0   ;;  %1202 = vmatpush3.bf16.msra.mxu1 %v1199_v44 }
  0x33   :  { %538 = vperm.xlu0 %1236, %v424_v1   ;;  %1204 = vmatprep.subr.bf16.mxu1 %v1203_v47 }
  0x34   :  { %1076 = vmatmul.mubr.f32.gmra.mrb[8].mxu0 %v38_v2  ;;  %1106 = vmatmul.mubr.f32.gmra.mrb[8].mxu1 %v58_v3 }
  0x35   :  { %1078 = vmatprep.mubr.f32.mxu0 %v39_v4  ;;  %1108 = vmatprep.mubr.f32.mxu1 %v59_v5 }
  0x36   :  { %568 = vperm.xlu1 %1237, %v430_v6   ;;  %1206 = vmatpush3.bf16.msra.mxu1 %v1203_v47 }
  0x37   :  { %553 = vperm.xlu0 %1236, %v427_v7   ;;  %1208 = vmatprep.subr.bf16.mxu1 %v1207_v50 }
  0x38   :  { %1079 = vmatmul.mubr.f32.gmra.mrb[10].mxu0 %v40_v8  ;;  %1109 = vmatmul.mubr.f32.gmra.mrb[10].mxu1 %v60_v9 }
  0x39   :  { %1081 = vmatprep.mubr.f32.mxu0 %v41_v10  ;;  %1111 = vmatprep.mubr.f32.mxu1 %v61_v11 }
  0x3a   :  { %583 = vperm.xlu1 %1237, %v433_v12   ;;  %1210 = vmatpush3.bf16.msra.mxu1 %v1207_v50 }
  0x3b   :  { %558 = vperm.xlu0 %1236, %v428_v13   ;;  %1212 = vmatprep.subr.bf16.mxu1 %v1211_v54 }
  0x3c   :  { %1082 = vmatmul.mubr.f32.gmra.mrb[12].mxu0 %v42_v14  ;;  %1112 = vmatmul.mubr.f32.gmra.mrb[12].mxu1 %v62_v15  ;;  %v1649_v14 = vld [vmem:[%s1834_s3] ss:$0 sm:$0xff] }
  0x3d   :  { %1084 = vmatprep.mubr.f32.mxu0 %v43_v16  ;;  %1114 = vmatprep.mubr.f32.mxu1 %v63_v17 }
  0x3e   :  { %588 = vperm.xlu1 %1237, %v434_v18   ;;  %1214 = vmatpush3.bf16.msra.mxu1 %v1211_v54 }
  0x3f   :  { %573 = vperm.xlu0 %1236, %v431_v19   ;;  %1216 = vmatprep.subr.bf16.mxu1 %v1215_v56 }
  0x40   :  { %1085 = vmatmul.mubr.f32.gmra.mrb[14].mxu0 %v44_v20  ;;  %1115 = vmatmul.mubr.f32.gmra.mrb[14].mxu1 %v64_v21 }
  0x41   :  { %1087 = vmatprep.mubr.f32.mxu0 %v1518_v22 }
  0x42   :  { %603 = vperm.xlu1 %1237, %v437_v23   ;;  %1218 = vmatpush3.bf16.msra.mxu1 %v1215_v56 }
  0x43   :  { %578 = vperm.xlu0 %1236, %v432_v24  }
  0x44   :  { %1088 = vmatmul.mubr.f32.gmra.mrb[16].mxu0 %v1530_v25 }
  0x45   :  { %1090 = vmatprep.mubr.f32.mxu0 %v1535_v26 }
  0x46   :  { %608 = vperm.xlu1 %1237, %v438_v27  }
  0x47   :  { %593 = vperm.xlu0 %1236, %v435_v28  }
  0x48   :  { %1091 = vmatmul.mubr.f32.gmra.mrb[18].mxu0 %v1548_v29 }
  0x4a   :  { %598 = vperm.xlu1 %1237, %v436_v30  }
  0x4b   :  { %613 = vperm.xlu0 %1236, %v439_v31  }
  0x4e   :  { %618 = vperm.xlu1 %1237, %v440_v32  }
  0x86   :  { %v1608_v57 = vpop.permute.xlu0 %443 }
  0x87   :  { %v449_v59 = vpop.permute.xlu1 %448 }
  0x8a   :  { %v1610_v58 = vpop.permute.xlu0 %463 }
  0x8b   :  { %v1614_v61 = vpop.permute.xlu1 %468 }
  0x8e   :  { %v1612_v60 = vpop.permute.xlu0 %483 }
  0x8f   :  { %v1618_v63 = vpop.permute.xlu1 %488 }
  0x92   :  { %v1616_v62 = vpop.permute.xlu0 %453 }
  0x93   :  { %v1622_v1 = vpop.permute.xlu1 %473 }
  0x96   :  { %v1620_v0 = vpop.permute.xlu0 %503 }
  0x97   :  { %v1626_v3 = vpop.permute.xlu1 %458 }
  0x9a   :  { %v1624_v2 = vpop.permute.xlu0 %478 }
  0x9b   :  { %v1630_v5 = vpop.permute.xlu1 %508 }
  0x9e   :  { %v1628_v4 = vpop.permute.xlu0 %493 }
  0x9f   :  { %v1634_v7 = vpop.permute.xlu1 %523 }
  0xa2   :  { %v1632_v6 = vpop.permute.xlu0 %498 }
  0xa5   :  { %v1638_v9 = vpop.permute.xlu1 %528 }
  0xa6   :  { %v1636_v8 = vpop.permute.xlu0 %513 }
  0xa9   :  { %v1642_v11 = vpop.permute.xlu1 %543 }
  0xaa   :  { %v1640_v10 = vpop.permute.xlu0 %518 }
  0xad   :  { %v1651_v18 = vpop.permute.xlu1 %548 }
  0xae   :  { %v1644_v12 = vpop.permute.xlu0 %533 }
  0xb1   :  { %v1661_v40 = vpop.permute.xlu1 %563 }
  0xb2   :  { %v1653_v19 = vpop.permute.xlu0 %538 }
  0xb6   :  { %v1663_v41 = vpop.permute.xlu0 %553 }
  0xf7   :  { %v1065_v13 = vpop.f32.mrb[0].mxu0  ;;  %v1095_v15 = vpop.f32.mrb[0].mxu1 }
  0xf8   :  { %v154_v16 = vpop.f32.mrb[1].mxu0  ;;  %v254_v17 = vpop.f32.mrb[1].mxu1  ;;  %v160_v20 = vadd.f32 %v1065_v13, %v1649_v14  ;;  %v260_v36 = vadd.f32 %v1095_v15, %v1649_v14 }
  0xf9   :  { %v155_v21 = vadd.f32 %v1649_v14, %v154_v16  ;;  %v255_v37 = vadd.f32 %v1649_v14, %v254_v17  ;;  %v940_v16 = vld [vmem:[%s1835_s4] ss:$0 sm:$0xff] }
  0xfa   :  { %v334_v30 = vmax.f32 %v160_v20, 0.0  ;;  %v354_v50 = vmax.f32 %v260_v36, 0.0 }
  0xfb   :  { %v1068_v23 = vpop.f32.mrb[2].mxu0  ;;  %v1098_v24 = vpop.f32.mrb[2].mxu1  ;;  %v333_v32 = vmax.f32 %v155_v21, 0.0  ;;  %v353_v51 = vmax.f32 %v255_v37, 0.0 }
  0xfc   :  { %v164_v27 = vpop.f32.mrb[3].mxu0  ;;  %v264_v28 = vpop.f32.mrb[3].mxu1  ;;  %v170_v31 = vadd.f32 %v1068_v23, %v1649_v14  ;;  %v370_v42 = vmin.f32 %v334_v30, 6.0  ;;  %v270_v55 = vadd.f32 %v1098_v24, %v1649_v14  ;;  %v942_v24 = vld [vmem:[%s1835_s4 + $0x1] ss:$0 sm:$0xff] }
  0xfd   :  { %v165_v33 = vadd.f32 %v1649_v14, %v164_v27  ;;  %v369_v45 = vmin.f32 %v333_v32, 6.0  ;;  %v1669_v56 = vadd.f32 %v1649_v14, %v264_v28  ;;  %v390_v32 = vmin.f32 %v354_v50, 6.0 }
  0xfe   :  { %v336_v43 = vmax.f32 %v170_v31, 0.0  ;;  %v622_v15 = vmul.f32 %v449_v59, %v370_v42 }
  0xff   :  { %v1071_v34 = vpop.f32.mrb[4].mxu0  ;;  %v1101_v35 = vpop.f32.mrb[4].mxu1  ;;  %v335_v46 = vmax.f32 %v165_v33, 0.0  ;;  %v621_v23 = vmul.f32 %v1608_v57, %v369_v45  ;;  %v389_v33 = vmin.f32 %v353_v51, 6.0  ;;  %v356_v57 = vmax.f32 %v270_v55, 0.0 }
 0x100   :  { %v174_v38 = vpop.f32.mrb[5].mxu0  ;;  %v274_v39 = vpop.f32.mrb[5].mxu1  ;;  %v180_v44 = vadd.f32 %v1071_v34, %v1649_v14  ;;  %v372_v17 = vmin.f32 %v336_v43, 6.0  ;;  %v355_v42 = vmax.f32 %v1669_v56, 0.0 }
 0x101   :  { %v175_v47 = vadd.f32 %v1649_v14, %v174_v38  ;;  %v371_v27 = vmin.f32 %v335_v46, 6.0  ;;  %v1687_v45 = vpop.permute.xlu1 %568  ;;  %v559_v46 = vpop.permute.xlu0 %558 }
 0x102   :  { %v338_v52 = vmax.f32 %v180_v44, 0.0 }
 0x103   :  { %v1074_v48 = vpop.f32.mrb[6].mxu0  ;;  %v1104_v49 = vpop.f32.mrb[6].mxu1  ;;  %v337_v13 = vmax.f32 %v175_v47, 0.0  ;;  %v665_v47 = vmul.f32 %v940_v16, %v622_v15 }
 0x104   :  { %v184_v53 = vpop.f32.mrb[7].mxu0  ;;  %v284_v54 = vpop.f32.mrb[7].mxu1  ;;  %v374_v20 = vmin.f32 %v338_v52, 6.0  ;;  %v190_v21 = vadd.f32 %v1074_v48, %v1649_v14  ;;  %v624_v48 = vmul.f32 %v1626_v3, %v372_v17  ;;  %v664_v52 = vmul.f32 %v940_v16, %v621_v23 }
 0x105   :  { %v373_v30 = vmin.f32 %v337_v13, 6.0  ;;  %v185_v28 = vadd.f32 %v1649_v14, %v184_v53  ;;  %v275_v17 = vadd.f32 %v1649_v14, %v274_v39 }
 0x106   :  { %v626_v34 = vmul.f32 %v1614_v61, %v374_v20  ;;  %v340_v36 = vmax.f32 %v190_v21, 0.0  ;;  %v623_v61 = vmul.f32 %v1616_v62, %v371_v27  ;;  %v290_v62 = vadd.f32 %v1104_v49, %v1649_v14 }
 0x107   :  { %v1077_v31 = vpop.f32.mrb[8].mxu0  ;;  %v1680_v59 = vpop.f32.mrb[8].mxu1  ;;  %v625_v43 = vmul.f32 %v1610_v58, %v373_v30  ;;  %v339_v44 = vmax.f32 %v185_v28, 0.0  ;;  %v280_v58 = vadd.f32 %v1101_v35, %v1649_v14  ;;  %v667_v27 = vmul.f32 %v940_v16, %v624_v48 }
 0x108   :  { %v194_v37 = vpop.f32.mrb[9].mxu0  ;;  %v1683_v38 = vpop.f32.mrb[9].mxu1  ;;  %v677_v50 = vmul.f32 %v942_v24, %v626_v34  ;;  %v376_v51 = vmin.f32 %v340_v36, 6.0  ;;  %v200_v30 = vadd.f32 %v1077_v31, %v1649_v14  ;;  %v392_v35 = vmin.f32 %v356_v57, 6.0 }
 0x109   :  { %v676_v53 = vmul.f32 %v942_v24, %v625_v43  ;;  %v375_v13 = vmin.f32 %v339_v44, 6.0  ;;  %v195_v43 = vadd.f32 %v1649_v14, %v194_v37  ;;  %v666_v44 = vmul.f32 %v940_v16, %v623_v61  ;;  %v1708_v48 = vpop.permute.xlu1 %583 }
 0x10a   :  { %v681_v56 = vadd.f32 %v677_v50, %v665_v47  ;;  %v628_v21 = vmul.f32 %v1624_v2, %v376_v51  ;;  %v342_v36 = vmax.f32 %v200_v30, 0.0  ;;  %v285_v31 = vadd.f32 %v1649_v14, %v284_v54  ;;  %v944_v54 = vld [vmem:[%s1835_s4 + $0x2] ss:$0 sm:$0xff] }
 0x10b   :  { %v1080_v20 = vpop.f32.mrb[10].mxu0  ;;  %v1691_v55 = vpop.f32.mrb[10].mxu1  ;;  %v680_v3 = vadd.f32 %v676_v53, %v664_v52  ;;  %v627_v23 = vmul.f32 %v1622_v1, %v375_v13  ;;  %v341_v39 = vmax.f32 %v195_v43, 0.0  ;;  %v358_v13 = vmax.f32 %v280_v58, 0.0 }
 0x10c   :  { %v204_v15 = vpop.f32.mrb[11].mxu0  ;;  %v1696_v28 = vpop.f32.mrb[11].mxu1  ;;  %v679_v34 = vmul.f32 %v942_v24, %v628_v21  ;;  %v378_v52 = vmin.f32 %v342_v36, 6.0  ;;  %v210_v49 = vadd.f32 %v1080_v20, %v1649_v14  ;;  %v357_v37 = vmax.f32 %v275_v17, 0.0  ;;  %v950_v36 = vld [vmem:[%s1835_s4 + $0x5] ss:$0 sm:$0xff] }
 0x10d   :  { %v678_v2 = vmul.f32 %v942_v24, %v627_v23  ;;  %v360_v57 = vmax.f32 %v290_v62, 0.0  ;;  %v574_v24 = vpop.permute.xlu0 %573  ;;  %v377_v21 = vmin.f32 %v341_v39, 6.0  ;;  %v205_v20 = vadd.f32 %v1649_v14, %v204_v15  ;;  %v1726_v26 = vpop.permute.xlu1 %588 }
 0x10e   :  { %v683_v51 = vadd.f32 %v679_v34, %v667_v27  ;;  %v630_v61 = vmul.f32 %v1618_v63, %v378_v52  ;;  %v344_v30 = vmax.f32 %v210_v49, 0.0  ;;  %v642_v23 = vmul.f32 %v1651_v18, %v390_v32 }
 0x10f   :  { %v1083_v47 = vpop.f32.mrb[12].mxu0  ;;  %v1703_v50 = vpop.f32.mrb[12].mxu1  ;;  %v682_v16 = vadd.f32 %v678_v2, %v666_v44  ;;  %v641_v27 = vmul.f32 %v1642_v11, %v389_v33  ;;  %v391_v34 = vmin.f32 %v355_v42, 6.0  ;;  %v359_v58 = vmax.f32 %v285_v31, 0.0 }
 0x110   :  { %v214_v53 = vpop.f32.mrb[13].mxu0  ;;  %v1706_v1 = vpop.f32.mrb[13].mxu1  ;;  %v693_v43 = vmul.f32 %v944_v54, %v630_v61  ;;  %v629_v63 = vmul.f32 %v1612_v60, %v377_v21  ;;  %v380_v44 = vmin.f32 %v344_v30, 6.0  ;;  %v343_v2 = vmax.f32 %v205_v20, 0.0 }
 0x111   :  { %v644_v18 = vmul.f32 %v559_v46, %v392_v35  ;;  %v394_v32 = vmin.f32 %v358_v13, 6.0  ;;  %v393_v11 = vmin.f32 %v357_v37, 6.0  ;;  %v396_v33 = vmin.f32 %v360_v57, 6.0  ;;  %v579_v57 = vpop.permute.xlu0 %578 }
 0x112   :  { %v697_v42 = vadd.f32 %v693_v43, %v681_v56  ;;  %v692_v31 = vmul.f32 %v944_v54, %v629_v63  ;;  %v632_v39 = vmul.f32 %v1632_v6, %v380_v44  ;;  %v379_v49 = vmin.f32 %v343_v2, 6.0 }
 0x113   :  { %v1086_v17 = vpop.f32.mrb[14].mxu0  ;;  %v1717_v62 = vpop.f32.mrb[14].mxu1  ;;  %v1728_v29 = vmul.f32 %v950_v36, %v642_v23  ;;  %v1730_v61 = vmul.f32 %v950_v36, %v641_v27  ;;  %v395_v60 = vmin.f32 %v359_v58, 6.0  ;;  %v220_v21 = vadd.f32 %v1083_v47, %v1649_v14 }
 0x114   :  { %v224_v52 = vpop.f32.mrb[15].mxu0  ;;  %v1723_v15 = vpop.f32.mrb[15].mxu1  ;;  %v643_v46 = vmul.f32 %v1663_v41, %v391_v34  ;;  %v696_v35 = vadd.f32 %v692_v31, %v680_v3  ;;  %v695_v13 = vmul.f32 %v944_v54, %v632_v39  ;;  %v631_v56 = vmul.f32 %v1628_v4, %v379_v49  ;;  %v952_v41 = vld [vmem:[%s1835_s4 + $0x6] ss:$0 sm:$0xff] }
 0x115   :  { %v1735_v6 = vmul.f32 %v950_v36, %v644_v18  ;;  %v646_v20 = vmul.f32 %v1687_v45, %v394_v32  ;;  %v346_v23 = vmax.f32 %v220_v21, 0.0  ;;  %v215_v27 = vadd.f32 %v1649_v14, %v214_v53  ;;  %v1753_v18 = vpop.permute.xlu1 %603 }
 0x116   :  { %v645_v58 = vmul.f32 %v1661_v40, %v393_v11  ;;  %v648_v43 = vmul.f32 %v579_v57, %v396_v33  ;;  %v699_v47 = vadd.f32 %v695_v13, %v683_v51  ;;  %v694_v63 = vmul.f32 %v944_v54, %v631_v56  ;;  %v946_v54 = vld [vmem:[%s1835_s4 + $0x3] ss:$0 sm:$0xff] }
 0x117   :  { %v1089_v30 = vpop.f32.mrb[16].mxu0  ;;  %v647_v3 = vmul.f32 %v574_v24, %v395_v60  ;;  %v382_v4 = vmin.f32 %v346_v23, 6.0  ;;  %v345_v34 = vmax.f32 %v215_v27, 0.0  ;;  %v230_v44 = vadd.f32 %v1086_v17, %v1649_v14 }
 0x118   :  { %v234_v37 = vpop.f32.mrb[17].mxu0  ;;  %v300_v45 = vadd.f32 %v1680_v59, %v1649_v14  ;;  %v295_v53 = vadd.f32 %v1649_v14, %v1683_v38  ;;  %v310_v40 = vadd.f32 %v1691_v55, %v1649_v14  ;;  %v698_v51 = vadd.f32 %v694_v63, %v682_v16 }
 0x119   :  { %v634_v17 = vmul.f32 %v1630_v5, %v382_v4  ;;  %v381_v32 = vmin.f32 %v345_v34, 6.0  ;;  %v348_v11 = vmax.f32 %v230_v44, 0.0  ;;  %v225_v59 = vadd.f32 %v1649_v14, %v224_v52 }
 0x11a   :  { %v1757_v33 = vmul.f32 %v950_v36, %v643_v46  ;;  %v1759_v38 = vmul.f32 %v952_v41, %v646_v20  ;;  %v1761_v31 = vmul.f32 %v952_v41, %v645_v58  ;;  %v1763_v55 = vmul.f32 %v952_v41, %v648_v43  ;;  %v609_v58 = vpop.permute.xlu1 %608 }
 0x11b   :  { %v1092_v2 = vpop.f32.mrb[18].mxu0  ;;  %v709_v16 = vmul.f32 %v946_v54, %v634_v17  ;;  %v633_v39 = vmul.f32 %v1620_v0, %v381_v32  ;;  %v384_v49 = vmin.f32 %v348_v11, 6.0  ;;  %v347_v60 = vmax.f32 %v225_v59, 0.0 }
 0x11c   :  { %v244_v24 = vpop.f32.mrb[19].mxu0  ;;  %v1766_v21 = vmul.f32 %v952_v41, %v647_v3  ;;  %v362_v5 = vmax.f32 %v300_v45, 0.0  ;;  %v361_v13 = vmax.f32 %v295_v53, 0.0  ;;  %v364_v56 = vmax.f32 %v310_v40, 0.0 }
 0x11d   :  { %v713_v57 = vadd.f32 %v709_v16, %v697_v42  ;;  %v708_v52 = vmul.f32 %v946_v54, %v633_v39  ;;  %v636_v36 = vmul.f32 %v1640_v10, %v384_v49  ;;  %v383_v46 = vmin.f32 %v347_v60, 6.0  ;;  %v594_v16 = vpop.permute.xlu0 %593 }
 0x11e   :  { %v305_v20 = vadd.f32 %v1649_v14, %v1696_v28  ;;  %v320_v23 = vadd.f32 %v1703_v50, %v1649_v14  ;;  %v315_v0 = vadd.f32 %v1649_v14, %v1706_v1  ;;  %v240_v27 = vadd.f32 %v1089_v30, %v1649_v14 }
 0x11f   :  { %v712_v43 = vadd.f32 %v708_v52, %v696_v35  ;;  %v711_v63 = vmul.f32 %v946_v54, %v636_v36  ;;  %v635_v42 = vmul.f32 %v1636_v8, %v383_v46  ;;  %v235_v41 = vadd.f32 %v1649_v14, %v234_v37 }
 0x120   :  { %v330_v10 = vadd.f32 %v1717_v62, %v1649_v14  ;;  %v325_v28 = vadd.f32 %v1649_v14, %v1723_v15  ;;  %v350_v3 = vmax.f32 %v240_v27, 0.0  ;;  %v250_v50 = vadd.f32 %v1092_v2, %v1649_v14  ;;  %v948_v62 = vld [vmem:[%s1835_s4 + $0x4] ss:$0 sm:$0xff] }
 0x121   :  { %v715_v4 = vadd.f32 %v711_v63, %v699_v47  ;;  %v710_v1 = vmul.f32 %v946_v54, %v635_v42  ;;  %v349_v34 = vmax.f32 %v235_v41, 0.0  ;;  %v245_v30 = vadd.f32 %v1649_v14, %v244_v24  ;;  %v599_v54 = vpop.permute.xlu1 %598 }
 0x122   :  { %v363_v35 = vmax.f32 %v305_v20, 0.0  ;;  %v366_v44 = vmax.f32 %v320_v23, 0.0  ;;  %v386_v45 = vmin.f32 %v350_v3, 6.0  ;;  %v352_v8 = vmax.f32 %v250_v50, 0.0 }
 0x123   :  { %v365_v53 = vmax.f32 %v315_v0, 0.0  ;;  %v714_v37 = vadd.f32 %v710_v1, %v698_v51  ;;  %v385_v40 = vmin.f32 %v349_v34, 6.0  ;;  %v351_v15 = vmax.f32 %v245_v30, 0.0 }
 0x124   :  { %v398_v17 = vmin.f32 %v362_v5, 6.0  ;;  %v368_v32 = vmax.f32 %v330_v10, 0.0  ;;  %v638_v47 = vmul.f32 %v1638_v9, %v386_v45  ;;  %v388_v2 = vmin.f32 %v352_v8, 6.0 }
 0x125   :  { %v397_v11 = vmin.f32 %v361_v13, 6.0  ;;  %v367_v14 = vmax.f32 %v325_v28, 0.0  ;;  %v637_v24 = vmul.f32 %v1634_v7, %v385_v40  ;;  %v387_v59 = vmin.f32 %v351_v15, 6.0  ;;  %v954_v7 = vld [vmem:[%s1835_s4 + $0x7] ss:$0 sm:$0xff] }
 0x126   :  { %v400_v39 = vmin.f32 %v364_v56, 6.0  ;;  %v402_v51 = vmin.f32 %v366_v44, 6.0  ;;  %v725_v49 = vmul.f32 %v948_v62, %v638_v47  ;;  %v640_v60 = vmul.f32 %v1653_v19, %v388_v2 }
 0x127   :  { %v399_v52 = vmin.f32 %v363_v35, 6.0  ;;  %v401_v36 = vmin.f32 %v365_v53, 6.0  ;;  %v724_v46 = vmul.f32 %v948_v62, %v637_v24  ;;  %v639_v5 = vmul.f32 %v1644_v12, %v387_v59  ;;  %v619_v12 = vpop.permute.xlu1 %618 }
 0x128   :  { %v650_v9 = vmul.f32 %v1726_v26, %v398_v17  ;;  %v404_v20 = vmin.f32 %v368_v32, 6.0  ;;  %v729_v23 = vadd.f32 %v725_v49, %v713_v57  ;;  %v727_v13 = vmul.f32 %v948_v62, %v640_v60  ;;  %v956_v26 = vld [vmem:[%s1835_s4 + $0x8] ss:$0 sm:$0xff]  ;;  %v958_v60 = vld [vmem:[%s1837_s7] ss:$0 sm:$0xff] }
 0x129   :  { %v649_v56 = vmul.f32 %v1708_v48, %v397_v11  ;;  %v403_v0 = vmin.f32 %v367_v14, 6.0  ;;  %v728_v27 = vadd.f32 %v724_v46, %v712_v43  ;;  %v726_v63 = vmul.f32 %v948_v62, %v639_v5  ;;  %v614_v48 = vpop.permute.xlu0 %613 }
 0x12a   :  { %v652_v19 = vmul.f32 %v599_v54, %v400_v39  ;;  %v654_v42 = vmul.f32 %v609_v58, %v402_v51  ;;  %v745_v41 = vadd.f32 %v1728_v29, %v729_v23  ;;  %v731_v10 = vadd.f32 %v727_v13, %v715_v4 }
 0x12b   :  { %v651_v28 = vmul.f32 %v594_v16, %v399_v52  ;;  %v653_v57 = vmul.f32 %v1753_v18, %v401_v36  ;;  %v744_v3 = vadd.f32 %v1730_v61, %v728_v27  ;;  %v730_v50 = vadd.f32 %v726_v63, %v714_v37  ;;  %v1844_v63 = vld [vmem:[#allocation2_spill] sm:$0xff] }
 0x12c   :  { %v773_v1 = vmul.f32 %v954_v7, %v650_v9  ;;  %v656_v43 = vmul.f32 %v619_v12, %v404_v20  ;;  %v761_v34 = vadd.f32 %v1759_v38, %v745_v41  ;;  %v747_v58 = vadd.f32 %v1735_v6, %v731_v10  ;;  %v957_v38 = vld [vmem:[%s1836_s5] ss:$0 sm:$0xff] }
 0x12d   :  { %v772_v29 = vmul.f32 %v954_v7, %v649_v56  ;;  %v655_v4 = vmul.f32 %v614_v48, %v403_v0  ;;  %v746_v30 = vadd.f32 %v1757_v33, %v730_v50  ;;  %v760_v35 = vadd.f32 %v1761_v31, %v744_v3  ;;  %v1843_v0 = vld [vmem:[#allocation3_spill] sm:$0xff] }
 0x12e   :  { %v775_v44 = vmul.f32 %v954_v7, %v652_v19  ;;  %v789_v45 = vmul.f32 %v956_v26, %v654_v42  ;;  %v777_v8 = vadd.f32 %v773_v1, %v761_v34  ;;  %v763_v18 = vadd.f32 %v1763_v55, %v747_v58 }
 0x12f   :  { %v774_v61 = vmul.f32 %v954_v7, %v651_v28  ;;  %v788_v53 = vmul.f32 %v956_v26, %v653_v57  ;;  %v776_v37 = vadd.f32 %v772_v29, %v760_v35  ;;  %v762_v6 = vadd.f32 %v1766_v21, %v746_v30 }
 0x130   :  { %v791_v62 = vmul.f32 %v956_v26, %v656_v43  ;;  %v793_v40 = vadd.f32 %v789_v45, %v777_v8  ;;  %v779_v15 = vadd.f32 %v775_v44, %v763_v18  ;;  %v790_v33 = vmul.f32 %v956_v26, %v655_v4 }
 0x131   :  { %v792_v17 = vadd.f32 %v788_v53, %v776_v37  ;;  %v778_v31 = vadd.f32 %v774_v61, %v762_v6 }
 0x132   :  { %v804_v32 = vadd.f32 %v957_v38, %v793_v40  ;;  %v795_v47 = vadd.f32 %v791_v62, %v779_v15 }
 0x133   :  { %v803_v2 = vadd.f32 %v957_v38, %v792_v17  ;;  %v794_v54 = vadd.f32 %v790_v33, %v778_v31 }
 0x134   :  { %v808_v55 = vmax.f32 %v804_v32, 0.0  ;;  %v806_v11 = vadd.f32 %v957_v38, %v795_v47 }
 0x135   :  { %v807_v14 = vmax.f32 %v803_v2, 0.0  ;;  %v805_v24 = vadd.f32 %v957_v38, %v794_v54 }
 0x136   :  { %v812_v39 = vmin.f32 %v808_v55, 6.0  ;;  %v810_v51 = vmax.f32 %v806_v11, 0.0 }
 0x137   :  { %v811_v59 = vmin.f32 %v807_v14, 6.0  ;;  %v809_v16 = vmax.f32 %v805_v24, 0.0 }
 0x138   :  { %v814_v49 = vmin.f32 %v810_v51, 6.0 }
 0x139   :  { %1149 = vmatprep.mubr.f32.mxu1 %v811_v59  ;;  %v813_v21 = vmin.f32 %v809_v16, 6.0 }
 0x13a   :  { %1150 = vmatmul.mubr.f32.vlgmr.msra.gmra.mrb[16].mxu1 %v812_v39 }
 0x13b   :  { %1152 = vmatprep.mubr.f32.mxu1 %v813_v21 }
 0x13e   :  { %1153 = vmatmul.mubr.f32.gmra.mrb[18].mxu1 %v814_v49 }
 0x20d   :  { %v1151_v52 = vpop.f32.mrb[16].mxu1 }
 0x20e   :  { %v910_v36 = vadd.f32 %v1151_v52, %v958_v60  ;;  %v904_v46 = vpop.f32.mrb[17].mxu1 }
 0x20f   :  { %v905_v5 = vadd.f32 %v958_v60, %v904_v46 }
 0x210   :  { %v928_v9 = vadd.f32 %v910_v36, %v1530_v25 }
 0x211   :  { %v927_v20 = vadd.f32 %v905_v5, %v1518_v22  ;;  %v1154_v23 = vpop.f32.mrb[18].mxu1 }
 0x212   :  { %932 = vst [vmem:[%s1838_s8 + $0x8] sm:$0xff] %v928_v9  ;;  %v920_v13 = vadd.f32 %v1154_v23, %v958_v60  ;;  %v914_v7 = vpop.f32.mrb[19].mxu1 }
 0x213   :  { %931 = vst [vmem:[%s1838_s8] sm:$0xff] %v927_v20  ;;  %v915_v56 = vadd.f32 %v958_v60, %v914_v7 }
 0x214   :  { %v930_v27 = vadd.f32 %v920_v13, %v1843_v0 }
 0x215   :  { %v929_v19 = vadd.f32 %v915_v56, %v1844_v63 }
 0x216   :  { %934 = vst [vmem:[%s1838_s8 + $0x18] sm:$0xff] %v930_v27 }
 0x217   :  { %933 = vst [vmem:[%s1838_s8 + $0x10] sm:$0xff] %v929_v19 }

// kernel: mobilenet_v3_like.11
= control target key start
LH: loop header
LB: loop body
LE: loop exit
PB: predicated region body
PF: predicated region fallthrough
CT: control target
= control target key end

     0   :  { %v1230_v3 = vmov 0   ;;  %s1806_s2 = inlined_call_operand.vmem [shape: f32[128,128], index: 2, kind: input, shape index: {}]   ;;  %s1807_s1 = inlined_call_operand.vmem [shape: f32[288,1], index: 1, kind: input, shape index: {}]   ;;  %s1808_s0 = inlined_call_operand.vmem [shape: f32[288,128], index: 0, kind: input, shape index: {}]   ;;  %s1809_s6 = inlined_call_operand.vmem [shape: f32[128,128], index: 6, kind: input, shape index: {}]   ;;  %s1810_s3 = inlined_call_operand.vmem [shape: f32[1,128], index: 3, kind: input, shape index: {}]   ;;  %s1811_s4 = inlined_call_operand.vmem [shape: f32[9,1,128], index: 4, kind: input, shape index: {}]   ;;  %s1812_s5 = inlined_call_operand.vmem [shape: f32[1,128], index: 5, kind: input, shape index: {}]   ;;  %s1813_s7 = inlined_call_operand.vmem [shape: f32[1,128], index: 7, kind: input, shape index: {}]   ;;  %s1814_s8 = inlined_call_operand.vmem [shape: f32[32,128], index: 8, kind: output, shape index: {}]  }
   0x1   :  { %v65_v0 = vld [vmem:[%s1806_s2] sm:$0xff]  ;;  %v66_v1 = vld [vmem:[%s1806_s2 + $0x8] sm:$0xff]  ;;  %v67_v2 = vld [vmem:[%s1806_s2 + $0x10] sm:$0xff]  ;;  %1228 = vset.pattern.permute.xlu0 %v1230_v3  ;;  %1229 = vset.pattern.permute.xlu1 %v1230_v3 }
   0x2   :  { %v1147_v4 = vpack.c.bf16 %v66_v1, %v65_v0  ;;  %v68_v5 = vld [vmem:[%s1806_s2 + $0x18] sm:$0xff]  ;;  %v69_v7 = vld [vmem:[%s1806_s2 + $0x20] sm:$0xff]  ;;  %v70_v8 = vld [vmem:[%s1806_s2 + $0x28] sm:$0xff] }
   0x3   :  { %v1151_v6 = vpack.c.bf16 %v68_v5, %v67_v2  ;;  %v1155_v9 = vpack.c.bf16 %v70_v8, %v69_v7  ;;  %v71_v10 = vld [vmem:[%s1806_s2 + $0x30] sm:$0xff]  ;;  %v405_v11 = vld [vmem:[%s1807_s1] sm:$0xff]  ;;  %v72_v13 = vld [vmem:[%s1806_s2 + $0x38] sm:$0xff] }
   0x4   :  { %1148 = vmatprep.subr.bf16.mxu0 %v1147_v4  ;;  %1211 = vmatprep.subr.bf16.mxu1 %v1147_v4  ;;  %v29_v12 = vld [vmem:[%s1808_s0] sm:$0xff]  ;;  %v406_v15 = vld [vmem:[%s1807_s1 + $0x8] sm:$0xff]  ;;  %v1159_v18 = vpack.c.bf16 %v72_v13, %v71_v10  ;;  %v75_v24 = vld [vmem:[%s1806_s2 + $0x50] sm:$0xff] }
   0x5   :  { %1150 = vmatpush3.bf16.msra.mxu0 %v1147_v4  ;;  %1219 = vmatpush3.bf16.msra.mxu1 %v1147_v4  ;;  %v49_v14 = vld [vmem:[%s1808_s0 + $0xa0] sm:$0xff]  ;;  %v410_v17 = vld [vmem:[%s1807_s1 + $0x28] sm:$0xff]  ;;  %v76_v25 = vld [vmem:[%s1806_s2 + $0x58] sm:$0xff] }
   0x6   :  { %1152 = vmatprep.subr.bf16.mxu0 %v1151_v6  ;;  %1212 = vmatprep.subr.bf16.mxu1 %v1151_v6  ;;  %v409_v16 = vld [vmem:[%s1807_s1 + $0x20] sm:$0xff]  ;;  %v74_v20 = vld [vmem:[%s1806_s2 + $0x48] sm:$0xff]  ;;  %v407_v26 = vld [vmem:[%s1807_s1 + $0x10] sm:$0xff]  ;;  %v1167_v28 = vpack.c.bf16 %v76_v25, %v75_v24 }
   0x7   :  { %443 = vperm.xlu0 %1228, %v405_v11   ;;  %1055 = vmatprep.mubr.f32.mxu0 %v29_v12  ;;  %v73_v19 = vld [vmem:[%s1806_s2 + $0x40] sm:$0xff]  ;;  %v414_v22 = vld [vmem:[%s1807_s1 + $0x48] sm:$0xff]  ;;  %v411_v27 = vld [vmem:[%s1807_s1 + $0x30] sm:$0xff] }
   0x8   :  { %1085 = vmatprep.mubr.f32.mxu1 %v49_v14  ;;  %448 = vperm.xlu1 %1229, %v406_v15   ;;  %v413_v21 = vld [vmem:[%s1807_s1 + $0x40] sm:$0xff]  ;;  %v1163_v23 = vpack.c.bf16 %v74_v20, %v73_v19  ;;  %v78_v30 = vld [vmem:[%s1806_s2 + $0x68] sm:$0xff]  ;;  %v408_v32 = vld [vmem:[%s1807_s1 + $0x18] sm:$0xff] }
   0x9   :  { %1154 = vmatpush3.bf16.msra.mxu0 %v1151_v6  ;;  %1220 = vmatpush3.bf16.msra.mxu1 %v1151_v6  ;;  %v77_v29 = vld [vmem:[%s1806_s2 + $0x60] sm:$0xff]  ;;  %v79_v34 = vld [vmem:[%s1806_s2 + $0x70] sm:$0xff]  ;;  %v80_v35 = vld [vmem:[%s1806_s2 + $0x78] sm:$0xff] }
   0xa   :  { %1156 = vmatprep.subr.bf16.mxu0 %v1155_v9  ;;  %1213 = vmatprep.subr.bf16.mxu1 %v1155_v9  ;;  %v417_v31 = vld [vmem:[%s1807_s1 + $0x60] sm:$0xff]  ;;  %v1171_v33 = vpack.c.bf16 %v78_v30, %v77_v29  ;;  %v412_v36 = vld [vmem:[%s1807_s1 + $0x38] sm:$0xff]  ;;  %v418_v37 = vld [vmem:[%s1807_s1 + $0x68] sm:$0xff]  ;;  %v1175_v38 = vpack.c.bf16 %v80_v35, %v79_v34 }
   0xb   :  { %463 = vperm.xlu0 %1228, %v409_v16   ;;  %v415_v39 = vld [vmem:[%s1807_s1 + $0x50] sm:$0xff]  ;;  %v421_v40 = vld [vmem:[%s1807_s1 + $0x80] sm:$0xff]  ;;  %v416_v41 = vld [vmem:[%s1807_s1 + $0x58] sm:$0xff] }
   0xc   :  { %468 = vperm.xlu1 %1229, %v410_v17   ;;  %v30_v42 = vld [vmem:[%s1808_s0 + $0x8] sm:$0xff]  ;;  %v31_v44 = vld [vmem:[%s1808_s0 + $0x10] sm:$0xff]  ;;  %v32_v48 = vld [vmem:[%s1808_s0 + $0x18] sm:$0xff] }
   0xd   :  { %1158 = vmatpush3.bf16.msra.mxu0 %v1155_v9  ;;  %1221 = vmatpush3.bf16.msra.mxu1 %v1155_v9  ;;  %v50_v43 = vld [vmem:[%s1808_s0 + $0xa8] sm:$0xff]  ;;  %v51_v45 = vld [vmem:[%s1808_s0 + $0xb0] sm:$0xff]  ;;  %v52_v49 = vld [vmem:[%s1808_s0 + $0xb8] sm:$0xff] }
   0xe   :  { %1160 = vmatprep.subr.bf16.mxu0 %v1159_v18  ;;  %1214 = vmatprep.subr.bf16.mxu1 %v1159_v18  ;;  %v422_v46 = vld [vmem:[%s1807_s1 + $0x88] sm:$0xff]  ;;  %v419_v47 = vld [vmem:[%s1807_s1 + $0x70] sm:$0xff]  ;;  %v33_v50 = vld [vmem:[%s1808_s0 + $0x20] sm:$0xff] }
   0xf   :  { %483 = vperm.xlu0 %1228, %v413_v21   ;;  %v53_v51 = vld [vmem:[%s1808_s0 + $0xc0] sm:$0xff]  ;;  %v420_v53 = vld [vmem:[%s1807_s1 + $0x78] sm:$0xff]  ;;  %v34_v54 = vld [vmem:[%s1808_s0 + $0x28] sm:$0xff] }
  0x10   :  { %488 = vperm.xlu1 %1229, %v414_v22   ;;  %v425_v52 = vld [vmem:[%s1807_s1 + $0xa0] sm:$0xff]  ;;  %v54_v55 = vld [vmem:[%s1808_s0 + $0xc8] sm:$0xff]  ;;  %v35_v56 = vld [vmem:[%s1808_s0 + $0x30] sm:$0xff] }
  0x11   :  { %1162 = vmatpush3.bf16.msra.mxu0 %v1159_v18  ;;  %1222 = vmatpush3.bf16.msra.mxu1 %v1159_v18  ;;  %v55_v57 = vld [vmem:[%s1808_s0 + $0xd0] sm:$0xff]  ;;  %v426_v58 = vld [vmem:[%s1807_s1 + $0xa8] sm:$0xff]  ;;  %v36_v60 = vld [vmem:[%s1808_s0 + $0x38] sm:$0xff] }
  0x12   :  { %1164 = vmatprep.subr.bf16.mxu0 %v1163_v23  ;;  %1215 = vmatprep.subr.bf16.mxu1 %v1163_v23  ;;  %v423_v59 = vld [vmem:[%s1807_s1 + $0x90] sm:$0xff]  ;;  %v56_v61 = vld [vmem:[%s1808_s0 + $0xd8] sm:$0xff]  ;;  %v37_v62 = vld [vmem:[%s1808_s0 + $0x40] sm:$0xff] }
  0x13   :  { %453 = vperm.xlu0 %1228, %v407_v26   ;;  %v57_v63 = vld [vmem:[%s1808_s0 + $0xe0] sm:$0xff]  ;;  %v424_v1 = vld [vmem:[%s1807_s1 + $0x98] sm:$0xff]  ;;  %v38_v2 = vld [vmem:[%s1808_s0 + $0x48] sm:$0xff] }
  0x14   :  { %473 = vperm.xlu1 %1229, %v411_v27   ;;  %v429_v0 = vld [vmem:[%s1807_s1 + $0xc0] sm:$0xff]  ;;  %v58_v3 = vld [vmem:[%s1808_s0 + $0xe8] sm:$0xff]  ;;  %v39_v4 = vld [vmem:[%s1808_s0 + $0x50] sm:$0xff] }
  0x15   :  { %1166 = vmatpush3.bf16.msra.mxu0 %v1163_v23  ;;  %1223 = vmatpush3.bf16.msra.mxu1 %v1163_v23  ;;  %v59_v5 = vld [vmem:[%s1808_s0 + $0xf0] sm:$0xff]  ;;  %v430_v6 = vld [vmem:[%s1807_s1 + $0xc8] sm:$0xff]  ;;  %v40_v8 = vld [vmem:[%s1808_s0 + $0x58] sm:$0xff] }
  0x16   :  { %1168 = vmatprep.subr.bf16.mxu0 %v1167_v28  ;;  %1216 = vmatprep.subr.bf16.mxu1 %v1167_v28  ;;  %v427_v7 = vld [vmem:[%s1807_s1 + $0xb0] sm:$0xff]  ;;  %v60_v9 = vld [vmem:[%s1808_s0 + $0xf8] sm:$0xff]  ;;  %v41_v10 = vld [vmem:[%s1808_s0 + $0x60] sm:$0xff] }
  0x17   :  { %503 = vperm.xlu0 %1228, %v417_v31   ;;  %v61_v11 = vld [vmem:[%s1808_s0 + $0x100] sm:$0xff]  ;;  %v428_v13 = vld [vmem:[%s1807_s1 + $0xb8] sm:$0xff]  ;;  %v42_v14 = vld [vmem:[%s1808_s0 + $0x68] sm:$0xff] }
  0x18   :  { %458 = vperm.xlu1 %1229, %v408_v32   ;;  %v433_v12 = vld [vmem:[%s1807_s1 + $0xe0] sm:$0xff]  ;;  %v62_v15 = vld [vmem:[%s1808_s0 + $0x108] sm:$0xff]  ;;  %v43_v16 = vld [vmem:[%s1808_s0 + $0x70] sm:$0xff] }
  0x19   :  { %1170 = vmatpush3.bf16.msra.mxu0 %v1167_v28  ;;  %1224 = vmatpush3.bf16.msra.mxu1 %v1167_v28  ;;  %v63_v17 = vld [vmem:[%s1808_s0 + $0x110] sm:$0xff]  ;;  %v434_v18 = vld [vmem:[%s1807_s1 + $0xe8] sm:$0xff]  ;;  %v44_v20 = vld [vmem:[%s1808_s0 + $0x78] sm:$0xff] }
  0x1a   :  { %1172 = vmatprep.subr.bf16.mxu0 %v1171_v33  ;;  %1217 = vmatprep.subr.bf16.mxu1 %v1171_v33  ;;  %v431_v19 = vld [vmem:[%s1807_s1 + $0xd0] sm:$0xff]  ;;  %v64_v21 = vld [vmem:[%s1808_s0 + $0x118] sm:$0xff]  ;;  %v45_v22 = vld [vmem:[%s1808_s0 + $0x80] sm:$0xff] }
  0x1b   :  { %478 = vperm.xlu0 %1228, %v412_v36   ;;  %v437_v23 = vld [vmem:[%s1807_s1 + $0x100] sm:$0xff]  ;;  %v432_v24 = vld [vmem:[%s1807_s1 + $0xd8] sm:$0xff]  ;;  %v46_v25 = vld [vmem:[%s1808_s0 + $0x88] sm:$0xff] }
  0x1c   :  { %508 = vperm.xlu1 %1229, %v418_v37   ;;  %v47_v26 = vld [vmem:[%s1808_s0 + $0x90] sm:$0xff]  ;;  %v438_v27 = vld [vmem:[%s1807_s1 + $0x108] sm:$0xff]  ;;  %v48_v29 = vld [vmem:[%s1808_s0 + $0x98] sm:$0xff] }
  0x1d   :  { %1174 = vmatpush3.bf16.msra.mxu0 %v1171_v33  ;;  %1225 = vmatpush3.bf16.msra.mxu1 %v1171_v33  ;;  %v435_v28 = vld [vmem:[%s1807_s1 + $0xf0] sm:$0xff]  ;;  %v436_v30 = vld [vmem:[%s1807_s1 + $0xf8] sm:$0xff]  ;;  %v815_v33 = vld [vmem:[%s1809_s6] sm:$0xff] }
  0x1e   :  { %1176 = vmatprep.subr.bf16.mxu0 %v1175_v38  ;;  %1218 = vmatprep.subr.bf16.mxu1 %v1175_v38  ;;  %v439_v31 = vld [vmem:[%s1807_s1 + $0x110] sm:$0xff]  ;;  %v440_v32 = vld [vmem:[%s1807_s1 + $0x118] sm:$0xff]  ;;  %v816_v34 = vld [vmem:[%s1809_s6 + $0x8] sm:$0xff] }
  0x1f   :  { %493 = vperm.xlu0 %1228, %v415_v39   ;;  %v1179_v35 = vpack.c.bf16 %v816_v34, %v815_v33  ;;  %v817_v36 = vld [vmem:[%s1809_s6 + $0x10] sm:$0xff]  ;;  %v818_v37 = vld [vmem:[%s1809_s6 + $0x18] sm:$0xff]  ;;  %v819_v39 = vld [vmem:[%s1809_s6 + $0x20] sm:$0xff] }
  0x20   :  { %523 = vperm.xlu1 %1229, %v421_v40   ;;  %v820_v40 = vld [vmem:[%s1809_s6 + $0x28] sm:$0xff] }
  0x21   :  { %1178 = vmatpush3.bf16.msra.mxu0 %v1175_v38  ;;  %1226 = vmatpush3.bf16.msra.mxu1 %v1175_v38  ;;  %v1183_v38 = vpack.c.bf16 %v818_v37, %v817_v36 }
  0x22   :  { %1180 = vmatprep.subr.bf16.mxu1 %v1179_v35 }
  0x23   :  { %498 = vperm.xlu0 %1228, %v416_v41   ;;  %v1187_v41 = vpack.c.bf16 %v820_v40, %v819_v39 }
  0x24   :  { %1056 = vmatmul.mubr.f32.vlgmr.msra.gmra.mrb[0].mxu0 %v30_v42  ;;  %1086 = vmatmul.mubr.f32.vlgmr.msra.gmra.mrb[0].mxu1 %v50_v43  ;;  %v821_v42 = vld [vmem:[%s1809_s6 + $0x30] sm:$0xff]  ;;  %v822_v43 = vld [vmem:[%s1809_s6 + $0x38] sm:$0xff] }
  0x25   :  { %1058 = vmatprep.mubr.f32.mxu0 %v31_v44  ;;  %1088 = vmatprep.mubr.f32.mxu1 %v51_v45  ;;  %v1191_v44 = vpack.c.bf16 %v822_v43, %v821_v42  ;;  %v823_v45 = vld [vmem:[%s1809_s6 + $0x40] sm:$0xff] }
  0x26   :  { %528 = vperm.xlu1 %1229, %v422_v46   ;;  %1182 = vmatpush3.bf16.msra.mxu1 %v1179_v35  ;;  %v824_v46 = vld [vmem:[%s1809_s6 + $0x48] sm:$0xff] }
  0x27   :  { %513 = vperm.xlu0 %1228, %v419_v47   ;;  %1184 = vmatprep.subr.bf16.mxu1 %v1183_v38  ;;  %v1195_v47 = vpack.c.bf16 %v824_v46, %v823_v45 }
  0x28   :  { %1059 = vmatmul.mubr.f32.gmra.mrb[2].mxu0 %v32_v48  ;;  %1089 = vmatmul.mubr.f32.gmra.mrb[2].mxu1 %v52_v49  ;;  %v825_v48 = vld [vmem:[%s1809_s6 + $0x50] sm:$0xff]  ;;  %v826_v49 = vld [vmem:[%s1809_s6 + $0x58] sm:$0xff] }
  0x29   :  { %1061 = vmatprep.mubr.f32.mxu0 %v33_v50  ;;  %1091 = vmatprep.mubr.f32.mxu1 %v53_v51  ;;  %v1199_v50 = vpack.c.bf16 %v826_v49, %v825_v48  ;;  %v827_v51 = vld [vmem:[%s1809_s6 + $0x60] sm:$0xff] }
  0x2a   :  { %543 = vperm.xlu1 %1229, %v425_v52   ;;  %1186 = vmatpush3.bf16.msra.mxu1 %v1183_v38  ;;  %v828_v52 = vld [vmem:[%s1809_s6 + $0x68] sm:$0xff] }
  0x2b   :  { %518 = vperm.xlu0 %1228, %v420_v53   ;;  %1188 = vmatprep.subr.bf16.mxu1 %v1187_v41  ;;  %v829_v53 = vld [vmem:[%s1809_s6 + $0x70] sm:$0xff] }
  0x2c   :  { %1062 = vmatmul.mubr.f32.gmra.mrb[4].mxu0 %v34_v54  ;;  %1092 = vmatmul.mubr.f32.gmra.mrb[4].mxu1 %v54_v55  ;;  %v1203_v54 = vpack.c.bf16 %v828_v52, %v827_v51  ;;  %v830_v55 = vld [vmem:[%s1809_s6 + $0x78] sm:$0xff] }
  0x2d   :  { %1064 = vmatprep.mubr.f32.mxu0 %v35_v56  ;;  %1094 = vmatprep.mubr.f32.mxu1 %v55_v57  ;;  %v1207_v56 = vpack.c.bf16 %v830_v55, %v829_v53  ;;  %v932_v55 = vld [vmem:[%s1811_s4] ss:$0 sm:$0xff] }
  0x2e   :  { %548 = vperm.xlu1 %1229, %v426_v58   ;;  %1190 = vmatpush3.bf16.msra.mxu1 %v1187_v41 }
  0x2f   :  { %533 = vperm.xlu0 %1228, %v423_v59   ;;  %1192 = vmatprep.subr.bf16.mxu1 %v1191_v44 }
  0x30   :  { %1065 = vmatmul.mubr.f32.gmra.mrb[6].mxu0 %v36_v60  ;;  %1095 = vmatmul.mubr.f32.gmra.mrb[6].mxu1 %v56_v61 }
  0x31   :  { %1067 = vmatprep.mubr.f32.mxu0 %v37_v62  ;;  %1097 = vmatprep.mubr.f32.mxu1 %v57_v63 }
  0x32   :  { %563 = vperm.xlu1 %1229, %v429_v0   ;;  %1194 = vmatpush3.bf16.msra.mxu1 %v1191_v44 }
  0x33   :  { %538 = vperm.xlu0 %1228, %v424_v1   ;;  %1196 = vmatprep.subr.bf16.mxu1 %v1195_v47 }
  0x34   :  { %1068 = vmatmul.mubr.f32.gmra.mrb[8].mxu0 %v38_v2  ;;  %1098 = vmatmul.mubr.f32.gmra.mrb[8].mxu1 %v58_v3 }
  0x35   :  { %1070 = vmatprep.mubr.f32.mxu0 %v39_v4  ;;  %1100 = vmatprep.mubr.f32.mxu1 %v59_v5 }
  0x36   :  { %568 = vperm.xlu1 %1229, %v430_v6   ;;  %1198 = vmatpush3.bf16.msra.mxu1 %v1195_v47 }
  0x37   :  { %553 = vperm.xlu0 %1228, %v427_v7   ;;  %1200 = vmatprep.subr.bf16.mxu1 %v1199_v50 }
  0x38   :  { %1071 = vmatmul.mubr.f32.gmra.mrb[10].mxu0 %v40_v8  ;;  %1101 = vmatmul.mubr.f32.gmra.mrb[10].mxu1 %v60_v9 }
  0x39   :  { %1073 = vmatprep.mubr.f32.mxu0 %v41_v10  ;;  %1103 = vmatprep.mubr.f32.mxu1 %v61_v11 }
  0x3a   :  { %583 = vperm.xlu1 %1229, %v433_v12   ;;  %1202 = vmatpush3.bf16.msra.mxu1 %v1199_v50 }
  0x3b   :  { %558 = vperm.xlu0 %1228, %v428_v13   ;;  %1204 = vmatprep.subr.bf16.mxu1 %v1203_v54 }
  0x3c   :  { %1074 = vmatmul.mubr.f32.gmra.mrb[12].mxu0 %v42_v14  ;;  %1104 = vmatmul.mubr.f32.gmra.mrb[12].mxu1 %v62_v15  ;;  %v1629_v14 = vld [vmem:[%s1810_s3] ss:$0 sm:$0xff] }
  0x3d   :  { %1076 = vmatprep.mubr.f32.mxu0 %v43_v16  ;;  %1106 = vmatprep.mubr.f32.mxu1 %v63_v17 }
  0x3e   :  { %588 = vperm.xlu1 %1229, %v434_v18   ;;  %1206 = vmatpush3.bf16.msra.mxu1 %v1203_v54 }
  0x3f   :  { %573 = vperm.xlu0 %1228, %v431_v19   ;;  %1208 = vmatprep.subr.bf16.mxu1 %v1207_v56 }
  0x40   :  { %1077 = vmatmul.mubr.f32.gmra.mrb[14].mxu0 %v44_v20  ;;  %1107 = vmatmul.mubr.f32.gmra.mrb[14].mxu1 %v64_v21 }
  0x41   :  { %1079 = vmatprep.mubr.f32.mxu0 %v45_v22 }
  0x42   :  { %603 = vperm.xlu1 %1229, %v437_v23   ;;  %1210 = vmatpush3.bf16.msra.mxu1 %v1207_v56 }
  0x43   :  { %578 = vperm.xlu0 %1228, %v432_v24  }
  0x44   :  { %1080 = vmatmul.mubr.f32.gmra.mrb[16].mxu0 %v46_v25 }
  0x45   :  { %1082 = vmatprep.mubr.f32.mxu0 %v47_v26 }
  0x46   :  { %608 = vperm.xlu1 %1229, %v438_v27  }
  0x47   :  { %593 = vperm.xlu0 %1228, %v435_v28  }
  0x48   :  { %1083 = vmatmul.mubr.f32.gmra.mrb[18].mxu0 %v48_v29 }
  0x4a   :  { %598 = vperm.xlu1 %1229, %v436_v30  }
  0x4b   :  { %613 = vperm.xlu0 %1228, %v439_v31  }
  0x4e   :  { %618 = vperm.xlu1 %1229, %v440_v32  }
  0x86   :  { %v1588_v57 = vpop.permute.xlu0 %443 }
  0x87   :  { %v449_v59 = vpop.permute.xlu1 %448 }
  0x8a   :  { %v1590_v58 = vpop.permute.xlu0 %463 }
  0x8b   :  { %v1594_v61 = vpop.permute.xlu1 %468 }
  0x8e   :  { %v1592_v60 = vpop.permute.xlu0 %483 }
  0x8f   :  { %v1598_v63 = vpop.permute.xlu1 %488 }
  0x92   :  { %v1596_v62 = vpop.permute.xlu0 %453 }
  0x93   :  { %v1602_v1 = vpop.permute.xlu1 %473 }
  0x96   :  { %v1600_v0 = vpop.permute.xlu0 %503 }
  0x97   :  { %v1606_v3 = vpop.permute.xlu1 %458 }
  0x9a   :  { %v1604_v2 = vpop.permute.xlu0 %478 }
  0x9b   :  { %v1610_v5 = vpop.permute.xlu1 %508 }
  0x9e   :  { %v1608_v4 = vpop.permute.xlu0 %493 }
  0x9f   :  { %v1614_v7 = vpop.permute.xlu1 %523 }
  0xa2   :  { %v1612_v6 = vpop.permute.xlu0 %498 }
  0xa5   :  { %v1618_v9 = vpop.permute.xlu1 %528 }
  0xa6   :  { %v1616_v8 = vpop.permute.xlu0 %513 }
  0xa9   :  { %v1622_v11 = vpop.permute.xlu1 %543 }
  0xaa   :  { %v1620_v10 = vpop.permute.xlu0 %518 }
  0xad   :  { %v1631_v18 = vpop.permute.xlu1 %548 }
  0xae   :  { %v1624_v12 = vpop.permute.xlu0 %533 }
  0xb1   :  { %v1641_v36 = vpop.permute.xlu1 %563 }
  0xb2   :  { %v1633_v19 = vpop.permute.xlu0 %538 }
  0xb6   :  { %v1643_v37 = vpop.permute.xlu0 %553 }
  0xf7   :  { %v1057_v13 = vpop.f32.mrb[0].mxu0  ;;  %v1087_v15 = vpop.f32.mrb[0].mxu1 }
  0xf8   :  { %v154_v16 = vpop.f32.mrb[1].mxu0  ;;  %v254_v17 = vpop.f32.mrb[1].mxu1  ;;  %v160_v20 = vadd.f32 %v1057_v13, %v1629_v14  ;;  %v260_v32 = vadd.f32 %v1087_v15, %v1629_v14 }
  0xf9   :  { %v155_v21 = vadd.f32 %v1629_v14, %v154_v16  ;;  %v255_v33 = vadd.f32 %v1629_v14, %v254_v17 }
  0xfa   :  { %v334_v26 = vmax.f32 %v160_v20, 0.0  ;;  %v354_v46 = vmax.f32 %v260_v32, 0.0  ;;  %v934_v20 = vld [vmem:[%s1811_s4 + $0x1] ss:$0 sm:$0xff] }
  0xfb   :  { %v1060_v22 = vpop.f32.mrb[2].mxu0  ;;  %v1090_v23 = vpop.f32.mrb[2].mxu1  ;;  %v333_v28 = vmax.f32 %v155_v21, 0.0  ;;  %v353_v47 = vmax.f32 %v255_v33, 0.0 }
  0xfc   :  { %v164_v24 = vpop.f32.mrb[3].mxu0  ;;  %v264_v25 = vpop.f32.mrb[3].mxu1  ;;  %v170_v27 = vadd.f32 %v1060_v22, %v1629_v14  ;;  %v370_v38 = vmin.f32 %v334_v26, 6.0  ;;  %v270_v51 = vadd.f32 %v1090_v23, %v1629_v14 }
  0xfd   :  { %v165_v29 = vadd.f32 %v1629_v14, %v164_v24  ;;  %v369_v41 = vmin.f32 %v333_v28, 6.0  ;;  %v1649_v52 = vadd.f32 %v1629_v14, %v264_v25  ;;  %v390_v24 = vmin.f32 %v354_v46, 6.0 }
  0xfe   :  { %v336_v39 = vmax.f32 %v170_v27, 0.0  ;;  %v622_v54 = vmul.f32 %v449_v59, %v370_v38  ;;  %v389_v25 = vmin.f32 %v353_v47, 6.0  ;;  %v559_v38 = vpop.permute.xlu0 %558 }
  0xff   :  { %v1063_v30 = vpop.f32.mrb[4].mxu0  ;;  %v1093_v31 = vpop.f32.mrb[4].mxu1  ;;  %v335_v42 = vmax.f32 %v165_v29, 0.0  ;;  %v621_v16 = vmul.f32 %v1588_v57, %v369_v41  ;;  %v356_v57 = vmax.f32 %v270_v51, 0.0 }
 0x100   :  { %v174_v34 = vpop.f32.mrb[5].mxu0  ;;  %v274_v35 = vpop.f32.mrb[5].mxu1  ;;  %v180_v40 = vadd.f32 %v1063_v30, %v1629_v14  ;;  %v372_v56 = vmin.f32 %v336_v39, 6.0  ;;  %v355_v30 = vmax.f32 %v1649_v52, 0.0  ;;  %v665_v39 = vmul.f32 %v932_v55, %v622_v54 }
 0x101   :  { %v175_v43 = vadd.f32 %v1629_v14, %v174_v34  ;;  %v371_v17 = vmin.f32 %v335_v42, 6.0  ;;  %v1667_v34 = vpop.permute.xlu1 %568 }
 0x102   :  { %v338_v48 = vmax.f32 %v180_v40, 0.0  ;;  %v624_v40 = vmul.f32 %v1606_v3, %v372_v56  ;;  %v275_v56 = vadd.f32 %v1629_v14, %v274_v35 }
 0x103   :  { %v1066_v44 = vpop.f32.mrb[6].mxu0  ;;  %v1096_v45 = vpop.f32.mrb[6].mxu1  ;;  %v337_v53 = vmax.f32 %v175_v43, 0.0  ;;  %v664_v43 = vmul.f32 %v932_v55, %v621_v16 }
 0x104   :  { %v184_v49 = vpop.f32.mrb[7].mxu0  ;;  %v284_v50 = vpop.f32.mrb[7].mxu1  ;;  %v374_v13 = vmin.f32 %v338_v48, 6.0  ;;  %v190_v15 = vadd.f32 %v1066_v44, %v1629_v14 }
 0x105   :  { %v373_v21 = vmin.f32 %v337_v53, 6.0  ;;  %v185_v22 = vadd.f32 %v1629_v14, %v184_v49 }
 0x106   :  { %v626_v26 = vmul.f32 %v1594_v61, %v374_v13  ;;  %v340_v27 = vmax.f32 %v190_v15, 0.0  ;;  %v623_v61 = vmul.f32 %v1596_v62, %v371_v17  ;;  %v290_v62 = vadd.f32 %v1096_v45, %v1629_v14 }
 0x107   :  { %v1069_v23 = vpop.f32.mrb[8].mxu0  ;;  %v1660_v59 = vpop.f32.mrb[8].mxu1  ;;  %v625_v32 = vmul.f32 %v1590_v58, %v373_v21  ;;  %v339_v33 = vmax.f32 %v185_v22, 0.0  ;;  %v280_v58 = vadd.f32 %v1093_v31, %v1629_v14  ;;  %v667_v15 = vmul.f32 %v932_v55, %v624_v40 }
 0x108   :  { %v194_v28 = vpop.f32.mrb[9].mxu0  ;;  %v1663_v29 = vpop.f32.mrb[9].mxu1  ;;  %v677_v41 = vmul.f32 %v934_v20, %v626_v26  ;;  %v376_v42 = vmin.f32 %v340_v27, 6.0  ;;  %v200_v52 = vadd.f32 %v1069_v23, %v1629_v14  ;;  %v392_v31 = vmin.f32 %v356_v57, 6.0 }
 0x109   :  { %v676_v44 = vmul.f32 %v934_v20, %v625_v32  ;;  %v375_v46 = vmin.f32 %v339_v33, 6.0  ;;  %v195_v21 = vadd.f32 %v1629_v14, %v194_v28  ;;  %v666_v22 = vmul.f32 %v932_v55, %v623_v61  ;;  %v1688_v40 = vpop.permute.xlu1 %583 }
 0x10a   :  { %v681_v49 = vadd.f32 %v677_v41, %v665_v39  ;;  %v628_v51 = vmul.f32 %v1604_v2, %v376_v42  ;;  %v342_v17 = vmax.f32 %v200_v52, 0.0  ;;  %v285_v23 = vadd.f32 %v1629_v14, %v284_v50  ;;  %v936_v50 = vld [vmem:[%s1811_s4 + $0x2] ss:$0 sm:$0xff] }
 0x10b   :  { %v1072_v47 = vpop.f32.mrb[10].mxu0  ;;  %v1671_v48 = vpop.f32.mrb[10].mxu1  ;;  %v680_v3 = vadd.f32 %v676_v44, %v664_v43  ;;  %v627_v13 = vmul.f32 %v1602_v1, %v375_v46  ;;  %v341_v35 = vmax.f32 %v195_v21, 0.0  ;;  %v358_v41 = vmax.f32 %v280_v58, 0.0 }
 0x10c   :  { %v204_v53 = vpop.f32.mrb[11].mxu0  ;;  %v1676_v54 = vpop.f32.mrb[11].mxu1  ;;  %v679_v16 = vmul.f32 %v934_v20, %v628_v51  ;;  %v378_v33 = vmin.f32 %v342_v17, 6.0  ;;  %v210_v45 = vadd.f32 %v1072_v47, %v1629_v14  ;;  %v357_v28 = vmax.f32 %v275_v56, 0.0 }
 0x10d   :  { %v678_v2 = vmul.f32 %v934_v20, %v627_v13  ;;  %v360_v57 = vmax.f32 %v290_v62, 0.0  ;;  %v574_v20 = vpop.permute.xlu0 %573  ;;  %v377_v43 = vmin.f32 %v341_v35, 6.0  ;;  %v205_v44 = vadd.f32 %v1629_v14, %v204_v53  ;;  %v942_v62 = vld [vmem:[%s1811_s4 + $0x5] ss:$0 sm:$0xff] }
 0x10e   :  { %v683_v32 = vadd.f32 %v679_v16, %v667_v15  ;;  %v630_v42 = vmul.f32 %v1598_v63, %v378_v33  ;;  %v344_v61 = vmax.f32 %v210_v45, 0.0  ;;  %v642_v46 = vmul.f32 %v1631_v18, %v390_v24 }
 0x10f   :  { %v1075_v26 = vpop.f32.mrb[12].mxu0  ;;  %v1683_v27 = vpop.f32.mrb[12].mxu1  ;;  %v682_v55 = vadd.f32 %v678_v2, %v666_v22  ;;  %v641_v47 = vmul.f32 %v1622_v11, %v389_v25  ;;  %v391_v51 = vmin.f32 %v355_v30, 6.0  ;;  %v359_v58 = vmax.f32 %v285_v23, 0.0 }
 0x110   :  { %v214_v39 = vpop.f32.mrb[13].mxu0  ;;  %v1686_v1 = vpop.f32.mrb[13].mxu1  ;;  %v693_v13 = vmul.f32 %v936_v50, %v630_v42  ;;  %v629_v63 = vmul.f32 %v1592_v60, %v377_v43  ;;  %v380_v15 = vmin.f32 %v344_v61, 6.0  ;;  %v343_v16 = vmax.f32 %v205_v44, 0.0 }
 0x111   :  { %v644_v18 = vmul.f32 %v559_v38, %v392_v31  ;;  %v394_v24 = vmin.f32 %v358_v41, 6.0  ;;  %v393_v11 = vmin.f32 %v357_v28, 6.0  ;;  %v396_v25 = vmin.f32 %v360_v57, 6.0  ;;  %v1706_v23 = vpop.permute.xlu1 %588  ;;  %v579_v57 = vpop.permute.xlu0 %578 }
 0x112   :  { %v697_v30 = vadd.f32 %v693_v13, %v681_v49  ;;  %v692_v21 = vmul.f32 %v936_v50, %v629_v63  ;;  %v632_v22 = vmul.f32 %v1612_v6, %v380_v15  ;;  %v379_v2 = vmin.f32 %v343_v16, 6.0 }
 0x113   :  { %v1078_v52 = vpop.f32.mrb[14].mxu0  ;;  %v1697_v56 = vpop.f32.mrb[14].mxu1  ;;  %v1708_v33 = vmul.f32 %v942_v62, %v642_v46  ;;  %v1710_v35 = vmul.f32 %v942_v62, %v641_v47  ;;  %v395_v60 = vmin.f32 %v359_v58, 6.0  ;;  %v220_v45 = vadd.f32 %v1075_v26, %v1629_v14 }
 0x114   :  { %v224_v17 = vpop.f32.mrb[15].mxu0  ;;  %v1703_v53 = vpop.f32.mrb[15].mxu1  ;;  %v643_v38 = vmul.f32 %v1643_v37, %v391_v51  ;;  %v696_v31 = vadd.f32 %v692_v21, %v680_v3  ;;  %v695_v41 = vmul.f32 %v936_v50, %v632_v22  ;;  %v631_v49 = vmul.f32 %v1608_v4, %v379_v2  ;;  %v944_v37 = vld [vmem:[%s1811_s4 + $0x6] ss:$0 sm:$0xff] }
 0x115   :  { %v1715_v6 = vmul.f32 %v942_v62, %v644_v18  ;;  %v646_v43 = vmul.f32 %v1667_v34, %v394_v24  ;;  %v346_v61 = vmax.f32 %v220_v45, 0.0  ;;  %v215_v44 = vadd.f32 %v1629_v14, %v214_v39  ;;  %v1733_v15 = vpop.permute.xlu1 %603 }
 0x116   :  { %v645_v46 = vmul.f32 %v1641_v36, %v393_v11  ;;  %v648_v47 = vmul.f32 %v579_v57, %v396_v25  ;;  %v699_v26 = vadd.f32 %v695_v41, %v683_v32  ;;  %v694_v58 = vmul.f32 %v936_v50, %v631_v49  ;;  %v938_v50 = vld [vmem:[%s1811_s4 + $0x3] ss:$0 sm:$0xff] }
 0x117   :  { %v1081_v42 = vpop.f32.mrb[16].mxu0  ;;  %v647_v3 = vmul.f32 %v574_v20, %v395_v60  ;;  %v382_v4 = vmin.f32 %v346_v61, 6.0  ;;  %v345_v51 = vmax.f32 %v215_v44, 0.0  ;;  %v230_v13 = vadd.f32 %v1078_v52, %v1629_v14 }
 0x118   :  { %v234_v28 = vpop.f32.mrb[17].mxu0  ;;  %v300_v34 = vadd.f32 %v1660_v59, %v1629_v14  ;;  %v295_v39 = vadd.f32 %v1629_v14, %v1663_v29  ;;  %v310_v36 = vadd.f32 %v1671_v48, %v1629_v14  ;;  %v698_v32 = vadd.f32 %v694_v58, %v682_v55 }
 0x119   :  { %v634_v52 = vmul.f32 %v1610_v5, %v382_v4  ;;  %v381_v16 = vmin.f32 %v345_v51, 6.0  ;;  %v348_v18 = vmax.f32 %v230_v13, 0.0  ;;  %v225_v59 = vadd.f32 %v1629_v14, %v224_v17  ;;  %v609_v61 = vpop.permute.xlu1 %608 }
 0x11a   :  { %v1737_v24 = vmul.f32 %v942_v62, %v643_v38  ;;  %v1739_v29 = vmul.f32 %v944_v37, %v646_v43  ;;  %v1741_v11 = vmul.f32 %v944_v37, %v645_v46  ;;  %v1743_v48 = vmul.f32 %v944_v37, %v648_v47 }
 0x11b   :  { %v1084_v63 = vpop.f32.mrb[18].mxu0  ;;  %v709_v55 = vmul.f32 %v938_v50, %v634_v52  ;;  %v633_v25 = vmul.f32 %v1600_v0, %v381_v16  ;;  %v384_v21 = vmin.f32 %v348_v18, 6.0  ;;  %v347_v22 = vmax.f32 %v225_v59, 0.0  ;;  %v594_v18 = vpop.permute.xlu0 %593 }
 0x11c   :  { %v244_v20 = vpop.f32.mrb[19].mxu0  ;;  %v1746_v2 = vmul.f32 %v944_v37, %v647_v3  ;;  %v362_v5 = vmax.f32 %v300_v34, 0.0  ;;  %v361_v60 = vmax.f32 %v295_v39, 0.0  ;;  %v364_v45 = vmax.f32 %v310_v36, 0.0 }
 0x11d   :  { %v713_v41 = vadd.f32 %v709_v55, %v697_v30  ;;  %v708_v17 = vmul.f32 %v938_v50, %v633_v25  ;;  %v636_v62 = vmul.f32 %v1620_v10, %v384_v21  ;;  %v383_v38 = vmin.f32 %v347_v22, 6.0 }
 0x11e   :  { %v305_v49 = vadd.f32 %v1629_v14, %v1676_v54  ;;  %v320_v57 = vadd.f32 %v1683_v27, %v1629_v14  ;;  %v315_v0 = vadd.f32 %v1629_v14, %v1686_v1  ;;  %v240_v43 = vadd.f32 %v1081_v42, %v1629_v14 }
 0x11f   :  { %v712_v44 = vadd.f32 %v708_v17, %v696_v31  ;;  %v711_v46 = vmul.f32 %v938_v50, %v636_v62  ;;  %v635_v30 = vmul.f32 %v1616_v8, %v383_v38  ;;  %v235_v47 = vadd.f32 %v1629_v14, %v234_v28 }
 0x120   :  { %v330_v10 = vadd.f32 %v1697_v56, %v1629_v14  ;;  %v325_v54 = vadd.f32 %v1629_v14, %v1703_v53  ;;  %v350_v58 = vmax.f32 %v240_v43, 0.0  ;;  %v250_v27 = vadd.f32 %v1084_v63, %v1629_v14  ;;  %v940_v56 = vld [vmem:[%s1811_s4 + $0x4] ss:$0 sm:$0xff] }
 0x121   :  { %v715_v37 = vadd.f32 %v711_v46, %v699_v26  ;;  %v710_v1 = vmul.f32 %v938_v50, %v635_v30  ;;  %v349_v3 = vmax.f32 %v235_v47, 0.0  ;;  %v245_v42 = vadd.f32 %v1629_v14, %v244_v20  ;;  %v599_v50 = vpop.permute.xlu1 %598 }
 0x122   :  { %v363_v31 = vmax.f32 %v305_v49, 0.0  ;;  %v366_v4 = vmax.f32 %v320_v57, 0.0  ;;  %v386_v51 = vmin.f32 %v350_v58, 6.0  ;;  %v352_v8 = vmax.f32 %v250_v27, 0.0 }
 0x123   :  { %v365_v13 = vmax.f32 %v315_v0, 0.0  ;;  %v714_v28 = vadd.f32 %v710_v1, %v698_v32  ;;  %v385_v34 = vmin.f32 %v349_v3, 6.0  ;;  %v351_v53 = vmax.f32 %v245_v42, 0.0 }
 0x124   :  { %v398_v39 = vmin.f32 %v362_v5, 6.0  ;;  %v368_v36 = vmax.f32 %v330_v10, 0.0  ;;  %v638_v26 = vmul.f32 %v1618_v9, %v386_v51  ;;  %v388_v63 = vmin.f32 %v352_v8, 6.0 }
 0x125   :  { %v397_v52 = vmin.f32 %v361_v60, 6.0  ;;  %v367_v14 = vmax.f32 %v325_v54, 0.0  ;;  %v637_v20 = vmul.f32 %v1614_v7, %v385_v34  ;;  %v387_v16 = vmin.f32 %v351_v53, 6.0  ;;  %v946_v7 = vld [vmem:[%s1811_s4 + $0x7] ss:$0 sm:$0xff] }
 0x126   :  { %v400_v59 = vmin.f32 %v364_v45, 6.0  ;;  %v402_v32 = vmin.f32 %v366_v4, 6.0  ;;  %v725_v55 = vmul.f32 %v940_v56, %v638_v26  ;;  %v640_v25 = vmul.f32 %v1633_v19, %v388_v63 }
 0x127   :  { %v399_v21 = vmin.f32 %v363_v31, 6.0  ;;  %v401_v22 = vmin.f32 %v365_v13, 6.0  ;;  %v724_v17 = vmul.f32 %v940_v56, %v637_v20  ;;  %v639_v5 = vmul.f32 %v1624_v12, %v387_v16  ;;  %v619_v12 = vpop.permute.xlu1 %618 }
 0x128   :  { %v650_v9 = vmul.f32 %v1706_v23, %v398_v39  ;;  %v404_v62 = vmin.f32 %v368_v36, 6.0  ;;  %v729_v38 = vadd.f32 %v725_v55, %v713_v41  ;;  %v727_v60 = vmul.f32 %v940_v56, %v640_v25  ;;  %v948_v23 = vld [vmem:[%s1811_s4 + $0x8] ss:$0 sm:$0xff] }
 0x129   :  { %v649_v45 = vmul.f32 %v1688_v40, %v397_v52  ;;  %v403_v49 = vmin.f32 %v367_v14, 6.0  ;;  %v728_v57 = vadd.f32 %v724_v17, %v712_v44  ;;  %v726_v0 = vmul.f32 %v940_v56, %v639_v5  ;;  %v614_v40 = vpop.permute.xlu0 %613 }
 0x12a   :  { %v652_v19 = vmul.f32 %v599_v50, %v400_v59  ;;  %v654_v43 = vmul.f32 %v609_v61, %v402_v32  ;;  %v745_v46 = vadd.f32 %v1708_v33, %v729_v38  ;;  %v731_v30 = vadd.f32 %v727_v60, %v715_v37  ;;  %v950_v32 = vld [vmem:[%s1813_s7] ss:$0 sm:$0xff] }
 0x12b   :  { %v651_v47 = vmul.f32 %v594_v18, %v399_v21  ;;  %v653_v41 = vmul.f32 %v1733_v15, %v401_v22  ;;  %v744_v10 = vadd.f32 %v1710_v35, %v728_v57  ;;  %v730_v54 = vadd.f32 %v726_v0, %v714_v28 }
 0x12c   :  { %v773_v58 = vmul.f32 %v946_v7, %v650_v9  ;;  %v656_v44 = vmul.f32 %v619_v12, %v404_v62  ;;  %v761_v27 = vadd.f32 %v1739_v29, %v745_v46  ;;  %v747_v61 = vadd.f32 %v1715_v6, %v731_v30  ;;  %v949_v29 = vld [vmem:[%s1812_s5] ss:$0 sm:$0xff] }
 0x12d   :  { %v772_v33 = vmul.f32 %v946_v7, %v649_v45  ;;  %v655_v37 = vmul.f32 %v614_v40, %v403_v49  ;;  %v746_v1 = vadd.f32 %v1737_v24, %v730_v54  ;;  %v760_v3 = vadd.f32 %v1741_v11, %v744_v10 }
 0x12e   :  { %v775_v42 = vmul.f32 %v946_v7, %v652_v19  ;;  %v789_v31 = vmul.f32 %v948_v23, %v654_v43  ;;  %v777_v4 = vadd.f32 %v773_v58, %v761_v27  ;;  %v763_v15 = vadd.f32 %v1743_v48, %v747_v61 }
 0x12f   :  { %v774_v35 = vmul.f32 %v946_v7, %v651_v47  ;;  %v788_v51 = vmul.f32 %v948_v23, %v653_v41  ;;  %v776_v8 = vadd.f32 %v772_v33, %v760_v3  ;;  %v762_v6 = vadd.f32 %v1746_v2, %v746_v1 }
 0x130   :  { %v791_v13 = vmul.f32 %v948_v23, %v656_v44  ;;  %v793_v28 = vadd.f32 %v789_v31, %v777_v4  ;;  %v779_v56 = vadd.f32 %v775_v42, %v763_v15  ;;  %v790_v24 = vmul.f32 %v948_v23, %v655_v37 }
 0x131   :  { %v792_v34 = vadd.f32 %v788_v51, %v776_v8  ;;  %v778_v11 = vadd.f32 %v774_v35, %v762_v6 }
 0x132   :  { %v804_v53 = vadd.f32 %v949_v29, %v793_v28  ;;  %v795_v39 = vadd.f32 %v791_v13, %v779_v56 }
 0x133   :  { %v803_v36 = vadd.f32 %v949_v29, %v792_v34  ;;  %v794_v26 = vadd.f32 %v790_v24, %v778_v11 }
 0x134   :  { %v808_v48 = vmax.f32 %v804_v53, 0.0  ;;  %v806_v63 = vadd.f32 %v949_v29, %v795_v39 }
 0x135   :  { %v807_v50 = vmax.f32 %v803_v36, 0.0  ;;  %v805_v52 = vadd.f32 %v949_v29, %v794_v26 }
 0x136   :  { %v812_v16 = vmin.f32 %v808_v48, 6.0  ;;  %v810_v18 = vmax.f32 %v806_v63, 0.0 }
 0x137   :  { %v811_v14 = vmin.f32 %v807_v50, 6.0  ;;  %v809_v20 = vmax.f32 %v805_v52, 0.0 }
 0x138   :  { %v814_v59 = vmin.f32 %v810_v18, 6.0 }
 0x139   :  { %1141 = vmatprep.mubr.f32.mxu1 %v811_v14  ;;  %v813_v2 = vmin.f32 %v809_v20, 6.0 }
 0x13a   :  { %1142 = vmatmul.mubr.f32.vlgmr.msra.gmra.mrb[16].mxu1 %v812_v16 }
 0x13b   :  { %1144 = vmatprep.mubr.f32.mxu1 %v813_v2 }
 0x13e   :  { %1145 = vmatmul.mubr.f32.gmra.mrb[18].mxu1 %v814_v59 }
 0x20d   :  { %v1143_v55 = vpop.f32.mrb[16].mxu1 }
 0x20e   :  { %v910_v25 = vadd.f32 %v1143_v55, %v950_v32  ;;  %v904_v21 = vpop.f32.mrb[17].mxu1 }
 0x20f   :  { %v905_v22 = vadd.f32 %v950_v32, %v904_v21 }
 0x210   :  { %924 = vst [vmem:[%s1814_s8 + $0x8] sm:$0xff] %v910_v25 }
 0x211   :  { %923 = vst [vmem:[%s1814_s8] sm:$0xff] %v905_v22  ;;  %v1146_v17 = vpop.f32.mrb[18].mxu1 }
 0x212   :  { %v920_v5 = vadd.f32 %v1146_v17, %v950_v32  ;;  %v914_v9 = vpop.f32.mrb[19].mxu1 }
 0x213   :  { %v915_v62 = vadd.f32 %v950_v32, %v914_v9 }
 0x214   :  { %926 = vst [vmem:[%s1814_s8 + $0x18] sm:$0xff] %v920_v5 }
 0x215   :  { %925 = vst [vmem:[%s1814_s8 + $0x10] sm:$0xff] %v915_v62 }

// kernel: mobilenet_v3_like.10
= control target key start
LH: loop header
LB: loop body
LE: loop exit
PB: predicated region body
PF: predicated region fallthrough
CT: control target
= control target key end

     0   :  { %v4269_v0 = vmov 0   ;;  %vm4271_vm0 = vmmov 0   ;;  %vm2971_vm1 = vcmask 15360   ;;  %vm3020_vm2 = vcmask 1041408   ;;  %s6942_s1 = inlined_call_operand.vmem [shape: f32[1152,1], index: 1, kind: input, shape index: {}]   ;;  %s6943_s2 = inlined_call_operand.vmem [shape: f32[128,128], index: 2, kind: input, shape index: {}]   ;;  %s6944_s0 = inlined_call_operand.vmem [shape: f32[1152,128], index: 0, kind: input, shape index: {}]   ;;  %s6945_s3 = inlined_call_operand.vmem [shape: f32[1,128], index: 3, kind: input, shape index: {}]   ;;  %s6946_s4 = inlined_call_operand.vmem [shape: f32[9,1,128], index: 4, kind: input, shape index: {}]   ;;  %s6947_s5 = inlined_call_operand.vmem [shape: f32[1,128], index: 5, kind: input, shape index: {}]   ;;  %s6948_s6 = inlined_call_operand.vmem [shape: f32[128,128], index: 6, kind: input, shape index: {}]   ;;  %s6949_s10 = inlined_call_operand.vmem [shape: f32[2,128], index: 10, kind: input, shape index: {}]   ;;  %s6950_s8 = inlined_call_operand.vmem [shape: f32[128,128], index: 8, kind: input, shape index: {}]   ;;  %s6951_s7 = inlined_call_operand.vmem [shape: f32[1,128], index: 7, kind: input, shape index: {}]   ;;  %s6952_s11 = inlined_call_operand.vmem [shape: f32[128,2], index: 11, kind: input, shape index: {}]   ;;  %s6953_s9 = inlined_call_operand.vmem [shape: f32[1,128], index: 9, kind: input, shape index: {}]   ;;  %s6954_s12 = inlined_call_operand.vmem [shape: f32[128,128], index: 12, kind: input, shape index: {}]   ;;  %s6955_s13 = inlined_call_operand.vmem [shape: f32[1,128], index: 13, kind: input, shape index: {}]   ;;  %s6956_s14 = inlined_call_operand.vmem [shape: f32[128,128], index: 14, kind: output, shape index: {}]  }
   0x1   :  { %4264 = vset.pattern.permute.xlu1 %v4269_v0  ;;  %4263 = vset.pattern.permute.xlu0 %v4269_v0  ;;  %v1303_v1 = vld [vmem:[%s6942_s1 + $0x80] sm:$0xff]  ;;  %v192_v4 = vld [vmem:[%s6943_s2 + $0x8] sm:$0xff]  ;;  %v193_v6 = vld [vmem:[%s6943_s2 + $0x10] sm:$0xff] }
   0x2   :  { %v1287_v2 = vld [vmem:[%s6942_s1] sm:$0xff]  ;;  %1513 = vperm.xlu1 %4264, %v1303_v1   ;;  %v194_v7 = vld [vmem:[%s6943_s2 + $0x18] sm:$0xff]  ;;  %v1304_v8 = vld [vmem:[%s6942_s1 + $0x88] sm:$0xff] }
   0x3   :  { %v191_v3 = vld [vmem:[%s6943_s2] sm:$0xff]  ;;  %1433 = vperm.xlu0 %4263, %v1287_v2   ;;  %v1288_v9 = vld [vmem:[%s6942_s1 + $0x8] sm:$0xff]  ;;  %v4111_v10 = vpack.c.bf16 %v194_v7, %v193_v6  ;;  %v197_v16 = vld [vmem:[%s6943_s2 + $0x30] sm:$0xff] }
   0x4   :  { %v4107_v5 = vpack.c.bf16 %v192_v4, %v191_v3  ;;  %v195_v11 = vld [vmem:[%s6943_s2 + $0x20] sm:$0xff]  ;;  %v196_v12 = vld [vmem:[%s6943_s2 + $0x28] sm:$0xff]  ;;  %v198_v17 = vld [vmem:[%s6943_s2 + $0x38] sm:$0xff] }
   0x5   :  { %v1320_v13 = vld [vmem:[%s6942_s1 + $0x108] sm:$0xff]  ;;  %v1319_v14 = vld [vmem:[%s6942_s1 + $0x100] sm:$0xff]  ;;  %v4115_v15 = vpack.c.bf16 %v196_v12, %v195_v11  ;;  %v1290_v18 = vld [vmem:[%s6942_s1 + $0x18] sm:$0xff]  ;;  %v4119_v20 = vpack.c.bf16 %v198_v17, %v197_v16 }
   0x6   :  { %4108 = vmatprep.subr.bf16.mxu0 %v4107_v5  ;;  %4243 = vmatprep.subr.bf16.mxu1 %v4107_v5  ;;  %v1289_v19 = vld [vmem:[%s6942_s1 + $0x10] sm:$0xff]  ;;  %v47_v21 = vld [vmem:[%s6944_s0] sm:$0xff]  ;;  %v200_v24 = vld [vmem:[%s6943_s2 + $0x48] sm:$0xff] }
   0x7   :  { %4110 = vmatpush3.bf16.msra.mxu0 %v4107_v5  ;;  %4251 = vmatpush3.bf16.msra.mxu1 %v4107_v5  ;;  %v153_v22 = vld [vmem:[%s6944_s0 + $0x350] sm:$0xff]  ;;  %v199_v23 = vld [vmem:[%s6943_s2 + $0x40] sm:$0xff]  ;;  %v1306_v25 = vld [vmem:[%s6942_s1 + $0x98] sm:$0xff] }
   0x8   :  { %1518 = vperm.xlu1 %4264, %v1304_v8   ;;  %1438 = vperm.xlu0 %4263, %v1288_v9   ;;  %v1305_v26 = vld [vmem:[%s6942_s1 + $0x90] sm:$0xff]  ;;  %v4123_v27 = vpack.c.bf16 %v200_v24, %v199_v23  ;;  %v202_v29 = vld [vmem:[%s6943_s2 + $0x58] sm:$0xff]  ;;  %v1336_v30 = vld [vmem:[%s6942_s1 + $0x188] sm:$0xff] }
   0x9   :  { %4112 = vmatprep.subr.bf16.mxu0 %v4111_v10  ;;  %4244 = vmatprep.subr.bf16.mxu1 %v4111_v10  ;;  %v201_v28 = vld [vmem:[%s6943_s2 + $0x50] sm:$0xff]  ;;  %v1335_v31 = vld [vmem:[%s6942_s1 + $0x180] sm:$0xff]  ;;  %v204_v34 = vld [vmem:[%s6943_s2 + $0x68] sm:$0xff] }
   0xa   :  { %3704 = vmatprep.mubr.f32.mxu0 %v47_v21  ;;  %3863 = vmatprep.mubr.f32.mxu1 %v153_v22  ;;  %v4127_v32 = vpack.c.bf16 %v202_v29, %v201_v28  ;;  %v203_v33 = vld [vmem:[%s6943_s2 + $0x60] sm:$0xff]  ;;  %v1322_v35 = vld [vmem:[%s6942_s1 + $0x118] sm:$0xff]  ;;  %v1321_v36 = vld [vmem:[%s6942_s1 + $0x110] sm:$0xff] }
   0xb   :  { %4114 = vmatpush3.bf16.msra.mxu0 %v4111_v10  ;;  %4252 = vmatpush3.bf16.msra.mxu1 %v4111_v10  ;;  %v4131_v37 = vpack.c.bf16 %v204_v34, %v203_v33  ;;  %v205_v38 = vld [vmem:[%s6943_s2 + $0x70] sm:$0xff]  ;;  %v206_v39 = vld [vmem:[%s6943_s2 + $0x78] sm:$0xff]  ;;  %v1352_v40 = vld [vmem:[%s6942_s1 + $0x208] sm:$0xff] }
   0xc   :  { %1598 = vperm.xlu1 %4264, %v1320_v13   ;;  %1593 = vperm.xlu0 %4263, %v1319_v14   ;;  %v1351_v41 = vld [vmem:[%s6942_s1 + $0x200] sm:$0xff]  ;;  %v4135_v42 = vpack.c.bf16 %v206_v39, %v205_v38  ;;  %v1292_v43 = vld [vmem:[%s6942_s1 + $0x28] sm:$0xff]  ;;  %v154_v46 = vld [vmem:[%s6944_s0 + $0x358] sm:$0xff] }
   0xd   :  { %4116 = vmatprep.subr.bf16.mxu0 %v4115_v15  ;;  %4245 = vmatprep.subr.bf16.mxu1 %v4115_v15  ;;  %v1291_v44 = vld [vmem:[%s6942_s1 + $0x20] sm:$0xff]  ;;  %v48_v45 = vld [vmem:[%s6944_s0 + $0x8] sm:$0xff]  ;;  %v49_v47 = vld [vmem:[%s6944_s0 + $0x10] sm:$0xff] }
   0xe   :  { %v155_v48 = vld [vmem:[%s6944_s0 + $0x360] sm:$0xff]  ;;  %v1308_v49 = vld [vmem:[%s6942_s1 + $0xa8] sm:$0xff]  ;;  %v50_v51 = vld [vmem:[%s6944_s0 + $0x18] sm:$0xff] }
   0xf   :  { %4118 = vmatpush3.bf16.msra.mxu0 %v4115_v15  ;;  %4253 = vmatpush3.bf16.msra.mxu1 %v4115_v15  ;;  %v1307_v50 = vld [vmem:[%s6942_s1 + $0xa0] sm:$0xff]  ;;  %v156_v52 = vld [vmem:[%s6944_s0 + $0x368] sm:$0xff]  ;;  %v157_v54 = vld [vmem:[%s6944_s0 + $0x370] sm:$0xff] }
  0x10   :  { %1448 = vperm.xlu1 %4264, %v1290_v18   ;;  %1443 = vperm.xlu0 %4263, %v1289_v19   ;;  %v51_v53 = vld [vmem:[%s6944_s0 + $0x20] sm:$0xff]  ;;  %v1338_v55 = vld [vmem:[%s6942_s1 + $0x198] sm:$0xff]  ;;  %v1337_v56 = vld [vmem:[%s6942_s1 + $0x190] sm:$0xff] }
  0x11   :  { %4120 = vmatprep.subr.bf16.mxu0 %v4119_v20  ;;  %4246 = vmatprep.subr.bf16.mxu1 %v4119_v20  ;;  %v52_v57 = vld [vmem:[%s6944_s0 + $0x28] sm:$0xff]  ;;  %v158_v58 = vld [vmem:[%s6944_s0 + $0x378] sm:$0xff]  ;;  %v53_v59 = vld [vmem:[%s6944_s0 + $0x30] sm:$0xff] }
  0x12   :  { %v159_v60 = vld [vmem:[%s6944_s0 + $0x380] sm:$0xff]  ;;  %v1368_v61 = vld [vmem:[%s6942_s1 + $0x288] sm:$0xff]  ;;  %v54_v63 = vld [vmem:[%s6944_s0 + $0x38] sm:$0xff] }
  0x13   :  { %4122 = vmatpush3.bf16.msra.mxu0 %v4119_v20  ;;  %4254 = vmatpush3.bf16.msra.mxu1 %v4119_v20  ;;  %v1367_v62 = vld [vmem:[%s6942_s1 + $0x280] sm:$0xff]  ;;  %v160_v0 = vld [vmem:[%s6944_s0 + $0x388] sm:$0xff]  ;;  %v161_v2 = vld [vmem:[%s6944_s0 + $0x390] sm:$0xff] }
  0x14   :  { %1528 = vperm.xlu1 %4264, %v1306_v25   ;;  %1523 = vperm.xlu0 %4263, %v1305_v26   ;;  %v55_v1 = vld [vmem:[%s6944_s0 + $0x40] sm:$0xff]  ;;  %v1324_v3 = vld [vmem:[%s6942_s1 + $0x128] sm:$0xff]  ;;  %v162_v6 = vld [vmem:[%s6944_s0 + $0x398] sm:$0xff] }
  0x15   :  { %4124 = vmatprep.subr.bf16.mxu0 %v4123_v27  ;;  %4247 = vmatprep.subr.bf16.mxu1 %v4123_v27  ;;  %v1323_v4 = vld [vmem:[%s6942_s1 + $0x120] sm:$0xff]  ;;  %v56_v5 = vld [vmem:[%s6944_s0 + $0x48] sm:$0xff]  ;;  %v57_v7 = vld [vmem:[%s6944_s0 + $0x50] sm:$0xff] }
  0x16   :  { %v163_v8 = vld [vmem:[%s6944_s0 + $0x3a0] sm:$0xff]  ;;  %v1354_v9 = vld [vmem:[%s6942_s1 + $0x218] sm:$0xff]  ;;  %v1353_v10 = vld [vmem:[%s6942_s1 + $0x210] sm:$0xff] }
  0x17   :  { %4126 = vmatpush3.bf16.msra.mxu0 %v4123_v27  ;;  %4255 = vmatpush3.bf16.msra.mxu1 %v4123_v27  ;;  %v58_v11 = vld [vmem:[%s6944_s0 + $0x58] sm:$0xff]  ;;  %v164_v12 = vld [vmem:[%s6944_s0 + $0x3a8] sm:$0xff]  ;;  %v59_v13 = vld [vmem:[%s6944_s0 + $0x60] sm:$0xff] }
  0x18   :  { %1678 = vperm.xlu1 %4264, %v1336_v30   ;;  %1673 = vperm.xlu0 %4263, %v1335_v31   ;;  %v165_v14 = vld [vmem:[%s6944_s0 + $0x3b0] sm:$0xff]  ;;  %v1384_v15 = vld [vmem:[%s6942_s1 + $0x308] sm:$0xff]  ;;  %v1383_v16 = vld [vmem:[%s6942_s1 + $0x300] sm:$0xff] }
  0x19   :  { %4128 = vmatprep.subr.bf16.mxu0 %v4127_v32  ;;  %4248 = vmatprep.subr.bf16.mxu1 %v4127_v32  ;;  %v60_v17 = vld [vmem:[%s6944_s0 + $0x68] sm:$0xff]  ;;  %v166_v18 = vld [vmem:[%s6944_s0 + $0x3b8] sm:$0xff]  ;;  %v61_v19 = vld [vmem:[%s6944_s0 + $0x70] sm:$0xff] }
  0x1a   :  { %v167_v20 = vld [vmem:[%s6944_s0 + $0x3c0] sm:$0xff]  ;;  %v1294_v21 = vld [vmem:[%s6942_s1 + $0x38] sm:$0xff]  ;;  %v1293_v22 = vld [vmem:[%s6942_s1 + $0x30] sm:$0xff] }
  0x1b   :  { %4130 = vmatpush3.bf16.msra.mxu0 %v4127_v32  ;;  %4256 = vmatpush3.bf16.msra.mxu1 %v4127_v32  ;;  %v62_v23 = vld [vmem:[%s6944_s0 + $0x78] sm:$0xff]  ;;  %v168_v24 = vld [vmem:[%s6944_s0 + $0x3c8] sm:$0xff]  ;;  %v63_v25 = vld [vmem:[%s6944_s0 + $0x80] sm:$0xff] }
  0x1c   :  { %1608 = vperm.xlu1 %4264, %v1322_v35   ;;  %1603 = vperm.xlu0 %4263, %v1321_v36   ;;  %v169_v26 = vld [vmem:[%s6944_s0 + $0x3d0] sm:$0xff]  ;;  %v1310_v27 = vld [vmem:[%s6942_s1 + $0xb8] sm:$0xff]  ;;  %v64_v29 = vld [vmem:[%s6944_s0 + $0x88] sm:$0xff] }
  0x1d   :  { %4132 = vmatprep.subr.bf16.mxu0 %v4131_v37  ;;  %4249 = vmatprep.subr.bf16.mxu1 %v4131_v37  ;;  %v1309_v28 = vld [vmem:[%s6942_s1 + $0xb0] sm:$0xff]  ;;  %v170_v30 = vld [vmem:[%s6944_s0 + $0x3d8] sm:$0xff]  ;;  %v171_v32 = vld [vmem:[%s6944_s0 + $0x3e0] sm:$0xff] }
  0x1e   :  { %v65_v31 = vld [vmem:[%s6944_s0 + $0x90] sm:$0xff]  ;;  %v1340_v33 = vld [vmem:[%s6942_s1 + $0x1a8] sm:$0xff]  ;;  %v1339_v34 = vld [vmem:[%s6942_s1 + $0x1a0] sm:$0xff] }
  0x1f   :  { %4134 = vmatpush3.bf16.msra.mxu0 %v4131_v37  ;;  %4257 = vmatpush3.bf16.msra.mxu1 %v4131_v37  ;;  %v66_v35 = vld [vmem:[%s6944_s0 + $0x98] sm:$0xff]  ;;  %v172_v36 = vld [vmem:[%s6944_s0 + $0x3e8] sm:$0xff]  ;;  %v67_v37 = vld [vmem:[%s6944_s0 + $0xa0] sm:$0xff] }
  0x20   :  { %1758 = vperm.xlu1 %4264, %v1352_v40   ;;  %1753 = vperm.xlu0 %4263, %v1351_v41   ;;  %v173_v38 = vld [vmem:[%s6944_s0 + $0x3f0] sm:$0xff]  ;;  %v1370_v39 = vld [vmem:[%s6942_s1 + $0x298] sm:$0xff]  ;;  %v68_v41 = vld [vmem:[%s6944_s0 + $0xa8] sm:$0xff] }
  0x21   :  { %4136 = vmatprep.subr.bf16.mxu0 %v4135_v42  ;;  %4250 = vmatprep.subr.bf16.mxu1 %v4135_v42  ;;  %v1369_v40 = vld [vmem:[%s6942_s1 + $0x290] sm:$0xff] }
  0x23   :  { %4138 = vmatpush3.bf16.msra.mxu0 %v4135_v42  ;;  %4258 = vmatpush3.bf16.msra.mxu1 %v4135_v42  ;;  %v174_v42 = vld [vmem:[%s6944_s0 + $0x3f8] sm:$0xff] }
  0x24   :  { %1458 = vperm.xlu1 %4264, %v1292_v43   ;;  %1453 = vperm.xlu0 %4263, %v1291_v44   ;;  %v69_v43 = vld [vmem:[%s6944_s0 + $0xb0] sm:$0xff]  ;;  %v175_v44 = vld [vmem:[%s6944_s0 + $0x400] sm:$0xff] }
  0x26   :  { %3705 = vmatmul.mubr.f32.vlgmr.msra.gmra.mrb[0].mxu0 %v48_v45  ;;  %3864 = vmatmul.mubr.f32.vlgmr.msra.gmra.mrb[0].mxu1 %v154_v46  ;;  %v1400_v45 = vld [vmem:[%s6942_s1 + $0x388] sm:$0xff]  ;;  %v1399_v46 = vld [vmem:[%s6942_s1 + $0x380] sm:$0xff] }
  0x27   :  { %3707 = vmatprep.mubr.f32.mxu0 %v49_v47  ;;  %3866 = vmatprep.mubr.f32.mxu1 %v155_v48  ;;  %v70_v47 = vld [vmem:[%s6944_s0 + $0xb8] sm:$0xff]  ;;  %v176_v48 = vld [vmem:[%s6944_s0 + $0x408] sm:$0xff] }
  0x28   :  { %1538 = vperm.xlu1 %4264, %v1308_v49   ;;  %1533 = vperm.xlu0 %4263, %v1307_v50   ;;  %v71_v49 = vld [vmem:[%s6944_s0 + $0xc0] sm:$0xff]  ;;  %v177_v50 = vld [vmem:[%s6944_s0 + $0x410] sm:$0xff] }
  0x2a   :  { %3708 = vmatmul.mubr.f32.gmra.mrb[2].mxu0 %v50_v51  ;;  %3867 = vmatmul.mubr.f32.gmra.mrb[2].mxu1 %v156_v52  ;;  %v1326_v51 = vld [vmem:[%s6942_s1 + $0x138] sm:$0xff]  ;;  %v1325_v52 = vld [vmem:[%s6942_s1 + $0x130] sm:$0xff] }
  0x2b   :  { %3710 = vmatprep.mubr.f32.mxu0 %v51_v53  ;;  %3869 = vmatprep.mubr.f32.mxu1 %v157_v54  ;;  %v72_v53 = vld [vmem:[%s6944_s0 + $0xc8] sm:$0xff]  ;;  %v178_v54 = vld [vmem:[%s6944_s0 + $0x418] sm:$0xff] }
  0x2c   :  { %1688 = vperm.xlu1 %4264, %v1338_v55   ;;  %1683 = vperm.xlu0 %4263, %v1337_v56   ;;  %v73_v55 = vld [vmem:[%s6944_s0 + $0xd0] sm:$0xff]  ;;  %v179_v56 = vld [vmem:[%s6944_s0 + $0x420] sm:$0xff] }
  0x2e   :  { %3711 = vmatmul.mubr.f32.gmra.mrb[4].mxu0 %v52_v57  ;;  %3870 = vmatmul.mubr.f32.gmra.mrb[4].mxu1 %v158_v58  ;;  %v1356_v57 = vld [vmem:[%s6942_s1 + $0x228] sm:$0xff]  ;;  %v1355_v58 = vld [vmem:[%s6942_s1 + $0x220] sm:$0xff] }
  0x2f   :  { %3713 = vmatprep.mubr.f32.mxu0 %v53_v59  ;;  %3872 = vmatprep.mubr.f32.mxu1 %v159_v60  ;;  %v74_v59 = vld [vmem:[%s6944_s0 + $0xd8] sm:$0xff]  ;;  %v180_v60 = vld [vmem:[%s6944_s0 + $0x428] sm:$0xff] }
  0x30   :  { %1838 = vperm.xlu1 %4264, %v1368_v61   ;;  %1833 = vperm.xlu0 %4263, %v1367_v62   ;;  %v75_v61 = vld [vmem:[%s6944_s0 + $0xe0] sm:$0xff]  ;;  %v181_v62 = vld [vmem:[%s6944_s0 + $0x430] sm:$0xff] }
  0x32   :  { %3714 = vmatmul.mubr.f32.gmra.mrb[6].mxu0 %v54_v63  ;;  %3873 = vmatmul.mubr.f32.gmra.mrb[6].mxu1 %v160_v0  ;;  %v1386_v63 = vld [vmem:[%s6942_s1 + $0x318] sm:$0xff]  ;;  %v1385_v0 = vld [vmem:[%s6942_s1 + $0x310] sm:$0xff] }
  0x33   :  { %3716 = vmatprep.mubr.f32.mxu0 %v55_v1  ;;  %3875 = vmatprep.mubr.f32.mxu1 %v161_v2  ;;  %v76_v1 = vld [vmem:[%s6944_s0 + $0xe8] sm:$0xff]  ;;  %v182_v2 = vld [vmem:[%s6944_s0 + $0x438] sm:$0xff] }
  0x34   :  { %1618 = vperm.xlu1 %4264, %v1324_v3   ;;  %1613 = vperm.xlu0 %4263, %v1323_v4   ;;  %v77_v3 = vld [vmem:[%s6944_s0 + $0xf0] sm:$0xff]  ;;  %v183_v4 = vld [vmem:[%s6944_s0 + $0x440] sm:$0xff] }
  0x36   :  { %3717 = vmatmul.mubr.f32.gmra.mrb[8].mxu0 %v56_v5  ;;  %3876 = vmatmul.mubr.f32.gmra.mrb[8].mxu1 %v162_v6  ;;  %v1416_v5 = vld [vmem:[%s6942_s1 + $0x408] sm:$0xff]  ;;  %v1415_v6 = vld [vmem:[%s6942_s1 + $0x400] sm:$0xff] }
  0x37   :  { %3719 = vmatprep.mubr.f32.mxu0 %v57_v7  ;;  %3878 = vmatprep.mubr.f32.mxu1 %v163_v8  ;;  %v78_v7 = vld [vmem:[%s6944_s0 + $0xf8] sm:$0xff]  ;;  %v184_v8 = vld [vmem:[%s6944_s0 + $0x448] sm:$0xff] }
  0x38   :  { %1768 = vperm.xlu1 %4264, %v1354_v9   ;;  %1763 = vperm.xlu0 %4263, %v1353_v10   ;;  %v79_v9 = vld [vmem:[%s6944_s0 + $0x100] sm:$0xff]  ;;  %v185_v10 = vld [vmem:[%s6944_s0 + $0x450] sm:$0xff] }
  0x3a   :  { %3720 = vmatmul.mubr.f32.gmra.mrb[10].mxu0 %v58_v11  ;;  %3879 = vmatmul.mubr.f32.gmra.mrb[10].mxu1 %v164_v12  ;;  %v1296_v11 = vld [vmem:[%s6942_s1 + $0x48] sm:$0xff]  ;;  %v1295_v12 = vld [vmem:[%s6942_s1 + $0x40] sm:$0xff] }
  0x3b   :  { %3722 = vmatprep.mubr.f32.mxu0 %v59_v13  ;;  %3881 = vmatprep.mubr.f32.mxu1 %v165_v14  ;;  %v80_v13 = vld [vmem:[%s6944_s0 + $0x108] sm:$0xff]  ;;  %v186_v14 = vld [vmem:[%s6944_s0 + $0x458] sm:$0xff] }
  0x3c   :  { %1918 = vperm.xlu1 %4264, %v1384_v15   ;;  %1913 = vperm.xlu0 %4263, %v1383_v16   ;;  %v81_v15 = vld [vmem:[%s6944_s0 + $0x110] sm:$0xff]  ;;  %v187_v16 = vld [vmem:[%s6944_s0 + $0x460] sm:$0xff] }
  0x3e   :  { %3723 = vmatmul.mubr.f32.gmra.mrb[12].mxu0 %v60_v17  ;;  %3882 = vmatmul.mubr.f32.gmra.mrb[12].mxu1 %v166_v18  ;;  %v1312_v17 = vld [vmem:[%s6942_s1 + $0xc8] sm:$0xff]  ;;  %v1311_v18 = vld [vmem:[%s6942_s1 + $0xc0] sm:$0xff] }
  0x3f   :  { %3725 = vmatprep.mubr.f32.mxu0 %v61_v19  ;;  %3884 = vmatprep.mubr.f32.mxu1 %v167_v20  ;;  %v82_v19 = vld [vmem:[%s6944_s0 + $0x118] sm:$0xff]  ;;  %v188_v20 = vld [vmem:[%s6944_s0 + $0x468] sm:$0xff] }
  0x40   :  { %1468 = vperm.xlu1 %4264, %v1294_v21   ;;  %1463 = vperm.xlu0 %4263, %v1293_v22   ;;  %v83_v21 = vld [vmem:[%s6944_s0 + $0x120] sm:$0xff]  ;;  %v189_v22 = vld [vmem:[%s6944_s0 + $0x470] sm:$0xff] }
  0x42   :  { %3726 = vmatmul.mubr.f32.gmra.mrb[14].mxu0 %v62_v23  ;;  %3885 = vmatmul.mubr.f32.gmra.mrb[14].mxu1 %v168_v24  ;;  %v1342_v23 = vld [vmem:[%s6942_s1 + $0x1b8] sm:$0xff]  ;;  %v1341_v24 = vld [vmem:[%s6942_s1 + $0x1b0] sm:$0xff] }
  0x43   :  { %3728 = vmatprep.mubr.f32.mxu0 %v63_v25  ;;  %3887 = vmatprep.mubr.f32.mxu1 %v169_v26  ;;  %v84_v25 = vld [vmem:[%s6944_s0 + $0x128] sm:$0xff]  ;;  %v190_v26 = vld [vmem:[%s6944_s0 + $0x478] sm:$0xff] }
  0x44   :  { %1548 = vperm.xlu1 %4264, %v1310_v27   ;;  %1543 = vperm.xlu0 %4263, %v1309_v28   ;;  %v85_v27 = vld [vmem:[%s6944_s0 + $0x130] sm:$0xff]  ;;  %v1372_v28 = vld [vmem:[%s6942_s1 + $0x2a8] sm:$0xff] }
  0x46   :  { %3729 = vmatmul.mubr.f32.gmra.mrb[16].mxu0 %v64_v29  ;;  %3888 = vmatmul.mubr.f32.gmra.mrb[16].mxu1 %v170_v30  ;;  %v1371_v29 = vld [vmem:[%s6942_s1 + $0x2a0] sm:$0xff]  ;;  %v86_v30 = vld [vmem:[%s6944_s0 + $0x138] sm:$0xff] }
  0x47   :  { %3731 = vmatprep.mubr.f32.mxu0 %v65_v31  ;;  %3890 = vmatprep.mubr.f32.mxu1 %v171_v32  ;;  %v87_v31 = vld [vmem:[%s6944_s0 + $0x140] sm:$0xff]  ;;  %v1402_v32 = vld [vmem:[%s6942_s1 + $0x398] sm:$0xff] }
  0x48   :  { %1698 = vperm.xlu1 %4264, %v1340_v33   ;;  %1693 = vperm.xlu0 %4263, %v1339_v34   ;;  %v1401_v33 = vld [vmem:[%s6942_s1 + $0x390] sm:$0xff]  ;;  %v88_v34 = vld [vmem:[%s6944_s0 + $0x148] sm:$0xff] }
  0x4a   :  { %3732 = vmatmul.mubr.f32.gmra.mrb[18].mxu0 %v66_v35  ;;  %3891 = vmatmul.mubr.f32.gmra.mrb[18].mxu1 %v172_v36  ;;  %v89_v35 = vld [vmem:[%s6944_s0 + $0x150] sm:$0xff]  ;;  %v1328_v36 = vld [vmem:[%s6942_s1 + $0x148] sm:$0xff] }
  0x4b   :  { %3734 = vmatprep.mubr.f32.mxu0 %v67_v37  ;;  %3893 = vmatprep.mubr.f32.mxu1 %v173_v38  ;;  %v1327_v37 = vld [vmem:[%s6942_s1 + $0x140] sm:$0xff]  ;;  %v90_v38 = vld [vmem:[%s6944_s0 + $0x158] sm:$0xff] }
  0x4c   :  { %1848 = vperm.xlu1 %4264, %v1370_v39   ;;  %1843 = vperm.xlu0 %4263, %v1369_v40   ;;  %v91_v39 = vld [vmem:[%s6944_s0 + $0x160] sm:$0xff]  ;;  %v1358_v40 = vld [vmem:[%s6942_s1 + $0x238] sm:$0xff] }
  0x4e   :  { %3735 = vmatmul.mubr.f32.gmra.mrb[20].mxu0 %v68_v41  ;;  %3894 = vmatmul.mubr.f32.gmra.mrb[20].mxu1 %v174_v42  ;;  %v1357_v41 = vld [vmem:[%s6942_s1 + $0x230] sm:$0xff]  ;;  %v92_v42 = vld [vmem:[%s6944_s0 + $0x168] sm:$0xff] }
  0x4f   :  { %3737 = vmatprep.mubr.f32.mxu0 %v69_v43  ;;  %3896 = vmatprep.mubr.f32.mxu1 %v175_v44  ;;  %v93_v43 = vld [vmem:[%s6944_s0 + $0x170] sm:$0xff]  ;;  %v1388_v44 = vld [vmem:[%s6942_s1 + $0x328] sm:$0xff] }
  0x50   :  { %1998 = vperm.xlu1 %4264, %v1400_v45   ;;  %1993 = vperm.xlu0 %4263, %v1399_v46   ;;  %v1387_v45 = vld [vmem:[%s6942_s1 + $0x320] sm:$0xff]  ;;  %v94_v46 = vld [vmem:[%s6944_s0 + $0x178] sm:$0xff] }
  0x52   :  { %3738 = vmatmul.mubr.f32.gmra.mrb[22].mxu0 %v70_v47  ;;  %3897 = vmatmul.mubr.f32.gmra.mrb[22].mxu1 %v176_v48  ;;  %v95_v47 = vld [vmem:[%s6944_s0 + $0x180] sm:$0xff]  ;;  %v1418_v48 = vld [vmem:[%s6942_s1 + $0x418] sm:$0xff] }
  0x53   :  { %3740 = vmatprep.mubr.f32.mxu0 %v71_v49  ;;  %3899 = vmatprep.mubr.f32.mxu1 %v177_v50  ;;  %v1417_v49 = vld [vmem:[%s6942_s1 + $0x410] sm:$0xff] }
  0x54   :  { %1628 = vperm.xlu1 %4264, %v1326_v51   ;;  %1623 = vperm.xlu0 %4263, %v1325_v52   ;;  %v96_v52 = vld [vmem:[%s6944_s0 + $0x188] sm:$0xff] }
  0x56   :  { %3741 = vmatmul.mubr.f32.gmra.mrb[24].mxu0 %v72_v53  ;;  %3900 = vmatmul.mubr.f32.gmra.mrb[24].mxu1 %v178_v54  ;;  %v97_v53 = vld [vmem:[%s6944_s0 + $0x190] sm:$0xff]  ;;  %v1298_v54 = vld [vmem:[%s6942_s1 + $0x58] sm:$0xff] }
  0x57   :  { %3743 = vmatprep.mubr.f32.mxu0 %v73_v55  ;;  %3902 = vmatprep.mubr.f32.mxu1 %v179_v56  ;;  %v1297_v55 = vld [vmem:[%s6942_s1 + $0x50] sm:$0xff] }
  0x58   :  { %1778 = vperm.xlu1 %4264, %v1356_v57   ;;  %1773 = vperm.xlu0 %4263, %v1355_v58   ;;  %v98_v58 = vld [vmem:[%s6944_s0 + $0x198] sm:$0xff] }
  0x5a   :  { %3744 = vmatmul.mubr.f32.gmra.mrb[26].mxu0 %v74_v59  ;;  %3903 = vmatmul.mubr.f32.gmra.mrb[26].mxu1 %v180_v60  ;;  %v99_v59 = vld [vmem:[%s6944_s0 + $0x1a0] sm:$0xff]  ;;  %v1314_v60 = vld [vmem:[%s6942_s1 + $0xd8] sm:$0xff] }
  0x5b   :  { %3746 = vmatprep.mubr.f32.mxu0 %v75_v61  ;;  %3905 = vmatprep.mubr.f32.mxu1 %v181_v62  ;;  %v1313_v61 = vld [vmem:[%s6942_s1 + $0xd0] sm:$0xff] }
  0x5c   :  { %1928 = vperm.xlu1 %4264, %v1386_v63   ;;  %1923 = vperm.xlu0 %4263, %v1385_v0   ;;  %v100_v0 = vld [vmem:[%s6944_s0 + $0x1a8] sm:$0xff] }
  0x5e   :  { %3747 = vmatmul.mubr.f32.gmra.mrb[28].mxu0 %v76_v1  ;;  %3906 = vmatmul.mubr.f32.gmra.mrb[28].mxu1 %v182_v2  ;;  %v101_v1 = vld [vmem:[%s6944_s0 + $0x1b0] sm:$0xff]  ;;  %v1344_v2 = vld [vmem:[%s6942_s1 + $0x1c8] sm:$0xff] }
  0x5f   :  { %3749 = vmatprep.mubr.f32.mxu0 %v77_v3  ;;  %3908 = vmatprep.mubr.f32.mxu1 %v183_v4  ;;  %v1343_v3 = vld [vmem:[%s6942_s1 + $0x1c0] sm:$0xff] }
  0x60   :  { %2078 = vperm.xlu1 %4264, %v1416_v5   ;;  %2073 = vperm.xlu0 %4263, %v1415_v6   ;;  %v102_v6 = vld [vmem:[%s6944_s0 + $0x1b8] sm:$0xff] }
  0x62   :  { %3750 = vmatmul.mubr.f32.gmra.mrb[30].mxu0 %v78_v7  ;;  %3909 = vmatmul.mubr.f32.gmra.mrb[30].mxu1 %v184_v8  ;;  %v103_v7 = vld [vmem:[%s6944_s0 + $0x1c0] sm:$0xff]  ;;  %v1374_v8 = vld [vmem:[%s6942_s1 + $0x2b8] sm:$0xff] }
  0x63   :  { %3752 = vmatprep.mubr.f32.mxu0 %v79_v9  ;;  %3911 = vmatprep.mubr.f32.mxu1 %v185_v10  ;;  %v1373_v9 = vld [vmem:[%s6942_s1 + $0x2b0] sm:$0xff] }
  0x64   :  { %1478 = vperm.xlu1 %4264, %v1296_v11   ;;  %1473 = vperm.xlu0 %4263, %v1295_v12   ;;  %v104_v12 = vld [vmem:[%s6944_s0 + $0x1c8] sm:$0xff] }
  0x66   :  { %3753 = vmatmul.mubr.f32.gmra.mrb[32].mxu0 %v80_v13  ;;  %3912 = vmatmul.mubr.f32.gmra.mrb[32].mxu1 %v186_v14  ;;  %v105_v13 = vld [vmem:[%s6944_s0 + $0x1d0] sm:$0xff]  ;;  %v1404_v14 = vld [vmem:[%s6942_s1 + $0x3a8] sm:$0xff] }
  0x67   :  { %3755 = vmatprep.mubr.f32.mxu0 %v81_v15  ;;  %3914 = vmatprep.mubr.f32.mxu1 %v187_v16  ;;  %v1403_v15 = vld [vmem:[%s6942_s1 + $0x3a0] sm:$0xff] }
  0x68   :  { %1558 = vperm.xlu1 %4264, %v1312_v17   ;;  %1553 = vperm.xlu0 %4263, %v1311_v18   ;;  %v106_v18 = vld [vmem:[%s6944_s0 + $0x1d8] sm:$0xff] }
  0x6a   :  { %3756 = vmatmul.mubr.f32.gmra.mrb[34].mxu0 %v82_v19  ;;  %3915 = vmatmul.mubr.f32.gmra.mrb[34].mxu1 %v188_v20  ;;  %v107_v19 = vld [vmem:[%s6944_s0 + $0x1e0] sm:$0xff]  ;;  %v1330_v20 = vld [vmem:[%s6942_s1 + $0x158] sm:$0xff] }
  0x6b   :  { %3758 = vmatprep.mubr.f32.mxu0 %v83_v21  ;;  %3917 = vmatprep.mubr.f32.mxu1 %v189_v22  ;;  %v1329_v21 = vld [vmem:[%s6942_s1 + $0x150] sm:$0xff] }
  0x6c   :  { %1708 = vperm.xlu1 %4264, %v1342_v23   ;;  %1703 = vperm.xlu0 %4263, %v1341_v24   ;;  %v108_v24 = vld [vmem:[%s6944_s0 + $0x1e8] sm:$0xff] }
  0x6e   :  { %3759 = vmatmul.mubr.f32.gmra.mrb[36].mxu0 %v84_v25  ;;  %3918 = vmatmul.mubr.f32.gmra.mrb[36].mxu1 %v190_v26  ;;  %v109_v25 = vld [vmem:[%s6944_s0 + $0x1f0] sm:$0xff]  ;;  %v1360_v26 = vld [vmem:[%s6942_s1 + $0x248] sm:$0xff] }
  0x6f   :  { %3761 = vmatprep.mubr.f32.mxu0 %v85_v27  ;;  %v1359_v27 = vld [vmem:[%s6942_s1 + $0x240] sm:$0xff] }
  0x70   :  { %1858 = vperm.xlu1 %4264, %v1372_v28   ;;  %1853 = vperm.xlu0 %4263, %v1371_v29  }
  0x72   :  { %3762 = vmatmul.mubr.f32.gmra.mrb[38].mxu0 %v86_v30  ;;  %v110_v30 = vld [vmem:[%s6944_s0 + $0x1f8] sm:$0xff] }
  0x73   :  { %3764 = vmatprep.mubr.f32.mxu0 %v87_v31  ;;  %v111_v31 = vld [vmem:[%s6944_s0 + $0x200] sm:$0xff] }
  0x74   :  { %2008 = vperm.xlu1 %4264, %v1402_v32   ;;  %2003 = vperm.xlu0 %4263, %v1401_v33   ;;  %v1390_v32 = vld [vmem:[%s6942_s1 + $0x338] sm:$0xff]  ;;  %v1389_v33 = vld [vmem:[%s6942_s1 + $0x330] sm:$0xff] }
  0x76   :  { %3765 = vmatmul.mubr.f32.gmra.mrb[40].mxu0 %v88_v34 }
  0x77   :  { %3767 = vmatprep.mubr.f32.mxu0 %v89_v35 }
  0x78   :  { %1638 = vperm.xlu1 %4264, %v1328_v36   ;;  %1633 = vperm.xlu0 %4263, %v1327_v37   ;;  %v112_v36 = vld [vmem:[%s6944_s0 + $0x208] sm:$0xff]  ;;  %v113_v37 = vld [vmem:[%s6944_s0 + $0x210] sm:$0xff] }
  0x7a   :  { %3768 = vmatmul.mubr.f32.gmra.mrb[42].mxu0 %v90_v38  ;;  %v1420_v38 = vld [vmem:[%s6942_s1 + $0x428] sm:$0xff] }
  0x7b   :  { %3770 = vmatprep.mubr.f32.mxu0 %v91_v39  ;;  %v1419_v39 = vld [vmem:[%s6942_s1 + $0x420] sm:$0xff] }
  0x7c   :  { %1788 = vperm.xlu1 %4264, %v1358_v40   ;;  %1783 = vperm.xlu0 %4263, %v1357_v41  }
  0x7e   :  { %3771 = vmatmul.mubr.f32.gmra.mrb[44].mxu0 %v92_v42  ;;  %v114_v42 = vld [vmem:[%s6944_s0 + $0x218] sm:$0xff] }
  0x7f   :  { %3773 = vmatprep.mubr.f32.mxu0 %v93_v43  ;;  %v115_v43 = vld [vmem:[%s6944_s0 + $0x220] sm:$0xff] }
  0x80   :  { %1938 = vperm.xlu1 %4264, %v1388_v44   ;;  %1933 = vperm.xlu0 %4263, %v1387_v45   ;;  %v1300_v44 = vld [vmem:[%s6942_s1 + $0x68] sm:$0xff]  ;;  %v1299_v45 = vld [vmem:[%s6942_s1 + $0x60] sm:$0xff] }
  0x81   :  { %v4855_v50 = vpop.permute.xlu1 %1513 }
  0x82   :  { %3774 = vmatmul.mubr.f32.gmra.mrb[46].mxu0 %v94_v46  ;;  %v4857_v51 = vpop.permute.xlu0 %1433 }
  0x83   :  { %3776 = vmatprep.mubr.f32.mxu0 %v95_v47 }
  0x84   :  { %2088 = vperm.xlu1 %4264, %v1418_v48   ;;  %2083 = vperm.xlu0 %4263, %v1417_v49   ;;  %v116_v48 = vld [vmem:[%s6944_s0 + $0x228] sm:$0xff]  ;;  %v117_v49 = vld [vmem:[%s6944_s0 + $0x230] sm:$0xff] }
  0x86   :  { %3777 = vmatmul.mubr.f32.gmra.mrb[48].mxu0 %v96_v52  ;;  %v1316_v52 = vld [vmem:[%s6942_s1 + $0xe8] sm:$0xff] }
  0x87   :  { %v4871_v56 = vpop.permute.xlu1 %1518  ;;  %v4873_v57 = vpop.permute.xlu0 %1438  ;;  %3779 = vmatprep.mubr.f32.mxu0 %v97_v53  ;;  %v1315_v53 = vld [vmem:[%s6942_s1 + $0xe0] sm:$0xff] }
  0x88   :  { %1488 = vperm.xlu1 %4264, %v1298_v54   ;;  %1483 = vperm.xlu0 %4263, %v1297_v55  }
  0x8a   :  { %3780 = vmatmul.mubr.f32.gmra.mrb[50].mxu0 %v98_v58  ;;  %v118_v58 = vld [vmem:[%s6944_s0 + $0x238] sm:$0xff] }
  0x8b   :  { %v4887_v62 = vpop.permute.xlu1 %1598  ;;  %v4889_v63 = vpop.permute.xlu0 %1593  ;;  %3782 = vmatprep.mubr.f32.mxu0 %v99_v59  ;;  %v119_v59 = vld [vmem:[%s6944_s0 + $0x240] sm:$0xff] }
  0x8c   :  { %1568 = vperm.xlu1 %4264, %v1314_v60   ;;  %1563 = vperm.xlu0 %4263, %v1313_v61   ;;  %v1346_v60 = vld [vmem:[%s6942_s1 + $0x1d8] sm:$0xff]  ;;  %v1345_v61 = vld [vmem:[%s6942_s1 + $0x1d0] sm:$0xff] }
  0x8e   :  { %3783 = vmatmul.mubr.f32.gmra.mrb[52].mxu0 %v100_v0 }
  0x8f   :  { %v4903_v4 = vpop.permute.xlu1 %1448  ;;  %v4905_v5 = vpop.permute.xlu0 %1443  ;;  %3785 = vmatprep.mubr.f32.mxu0 %v101_v1 }
  0x90   :  { %1718 = vperm.xlu1 %4264, %v1344_v2   ;;  %1713 = vperm.xlu0 %4263, %v1343_v3   ;;  %v120_v2 = vld [vmem:[%s6944_s0 + $0x248] sm:$0xff]  ;;  %v121_v3 = vld [vmem:[%s6944_s0 + $0x250] sm:$0xff] }
  0x92   :  { %3786 = vmatmul.mubr.f32.gmra.mrb[54].mxu0 %v102_v6  ;;  %v1376_v6 = vld [vmem:[%s6942_s1 + $0x2c8] sm:$0xff] }
  0x93   :  { %v4919_v10 = vpop.permute.xlu1 %1528  ;;  %v4921_v11 = vpop.permute.xlu0 %1523  ;;  %3788 = vmatprep.mubr.f32.mxu0 %v103_v7  ;;  %v1375_v7 = vld [vmem:[%s6942_s1 + $0x2c0] sm:$0xff] }
  0x94   :  { %1868 = vperm.xlu1 %4264, %v1374_v8   ;;  %1863 = vperm.xlu0 %4263, %v1373_v9  }
  0x96   :  { %3789 = vmatmul.mubr.f32.gmra.mrb[56].mxu0 %v104_v12  ;;  %v122_v12 = vld [vmem:[%s6944_s0 + $0x258] sm:$0xff] }
  0x97   :  { %v4935_v16 = vpop.permute.xlu1 %1678  ;;  %v4937_v17 = vpop.permute.xlu0 %1673  ;;  %3791 = vmatprep.mubr.f32.mxu0 %v105_v13  ;;  %v123_v13 = vld [vmem:[%s6944_s0 + $0x260] sm:$0xff] }
  0x98   :  { %6963 = vst [vmem:[#allocation2_spill] sm:$0xff] %v4935_v16  ;;  %6964 = vst [vmem:[#allocation3_spill] sm:$0xff] %v4937_v17  ;;  %2018 = vperm.xlu1 %4264, %v1404_v14   ;;  %2013 = vperm.xlu0 %4263, %v1403_v15   ;;  %v1406_v14 = vld [vmem:[%s6942_s1 + $0x3b8] sm:$0xff]  ;;  %v1405_v15 = vld [vmem:[%s6942_s1 + $0x3b0] sm:$0xff] }
  0x9a   :  { %3792 = vmatmul.mubr.f32.gmra.mrb[58].mxu0 %v106_v18 }
  0x9b   :  { %v4951_v22 = vpop.permute.xlu1 %1608  ;;  %v4953_v23 = vpop.permute.xlu0 %1603  ;;  %3794 = vmatprep.mubr.f32.mxu0 %v107_v19 }
  0x9c   :  { %6965 = vst [vmem:[#allocation4_spill] sm:$0xff] %v4951_v22  ;;  %6966 = vst [vmem:[#allocation5_spill] sm:$0xff] %v4953_v23  ;;  %1648 = vperm.xlu1 %4264, %v1330_v20   ;;  %1643 = vperm.xlu0 %4263, %v1329_v21   ;;  %v124_v20 = vld [vmem:[%s6944_s0 + $0x268] sm:$0xff]  ;;  %v125_v21 = vld [vmem:[%s6944_s0 + $0x270] sm:$0xff] }
  0x9e   :  { %3795 = vmatmul.mubr.f32.gmra.mrb[60].mxu0 %v108_v24  ;;  %v1332_v24 = vld [vmem:[%s6942_s1 + $0x168] sm:$0xff] }
  0x9f   :  { %v4967_v28 = vpop.permute.xlu1 %1758  ;;  %v4969_v29 = vpop.permute.xlu0 %1753  ;;  %3797 = vmatprep.mubr.f32.mxu0 %v109_v25  ;;  %v1331_v25 = vld [vmem:[%s6942_s1 + $0x160] sm:$0xff] }
  0xa0   :  { %6967 = vst [vmem:[#allocation6_spill] sm:$0xff] %v4967_v28  ;;  %6968 = vst [vmem:[#allocation7_spill] sm:$0xff] %v4969_v29  ;;  %1798 = vperm.xlu1 %4264, %v1360_v26   ;;  %1793 = vperm.xlu0 %4263, %v1359_v27  }
  0xa2   :  { %3798 = vmatmul.mubr.f32.gmra.mrb[62].mxu0 %v110_v30  ;;  %v126_v30 = vld [vmem:[%s6944_s0 + $0x278] sm:$0xff] }
  0xa3   :  { %v4983_v34 = vpop.permute.xlu1 %1458  ;;  %v4985_v35 = vpop.permute.xlu0 %1453  ;;  %3800 = vmatprep.mubr.f32.mxu0 %v111_v31  ;;  %v127_v31 = vld [vmem:[%s6944_s0 + $0x280] sm:$0xff] }
  0xa4   :  { %1948 = vperm.xlu1 %4264, %v1390_v32   ;;  %1943 = vperm.xlu0 %4263, %v1389_v33   ;;  %v1362_v32 = vld [vmem:[%s6942_s1 + $0x258] sm:$0xff]  ;;  %v1361_v33 = vld [vmem:[%s6942_s1 + $0x250] sm:$0xff] }
  0xa6   :  { %3801 = vmatmul.mubr.f32.gmra.mrb[64].mxu0 %v112_v36 }
  0xa7   :  { %v4999_v40 = vpop.permute.xlu1 %1538  ;;  %v5001_v41 = vpop.permute.xlu0 %1533  ;;  %3803 = vmatprep.mubr.f32.mxu0 %v113_v37 }
  0xa8   :  { %2098 = vperm.xlu1 %4264, %v1420_v38   ;;  %2093 = vperm.xlu0 %4263, %v1419_v39   ;;  %v128_v38 = vld [vmem:[%s6944_s0 + $0x288] sm:$0xff]  ;;  %v129_v39 = vld [vmem:[%s6944_s0 + $0x290] sm:$0xff] }
  0xaa   :  { %3804 = vmatmul.mubr.f32.gmra.mrb[66].mxu0 %v114_v42  ;;  %v1392_v42 = vld [vmem:[%s6942_s1 + $0x348] sm:$0xff] }
  0xab   :  { %v5015_v46 = vpop.permute.xlu1 %1688  ;;  %v5017_v47 = vpop.permute.xlu0 %1683  ;;  %3806 = vmatprep.mubr.f32.mxu0 %v115_v43  ;;  %v1391_v43 = vld [vmem:[%s6942_s1 + $0x340] sm:$0xff] }
  0xac   :  { %6969 = vst [vmem:[#allocation8_spill] sm:$0xff] %v5015_v46  ;;  %6970 = vst [vmem:[#allocation9_spill] sm:$0xff] %v5017_v47  ;;  %1498 = vperm.xlu1 %4264, %v1300_v44   ;;  %1493 = vperm.xlu0 %4263, %v1299_v45  }
  0xae   :  { %3807 = vmatmul.mubr.f32.gmra.mrb[68].mxu0 %v116_v48  ;;  %v130_v48 = vld [vmem:[%s6944_s0 + $0x298] sm:$0xff] }
  0xaf   :  { %v5031_v54 = vpop.permute.xlu1 %1838  ;;  %v5033_v55 = vpop.permute.xlu0 %1833  ;;  %3809 = vmatprep.mubr.f32.mxu0 %v117_v49  ;;  %v131_v49 = vld [vmem:[%s6944_s0 + $0x2a0] sm:$0xff] }
  0xb0   :  { %6971 = vst [vmem:[#allocation10_spill] sm:$0xff] %v5031_v54  ;;  %6972 = vst [vmem:[#allocation11_spill] sm:$0xff] %v5033_v55  ;;  %1578 = vperm.xlu1 %4264, %v1316_v52   ;;  %1573 = vperm.xlu0 %4263, %v1315_v53   ;;  %v1422_v52 = vld [vmem:[%s6942_s1 + $0x438] sm:$0xff]  ;;  %v1421_v53 = vld [vmem:[%s6942_s1 + $0x430] sm:$0xff] }
  0xb2   :  { %3810 = vmatmul.mubr.f32.gmra.mrb[70].mxu0 %v118_v58 }
  0xb3   :  { %v5047_v0 = vpop.permute.xlu1 %1618  ;;  %v5049_v1 = vpop.permute.xlu0 %1613  ;;  %3812 = vmatprep.mubr.f32.mxu0 %v119_v59 }
  0xb4   :  { %6973 = vst [vmem:[#allocation12_spill] sm:$0xff] %v5047_v0  ;;  %6974 = vst [vmem:[#allocation13_spill] sm:$0xff] %v5049_v1  ;;  %1728 = vperm.xlu1 %4264, %v1346_v60   ;;  %1723 = vperm.xlu0 %4263, %v1345_v61   ;;  %v132_v60 = vld [vmem:[%s6944_s0 + $0x2a8] sm:$0xff]  ;;  %v133_v61 = vld [vmem:[%s6944_s0 + $0x2b0] sm:$0xff] }
  0xb6   :  { %3813 = vmatmul.mubr.f32.gmra.mrb[72].mxu0 %v120_v2  ;;  %v1302_v2 = vld [vmem:[%s6942_s1 + $0x78] sm:$0xff] }
  0xb7   :  { %v5063_v8 = vpop.permute.xlu1 %1768  ;;  %v5065_v9 = vpop.permute.xlu0 %1763  ;;  %3815 = vmatprep.mubr.f32.mxu0 %v121_v3  ;;  %v1301_v3 = vld [vmem:[%s6942_s1 + $0x70] sm:$0xff] }
  0xb8   :  { %6975 = vst [vmem:[#allocation14_spill] sm:$0xff] %v5063_v8  ;;  %6976 = vst [vmem:[#allocation15_spill] sm:$0xff] %v5065_v9  ;;  %1878 = vperm.xlu1 %4264, %v1376_v6   ;;  %1873 = vperm.xlu0 %4263, %v1375_v7  }
  0xba   :  { %3816 = vmatmul.mubr.f32.gmra.mrb[74].mxu0 %v122_v12  ;;  %v134_v12 = vld [vmem:[%s6944_s0 + $0x2b8] sm:$0xff] }
  0xbb   :  { %v5079_v18 = vpop.permute.xlu1 %1918  ;;  %v5081_v19 = vpop.permute.xlu0 %1913  ;;  %3818 = vmatprep.mubr.f32.mxu0 %v123_v13  ;;  %v135_v13 = vld [vmem:[%s6944_s0 + $0x2c0] sm:$0xff] }
  0xbc   :  { %6977 = vst [vmem:[#allocation16_spill] sm:$0xff] %v5079_v18  ;;  %6978 = vst [vmem:[#allocation17_spill] sm:$0xff] %v5081_v19  ;;  %2028 = vperm.xlu1 %4264, %v1406_v14   ;;  %2023 = vperm.xlu0 %4263, %v1405_v15   ;;  %v1318_v14 = vld [vmem:[%s6942_s1 + $0xf8] sm:$0xff]  ;;  %v1317_v15 = vld [vmem:[%s6942_s1 + $0xf0] sm:$0xff] }
  0xbe   :  { %3819 = vmatmul.mubr.f32.gmra.mrb[76].mxu0 %v124_v20 }
  0xbf   :  { %v5095_v26 = vpop.permute.xlu1 %1468  ;;  %v5097_v27 = vpop.permute.xlu0 %1463  ;;  %3821 = vmatprep.mubr.f32.mxu0 %v125_v21 }
  0xc0   :  { %1658 = vperm.xlu1 %4264, %v1332_v24   ;;  %1653 = vperm.xlu0 %4263, %v1331_v25   ;;  %v136_v24 = vld [vmem:[%s6944_s0 + $0x2c8] sm:$0xff]  ;;  %v137_v25 = vld [vmem:[%s6944_s0 + $0x2d0] sm:$0xff] }
  0xc2   :  { %3822 = vmatmul.mubr.f32.gmra.mrb[78].mxu0 %v126_v30  ;;  %v1348_v30 = vld [vmem:[%s6942_s1 + $0x1e8] sm:$0xff] }
  0xc3   :  { %v5111_v36 = vpop.permute.xlu1 %1548  ;;  %v5113_v37 = vpop.permute.xlu0 %1543  ;;  %3824 = vmatprep.mubr.f32.mxu0 %v127_v31  ;;  %v1347_v31 = vld [vmem:[%s6942_s1 + $0x1e0] sm:$0xff] }
  0xc4   :  { %1808 = vperm.xlu1 %4264, %v1362_v32   ;;  %1803 = vperm.xlu0 %4263, %v1361_v33  }
  0xc6   :  { %3825 = vmatmul.mubr.f32.gmra.mrb[80].mxu0 %v128_v38  ;;  %v138_v38 = vld [vmem:[%s6944_s0 + $0x2d8] sm:$0xff] }
  0xc7   :  { %v5127_v44 = vpop.permute.xlu1 %1698  ;;  %v5129_v45 = vpop.permute.xlu0 %1693  ;;  %3827 = vmatprep.mubr.f32.mxu0 %v129_v39  ;;  %v139_v39 = vld [vmem:[%s6944_s0 + $0x2e0] sm:$0xff] }
  0xc8   :  { %6979 = vst [vmem:[#allocation18_spill] sm:$0xff] %v5127_v44  ;;  %6980 = vst [vmem:[#allocation19_spill] sm:$0xff] %v5129_v45  ;;  %1958 = vperm.xlu1 %4264, %v1392_v42   ;;  %1953 = vperm.xlu0 %4263, %v1391_v43   ;;  %v1378_v42 = vld [vmem:[%s6942_s1 + $0x2d8] sm:$0xff]  ;;  %v1377_v43 = vld [vmem:[%s6942_s1 + $0x2d0] sm:$0xff] }
  0xca   :  { %3828 = vmatmul.mubr.f32.gmra.mrb[82].mxu0 %v130_v48 }
  0xcb   :  { %v5143_v58 = vpop.permute.xlu1 %1848  ;;  %v5145_v59 = vpop.permute.xlu0 %1843  ;;  %3830 = vmatprep.mubr.f32.mxu0 %v131_v49 }
  0xcc   :  { %6981 = vst [vmem:[#allocation20_spill] sm:$0xff] %v5143_v58  ;;  %6982 = vst [vmem:[#allocation21_spill] sm:$0xff] %v5145_v59  ;;  %2108 = vperm.xlu1 %4264, %v1422_v52   ;;  %2103 = vperm.xlu0 %4263, %v1421_v53   ;;  %v140_v52 = vld [vmem:[%s6944_s0 + $0x2e8] sm:$0xff]  ;;  %v141_v53 = vld [vmem:[%s6944_s0 + $0x2f0] sm:$0xff] }
  0xce   :  { %3831 = vmatmul.mubr.f32.gmra.mrb[84].mxu0 %v132_v60  ;;  %v1408_v60 = vld [vmem:[%s6942_s1 + $0x3c8] sm:$0xff] }
  0xcf   :  { %v5159_v6 = vpop.permute.xlu1 %1998  ;;  %v5161_v7 = vpop.permute.xlu0 %1993  ;;  %3833 = vmatprep.mubr.f32.mxu0 %v133_v61  ;;  %v1407_v61 = vld [vmem:[%s6942_s1 + $0x3c0] sm:$0xff] }
  0xd0   :  { %1508 = vperm.xlu1 %4264, %v1302_v2   ;;  %1503 = vperm.xlu0 %4263, %v1301_v3  }
  0xd2   :  { %3834 = vmatmul.mubr.f32.gmra.mrb[86].mxu0 %v134_v12  ;;  %v142_v12 = vld [vmem:[%s6944_s0 + $0x2f8] sm:$0xff] }
  0xd3   :  { %v5175_v20 = vpop.permute.xlu1 %1628  ;;  %v5177_v21 = vpop.permute.xlu0 %1623  ;;  %3836 = vmatprep.mubr.f32.mxu0 %v135_v13  ;;  %v143_v13 = vld [vmem:[%s6944_s0 + $0x300] sm:$0xff] }
  0xd4   :  { %6983 = vst [vmem:[#allocation22_spill] sm:$0xff] %v5175_v20  ;;  %6984 = vst [vmem:[#allocation23_spill] sm:$0xff] %v5177_v21  ;;  %1588 = vperm.xlu1 %4264, %v1318_v14   ;;  %1583 = vperm.xlu0 %4263, %v1317_v15   ;;  %v1334_v14 = vld [vmem:[%s6942_s1 + $0x178] sm:$0xff]  ;;  %v1333_v15 = vld [vmem:[%s6942_s1 + $0x170] sm:$0xff] }
  0xd6   :  { %3837 = vmatmul.mubr.f32.gmra.mrb[88].mxu0 %v136_v24 }
  0xd7   :  { %v5191_v32 = vpop.permute.xlu1 %1778  ;;  %v5193_v33 = vpop.permute.xlu0 %1773  ;;  %3839 = vmatprep.mubr.f32.mxu0 %v137_v25 }
  0xd8   :  { %6985 = vst [vmem:[#allocation24_spill] sm:$0xff] %v5191_v32  ;;  %6986 = vst [vmem:[#allocation25_spill] sm:$0xff] %v5193_v33  ;;  %1738 = vperm.xlu1 %4264, %v1348_v30   ;;  %1733 = vperm.xlu0 %4263, %v1347_v31   ;;  %v144_v30 = vld [vmem:[%s6944_s0 + $0x308] sm:$0xff]  ;;  %v145_v31 = vld [vmem:[%s6944_s0 + $0x310] sm:$0xff] }
  0xd9   :  { %v1366_v33 = vld [vmem:[%s6942_s1 + $0x278] sm:$0xff] }
  0xda   :  { %3840 = vmatmul.mubr.f32.gmra.mrb[90].mxu0 %v138_v38  ;;  %v1364_v38 = vld [vmem:[%s6942_s1 + $0x268] sm:$0xff] }
  0xdb   :  { %v5207_v48 = vpop.permute.xlu1 %1928  ;;  %v5209_v49 = vpop.permute.xlu0 %1923  ;;  %3842 = vmatprep.mubr.f32.mxu0 %v139_v39  ;;  %v1363_v39 = vld [vmem:[%s6942_s1 + $0x260] sm:$0xff] }
  0xdc   :  { %6987 = vst [vmem:[#allocation26_spill] sm:$0xff] %v5207_v48  ;;  %6988 = vst [vmem:[#allocation27_spill] sm:$0xff] %v5209_v49  ;;  %1888 = vperm.xlu1 %4264, %v1378_v42   ;;  %1883 = vperm.xlu0 %4263, %v1377_v43   ;;  %v1379_v49 = vld [vmem:[%s6942_s1 + $0x2e0] sm:$0xff] }
  0xde   :  { %3843 = vmatmul.mubr.f32.gmra.mrb[92].mxu0 %v140_v52  ;;  %v146_v52 = vld [vmem:[%s6944_s0 + $0x318] sm:$0xff] }
  0xdf   :  { %v5223_v2 = vpop.permute.xlu1 %2078  ;;  %v5225_v3 = vpop.permute.xlu0 %2073  ;;  %3845 = vmatprep.mubr.f32.mxu0 %v141_v53  ;;  %v147_v53 = vld [vmem:[%s6944_s0 + $0x320] sm:$0xff] }
  0xe0   :  { %6989 = vst [vmem:[#allocation28_spill] sm:$0xff] %v5223_v2  ;;  %6990 = vst [vmem:[#allocation29_spill] sm:$0xff] %v5225_v3  ;;  %2038 = vperm.xlu1 %4264, %v1408_v60   ;;  %2033 = vperm.xlu0 %4263, %v1407_v61   ;;  %v1394_v60 = vld [vmem:[%s6942_s1 + $0x358] sm:$0xff]  ;;  %v1393_v61 = vld [vmem:[%s6942_s1 + $0x350] sm:$0xff] }
  0xe2   :  { %3846 = vmatmul.mubr.f32.gmra.mrb[94].mxu0 %v142_v12 }
  0xe3   :  { %v5239_v24 = vpop.permute.xlu1 %1478  ;;  %v5241_v25 = vpop.permute.xlu0 %1473  ;;  %3848 = vmatprep.mubr.f32.mxu0 %v143_v13 }
  0xe4   :  { %1668 = vperm.xlu1 %4264, %v1334_v14   ;;  %1663 = vperm.xlu0 %4263, %v1333_v15   ;;  %v148_v14 = vld [vmem:[%s6944_s0 + $0x328] sm:$0xff]  ;;  %v149_v15 = vld [vmem:[%s6944_s0 + $0x330] sm:$0xff] }
  0xe6   :  { %3849 = vmatmul.mubr.f32.gmra.mrb[96].mxu0 %v144_v30  ;;  %v1424_v30 = vld [vmem:[%s6942_s1 + $0x448] sm:$0xff] }
  0xe7   :  { %v5255_v42 = vpop.permute.xlu1 %1558  ;;  %v5257_v43 = vpop.permute.xlu0 %1553  ;;  %3851 = vmatprep.mubr.f32.mxu0 %v145_v31  ;;  %v1423_v31 = vld [vmem:[%s6942_s1 + $0x440] sm:$0xff] }
  0xe8   :  { %1818 = vperm.xlu1 %4264, %v1364_v38   ;;  %1813 = vperm.xlu0 %4263, %v1363_v39  }
  0xea   :  { %3852 = vmatmul.mubr.f32.gmra.mrb[98].mxu0 %v146_v52  ;;  %v150_v52 = vld [vmem:[%s6944_s0 + $0x338] sm:$0xff] }
  0xeb   :  { %v5271_v12 = vpop.permute.xlu1 %1708  ;;  %v5273_v13 = vpop.permute.xlu0 %1703  ;;  %3854 = vmatprep.mubr.f32.mxu0 %v147_v53  ;;  %v151_v53 = vld [vmem:[%s6944_s0 + $0x340] sm:$0xff] }
  0xec   :  { %6991 = vst [vmem:[#allocation30_spill] sm:$0xff] %v5271_v12  ;;  %6992 = vst [vmem:[#allocation31_spill] sm:$0xff] %v5273_v13  ;;  %1968 = vperm.xlu1 %4264, %v1394_v60   ;;  %1963 = vperm.xlu0 %4263, %v1393_v61   ;;  %v1350_v60 = vld [vmem:[%s6942_s1 + $0x1f8] sm:$0xff]  ;;  %v1349_v61 = vld [vmem:[%s6942_s1 + $0x1f0] sm:$0xff] }
  0xee   :  { %3855 = vmatmul.mubr.f32.gmra.mrb[100].mxu0 %v148_v14 }
  0xef   :  { %v5287_v38 = vpop.permute.xlu1 %1858  ;;  %v5289_v39 = vpop.permute.xlu0 %1853  ;;  %3857 = vmatprep.mubr.f32.mxu0 %v149_v15 }
  0xf0   :  { %6993 = vst [vmem:[#allocation32_spill] sm:$0xff] %v5287_v38  ;;  %6994 = vst [vmem:[#allocation33_spill] sm:$0xff] %v5289_v39  ;;  %2118 = vperm.xlu1 %4264, %v1424_v30   ;;  %2113 = vperm.xlu0 %4263, %v1423_v31   ;;  %v152_v30 = vld [vmem:[%s6944_s0 + $0x348] sm:$0xff] }
  0xf1   :  { %v1380_v31 = vld [vmem:[%s6942_s1 + $0x2e8] sm:$0xff] }
  0xf2   :  { %3858 = vmatmul.mubr.f32.gmra.mrb[102].mxu0 %v150_v52 }
  0xf3   :  { %v5303_v14 = vpop.permute.xlu1 %2008  ;;  %v5305_v15 = vpop.permute.xlu0 %2003  ;;  %3860 = vmatprep.mubr.f32.mxu0 %v151_v53  ;;  %v5323_v53 = vld [vmem:[%s6945_s3] ss:$0 sm:$0xff] }
  0xf4   :  { %1748 = vperm.xlu1 %4264, %v1350_v60   ;;  %1743 = vperm.xlu0 %4263, %v1349_v61   ;;  %v1410_v61 = vld [vmem:[%s6942_s1 + $0x3d8] sm:$0xff] }
  0xf6   :  { %3861 = vmatmul.mubr.f32.gmra.mrb[104].mxu0 %v152_v30  ;;  %v1409_v30 = vld [vmem:[%s6942_s1 + $0x3d0] sm:$0xff] }
  0xf7   :  { %v5316_v52 = vpop.permute.xlu1 %1638  ;;  %v5318_v48 = vpop.permute.xlu0 %1633 }
  0xf8   :  { %6995 = vst [vmem:[#allocation34_spill] sm:$0xff] %v5316_v52  ;;  %6996 = vst [vmem:[#allocation35_spill] sm:$0xff] %v5318_v48  ;;  %1898 = vperm.xlu1 %4264, %v1380_v31   ;;  %1893 = vperm.xlu0 %4263, %v1379_v49  }
  0xf9   :  { %v3706_v60 = vpop.f32.mrb[0].mxu0  ;;  %v3865_v19 = vpop.f32.mrb[0].mxu1 }
  0xfa   :  { %v286_v18 = vadd.f32 %v3706_v60, %v5323_v53  ;;  %v280_v39 = vpop.f32.mrb[1].mxu0  ;;  %v810_v38 = vpop.f32.mrb[1].mxu1  ;;  %v1365_v60 = vld [vmem:[%s6942_s1 + $0x270] sm:$0xff] }
  0xfb   :  { %v281_v59 = vadd.f32 %v5323_v53, %v280_v39  ;;  %v5333_v58 = vpop.permute.xlu1 %1788  ;;  %v5335_v31 = vpop.permute.xlu0 %1783 }
  0xfc   :  { %6997 = vst [vmem:[#allocation36_spill] sm:$0xff] %v5333_v58  ;;  %6998 = vst [vmem:[#allocation37_spill] sm:$0xff] %v5335_v31  ;;  %v1000_v49 = vmax.f32 %v286_v18, 0.0  ;;  %2048 = vperm.xlu1 %4264, %v1410_v61   ;;  %2043 = vperm.xlu0 %4263, %v1409_v30   ;;  %v811_v30 = vadd.f32 %v5323_v53, %v810_v38 }
  0xfd   :  { %v999_v55 = vmax.f32 %v281_v59, 0.0  ;;  %v3709_v54 = vpop.f32.mrb[2].mxu0  ;;  %v3868_v32 = vpop.f32.mrb[2].mxu1  ;;  %v816_v59 = vadd.f32 %v3865_v19, %v5323_v53  ;;  %v1395_v19 = vld [vmem:[%s6942_s1 + $0x360] sm:$0xff] }
  0xfe   :  { %v296_v39 = vadd.f32 %v3709_v54, %v5323_v53  ;;  %v290_v9 = vpop.f32.mrb[3].mxu0  ;;  %v820_v58 = vpop.f32.mrb[3].mxu1  ;;  %v1144_v8 = vmin.f32 %v1000_v49, 6.0  ;;  %v826_v13 = vadd.f32 %v3868_v32, %v5323_v53  ;;  %v1105_v44 = vmax.f32 %v811_v30, 0.0 }
  0xff   :  { %v291_v31 = vadd.f32 %v5323_v53, %v290_v9  ;;  %v5345_v18 = vpop.permute.xlu1 %1938  ;;  %v5347_v61 = vpop.permute.xlu0 %1933  ;;  %v1143_v29 = vmin.f32 %v999_v55, 6.0  ;;  %v821_v12 = vadd.f32 %v5323_v53, %v820_v58  ;;  %v1396_v9 = vld [vmem:[%s6942_s1 + $0x368] sm:$0xff] }
 0x100   :  { %6999 = vst [vmem:[#allocation38_spill] sm:$0xff] %v5345_v18  ;;  %7000 = vst [vmem:[#allocation39_spill] sm:$0xff] %v5347_v61  ;;  %v1002_v28 = vmax.f32 %v296_v39, 0.0  ;;  %1828 = vperm.xlu1 %4264, %v1366_v33   ;;  %1823 = vperm.xlu0 %4263, %v1365_v60   ;;  %v1106_v33 = vmax.f32 %v816_v59, 0.0  ;;  %v2152_v58 = vmul.f32 %v4873_v57, %v1144_v8  ;;  %v5367_v61 = vld [vmem:[%s6946_s4] ss:$0 sm:$0xff] }
 0x101   :  { %v3712_v54 = vpop.f32.mrb[4].mxu0  ;;  %v3871_v45 = vpop.f32.mrb[4].mxu1  ;;  %v1001_v39 = vmax.f32 %v291_v31, 0.0  ;;  %v2151_v18 = vmul.f32 %v4857_v51, %v1143_v29  ;;  %v1108_v47 = vmax.f32 %v826_v13, 0.0  ;;  %v1107_v31 = vmax.f32 %v821_v12, 0.0  ;;  %v1426_v57 = vld [vmem:[%s6942_s1 + $0x458] sm:$0xff] }
 0x102   :  { %v300_v38 = vpop.f32.mrb[5].mxu0  ;;  %v830_v49 = vpop.f32.mrb[5].mxu1  ;;  %v1146_v55 = vmin.f32 %v1002_v28, 6.0  ;;  %v306_v28 = vadd.f32 %v3712_v54, %v5323_v53  ;;  %v1425_v8 = vld [vmem:[%s6942_s1 + $0x450] sm:$0xff]  ;;  %v5378_v13 = vmin.f32 %v1106_v33, 6.0  ;;  %v5391_v3 = vmin.f32 %v1105_v44, 6.0 }
 0x103   :  { %v5359_v60 = vpop.permute.xlu1 %2088  ;;  %v5361_v32 = vpop.permute.xlu0 %2083  ;;  %v1145_v29 = vmin.f32 %v1001_v39, 6.0  ;;  %v301_v30 = vadd.f32 %v5323_v53, %v300_v38  ;;  %v5393_v2 = vmin.f32 %v1108_v47, 6.0  ;;  %v5398_v38 = vadd.f32 %v3871_v45, %v5323_v53  ;;  %v1381_v47 = vld [vmem:[%s6942_s1 + $0x2f0] sm:$0xff] }
 0x104   :  { %1978 = vperm.xlu1 %4264, %v1396_v9   ;;  %1973 = vperm.xlu0 %4263, %v1395_v19   ;;  %v2154_v51 = vmul.f32 %v4903_v4, %v1146_v55  ;;  %7001 = vst [vmem:[#allocation40_spill] sm:$0xff] %v5378_v13  ;;  %v5386_v9 = vmul.f32 %v5367_v61, %v2152_v58  ;;  %7002 = vst [vmem:[#allocation41_spill] sm:$0xff] %v5391_v3  ;;  %v1004_v4 = vmax.f32 %v306_v28, 0.0 }
 0x105   :  { %v3715_v59 = vpop.f32.mrb[6].mxu0  ;;  %v3874_v46 = vpop.f32.mrb[6].mxu1  ;;  %v5389_v19 = vmul.f32 %v5367_v61, %v2151_v18  ;;  %7003 = vst [vmem:[#allocation42_spill] sm:$0xff] %v5393_v2  ;;  %v5395_v55 = vmin.f32 %v1107_v31, 6.0  ;;  %v1382_v18 = vld [vmem:[%s6942_s1 + $0x2f8] sm:$0xff]  ;;  %v5408_v44 = vadd.f32 %v5323_v53, %v830_v49  ;;  %v1003_v2 = vmax.f32 %v301_v30, 0.0 }
 0x106   :  { %v310_v17 = vpop.f32.mrb[7].mxu0  ;;  %v840_v16 = vpop.f32.mrb[7].mxu1  ;;  %v316_v39 = vadd.f32 %v3715_v59, %v5323_v53  ;;  %v846_v28 = vadd.f32 %v3874_v46, %v5323_v53 }
 0x107   :  { %v5381_v12 = vpop.permute.xlu1 %1488  ;;  %v5383_v54 = vpop.permute.xlu0 %1483  ;;  %7004 = vst [vmem:[#allocation43_spill] sm:$0xff] %v5395_v55  ;;  %v2153_v55 = vmul.f32 %v4905_v5, %v1145_v29  ;;  %v311_v3 = vadd.f32 %v5323_v53, %v310_v17  ;;  %v841_v46 = vadd.f32 %v5323_v53, %v840_v16  ;;  %v1148_v5 = vmin.f32 %v1004_v4, 6.0  ;;  %v1411_v16 = vld [vmem:[%s6942_s1 + $0x3e0] sm:$0xff] }
 0x108   :  { %2128 = vperm.xlu1 %4264, %v1426_v57   ;;  %2123 = vperm.xlu0 %4263, %v1425_v8   ;;  %v5414_v8 = vmul.f32 %v5367_v61, %v2154_v51  ;;  %v1412_v51 = vld [vmem:[%s6942_s1 + $0x3e8] sm:$0xff]  ;;  %v1006_v17 = vmax.f32 %v316_v39, 0.0  ;;  %v1147_v1 = vmin.f32 %v1003_v2, 6.0 }
 0x109   :  { %v3718_v33 = vpop.f32.mrb[8].mxu0  ;;  %v3877_v58 = vpop.f32.mrb[8].mxu1  ;;  %v1005_v0 = vmax.f32 %v311_v3, 0.0  ;;  %v1111_v23 = vmax.f32 %v841_v46, 0.0  ;;  %v1398_v46 = vld [vmem:[%s6942_s1 + $0x378] sm:$0xff] }
 0x10a   :  { %v326_v45 = vadd.f32 %v3718_v33, %v5323_v53  ;;  %v856_v31 = vadd.f32 %v3877_v58, %v5323_v53  ;;  %v320_v59 = vpop.f32.mrb[9].mxu0  ;;  %v850_v57 = vpop.f32.mrb[9].mxu1 }
 0x10b   :  { %v5418_v13 = vpop.permute.xlu1 %1568  ;;  %v5420_v49 = vpop.permute.xlu0 %1563  ;;  %v321_v58 = vadd.f32 %v5323_v53, %v320_v59  ;;  %v851_v30 = vadd.f32 %v5323_v53, %v850_v57 }
 0x10c   :  { %v1008_v48 = vmax.f32 %v326_v45, 0.0  ;;  %v1114_v33 = vmax.f32 %v856_v31, 0.0  ;;  %1908 = vperm.xlu1 %4264, %v1382_v18   ;;  %1903 = vperm.xlu0 %4263, %v1381_v47   ;;  %v1112_v31 = vmax.f32 %v846_v28, 0.0 }
 0x10d   :  { %v3721_v52 = vpop.f32.mrb[10].mxu0  ;;  %v3880_v45 = vpop.f32.mrb[10].mxu1  ;;  %v1007_v47 = vmax.f32 %v321_v58, 0.0  ;;  %v1113_v29 = vmax.f32 %v851_v30, 0.0 }
 0x10e   :  { %v1152_v59 = vmin.f32 %v1008_v48, 6.0  ;;  %v1258_v18 = vmin.f32 %v1114_v33, 6.0  ;;  %v330_v21 = vpop.f32.mrb[11].mxu0  ;;  %v860_v20 = vpop.f32.mrb[11].mxu1  ;;  %v1150_v33 = vmin.f32 %v1006_v17, 6.0  ;;  %v336_v58 = vadd.f32 %v3721_v52, %v5323_v53 }
 0x10f   :  { %v5433_v39 = vpop.permute.xlu1 %1718  ;;  %v5435_v57 = vpop.permute.xlu0 %1713  ;;  %v1151_v48 = vmin.f32 %v1007_v47, 6.0  ;;  %v1257_v2 = vmin.f32 %v1113_v29, 6.0  ;;  %v331_v3 = vadd.f32 %v5323_v53, %v330_v21  ;;  %v1256_v17 = vmin.f32 %v1112_v31, 6.0 }
 0x110   :  { %7005 = vst [vmem:[#allocation44_spill] sm:$0xff] %v5433_v39  ;;  %7006 = vst [vmem:[#allocation45_spill] sm:$0xff] %v5435_v57  ;;  %v5438_v22 = vmul.f32 %v5239_v24, %v1152_v59  ;;  %v5441_v28 = vmul.f32 %v5303_v14, %v1258_v18  ;;  %2058 = vperm.xlu1 %4264, %v1412_v51   ;;  %2053 = vperm.xlu0 %4263, %v1411_v16   ;;  %v1397_v24 = vld [vmem:[%s6942_s1 + $0x370] sm:$0xff]  ;;  %v1149_v59 = vmin.f32 %v1005_v0, 6.0 }
 0x111   :  { %v3724_v30 = vpop.f32.mrb[12].mxu0  ;;  %v5451_v14 = vpop.f32.mrb[12].mxu1  ;;  %v5454_v51 = vmul.f32 %v5367_v61, %v2153_v55  ;;  %v5457_v29 = vmul.f32 %v5241_v25, %v1151_v48  ;;  %v866_v21 = vadd.f32 %v3880_v45, %v5323_v53  ;;  %v5463_v18 = vmul.f32 %v5305_v15, %v1257_v2 }
 0x112   :  { %v340_v52 = vpop.f32.mrb[13].mxu0  ;;  %v5460_v16 = vpop.f32.mrb[13].mxu1  ;;  %v1010_v47 = vmax.f32 %v336_v58, 0.0  ;;  %v1009_v4 = vmax.f32 %v331_v3, 0.0  ;;  %v2156_v55 = vmul.f32 %v4983_v34, %v1148_v5  ;;  %v1255_v31 = vmin.f32 %v1111_v23, 6.0  ;;  %v1428_v3 = vld [vmem:[%s6942_s1 + $0x468] sm:$0xff] }
 0x113   :  { %v5465_v57 = vpop.permute.xlu1 %1868  ;;  %v5467_v39 = vpop.permute.xlu0 %1863  ;;  %v1116_v25 = vmax.f32 %v866_v21, 0.0  ;;  %v861_v48 = vadd.f32 %v5323_v53, %v860_v20  ;;  %v2155_v45 = vmul.f32 %v4985_v35, %v1147_v1  ;;  %v2158_v0 = vmul.f32 %v5095_v26, %v1150_v33  ;;  %v1427_v23 = vld [vmem:[%s6942_s1 + $0x460] sm:$0xff] }
 0x114   :  { %7007 = vst [vmem:[#allocation46_spill] sm:$0xff] %v5465_v57  ;;  %7008 = vst [vmem:[#allocation47_spill] sm:$0xff] %v5467_v39  ;;  %1988 = vperm.xlu1 %4264, %v1398_v46   ;;  %1983 = vperm.xlu0 %4263, %v1397_v24   ;;  %v1154_v15 = vmin.f32 %v1010_v47, 6.0  ;;  %v1153_v2 = vmin.f32 %v1009_v4, 6.0  ;;  %v2264_v20 = vmul.f32 %v5159_v6, %v1256_v17  ;;  %v7009_v57 = vmax.f32 %v5398_v38, 0.0 }
 0x115   :  { %v3727_v58 = vpop.f32.mrb[14].mxu0  ;;  %v5479_v34 = vpop.f32.mrb[14].mxu1  ;;  %v1260_v5 = vmin.f32 %v1116_v25, 6.0  ;;  %v346_v35 = vadd.f32 %v3724_v30, %v5323_v53  ;;  %v1115_v1 = vmax.f32 %v861_v48, 0.0  ;;  %v2157_v4 = vmul.f32 %v5097_v27, %v1149_v59  ;;  %v5496_v30 = vld [vmem:[%s6946_s4 + $0x7] ss:$0 sm:$0xff] }
 0x116   :  { %v350_v26 = vpop.f32.mrb[15].mxu0  ;;  %v5483_v33 = vpop.f32.mrb[15].mxu1  ;;  %v2162_v46 = vmul.f32 %v5381_v12, %v1154_v15  ;;  %v2161_v24 = vmul.f32 %v5383_v54, %v1153_v2  ;;  %v341_v21 = vadd.f32 %v5323_v53, %v340_v52  ;;  %v5491_v6 = vmin.f32 %v7009_v57, 6.0  ;;  %7011 = vst [vmem:[#allocation49_spill] sm:$0xff] %v5496_v30 }
 0x117   :  { %v2019_v47 = vpop.permute.xlu1 %2018  ;;  %v2014_v39 = vpop.permute.xlu0 %2013  ;;  %v2263_v17 = vmul.f32 %v5161_v7, %v1255_v31  ;;  %v1259_v27 = vmin.f32 %v1115_v1, 6.0  ;;  %v5500_v12 = vmul.f32 %v5367_v61, %v2156_v55  ;;  %v5503_v54 = vmul.f32 %v5367_v61, %v2155_v45  ;;  %v1414_v7 = vld [vmem:[%s6942_s1 + $0x3f8] sm:$0xff]  ;;  %v1413_v31 = vld [vmem:[%s6942_s1 + $0x3f0] sm:$0xff] }
 0x118   :  { %7010 = vst [vmem:[#allocation48_spill] sm:$0xff] %v5491_v6  ;;  %v2268_v59 = vmul.f32 %v2019_v47, %v1260_v5  ;;  %2138 = vperm.xlu1 %4264, %v1428_v3   ;;  %2133 = vperm.xlu0 %4263, %v1427_v23   ;;  %v7012_v38 = vmax.f32 %v5408_v44, 0.0  ;;  %v356_v52 = vadd.f32 %v3727_v58, %v5323_v53  ;;  %v1012_v45 = vmax.f32 %v346_v35, 0.0 }
 0x119   :  { %v3730_v25 = vpop.f32.mrb[16].mxu0  ;;  %v5516_v55 = vpop.f32.mrb[16].mxu1  ;;  %v5519_v48 = vmul.f32 %v5367_v61, %v2158_v0  ;;  %v5521_v44 = vmul.f32 %v2014_v39, %v1259_v27  ;;  %v5527_v3 = vmul.f32 %v5496_v30, %v2264_v20  ;;  %v5530_v23 = vmul.f32 %v5367_v61, %v2157_v4 }
 0x11a   :  { %v5507_v57 = vmin.f32 %v7012_v38, 6.0  ;;  %v366_v15 = vadd.f32 %v3730_v25, %v5323_v53  ;;  %v360_v2 = vpop.f32.mrb[17].mxu0  ;;  %v5524_v58 = vpop.f32.mrb[17].mxu1  ;;  %v1011_v5 = vmax.f32 %v341_v21, 0.0  ;;  %v5538_v39 = vmul.f32 %v5496_v30, %v2263_v17 }
 0x11b   :  { %7014 = vst [vmem:[#allocation51_spill] sm:$0xff] %v5527_v3  ;;  %v361_v1 = vadd.f32 %v5323_v53, %v360_v2  ;;  %v5533_v47 = vpop.permute.xlu1 %1648  ;;  %v5535_v0 = vpop.permute.xlu0 %1643  ;;  %v5542_v35 = vmul.f32 %v5367_v61, %v5438_v22  ;;  %v351_v20 = vadd.f32 %v5323_v53, %v350_v26  ;;  %v5547_v4 = vmul.f32 %v5496_v30, %v5441_v28  ;;  %v1430_v22 = vld [vmem:[%s6942_s1 + $0x478] sm:$0xff]  ;;  %v1429_v26 = vld [vmem:[%s6942_s1 + $0x470] sm:$0xff] }
 0x11c   :  { %7013 = vst [vmem:[#allocation50_spill] sm:$0xff] %v5507_v57  ;;  %7015 = vst [vmem:[#allocation52_spill] sm:$0xff] %v5533_v47  ;;  %v1016_v27 = vmax.f32 %v366_v15, 0.0  ;;  %2068 = vperm.xlu1 %4264, %v1414_v7   ;;  %2063 = vperm.xlu0 %4263, %v1413_v31   ;;  %v5551_v21 = vmul.f32 %v5367_v61, %v5457_v29  ;;  %v1014_v38 = vmax.f32 %v356_v52, 0.0  ;;  %v5565_v31 = vmin.f32 %v1012_v45, 6.0 }
 0x11d   :  { %7016 = vst [vmem:[#allocation53_spill] sm:$0xff] %v5535_v0  ;;  %7017 = vst [vmem:[#allocation54_spill] sm:$0xff] %v5538_v39  ;;  %v1015_v17 = vmax.f32 %v361_v1, 0.0  ;;  %v3733_v25 = vpop.f32.mrb[18].mxu0  ;;  %v5559_v7 = vpop.f32.mrb[18].mxu1  ;;  %v5563_v28 = vmul.f32 %v5496_v30, %v5463_v18  ;;  %v5571_v1 = vmul.f32 %v5367_v61, %v2162_v46  ;;  %v1013_v3 = vmax.f32 %v351_v20, 0.0 }
 0x11e   :  { %7018 = vst [vmem:[#allocation55_spill] sm:$0xff] %v5547_v4  ;;  %v1160_v29 = vmin.f32 %v1016_v27, 6.0  ;;  %v376_v52 = vadd.f32 %v3733_v25, %v5323_v53  ;;  %v370_v15 = vpop.f32.mrb[19].mxu0  ;;  %v5568_v2 = vpop.f32.mrb[19].mxu1  ;;  %v5573_v4 = vmin.f32 %v1011_v5, 6.0  ;;  %v5586_v25 = vmul.f32 %v5367_v61, %v2161_v24 }
 0x11f   :  { %7019 = vst [vmem:[#allocation56_spill] sm:$0xff] %v5563_v28  ;;  %v5578_v39 = vld [vmem:[%s6946_s4 + $0x1] ss:$0 sm:$0xff]  ;;  %v1159_v18 = vmin.f32 %v1015_v17, 6.0  ;;  %v371_v45 = vadd.f32 %v5323_v53, %v370_v15  ;;  %v5581_v28 = vpop.permute.xlu1 %1798  ;;  %v5583_v27 = vpop.permute.xlu0 %1793  ;;  %v5589_v57 = vmin.f32 %v1014_v38, 6.0  ;;  %v876_v17 = vadd.f32 %v5451_v14, %v5323_v53 }
 0x120   :  { %7020 = vst [vmem:[#allocation57_spill] sm:$0xff] %v5581_v28  ;;  %7021 = vst [vmem:[#allocation58_spill] sm:$0xff] %v5583_v27  ;;  %v2168_v46 = vmul.f32 %v4871_v56, %v1160_v29  ;;  %v1018_v5 = vmax.f32 %v376_v52, 0.0  ;;  %2148 = vperm.xlu1 %4264, %v1430_v22   ;;  %2143 = vperm.xlu0 %4263, %v1429_v26   ;;  %v5597_v24 = vmul.f32 %v5496_v30, %v2268_v59 }
 0x121   :  { %7022 = vst [vmem:[#allocation59_spill] sm:$0xff] %v5589_v57  ;;  %v2167_v6 = vmul.f32 %v4855_v50, %v1159_v18  ;;  %v1017_v15 = vmax.f32 %v371_v45, 0.0  ;;  %v3736_v28 = vpop.f32.mrb[20].mxu0  ;;  %v5594_v0 = vpop.f32.mrb[20].mxu1  ;;  %v871_v14 = vadd.f32 %v5323_v53, %v5460_v16  ;;  %v1118_v16 = vmax.f32 %v876_v17, 0.0 }
 0x122   :  { %7023 = vst [vmem:[#allocation60_spill] sm:$0xff] %v5597_v24  ;;  %v2327_v20 = vmul.f32 %v5578_v39, %v2168_v46  ;;  %v1162_v56 = vmin.f32 %v1018_v5, 6.0  ;;  %v386_v22 = vadd.f32 %v3736_v28, %v5323_v53  ;;  %v380_v26 = vpop.f32.mrb[21].mxu0  ;;  %v5601_v38 = vpop.f32.mrb[21].mxu1  ;;  %v886_v46 = vadd.f32 %v5479_v34, %v5323_v53 }
 0x123   :  { %v2326_v50 = vmul.f32 %v5578_v39, %v2167_v6  ;;  %v1161_v29 = vmin.f32 %v1017_v15, 6.0  ;;  %v381_v52 = vadd.f32 %v5323_v53, %v380_v26  ;;  %v5607_v18 = vpop.permute.xlu1 %1948  ;;  %v5609_v59 = vpop.permute.xlu0 %1943 }
 0x124   :  { %7024 = vst [vmem:[#allocation61_spill] sm:$0xff] %v5607_v18  ;;  %7025 = vst [vmem:[#allocation62_spill] sm:$0xff] %v5609_v59  ;;  %v5612_v45 = vadd.f32 %v2327_v20, %v5386_v9  ;;  %v2170_v28 = vmul.f32 %v4919_v10, %v1162_v56  ;;  %v1020_v5 = vmax.f32 %v386_v22, 0.0  ;;  %v5623_v59 = vmin.f32 %v1013_v3, 6.0 }
 0x125   :  { %v5618_v6 = vadd.f32 %v2326_v50, %v5389_v19  ;;  %v2169_v15 = vmul.f32 %v4921_v11, %v1161_v29  ;;  %v1019_v26 = vmax.f32 %v381_v52, 0.0  ;;  %v3739_v24 = vpop.f32.mrb[22].mxu0  ;;  %v5621_v18 = vpop.f32.mrb[22].mxu1  ;;  %v881_v10 = vadd.f32 %v5323_v53, %v5483_v33 }
 0x126   :  { %7026 = vst [vmem:[#allocation63_spill] sm:$0xff] %v5623_v59  ;;  %v2329_v9 = vmul.f32 %v5578_v39, %v2170_v28  ;;  %v1164_v20 = vmin.f32 %v1020_v5, 6.0  ;;  %v390_v34 = vpop.f32.mrb[23].mxu0  ;;  %v5628_v56 = vpop.f32.mrb[23].mxu1  ;;  %v1117_v19 = vmax.f32 %v871_v14, 0.0  ;;  %v896_v11 = vadd.f32 %v5516_v55, %v5323_v53 }
 0x127   :  { %v2328_v17 = vmul.f32 %v5578_v39, %v2169_v15  ;;  %v1163_v22 = vmin.f32 %v1019_v26, 6.0  ;;  %v5633_v50 = vpop.permute.xlu1 %2098  ;;  %v5635_v3 = vpop.permute.xlu0 %2093  ;;  %v1120_v52 = vmax.f32 %v886_v46, 0.0  ;;  %v396_v28 = vadd.f32 %v3739_v24, %v5323_v53 }
 0x128   :  { %v5638_v29 = vadd.f32 %v2329_v9, %v5414_v8  ;;  %v2172_v33 = vmul.f32 %v4999_v40, %v1164_v20  ;;  %v5644_v14 = vmul.f32 %v5496_v30, %v5521_v44  ;;  %v5646_v5 = vmin.f32 %v1118_v16, 6.0 }
 0x129   :  { %v5649_v55 = vadd.f32 %v2328_v17, %v5454_v51  ;;  %v2171_v15 = vmul.f32 %v5001_v41, %v1163_v22  ;;  %v3742_v26 = vpop.f32.mrb[24].mxu0  ;;  %v3901_v27 = vpop.f32.mrb[24].mxu1  ;;  %v1119_v8 = vmax.f32 %v881_v10, 0.0  ;;  %v891_v46 = vadd.f32 %v5323_v53, %v5524_v58 }
 0x12a   :  { %7027 = vst [vmem:[#allocation64_spill] sm:$0xff] %v5644_v14  ;;  %v2331_v40 = vmul.f32 %v5578_v39, %v2172_v33  ;;  %v1022_v24 = vmax.f32 %v396_v28, 0.0  ;;  %v400_v9 = vpop.f32.mrb[25].mxu0  ;;  %v930_v20 = vpop.f32.mrb[25].mxu1  ;;  %v5655_v44 = vmin.f32 %v1117_v19, 6.0  ;;  %v1122_v16 = vmax.f32 %v896_v11, 0.0 }
 0x12b   :  { %v2330_v14 = vmul.f32 %v5578_v39, %v2171_v15  ;;  %v391_v51 = vadd.f32 %v5323_v53, %v390_v34  ;;  %v1499_v17 = vpop.permute.xlu1 %1498  ;;  %v1494_v41 = vpop.permute.xlu0 %1493  ;;  %v5659_v22 = vmin.f32 %v1120_v52, 6.0  ;;  %v906_v58 = vadd.f32 %v5559_v7, %v5323_v53 }
 0x12c   :  { %v5662_v10 = vadd.f32 %v2331_v40, %v5500_v12  ;;  %v1166_v33 = vmin.f32 %v1022_v24, 6.0  ;;  %v406_v11 = vadd.f32 %v3742_v26, %v5323_v53  ;;  %v936_v15 = vadd.f32 %v3901_v27, %v5323_v53 }
 0x12d   :  { %7028 = vst [vmem:[#allocation65_spill] sm:$0xff] %v5659_v22  ;;  %v5667_v28 = vadd.f32 %v2330_v14, %v5503_v54  ;;  %v1021_v19 = vmax.f32 %v391_v51, 0.0  ;;  %v3745_v34 = vpop.f32.mrb[26].mxu0  ;;  %v3904_v30 = vpop.f32.mrb[26].mxu1  ;;  %v5671_v47 = vmin.f32 %v1119_v8, 6.0  ;;  %v1121_v52 = vmax.f32 %v891_v46, 0.0 }
 0x12e   :  { %v2174_v12 = vmul.f32 %v5111_v36, %v1166_v33  ;;  %v401_v40 = vadd.f32 %v5323_v53, %v400_v9  ;;  %v410_v22 = vpop.f32.mrb[27].mxu0  ;;  %v940_v7 = vpop.f32.mrb[27].mxu1  ;;  %v1024_v59 = vmax.f32 %v406_v11, 0.0  ;;  %v1130_v54 = vmax.f32 %v936_v15, 0.0 }
 0x12f   :  { %7029 = vst [vmem:[#allocation66_spill] sm:$0xff] %v5671_v47  ;;  %v1165_v24 = vmin.f32 %v1021_v19, 6.0  ;;  %v931_v14 = vadd.f32 %v5323_v53, %v930_v20  ;;  %v5676_v51 = vpop.permute.xlu1 %1578  ;;  %v5678_v26 = vpop.permute.xlu0 %1573  ;;  %v5680_v27 = vmin.f32 %v1122_v16, 6.0  ;;  %v1124_v8 = vmax.f32 %v906_v58, 0.0 }
 0x130   :  { %v2333_v46 = vmul.f32 %v5578_v39, %v2174_v12  ;;  %v1023_v47 = vmax.f32 %v401_v40, 0.0  ;;  %v1168_v9 = vmin.f32 %v1024_v59, 6.0  ;;  %v1274_v33 = vmin.f32 %v1130_v54, 6.0 }
 0x131   :  { %7030 = vst [vmem:[#allocation67_spill] sm:$0xff] %v5680_v27  ;;  %v2173_v36 = vmul.f32 %v5113_v37, %v1165_v24  ;;  %v1129_v57 = vmax.f32 %v931_v14, 0.0  ;;  %v3748_v19 = vpop.f32.mrb[28].mxu0  ;;  %v5684_v11 = vpop.f32.mrb[28].mxu1  ;;  %v5686_v15 = vmin.f32 %v1121_v52, 6.0  ;;  %v5690_v20 = vadd.f32 %v5323_v53, %v5568_v2 }
 0x132   :  { %v5693_v16 = vadd.f32 %v2333_v46, %v5519_v48  ;;  %v1167_v58 = vmin.f32 %v1023_v47, 6.0  ;;  %v420_v12 = vpop.f32.mrb[29].mxu0  ;;  %v5695_v40 = vpop.f32.mrb[29].mxu1  ;;  %v2176_v59 = vmul.f32 %v5255_v42, %v1168_v9  ;;  %v5700_v24 = vmul.f32 %v5359_v60, %v1274_v33 }
 0x133   :  { %7031 = vst [vmem:[#allocation68_spill] sm:$0xff] %v5686_v15  ;;  %v2332_v37 = vmul.f32 %v5578_v39, %v2173_v36  ;;  %v1273_v52 = vmin.f32 %v1129_v57, 6.0  ;;  %v5702_v54 = vpop.permute.xlu1 %1728  ;;  %v5704_v14 = vpop.permute.xlu0 %1723  ;;  %v5706_v2 = vmin.f32 %v1124_v8, 6.0  ;;  %v2164_v47 = vmul.f32 %v1499_v17, %v5565_v31 }
 0x134   :  { %v2175_v48 = vmul.f32 %v5257_v43, %v1167_v58  ;;  %v2163_v46 = vmul.f32 %v1494_v41, %v5573_v4  ;;  %v5713_v36 = vadd.f32 %v5594_v0, %v5323_v53  ;;  %v2335_v60 = vmul.f32 %v5578_v39, %v2176_v59 }
 0x135   :  { %7032 = vst [vmem:[#allocation69_spill] sm:$0xff] %v5706_v2  ;;  %v5716_v42 = vadd.f32 %v2332_v37, %v5530_v23  ;;  %v5720_v57 = vmul.f32 %v5361_v32, %v1273_v52  ;;  %v3751_v8 = vpop.f32.mrb[30].mxu0  ;;  %v5722_v9 = vpop.f32.mrb[30].mxu1  ;;  %v5727_v4 = vadd.f32 %v5323_v53, %v5601_v38  ;;  %v416_v31 = vadd.f32 %v3745_v34, %v5323_v53 }
 0x136   :  { %v2334_v0 = vmul.f32 %v5578_v39, %v2175_v48  ;;  %v430_v23 = vpop.f32.mrb[31].mxu0  ;;  %v5731_v17 = vpop.f32.mrb[31].mxu1  ;;  %v5735_v32 = vadd.f32 %v5621_v18, %v5323_v53  ;;  %v5738_v41 = vadd.f32 %v2335_v60, %v5542_v35  ;;  %v946_v33 = vadd.f32 %v3904_v30, %v5323_v53 }
 0x137   :  { %v411_v58 = vadd.f32 %v5323_v53, %v410_v22  ;;  %v5742_v38 = vpop.permute.xlu1 %1878  ;;  %v5744_v37 = vpop.permute.xlu0 %1873  ;;  %v1026_v59 = vmax.f32 %v416_v31, 0.0  ;;  %v941_v52 = vadd.f32 %v5323_v53, %v940_v7  ;;  %v426_v18 = vadd.f32 %v3748_v19, %v5323_v53 }
 0x138   :  { %7033 = vst [vmem:[#allocation70_spill] sm:$0xff] %v5742_v38  ;;  %7034 = vst [vmem:[#allocation71_spill] sm:$0xff] %v5744_v37  ;;  %v5747_v34 = vadd.f32 %v2334_v0, %v5551_v21  ;;  %v1132_v35 = vmax.f32 %v946_v33, 0.0  ;;  %v421_v30 = vadd.f32 %v5323_v53, %v420_v12  ;;  %v5761_v12 = vadd.f32 %v5323_v53, %v5628_v56 }
 0x139   :  { %v1025_v60 = vmax.f32 %v411_v58, 0.0  ;;  %v3754_v43 = vpop.f32.mrb[32].mxu0  ;;  %v5753_v22 = vpop.f32.mrb[32].mxu1  ;;  %v1170_v37 = vmin.f32 %v1026_v59, 6.0  ;;  %v1131_v2 = vmax.f32 %v941_v52, 0.0  ;;  %v1028_v21 = vmax.f32 %v426_v18, 0.0 }
 0x13a   :  { %7035 = vst [vmem:[#allocation72_spill] sm:$0xff] %v5753_v22  ;;  %v440_v0 = vpop.f32.mrb[33].mxu0  ;;  %v5756_v31 = vpop.f32.mrb[33].mxu1  ;;  %v1276_v19 = vmin.f32 %v1132_v35, 6.0  ;;  %v1027_v48 = vmax.f32 %v421_v30, 0.0  ;;  %v2315_v52 = vmul.f32 %v5367_v61, %v2164_v47 }
 0x13b   :  { %7036 = vst [vmem:[#allocation73_spill] sm:$0xff] %v5756_v31  ;;  %v1169_v15 = vmin.f32 %v1025_v60, 6.0  ;;  %v2029_v33 = vpop.permute.xlu1 %2028  ;;  %v2024_v58 = vpop.permute.xlu0 %2023  ;;  %v2178_v27 = vmul.f32 %v5418_v13, %v1170_v37  ;;  %v1275_v38 = vmin.f32 %v1131_v2, 6.0  ;;  %v1172_v59 = vmin.f32 %v1028_v21, 6.0 }
 0x13c   :  { %v5766_v18 = vmul.f32 %v5633_v50, %v1276_v19  ;;  %v1171_v35 = vmin.f32 %v1027_v48, 6.0  ;;  %v2314_v31 = vmul.f32 %v5367_v61, %v2163_v46  ;;  %v446_v37 = vadd.f32 %v3754_v43, %v5323_v53 }
 0x13d   :  { %v2177_v7 = vmul.f32 %v5420_v49, %v1169_v15  ;;  %v3757_v60 = vpop.f32.mrb[34].mxu0  ;;  %v5769_v30 = vpop.f32.mrb[34].mxu1  ;;  %v2337_v56 = vmul.f32 %v5578_v39, %v2178_v27  ;;  %v5774_v22 = vmul.f32 %v5635_v3, %v1275_v38  ;;  %v2180_v13 = vmul.f32 %v5676_v51, %v1172_v59 }
 0x13e   :  { %7037 = vst [vmem:[#allocation74_spill] sm:$0xff] %v5769_v30  ;;  %v450_v2 = vpop.f32.mrb[35].mxu0  ;;  %v5777_v47 = vpop.f32.mrb[35].mxu1  ;;  %v2179_v49 = vmul.f32 %v5678_v26, %v1171_v35  ;;  %v5782_v15 = vadd.f32 %v3751_v8, %v5323_v53  ;;  %v5794_v38 = vadd.f32 %v5323_v53, %v430_v23  ;;  %v441_v48 = vadd.f32 %v5323_v53, %v440_v0  ;;  %v7054_v30 = vld [vmem:[#allocation63_spill] sm:$0xff] }
 0x13f   :  { %7038 = vst [vmem:[#allocation75_spill] sm:$0xff] %v5777_v47  ;;  %v2336_v50 = vmul.f32 %v5578_v39, %v2177_v7  ;;  %v5785_v46 = vpop.permute.xlu1 %1658  ;;  %v5787_v27 = vpop.permute.xlu0 %1653  ;;  %v5790_v3 = vadd.f32 %v2337_v56, %v5571_v1  ;;  %v2339_v51 = vmul.f32 %v5578_v39, %v2180_v13  ;;  %v1032_v43 = vmax.f32 %v446_v37, 0.0 }
 0x140   :  { %v2338_v8 = vmul.f32 %v5578_v39, %v2179_v49  ;;  %v5802_v21 = vmul.f32 %v2029_v33, %v5646_v5  ;;  %v1031_v59 = vmax.f32 %v441_v48, 0.0  ;;  %v5809_v23 = vmul.f32 %v2024_v58, %v5655_v44  ;;  %v5826_v44 = vld [vmem:[%s6946_s4 + $0x2] ss:$0 sm:$0xff] }
 0x141   :  { %v5798_v26 = vadd.f32 %v2336_v50, %v5586_v25  ;;  %v3760_v7 = vpop.f32.mrb[36].mxu0  ;;  %v5804_v19 = vpop.f32.mrb[36].mxu1  ;;  %v5806_v1 = vadd.f32 %v2339_v51, %v2315_v52  ;;  %v456_v0 = vadd.f32 %v3757_v60, %v5323_v53  ;;  %v1176_v5 = vmin.f32 %v1032_v43, 6.0 }
 0x142   :  { %7039 = vst [vmem:[#allocation76_spill] sm:$0xff] %v5804_v19  ;;  %v460_v35 = vpop.f32.mrb[37].mxu0  ;;  %v5812_v25 = vpop.f32.mrb[37].mxu1  ;;  %v5814_v56 = vadd.f32 %v2338_v8, %v2314_v31  ;;  %v451_v33 = vadd.f32 %v5323_v53, %v450_v2  ;;  %v1175_v58 = vmin.f32 %v1031_v59, 6.0  ;;  %v466_v31 = vadd.f32 %v3760_v7, %v5323_v53 }
 0x143   :  { %7040 = vst [vmem:[#allocation77_spill] sm:$0xff] %v5812_v25  ;;  %v5818_v50 = vpop.permute.xlu1 %1808  ;;  %v5820_v52 = vpop.permute.xlu0 %1803  ;;  %v1034_v60 = vmax.f32 %v456_v0, 0.0  ;;  %v2184_v37 = vmul.f32 %v4887_v62, %v1176_v5  ;;  %v461_v2 = vadd.f32 %v5323_v53, %v460_v35  ;;  %v956_v48 = vadd.f32 %v5684_v11, %v5323_v53  ;;  %v7045_v11 = vld [vmem:[#allocation4_spill] sm:$0xff] }
 0x144   :  { %7041 = vst [vmem:[#allocation78_spill] sm:$0xff] %v5818_v50  ;;  %7042 = vst [vmem:[#allocation79_spill] sm:$0xff] %v5820_v52  ;;  %v1033_v51 = vmax.f32 %v451_v33, 0.0  ;;  %v2183_v43 = vmul.f32 %v4889_v63, %v1175_v58  ;;  %v1036_v13 = vmax.f32 %v466_v31, 0.0 }
 0x145   :  { %v3763_v8 = vpop.f32.mrb[38].mxu0  ;;  %v1178_v49 = vmin.f32 %v1034_v60, 6.0  ;;  %v2367_v59 = vmul.f32 %v5826_v44, %v2184_v37  ;;  %v1035_v7 = vmax.f32 %v461_v2, 0.0  ;;  %v1134_v52 = vmax.f32 %v956_v48, 0.0  ;;  %v7046_v60 = vld [vmem:[#allocation5_spill] sm:$0xff] }
 0x146   :  { %v476_v25 = vadd.f32 %v3763_v8, %v5323_v53  ;;  %v470_v19 = vpop.f32.mrb[39].mxu0  ;;  %v1177_v0 = vmin.f32 %v1033_v51, 6.0  ;;  %v2366_v35 = vmul.f32 %v5826_v44, %v2183_v43  ;;  %v1180_v50 = vmin.f32 %v1036_v13, 6.0 }
 0x147   :  { %v5836_v62 = vpop.permute.xlu1 %1958  ;;  %v5838_v5 = vpop.permute.xlu0 %1953  ;;  %v2186_v33 = vmul.f32 %v7045_v11, %v1178_v49  ;;  %v5843_v58 = vadd.f32 %v2367_v59, %v5612_v45  ;;  %v1179_v8 = vmin.f32 %v1035_v7, 6.0  ;;  %v1278_v37 = vmin.f32 %v1134_v52, 6.0 }
 0x148   :  { %7043 = vst [vmem:[#allocation80_spill] sm:$0xff] %v5836_v62  ;;  %7044 = vst [vmem:[#allocation81_spill] sm:$0xff] %v5838_v5  ;;  %v1038_v63 = vmax.f32 %v476_v25, 0.0  ;;  %v2185_v31 = vmul.f32 %v7046_v60, %v1177_v0  ;;  %v5847_v2 = vadd.f32 %v2366_v35, %v5618_v6  ;;  %v7047_v5 = vld [vmem:[#allocation12_spill] sm:$0xff]  ;;  %v7048_v25 = vld [vmem:[#allocation13_spill] sm:$0xff]  ;;  %v951_v45 = vadd.f32 %v5323_v53, %v5695_v40 }
 0x149   :  { %v3766_v51 = vpop.f32.mrb[40].mxu0  ;;  %v2369_v48 = vmul.f32 %v5826_v44, %v2186_v33  ;;  %v2188_v62 = vmul.f32 %v7047_v5, %v1180_v50  ;;  %v2187_v49 = vmul.f32 %v7048_v25, %v1179_v8  ;;  %v471_v59 = vadd.f32 %v5323_v53, %v470_v19  ;;  %v7049_v35 = vld [vmem:[#allocation22_spill] sm:$0xff] }
 0x14a   :  { %v1182_v43 = vmin.f32 %v1038_v63, 6.0  ;;  %v480_v47 = vpop.f32.mrb[41].mxu0  ;;  %v2368_v13 = vmul.f32 %v5826_v44, %v2185_v31  ;;  %v486_v5 = vadd.f32 %v3766_v51, %v5323_v53  ;;  %v1133_v63 = vmax.f32 %v951_v45, 0.0 }
 0x14b   :  { %v2109_v52 = vpop.permute.xlu1 %2108  ;;  %v2104_v0 = vpop.permute.xlu0 %2103  ;;  %v5857_v6 = vadd.f32 %v2369_v48, %v5638_v29  ;;  %v2371_v7 = vmul.f32 %v5826_v44, %v2188_v62  ;;  %v2370_v33 = vmul.f32 %v5826_v44, %v2187_v49  ;;  %v1037_v40 = vmax.f32 %v471_v59, 0.0 }
 0x14c   :  { %v2190_v50 = vmul.f32 %v7049_v35, %v1182_v43  ;;  %v5863_v11 = vadd.f32 %v2368_v13, %v5649_v55  ;;  %v1040_v31 = vmax.f32 %v486_v5, 0.0  ;;  %v481_v62 = vadd.f32 %v5323_v53, %v480_v47  ;;  %v7050_v47 = vld [vmem:[#allocation23_spill] sm:$0xff] }
 0x14d   :  { %v3769_v60 = vpop.f32.mrb[42].mxu0  ;;  %v5867_v19 = vadd.f32 %v2371_v7, %v5662_v10  ;;  %v5872_v48 = vadd.f32 %v2370_v33, %v5667_v28  ;;  %v1277_v51 = vmin.f32 %v1133_v63, 6.0  ;;  %v1181_v55 = vmin.f32 %v1037_v40, 6.0  ;;  %v7052_v40 = vld [vmem:[#allocation59_spill] sm:$0xff] }
 0x14e   :  { %v2373_v29 = vmul.f32 %v5826_v44, %v2190_v50  ;;  %v490_v8 = vpop.f32.mrb[43].mxu0  ;;  %v5874_v43 = vmul.f32 %v2109_v52, %v1278_v37  ;;  %v1184_v10 = vmin.f32 %v1040_v31, 6.0  ;;  %v1039_v45 = vmax.f32 %v481_v62, 0.0  ;;  %v7051_v37 = vld [vmem:[#allocation34_spill] sm:$0xff] }
 0x14f   :  { %v1509_v13 = vpop.permute.xlu1 %1508  ;;  %v1504_v25 = vpop.permute.xlu0 %1503  ;;  %v496_v59 = vadd.f32 %v3769_v60, %v5323_v53  ;;  %v1127_v7 = vmax.f32 %v5761_v12, 0.0  ;;  %v2189_v35 = vmul.f32 %v7050_v47, %v1181_v55  ;;  %v5882_v50 = vmul.f32 %v2104_v0, %v1277_v51 }
 0x150   :  { %v5877_v49 = vadd.f32 %v2373_v29, %v5693_v16  ;;  %v491_v28 = vadd.f32 %v5323_v53, %v490_v8  ;;  %v2192_v52 = vmul.f32 %v7051_v37, %v1184_v10  ;;  %v1183_v33 = vmin.f32 %v1039_v45, 6.0  ;;  %v7056_v45 = vld [vmem:[#allocation35_spill] sm:$0xff] }
 0x151   :  { %v3772_v5 = vpop.f32.mrb[44].mxu0  ;;  %v1042_v63 = vmax.f32 %v496_v59, 0.0  ;;  %v2166_v16 = vmul.f32 %v1509_v13, %v7052_v40  ;;  %v7053_v31 = vmax.f32 %v5782_v15, 0.0  ;;  %v2372_v60 = vmul.f32 %v5826_v44, %v2189_v35  ;;  %v7058_v40 = vld [vmem:[#allocation53_spill] sm:$0xff] }
 0x152   :  { %v500_v29 = vpop.f32.mrb[45].mxu0  ;;  %v1041_v12 = vmax.f32 %v491_v28, 0.0  ;;  %v2165_v55 = vmul.f32 %v1504_v25, %v7054_v30  ;;  %v7055_v53 = vmax.f32 %v5794_v38, 0.0  ;;  %v2375_v10 = vmul.f32 %v5826_v44, %v2192_v52  ;;  %v5902_v30 = vld [vmem:[%s6945_s3] ss:$0 sm:$0xff]  ;;  %v7057_v52 = vld [vmem:[#allocation52_spill] sm:$0xff] }
 0x153   :  { %v1174_v62 = vmin.f32 %v7053_v31, 6.0  ;;  %v1589_v0 = vpop.permute.xlu1 %1588  ;;  %v1584_v51 = vpop.permute.xlu0 %1583  ;;  %v2191_v59 = vmul.f32 %v7056_v45, %v1183_v33  ;;  %v1186_v47 = vmin.f32 %v1042_v63, 6.0  ;;  %v5896_v13 = vadd.f32 %v2372_v60, %v5716_v42 }
 0x154   :  { %v1173_v8 = vmin.f32 %v7055_v53, 6.0  ;;  %v1185_v15 = vmin.f32 %v1041_v12, 6.0  ;;  %v2317_v37 = vmul.f32 %v5367_v61, %v2166_v16  ;;  %v506_v25 = vadd.f32 %v5902_v30, %v3772_v5 }
 0x155   :  { %v3775_v38 = vpop.f32.mrb[46].mxu0  ;;  %v5906_v35 = vadd.f32 %v2375_v10, %v5738_v41  ;;  %v2374_v28 = vmul.f32 %v5826_v44, %v2191_v59  ;;  %v2194_v33 = vmul.f32 %v7057_v52, %v1186_v47  ;;  %v501_v42 = vadd.f32 %v5902_v30, %v500_v29 }
 0x156   :  { %v510_v63 = vpop.f32.mrb[47].mxu0  ;;  %v2193_v16 = vmul.f32 %v7058_v40, %v1185_v15  ;;  %v1044_v31 = vmax.f32 %v506_v25, 0.0  ;;  %v2182_v60 = vmul.f32 %v1589_v0, %v1174_v62  ;;  %v2181_v12 = vmul.f32 %v1584_v51, %v1173_v8 }
 0x157   :  { %v5912_v53 = vpop.permute.xlu1 %1738  ;;  %v5914_v45 = vpop.permute.xlu0 %1733  ;;  %v5917_v5 = vadd.f32 %v2374_v28, %v5747_v34  ;;  %v2377_v41 = vmul.f32 %v5826_v44, %v2194_v33  ;;  %v2316_v10 = vmul.f32 %v5367_v61, %v2165_v55  ;;  %v1043_v59 = vmax.f32 %v501_v42, 0.0 }
 0x158   :  { %v2376_v29 = vmul.f32 %v5826_v44, %v2193_v16  ;;  %v1188_v47 = vmin.f32 %v1044_v31, 6.0  ;;  %v2341_v15 = vmul.f32 %v5578_v39, %v2182_v60  ;;  %v2340_v62 = vmul.f32 %v5578_v39, %v2181_v12 }
 0x159   :  { %v3778_v0 = vpop.f32.mrb[48].mxu0  ;;  %v5925_v51 = vadd.f32 %v2377_v41, %v5790_v3  ;;  %v1187_v8 = vmin.f32 %v1043_v59, 6.0  ;;  %v516_v34 = vadd.f32 %v5902_v30, %v3775_v38  ;;  %v511_v25 = vadd.f32 %v5902_v30, %v510_v63 }
 0x15a   :  { %v520_v28 = vpop.f32.mrb[49].mxu0  ;;  %v5930_v61 = vadd.f32 %v2376_v29, %v5798_v26  ;;  %v2196_v55 = vmul.f32 %v5785_v46, %v1188_v47  ;;  %v5933_v52 = vadd.f32 %v2341_v15, %v2317_v37  ;;  %v5935_v33 = vadd.f32 %v2340_v62, %v2316_v10 }
 0x15b   :  { %v5937_v39 = vpop.permute.xlu1 %1888  ;;  %v5939_v42 = vpop.permute.xlu0 %1883  ;;  %v7061_v3 = vmax.f32 %v5690_v20, 0.0  ;;  %v7062_v38 = vmax.f32 %v5713_v36, 0.0  ;;  %v2195_v26 = vmul.f32 %v5787_v27, %v1187_v8  ;;  %v526_v46 = vadd.f32 %v5902_v30, %v3778_v0 }
 0x15c   :  { %7059 = vst [vmem:[#allocation4_spill] sm:$0xff] %v5937_v39  ;;  %7060 = vst [vmem:[#allocation5_spill] sm:$0xff] %v5939_v42  ;;  %v7063_v37 = vmax.f32 %v5735_v32, 0.0  ;;  %v1271_v31 = vmin.f32 %v1127_v7, 6.0  ;;  %v2379_v60 = vmul.f32 %v5826_v44, %v2196_v55  ;;  %v521_v12 = vadd.f32 %v5902_v30, %v520_v28 }
 0x15d   :  { %v5943_v40 = vmin.f32 %v7061_v3, 6.0  ;;  %v5947_v63 = vmin.f32 %v7062_v38, 6.0  ;;  %v3781_v41 = vpop.f32.mrb[50].mxu0  ;;  %v2378_v20 = vmul.f32 %v5826_v44, %v2195_v26  ;;  %v1046_v10 = vmax.f32 %v516_v34, 0.0  ;;  %v7066_v3 = vld [vmem:[#allocation28_spill] sm:$0xff]  ;;  %v7067_v38 = vld [vmem:[#allocation29_spill] sm:$0xff] }
 0x15e   :  { %v1272_v16 = vmin.f32 %v7063_v37, 6.0  ;;  %v1048_v59 = vmax.f32 %v526_v46, 0.0  ;;  %v536_v36 = vadd.f32 %v5902_v30, %v3781_v41  ;;  %v530_v29 = vpop.f32.mrb[51].mxu0  ;;  %v5958_v27 = vadd.f32 %v2379_v60, %v5806_v1  ;;  %v5977_v26 = vld [vmem:[%s6946_s4 + $0x3] ss:$0 sm:$0xff] }
 0x15f   :  { %v1045_v47 = vmax.f32 %v511_v25, 0.0  ;;  %v1047_v15 = vmax.f32 %v521_v12, 0.0  ;;  %v531_v32 = vadd.f32 %v5902_v30, %v530_v29  ;;  %v5961_v7 = vpop.permute.xlu1 %2038  ;;  %v5963_v62 = vpop.permute.xlu0 %2033  ;;  %v7064_v0 = vmax.f32 %v5727_v4, 0.0  ;;  %v7068_v12 = vld [vmem:[#allocation2_spill] sm:$0xff] }
 0x160   :  { %v5970_v34 = vadd.f32 %v2378_v20, %v5814_v56  ;;  %v1192_v28 = vmin.f32 %v1048_v59, 6.0  ;;  %v1050_v55 = vmax.f32 %v536_v36, 0.0  ;;  %v2280_v1 = vmul.f32 %v7066_v3, %v1272_v16  ;;  %v7069_v36 = vld [vmem:[#allocation3_spill] sm:$0xff] }
 0x161   :  { %v5967_v8 = vmin.f32 %v7064_v0, 6.0  ;;  %v2279_v25 = vmul.f32 %v7067_v38, %v1271_v31  ;;  %v1191_v46 = vmin.f32 %v1047_v15, 6.0  ;;  %v1049_v37 = vmax.f32 %v531_v32, 0.0  ;;  %v3784_v60 = vpop.f32.mrb[52].mxu0  ;;  %v7070_v15 = vld [vmem:[#allocation8_spill] sm:$0xff] }
 0x162   :  { %v1190_v4 = vmin.f32 %v1046_v10, 6.0  ;;  %v2200_v41 = vmul.f32 %v7068_v12, %v1192_v28  ;;  %v1194_v29 = vmin.f32 %v1050_v55, 6.0  ;;  %v546_v56 = vadd.f32 %v5902_v30, %v3784_v60  ;;  %v540_v20 = vpop.f32.mrb[53].mxu0  ;;  %v7071_v55 = vld [vmem:[#allocation9_spill] sm:$0xff] }
 0x163   :  { %7065 = vst [vmem:[#allocation12_spill] sm:$0xff] %v5967_v8  ;;  %v1189_v59 = vmin.f32 %v1045_v47, 6.0  ;;  %v2199_v16 = vmul.f32 %v7069_v36, %v1191_v46  ;;  %v1193_v0 = vmin.f32 %v1049_v37, 6.0  ;;  %v541_v31 = vadd.f32 %v5902_v30, %v540_v20  ;;  %v1669_v3 = vpop.permute.xlu1 %1668  ;;  %v1664_v38 = vpop.permute.xlu0 %1663 }
 0x164   :  { %v2407_v42 = vmul.f32 %v5977_v26, %v2200_v41  ;;  %v2202_v32 = vmul.f32 %v7070_v15, %v1194_v29  ;;  %v1052_v39 = vmax.f32 %v546_v56, 0.0  ;;  %v2198_v10 = vmul.f32 %v1669_v3, %v1190_v4  ;;  %v5995_v4 = vld [vmem:[%s6946_s4 + $0x8] ss:$0 sm:$0xff] }
 0x165   :  { %v2406_v28 = vmul.f32 %v5977_v26, %v2199_v16  ;;  %v2201_v12 = vmul.f32 %v7071_v55, %v1193_v0  ;;  %v1051_v60 = vmax.f32 %v541_v31, 0.0  ;;  %v2197_v8 = vmul.f32 %v1664_v38, %v1189_v59  ;;  %v3787_v47 = vpop.f32.mrb[54].mxu0  ;;  %v7072_v0 = vld [vmem:[#allocation18_spill] sm:$0xff]  ;;  %v7073_v15 = vld [vmem:[#allocation19_spill] sm:$0xff] }
 0x166   :  { %v5988_v46 = vadd.f32 %v2407_v42, %v5843_v58  ;;  %v2409_v37 = vmul.f32 %v5977_v26, %v2202_v32  ;;  %v1196_v20 = vmin.f32 %v1052_v39, 6.0  ;;  %v2381_v36 = vmul.f32 %v5826_v44, %v2198_v10  ;;  %v550_v41 = vpop.f32.mrb[55].mxu0 }
 0x167   :  { %v5998_v29 = vadd.f32 %v2406_v28, %v5847_v2  ;;  %v2408_v56 = vmul.f32 %v5977_v26, %v2201_v12  ;;  %v1195_v59 = vmin.f32 %v1051_v60, 6.0  ;;  %v2380_v58 = vmul.f32 %v5826_v44, %v2197_v8  ;;  %v6002_v42 = vpop.permute.xlu1 %1818  ;;  %v6004_v16 = vpop.permute.xlu0 %1813 }
 0x168   :  { %v6007_v39 = vadd.f32 %v2409_v37, %v5857_v6  ;;  %v2204_v31 = vmul.f32 %v7072_v0, %v1196_v20  ;;  %v6011_v3 = vadd.f32 %v2381_v36, %v5933_v52  ;;  %v556_v2 = vadd.f32 %v5902_v30, %v3787_v47 }
 0x169   :  { %v6015_v38 = vadd.f32 %v2408_v56, %v5863_v11  ;;  %v2203_v32 = vmul.f32 %v7073_v15, %v1195_v59  ;;  %v6019_v44 = vadd.f32 %v2380_v58, %v5935_v33  ;;  %v551_v8 = vadd.f32 %v5902_v30, %v550_v41  ;;  %v3790_v10 = vpop.f32.mrb[56].mxu0 }
 0x16a   :  { %v6023_v6 = vmul.f32 %v5995_v4, %v2280_v1  ;;  %v2411_v28 = vmul.f32 %v5977_v26, %v2204_v31  ;;  %v1054_v52 = vmax.f32 %v556_v2, 0.0  ;;  %v566_v55 = vadd.f32 %v5902_v30, %v3790_v10  ;;  %v560_v12 = vpop.f32.mrb[57].mxu0  ;;  %v7079_v10 = vld [vmem:[#allocation31_spill] sm:$0xff] }
 0x16b   :  { %v6028_v11 = vmul.f32 %v5995_v4, %v2279_v25  ;;  %v2410_v60 = vmul.f32 %v5977_v26, %v2203_v32  ;;  %v1053_v47 = vmax.f32 %v551_v8, 0.0  ;;  %v561_v33 = vadd.f32 %v5902_v30, %v560_v12  ;;  %v6032_v37 = vpop.permute.xlu1 %1968  ;;  %v6034_v20 = vpop.permute.xlu0 %1963 }
 0x16c   :  { %v6038_v1 = vmul.f32 %v5995_v4, %v5700_v24  ;;  %v6041_v36 = vadd.f32 %v2411_v28, %v5867_v19  ;;  %v1198_v41 = vmin.f32 %v1054_v52, 6.0  ;;  %v1056_v56 = vmax.f32 %v566_v55, 0.0  ;;  %v7077_v24 = vld [vmem:[#allocation30_spill] sm:$0xff] }
 0x16d   :  { %v6045_v25 = vmul.f32 %v5995_v4, %v5720_v57  ;;  %v6048_v59 = vadd.f32 %v2410_v60, %v5872_v48  ;;  %v1197_v58 = vmin.f32 %v1053_v47, 6.0  ;;  %v1055_v0 = vmax.f32 %v561_v33, 0.0  ;;  %v3793_v31 = vpop.f32.mrb[58].mxu0  ;;  %v7082_v33 = vld [vmem:[#allocation44_spill] sm:$0xff] }
 0x16e   :  { %7074 = vst [vmem:[#allocation13_spill] sm:$0xff] %v6038_v1  ;;  %v6052_v2 = vmul.f32 %v5995_v4, %v5766_v18  ;;  %v2206_v15 = vmul.f32 %v7077_v24, %v1198_v41  ;;  %v1200_v19 = vmin.f32 %v1056_v56, 6.0  ;;  %v576_v32 = vadd.f32 %v5902_v30, %v3793_v31  ;;  %v570_v8 = vpop.f32.mrb[59].mxu0  ;;  %v7080_v18 = vld [vmem:[#allocation49_spill] sm:$0xff]  ;;  %v7113_v1 = vld [vmem:[#allocation76_spill] sm:$0xff] }
 0x16f   :  { %7075 = vst [vmem:[#allocation22_spill] sm:$0xff] %v6045_v25  ;;  %v6058_v57 = vmul.f32 %v5995_v4, %v5774_v22  ;;  %v2205_v48 = vmul.f32 %v7079_v10, %v1197_v58  ;;  %v1199_v28 = vmin.f32 %v1055_v0, 6.0  ;;  %v571_v52 = vadd.f32 %v5902_v30, %v570_v8  ;;  %v6062_v55 = vpop.permute.xlu1 %2118  ;;  %v6064_v12 = vpop.permute.xlu0 %2113  ;;  %v7083_v0 = vld [vmem:[#allocation45_spill] sm:$0xff] }
 0x170   :  { %7076 = vst [vmem:[#allocation23_spill] sm:$0xff] %v6052_v2  ;;  %v6068_v60 = vmul.f32 %v7080_v18, %v5802_v21  ;;  %v2413_v47 = vmul.f32 %v5977_v26, %v2206_v15  ;;  %v2208_v41 = vmul.f32 %v7082_v33, %v1200_v19  ;;  %v1058_v56 = vmax.f32 %v576_v32, 0.0 }
 0x171   :  { %7078 = vst [vmem:[#allocation34_spill] sm:$0xff] %v6058_v57  ;;  %v2412_v22 = vmul.f32 %v5977_v26, %v2205_v48  ;;  %v966_v58 = vadd.f32 %v5902_v30, %v5722_v9  ;;  %v2207_v31 = vmul.f32 %v7083_v0, %v1199_v28  ;;  %v1057_v24 = vmax.f32 %v571_v52, 0.0  ;;  %v3796_v8 = vpop.f32.mrb[60].mxu0 }
 0x172   :  { %7081 = vst [vmem:[#allocation59_spill] sm:$0xff] %v6068_v60  ;;  %v6078_v10 = vmul.f32 %v7080_v18, %v5809_v23  ;;  %v6081_v21 = vadd.f32 %v2413_v47, %v5877_v49  ;;  %v2415_v15 = vmul.f32 %v5977_v26, %v2208_v41  ;;  %v1202_v19 = vmin.f32 %v1058_v56, 6.0  ;;  %v580_v32 = vpop.f32.mrb[61].mxu0  ;;  %v7109_v60 = vld [vmem:[#allocation57_spill] sm:$0xff] }
 0x173   :  { %v6086_v48 = vmul.f32 %v5995_v4, %v5874_v43  ;;  %v6089_v9 = vadd.f32 %v2412_v22, %v5896_v13  ;;  %v2414_v28 = vmul.f32 %v5977_v26, %v2207_v31  ;;  %v1201_v52 = vmin.f32 %v1057_v24, 6.0  ;;  %v1749_v33 = vpop.permute.xlu1 %1748  ;;  %v1744_v22 = vpop.permute.xlu0 %1743  ;;  %v7087_v31 = vld [vmem:[#allocation65_spill] sm:$0xff] }
 0x174   :  { %7084 = vst [vmem:[#allocation63_spill] sm:$0xff] %v6078_v10  ;;  %v6094_v23 = vmul.f32 %v5995_v4, %v5882_v50  ;;  %v6097_v49 = vadd.f32 %v2415_v15, %v5906_v35  ;;  %v2210_v18 = vmul.f32 %v5702_v54, %v1202_v19  ;;  %v586_v47 = vadd.f32 %v5902_v30, %v3796_v8  ;;  %v7088_v8 = vld [vmem:[#allocation66_spill] sm:$0xff] }
 0x175   :  { %7085 = vst [vmem:[#allocation35_spill] sm:$0xff] %v6086_v48  ;;  %v1136_v43 = vmax.f32 %v966_v58, 0.0  ;;  %v6102_v41 = vadd.f32 %v2414_v28, %v5917_v5  ;;  %v2209_v13 = vmul.f32 %v5704_v14, %v1201_v52  ;;  %v581_v56 = vadd.f32 %v5902_v30, %v580_v32  ;;  %v3799_v0 = vpop.f32.mrb[62].mxu0  ;;  %v7098_v48 = vld [vmem:[#allocation15_spill] sm:$0xff] }
 0x176   :  { %7086 = vst [vmem:[#allocation52_spill] sm:$0xff] %v6094_v23  ;;  %v2272_v50 = vmul.f32 %v5961_v7, %v7087_v31  ;;  %v2417_v35 = vmul.f32 %v5977_v26, %v2210_v18  ;;  %v1060_v24 = vmax.f32 %v586_v47, 0.0  ;;  %v596_v54 = vadd.f32 %v5902_v30, %v3799_v0  ;;  %v590_v15 = vpop.f32.mrb[63].mxu0 }
 0x177   :  { %v2271_v58 = vmul.f32 %v5963_v62, %v7088_v8  ;;  %v2416_v5 = vmul.f32 %v5977_v26, %v2209_v13  ;;  %v1059_v19 = vmax.f32 %v581_v56, 0.0  ;;  %v591_v14 = vadd.f32 %v5902_v30, %v590_v15  ;;  %v6114_v32 = vpop.permute.xlu1 %1898  ;;  %v6127_v56 = vld [vmem:[%s6946_s4 + $0x7] ss:$0 sm:$0xff]  ;;  %v6138_v8 = vpop.permute.xlu0 %1893 }
 0x178   :  { %v961_v28 = vadd.f32 %v5902_v30, %v5731_v17  ;;  %v6119_v7 = vadd.f32 %v2417_v35, %v5925_v51  ;;  %v1204_v52 = vmin.f32 %v1060_v24, 6.0  ;;  %v1062_v18 = vmax.f32 %v596_v54, 0.0 }
 0x179   :  { %v1280_v47 = vmin.f32 %v1136_v43, 6.0  ;;  %v6122_v0 = vadd.f32 %v2416_v5, %v5930_v61  ;;  %v1203_v62 = vmin.f32 %v1059_v19, 6.0  ;;  %v1061_v31 = vmax.f32 %v591_v14, 0.0  ;;  %v3802_v13 = vpop.f32.mrb[64].mxu0 }
 0x17a   :  { %v6130_v15 = vmul.f32 %v6127_v56, %v2272_v50  ;;  %v2212_v17 = vmul.f32 %v5912_v53, %v1204_v52  ;;  %v1206_v51 = vmin.f32 %v1062_v18, 6.0  ;;  %v606_v35 = vadd.f32 %v5902_v30, %v3802_v13  ;;  %v600_v43 = vpop.f32.mrb[65].mxu0  ;;  %v7091_v53 = vld [vmem:[#allocation40_spill] sm:$0xff] }
 0x17b   :  { %v6135_v61 = vmul.f32 %v6127_v56, %v2271_v58  ;;  %v2211_v24 = vmul.f32 %v5914_v45, %v1203_v62  ;;  %v1205_v54 = vmin.f32 %v1061_v31, 6.0  ;;  %v601_v5 = vadd.f32 %v5902_v30, %v600_v43  ;;  %v6150_v62 = vld [vmem:[%s6946_s4 + $0x6] ss:$0 sm:$0xff] }
 0x17c   :  { %7089 = vst [vmem:[#allocation53_spill] sm:$0xff] %v6130_v15  ;;  %v1135_v19 = vmax.f32 %v961_v28, 0.0  ;;  %v2419_v50 = vmul.f32 %v5977_v26, %v2212_v17  ;;  %v2214_v14 = vmul.f32 %v1749_v33, %v1206_v51  ;;  %v1064_v15 = vmax.f32 %v606_v35, 0.0 }
 0x17d   :  { %7090 = vst [vmem:[#allocation28_spill] sm:$0xff] %v6135_v61  ;;  %v2258_v52 = vmul.f32 %v6032_v37, %v7091_v53  ;;  %v2418_v18 = vmul.f32 %v5977_v26, %v2211_v24  ;;  %v2213_v13 = vmul.f32 %v1744_v22, %v1205_v54  ;;  %v1063_v58 = vmax.f32 %v601_v5, 0.0  ;;  %v6145_v61 = vpop.permute.xlu1 %2048  ;;  %v3805_v45 = vpop.f32.mrb[66].mxu0  ;;  %v7092_v37 = vld [vmem:[#allocation72_spill] sm:$0xff]  ;;  %v7093_v22 = vld [vmem:[#allocation41_spill] sm:$0xff]  ;;  %v7094_v5 = vld [vmem:[#allocation6_spill] sm:$0xff] }
 0x17e   :  { %v6153_v28 = vadd.f32 %v2419_v50, %v5958_v27  ;;  %v2421_v33 = vmul.f32 %v5977_v26, %v2214_v14  ;;  %v1208_v31 = vmin.f32 %v1064_v15, 6.0  ;;  %v610_v17 = vpop.f32.mrb[67].mxu0  ;;  %v976_v51 = vadd.f32 %v5902_v30, %v7092_v37  ;;  %v6167_v27 = vld [vmem:[%s6946_s4 + $0x4] ss:$0 sm:$0xff]  ;;  %v6182_v37 = vpop.permute.xlu0 %2043 }
 0x17f   :  { %v2257_v35 = vmul.f32 %v6034_v20, %v7093_v22  ;;  %v6161_v43 = vadd.f32 %v2418_v18, %v5970_v34  ;;  %v2420_v24 = vmul.f32 %v5977_v26, %v2213_v13  ;;  %v1207_v54 = vmin.f32 %v1063_v58, 6.0  ;;  %v7095_v18 = vld [vmem:[#allocation7_spill] sm:$0xff] }
 0x180   :  { %v6170_v15 = vadd.f32 %v2421_v33, %v6011_v3  ;;  %v2216_v50 = vmul.f32 %v7094_v5, %v1208_v31  ;;  %v616_v14 = vadd.f32 %v5902_v30, %v3805_v45  ;;  %v611_v20 = vadd.f32 %v5902_v30, %v610_v17 }
 0x181   :  { %v1279_v53 = vmin.f32 %v1135_v19, 6.0  ;;  %v6176_v34 = vmul.f32 %v6150_v62, %v2258_v52  ;;  %v6179_v26 = vadd.f32 %v2420_v24, %v6019_v44  ;;  %v2215_v13 = vmul.f32 %v7095_v18, %v1207_v54  ;;  %v3808_v58 = vpop.f32.mrb[68].mxu0  ;;  %v6191_v17 = vpop.permute.xlu1 %1828 }
 0x182   :  { %v2447_v3 = vmul.f32 %v6167_v27, %v2216_v50  ;;  %v1066_v33 = vmax.f32 %v616_v14, 0.0  ;;  %v1065_v31 = vmax.f32 %v611_v20, 0.0  ;;  %v626_v45 = vadd.f32 %v5902_v30, %v3808_v58  ;;  %v620_v22 = vpop.f32.mrb[69].mxu0  ;;  %v7097_v58 = vld [vmem:[#allocation14_spill] sm:$0xff] }
 0x183   :  { %v6187_v19 = vmul.f32 %v6150_v62, %v2257_v35  ;;  %v2288_v52 = vmul.f32 %v6062_v55, %v1280_v47  ;;  %v2446_v44 = vmul.f32 %v6167_v27, %v2215_v13  ;;  %v621_v24 = vadd.f32 %v5902_v30, %v620_v22  ;;  %v7096_v35 = vld [vmem:[#allocation73_spill] sm:$0xff] }
 0x184   :  { %v6195_v54 = vadd.f32 %v2447_v3, %v5988_v46  ;;  %v1210_v5 = vmin.f32 %v1066_v33, 6.0  ;;  %v1209_v50 = vmin.f32 %v1065_v31, 6.0  ;;  %v1068_v14 = vmax.f32 %v626_v45, 0.0 }
 0x185   :  { %v2287_v20 = vmul.f32 %v6064_v12, %v1279_v53  ;;  %v6199_v18 = vadd.f32 %v2446_v44, %v5998_v29  ;;  %v971_v55 = vadd.f32 %v5902_v30, %v7096_v35  ;;  %v1067_v47 = vmax.f32 %v621_v24, 0.0  ;;  %v3811_v13 = vpop.f32.mrb[70].mxu0  ;;  %v6209_v12 = vpop.permute.xlu0 %1823  ;;  %v7100_v24 = vld [vmem:[#allocation24_spill] sm:$0xff]  ;;  %v7102_v35 = vld [vmem:[#allocation25_spill] sm:$0xff] }
 0x186   :  { %v2218_v23 = vmul.f32 %v7097_v58, %v1210_v5  ;;  %v2217_v22 = vmul.f32 %v7098_v48, %v1209_v50  ;;  %v1212_v10 = vmin.f32 %v1068_v14, 6.0  ;;  %v636_v46 = vadd.f32 %v5902_v30, %v3811_v13  ;;  %v630_v3 = vpop.f32.mrb[71].mxu0  ;;  %v6219_v13 = vpop.permute.xlu1 %1978 }
 0x187   :  { %v6207_v33 = vmul.f32 %v5995_v4, %v2288_v52  ;;  %v1138_v29 = vmax.f32 %v976_v51, 0.0  ;;  %v1211_v53 = vmin.f32 %v1067_v47, 6.0  ;;  %v631_v31 = vadd.f32 %v5902_v30, %v630_v3 }
 0x188   :  { %v2449_v45 = vmul.f32 %v6167_v27, %v2218_v23  ;;  %v2448_v44 = vmul.f32 %v6167_v27, %v2217_v22  ;;  %v2220_v5 = vmul.f32 %v7100_v24, %v1212_v10  ;;  %v1070_v48 = vmax.f32 %v636_v46, 0.0 }
 0x189   :  { %7099 = vst [vmem:[#allocation29_spill] sm:$0xff] %v6207_v33  ;;  %v6216_v50 = vmul.f32 %v5995_v4, %v2287_v20  ;;  %v1137_v14 = vmax.f32 %v971_v55, 0.0  ;;  %v2219_v52 = vmul.f32 %v7102_v35, %v1211_v53  ;;  %v1069_v58 = vmax.f32 %v631_v31, 0.0  ;;  %v3814_v51 = vpop.f32.mrb[72].mxu0  ;;  %v7103_v53 = vld [vmem:[#allocation74_spill] sm:$0xff] }
 0x18a   :  { %v6222_v47 = vadd.f32 %v2449_v45, %v6007_v39  ;;  %v6225_v23 = vadd.f32 %v2448_v44, %v6015_v38  ;;  %v2451_v22 = vmul.f32 %v6167_v27, %v2220_v5  ;;  %v1214_v10 = vmin.f32 %v1070_v48, 6.0  ;;  %v640_v46 = vpop.f32.mrb[73].mxu0  ;;  %v7104_v39 = vld [vmem:[#allocation36_spill] sm:$0xff]  ;;  %v7105_v5 = vld [vmem:[#allocation67_spill] sm:$0xff] }
 0x18b   :  { %7101 = vst [vmem:[#allocation2_spill] sm:$0xff] %v6216_v50  ;;  %v6228_v3 = vmin.f32 %v1138_v29, 6.0  ;;  %v2450_v20 = vmul.f32 %v6167_v27, %v2219_v52  ;;  %v1213_v55 = vmin.f32 %v1069_v58, 6.0  ;;  %v986_v24 = vadd.f32 %v5902_v30, %v7103_v53  ;;  %v1974_v52 = vpop.permute.xlu0 %1973  ;;  %v7106_v58 = vld [vmem:[#allocation37_spill] sm:$0xff] }
 0x18c   :  { %v6234_v31 = vadd.f32 %v2451_v22, %v6041_v36  ;;  %v2222_v45 = vmul.f32 %v7104_v39, %v1214_v10  ;;  %v646_v38 = vadd.f32 %v5902_v30, %v3814_v51  ;;  %v641_v44 = vadd.f32 %v5902_v30, %v640_v46  ;;  %v7107_v39 = vld [vmem:[#allocation68_spill] sm:$0xff] }
 0x18d   :  { %v2274_v48 = vmul.f32 %v6145_v61, %v7105_v5  ;;  %v1281_v29 = vmin.f32 %v1137_v14, 6.0  ;;  %v6242_v35 = vadd.f32 %v2450_v20, %v6048_v59  ;;  %v2221_v50 = vmul.f32 %v7106_v58, %v1213_v55  ;;  %v3817_v53 = vpop.f32.mrb[74].mxu0  ;;  %v2129_v14 = vpop.permute.xlu1 %2128 }
 0x18e   :  { %v2453_v36 = vmul.f32 %v6167_v27, %v2222_v45  ;;  %v1072_v22 = vmax.f32 %v646_v38, 0.0  ;;  %v1071_v33 = vmax.f32 %v641_v44, 0.0  ;;  %v656_v10 = vadd.f32 %v5902_v30, %v3817_v53  ;;  %v650_v51 = vpop.f32.mrb[75].mxu0 }
 0x18f   :  { %v2273_v46 = vmul.f32 %v6182_v37, %v7107_v39  ;;  %v2452_v61 = vmul.f32 %v6167_v27, %v2221_v50  ;;  %v651_v59 = vadd.f32 %v5902_v30, %v650_v51  ;;  %v1140_v20 = vmax.f32 %v986_v24, 0.0  ;;  %v7108_v39 = vld [vmem:[#allocation75_spill] sm:$0xff]  ;;  %v7110_v24 = vld [vmem:[#allocation58_spill] sm:$0xff] }
 0x190   :  { %v6252_v5 = vadd.f32 %v2453_v36, %v6081_v21  ;;  %v1216_v55 = vmin.f32 %v1072_v22, 6.0  ;;  %v1215_v58 = vmin.f32 %v1071_v33, 6.0  ;;  %v1074_v45 = vmax.f32 %v656_v10, 0.0 }
 0x191   :  { %v6255_v38 = vmul.f32 %v6127_v56, %v2274_v48  ;;  %v6258_v44 = vadd.f32 %v2452_v61, %v6089_v9  ;;  %v1073_v53 = vmax.f32 %v651_v59, 0.0  ;;  %v3820_v37 = vpop.f32.mrb[76].mxu0  ;;  %v981_v50 = vadd.f32 %v5902_v30, %v7108_v39  ;;  %v2124_v48 = vpop.permute.xlu0 %2123 }
 0x192   :  { %v2224_v51 = vmul.f32 %v7109_v60, %v1216_v55  ;;  %v2223_v57 = vmul.f32 %v7110_v24, %v1215_v58  ;;  %v1218_v21 = vmin.f32 %v1074_v45, 6.0  ;;  %v666_v36 = vadd.f32 %v5902_v30, %v3820_v37  ;;  %v660_v33 = vpop.f32.mrb[77].mxu0  ;;  %v7111_v60 = vld [vmem:[#allocation78_spill] sm:$0xff]  ;;  %v6274_v45 = vpop.permute.xlu1 %1908  ;;  %v7112_v37 = vld [vmem:[#allocation79_spill] sm:$0xff] }
 0x193   :  { %v6266_v22 = vmul.f32 %v6127_v56, %v2273_v46  ;;  %v1217_v10 = vmin.f32 %v1073_v53, 6.0  ;;  %v6268_v9 = vmin.f32 %v1140_v20, 6.0  ;;  %v661_v61 = vadd.f32 %v5902_v30, %v660_v33  ;;  %v7114_v33 = vld [vmem:[#allocation42_spill] sm:$0xff] }
 0x194   :  { %v2455_v59 = vmul.f32 %v6167_v27, %v2224_v51  ;;  %v2454_v39 = vmul.f32 %v6167_v27, %v2223_v57  ;;  %v2226_v55 = vmul.f32 %v7111_v60, %v1218_v21  ;;  %v1076_v58 = vmax.f32 %v666_v36, 0.0 }
 0x195   :  { %v2225_v24 = vmul.f32 %v7112_v37, %v1217_v10  ;;  %v1139_v2 = vmax.f32 %v981_v50, 0.0  ;;  %v1075_v46 = vmax.f32 %v661_v61, 0.0  ;;  %v3823_v25 = vpop.f32.mrb[78].mxu0  ;;  %v996_v20 = vadd.f32 %v5902_v30, %v7113_v1  ;;  %v7115_v10 = vld [vmem:[#allocation43_spill] sm:$0xff] }
 0x196   :  { %v6280_v53 = vadd.f32 %v2455_v59, %v6097_v49  ;;  %v6283_v51 = vadd.f32 %v2454_v39, %v6102_v41  ;;  %v2457_v57 = vmul.f32 %v6167_v27, %v2226_v55  ;;  %v1220_v21 = vmin.f32 %v1076_v58, 6.0  ;;  %v670_v36 = vpop.f32.mrb[79].mxu0  ;;  %v6297_v58 = vpop.permute.xlu0 %1903 }
 0x197   :  { %v2260_v60 = vmul.f32 %v6219_v13, %v7114_v33  ;;  %v2259_v50 = vmul.f32 %v1974_v52, %v7115_v10  ;;  %v2456_v61 = vmul.f32 %v6167_v27, %v2225_v24  ;;  %v1219_v37 = vmin.f32 %v1075_v46, 6.0 }
 0x198   :  { %v6291_v1 = vadd.f32 %v2457_v57, %v6119_v7  ;;  %v2228_v49 = vmul.f32 %v6002_v42, %v1220_v21  ;;  %v676_v41 = vadd.f32 %v5902_v30, %v3823_v25  ;;  %v671_v59 = vadd.f32 %v5902_v30, %v670_v36 }
 0x199   :  { %v2290_v39 = vmul.f32 %v2129_v14, %v6228_v3  ;;  %v2289_v55 = vmul.f32 %v2124_v48, %v1281_v29  ;;  %v6300_v13 = vadd.f32 %v2456_v61, %v6122_v0  ;;  %v2227_v52 = vmul.f32 %v6004_v16, %v1219_v37  ;;  %v3826_v24 = vpop.f32.mrb[80].mxu0  ;;  %v2059_v29 = vpop.permute.xlu1 %2058 }
 0x19a   :  { %v2459_v7 = vmul.f32 %v6167_v27, %v2228_v49  ;;  %v1078_v46 = vmax.f32 %v676_v41, 0.0  ;;  %v1077_v57 = vmax.f32 %v671_v59, 0.0  ;;  %v686_v42 = vadd.f32 %v5902_v30, %v3826_v24  ;;  %v680_v25 = vpop.f32.mrb[81].mxu0  ;;  %v2054_v24 = vpop.permute.xlu0 %2053 }
 0x19b   :  { %v6306_v21 = vmul.f32 %v6150_v62, %v2260_v60  ;;  %v6309_v3 = vmul.f32 %v6150_v62, %v2259_v50  ;;  %v2458_v0 = vmul.f32 %v6167_v27, %v2227_v52  ;;  %v1142_v14 = vmax.f32 %v996_v20, 0.0  ;;  %v7117_v52 = vld [vmem:[#allocation69_spill] sm:$0xff] }
 0x19c   :  { %v6313_v16 = vadd.f32 %v2459_v7, %v6153_v28  ;;  %v1222_v48 = vmin.f32 %v1078_v46, 6.0  ;;  %v1221_v36 = vmin.f32 %v1077_v57, 6.0  ;;  %v1080_v33 = vmax.f32 %v686_v42, 0.0  ;;  %v7118_v57 = vld [vmem:[#allocation10_spill] sm:$0xff] }
 0x19d   :  { %v6316_v10 = vmul.f32 %v5995_v4, %v2290_v39  ;;  %v6319_v61 = vmul.f32 %v5995_v4, %v2289_v55  ;;  %v6322_v60 = vadd.f32 %v2458_v0, %v6161_v43  ;;  %v681_v50 = vadd.f32 %v5902_v30, %v680_v25  ;;  %v3829_v37 = vpop.f32.mrb[82].mxu0  ;;  %v6333_v55 = vld [vmem:[%s6946_s4 + $0x5] ss:$0 sm:$0xff]  ;;  %v1989_v25 = vpop.permute.xlu1 %1988 }
 0x19e   :  { %v6325_v49 = vmin.f32 %v1139_v2, 6.0  ;;  %v2230_v28 = vmul.f32 %v6191_v17, %v1222_v48  ;;  %v2229_v20 = vmul.f32 %v6209_v12, %v1221_v36  ;;  %v1224_v41 = vmin.f32 %v1080_v33, 6.0  ;;  %v690_v59 = vpop.f32.mrb[83].mxu0 }
 0x19f   :  { %7116 = vst [vmem:[#allocation3_spill] sm:$0xff] %v6316_v10  ;;  %v2276_v39 = vmul.f32 %v2059_v29, %v7117_v52  ;;  %v1079_v43 = vmax.f32 %v681_v50, 0.0  ;;  %v696_v7 = vadd.f32 %v5902_v30, %v3829_v37  ;;  %v691_v2 = vadd.f32 %v5902_v30, %v690_v59  ;;  %v7119_v29 = vld [vmem:[#allocation77_spill] sm:$0xff] }
 0x1a0   :  { %v2461_v46 = vmul.f32 %v6167_v27, %v2230_v28  ;;  %v2460_v17 = vmul.f32 %v6167_v27, %v2229_v20  ;;  %v6339_v12 = vmin.f32 %v1142_v14, 6.0  ;;  %v2232_v42 = vmul.f32 %v7118_v57, %v1224_v41  ;;  %v7120_v41 = vld [vmem:[#allocation11_spill] sm:$0xff] }
 0x1a1   :  { %v6344_v0 = vadd.f32 %v5902_v30, %v7119_v29  ;;  %v1223_v48 = vmin.f32 %v1079_v43, 6.0  ;;  %v1082_v36 = vmax.f32 %v696_v7, 0.0  ;;  %v1081_v33 = vmax.f32 %v691_v2, 0.0  ;;  %v3832_v50 = vpop.f32.mrb[84].mxu0  ;;  %v7121_v2 = vld [vmem:[#allocation48_spill] sm:$0xff] }
 0x1a2   :  { %v2275_v37 = vmul.f32 %v2054_v24, %v5943_v40  ;;  %v6348_v59 = vadd.f32 %v2461_v46, %v6170_v15  ;;  %v6351_v27 = vadd.f32 %v2460_v17, %v6179_v26  ;;  %v2487_v14 = vmul.f32 %v6333_v55, %v2232_v42  ;;  %v700_v28 = vpop.f32.mrb[85].mxu0  ;;  %v1984_v24 = vpop.permute.xlu0 %1983  ;;  %v7122_v17 = vld [vmem:[#allocation20_spill] sm:$0xff] }
 0x1a3   :  { %v6355_v20 = vmul.f32 %v6127_v56, %v2276_v39  ;;  %v2231_v52 = vmul.f32 %v7120_v41, %v1223_v48  ;;  %v1226_v43 = vmin.f32 %v1082_v36, 6.0  ;;  %v1225_v7 = vmin.f32 %v1081_v33, 6.0  ;;  %v7123_v39 = vld [vmem:[#allocation21_spill] sm:$0xff] }
 0x1a4   :  { %v2262_v57 = vmul.f32 %v1989_v25, %v7121_v2  ;;  %v6360_v40 = vadd.f32 %v2487_v14, %v6195_v54  ;;  %v706_v15 = vadd.f32 %v5902_v30, %v3832_v50  ;;  %v701_v26 = vadd.f32 %v5902_v30, %v700_v28 }
 0x1a5   :  { %v2486_v46 = vmul.f32 %v6333_v55, %v2231_v52  ;;  %v2234_v42 = vmul.f32 %v7122_v17, %v1226_v43  ;;  %v2233_v29 = vmul.f32 %v7123_v39, %v1225_v7  ;;  %v3835_v10 = vpop.f32.mrb[86].mxu0  ;;  %v6961_v41 = vmov 0.0|0.0   ;;  %v2139_v52 = vpop.permute.xlu1 %2138  ;;  %v7125_v39 = vld [vmem:[#allocation32_spill] sm:$0xff] }
 0x1a6   :  { %v1084_v48 = vmax.f32 %v706_v15, 0.0  ;;  %v1083_v36 = vmax.f32 %v701_v26, 0.0  ;;  %v716_v33 = vadd.f32 %v5902_v30, %v3835_v10  ;;  %v710_v25 = vpop.f32.mrb[87].mxu0  ;;  %4139 = vmatprep.subr.bf16.mxu1 %v6961_v41  ;;  %v7124_v15 = vld [vmem:[#allocation50_spill] sm:$0xff] }
 0x1a7   :  { %v6370_v54 = vadd.f32 %v2486_v46, %v6199_v18  ;;  %v2489_v50 = vmul.f32 %v6333_v55, %v2234_v42  ;;  %v2488_v14 = vmul.f32 %v6333_v55, %v2233_v29  ;;  %v711_v28 = vadd.f32 %v5902_v30, %v710_v25 }
 0x1a8   :  { %v1228_v43 = vmin.f32 %v1084_v48, 6.0  ;;  %v1227_v7 = vmin.f32 %v1083_v36, 6.0  ;;  %v1086_v2 = vmax.f32 %v716_v33, 0.0  ;;  %v2261_v26 = vmul.f32 %v1984_v24, %v7124_v15  ;;  %v7126_v48 = vld [vmem:[#allocation33_spill] sm:$0xff] }
 0x1a9   :  { %v6377_v10 = vadd.f32 %v2489_v50, %v6222_v47  ;;  %v6380_v17 = vadd.f32 %v2488_v14, %v6225_v23  ;;  %v1085_v18 = vmax.f32 %v711_v28, 0.0  ;;  %v3838_v46 = vpop.f32.mrb[88].mxu0  ;;  %v6959_v42 = vmov 0.0   ;;  %v2134_v50 = vpop.permute.xlu0 %2133 }
 0x1aa   :  { %3952 = vmatprep.mubr.msk.f32.mxu1 %vm4271_vm0, %v6959_v42  ;;  %v2236_v29 = vmul.f32 %v7125_v39, %v1228_v43  ;;  %v2235_v36 = vmul.f32 %v7126_v48, %v1227_v7  ;;  %v1230_v33 = vmin.f32 %v1086_v2, 6.0  ;;  %v726_v24 = vadd.f32 %v5902_v30, %v3838_v46  ;;  %v720_v25 = vpop.f32.mrb[89].mxu0  ;;  %v7127_v43 = vld [vmem:[#allocation46_spill] sm:$0xff] }
 0x1ab   :  { %v6388_v47 = vmul.f32 %v6127_v56, %v2275_v37  ;;  %v2292_v23 = vmul.f32 %v2139_v52, %v6268_v9  ;;  %v1229_v14 = vmin.f32 %v1085_v18, 6.0  ;;  %v721_v28 = vadd.f32 %v5902_v30, %v720_v25  ;;  %v7128_v37 = vld [vmem:[#allocation47_spill] sm:$0xff]  ;;  %v2069_v25 = vpop.permute.xlu1 %2068 }
 0x1ac   :  { %v2491_v15 = vmul.f32 %v6333_v55, %v2236_v29  ;;  %v2490_v42 = vmul.f32 %v6333_v55, %v2235_v36  ;;  %v2238_v39 = vmul.f32 %v7127_v43, %v1230_v33  ;;  %v1088_v7 = vmax.f32 %v726_v24, 0.0 }
 0x1ad   :  { %v6396_v2 = vmul.f32 %v6150_v62, %v2262_v57  ;;  %v6399_v46 = vmul.f32 %v6150_v62, %v2261_v26  ;;  %v2237_v48 = vmul.f32 %v7128_v37, %v1229_v14  ;;  %v1087_v9 = vmax.f32 %v721_v28, 0.0  ;;  %v3841_v52 = vpop.f32.mrb[90].mxu0  ;;  %v7130_v37 = vld [vmem:[#allocation71_spill] sm:$0xff] }
 0x1ae   :  { %v6403_v18 = vadd.f32 %v2491_v15, %v6234_v31  ;;  %v6406_v29 = vadd.f32 %v2490_v42, %v6242_v35  ;;  %v2493_v36 = vmul.f32 %v6333_v55, %v2238_v39  ;;  %v1232_v33 = vmin.f32 %v1088_v7, 6.0  ;;  %v730_v24 = vpop.f32.mrb[91].mxu0  ;;  %v7129_v42 = vld [vmem:[#allocation70_spill] sm:$0xff]  ;;  %v2064_v39 = vpop.permute.xlu0 %2063 }
 0x1af   :  { %v2492_v57 = vmul.f32 %v6333_v55, %v2237_v48  ;;  %v1231_v43 = vmin.f32 %v1087_v9, 6.0  ;;  %v736_v26 = vadd.f32 %v5902_v30, %v3841_v52  ;;  %v731_v14 = vadd.f32 %v5902_v30, %v730_v24 }
 0x1b0   :  { %v6413_v28 = vmul.f32 %v5995_v4, %v2292_v23  ;;  %v2291_v31 = vmul.f32 %v2134_v50, %v6325_v49  ;;  %v6417_v35 = vadd.f32 %v2493_v36, %v6252_v5  ;;  %v2240_v15 = vmul.f32 %v7129_v42, %v1232_v33 }
 0x1b1   :  { %v6421_v7 = vadd.f32 %v2492_v57, %v6258_v44  ;;  %v2239_v48 = vmul.f32 %v7130_v37, %v1231_v43  ;;  %v1090_v9 = vmax.f32 %v736_v26, 0.0  ;;  %v1089_v52 = vmax.f32 %v731_v14, 0.0  ;;  %v3844_v41 = vpop.f32.mrb[92].mxu0  ;;  %v7131_v43 = vld [vmem:[#allocation12_spill] sm:$0xff]  ;;  %v7133_v37 = vld [vmem:[#allocation5_spill] sm:$0xff] }
 0x1b2   :  { %v1141_v24 = vmax.f32 %v6344_v0, 0.0  ;;  %v2278_v23 = vmul.f32 %v2069_v25, %v5947_v63  ;;  %v2495_v49 = vmul.f32 %v6333_v55, %v2240_v15  ;;  %v746_v5 = vadd.f32 %v5902_v30, %v3844_v41  ;;  %v740_v50 = vpop.f32.mrb[93].mxu0  ;;  %v2149_v25 = vpop.permute.xlu1 %2148  ;;  %v7132_v41 = vld [vmem:[#allocation4_spill] sm:$0xff] }
 0x1b3   :  { %v2494_v36 = vmul.f32 %v6333_v55, %v2239_v48  ;;  %v1234_v33 = vmin.f32 %v1090_v9, 6.0  ;;  %v1233_v42 = vmin.f32 %v1089_v52, 6.0  ;;  %v741_v44 = vadd.f32 %v5902_v30, %v740_v50 }
 0x1b4   :  { %v6431_v57 = vmul.f32 %v5995_v4, %v2291_v31  ;;  %v2277_v26 = vmul.f32 %v2064_v39, %v7131_v43  ;;  %v6435_v0 = vadd.f32 %v2495_v49, %v6280_v53  ;;  %v1092_v63 = vmax.f32 %v746_v5, 0.0  ;;  %v2144_v49 = vpop.permute.xlu0 %2143 }
 0x1b5   :  { %v6438_v14 = vadd.f32 %v2494_v36, %v6283_v51  ;;  %v2242_v15 = vmul.f32 %v7132_v41, %v1234_v33  ;;  %v2241_v48 = vmul.f32 %v7133_v37, %v1233_v42  ;;  %v1091_v9 = vmax.f32 %v741_v44, 0.0  ;;  %v3847_v52 = vpop.f32.mrb[94].mxu0 }
 0x1b6   :  { %v1285_v50 = vmin.f32 %v1141_v24, 6.0  ;;  %v6443_v4 = vmul.f32 %v6127_v56, %v2278_v23  ;;  %v1236_v31 = vmin.f32 %v1092_v63, 6.0  ;;  %v756_v39 = vadd.f32 %v5902_v30, %v3847_v52  ;;  %v750_v53 = vpop.f32.mrb[95].mxu0 }
 0x1b7   :  { %v2497_v5 = vmul.f32 %v6333_v55, %v2242_v15  ;;  %v2496_v51 = vmul.f32 %v6333_v55, %v2241_v48  ;;  %v1235_v36 = vmin.f32 %v1091_v9, 6.0  ;;  %v751_v33 = vadd.f32 %v5902_v30, %v750_v53 }
 0x1b8   :  { %v2580_v42 = vmul.f32 %v6127_v56, %v2277_v26  ;;  %v6451_v44 = vmul.f32 %v2149_v25, %v6339_v12  ;;  %v2244_v24 = vmul.f32 %v6114_v32, %v1236_v31  ;;  %v1094_v23 = vmax.f32 %v756_v39, 0.0 }
 0x1b9   :  { %v2513_v43 = vadd.f32 %v2497_v5, %v6291_v1  ;;  %v2512_v63 = vadd.f32 %v2496_v51, %v6300_v13  ;;  %v2243_v41 = vmul.f32 %v6138_v8, %v1235_v36  ;;  %v1093_v15 = vmax.f32 %v751_v33, 0.0  ;;  %v3850_v37 = vpop.f32.mrb[96].mxu0 }
 0x1ba   :  { %v6457_v48 = vmul.f32 %v2144_v49, %v1285_v50  ;;  %v2499_v9 = vmul.f32 %v6333_v55, %v2244_v24  ;;  %v1238_v52 = vmin.f32 %v1094_v23, 6.0  ;;  %v766_v56 = vadd.f32 %v5902_v30, %v3850_v37  ;;  %v760_v12 = vpop.f32.mrb[97].mxu0  ;;  %v7134_v24 = vld [vmem:[#allocation16_spill] sm:$0xff] }
 0x1bb   :  { %v2553_v26 = vadd.f32 %v6176_v34, %v2513_v43  ;;  %v2552_v32 = vadd.f32 %v6187_v19, %v2512_v63  ;;  %v2498_v1 = vmul.f32 %v6333_v55, %v2243_v41  ;;  %v1237_v25 = vmin.f32 %v1093_v15, 6.0 }
 0x1bc   :  { %v2515_v13 = vadd.f32 %v2499_v9, %v6313_v16  ;;  %v2246_v8 = vmul.f32 %v6274_v45, %v1238_v52  ;;  %v1096_v31 = vmax.f32 %v766_v56, 0.0  ;;  %v761_v50 = vadd.f32 %v5902_v30, %v760_v12  ;;  %v7135_v52 = vld [vmem:[#allocation17_spill] sm:$0xff] }
 0x1bd   :  { %v6468_v39 = vadd.f32 %v6255_v38, %v2553_v26  ;;  %v6471_v53 = vadd.f32 %v6266_v22, %v2552_v32  ;;  %v2514_v34 = vadd.f32 %v2498_v1, %v6322_v60  ;;  %v2245_v19 = vmul.f32 %v6297_v58, %v1237_v25  ;;  %v3853_v49 = vpop.f32.mrb[98].mxu0  ;;  %v4267_v22 = vld [vmem:[%s6945_s3] ss:$0 sm:$0xff] }
 0x1be   :  { %v2555_v5 = vadd.f32 %v6306_v21, %v2515_v13  ;;  %v2501_v16 = vmul.f32 %v6333_v55, %v2246_v8  ;;  %v1240_v51 = vmin.f32 %v1096_v31, 6.0  ;;  %v1095_v45 = vmax.f32 %v761_v50, 0.0  ;;  %v770_v36 = vpop.f32.mrb[99].mxu0  ;;  %v7136_v8 = vld [vmem:[#allocation26_spill] sm:$0xff]  ;;  %v7137_v50 = vld [vmem:[#allocation27_spill] sm:$0xff] }
 0x1bf   :  { %v2554_v30 = vadd.f32 %v6309_v3, %v2514_v34  ;;  %v2500_v38 = vmul.f32 %v6333_v55, %v2245_v19  ;;  %v776_v33 = vadd.f32 %v4267_v22, %v3853_v49  ;;  %v771_v60 = vadd.f32 %v4267_v22, %v770_v36 }
 0x1c0   :  { %v6483_v58 = vadd.f32 %v6355_v20, %v2555_v5  ;;  %v2517_v21 = vadd.f32 %v2501_v16, %v6348_v59  ;;  %v2248_v23 = vmul.f32 %v7134_v24, %v1240_v51  ;;  %v1239_v43 = vmin.f32 %v1095_v45, 6.0 }
 0x1c1   :  { %v6488_v63 = vadd.f32 %v6388_v47, %v2554_v30  ;;  %v2516_v3 = vadd.f32 %v2500_v38, %v6351_v27  ;;  %v1098_v55 = vmax.f32 %v776_v33, 0.0  ;;  %v1097_v41 = vmax.f32 %v771_v60, 0.0  ;;  %v3856_v15 = vpop.f32.mrb[100].mxu0  ;;  %v7139_v33 = vld [vmem:[#allocation54_spill] sm:$0xff] }
 0x1c2   :  { %v2557_v37 = vadd.f32 %v6396_v2, %v2517_v21  ;;  %v2527_v9 = vmul.f32 %v6150_v62, %v2248_v23  ;;  %v2247_v20 = vmul.f32 %v7135_v52, %v1239_v43  ;;  %v786_v56 = vadd.f32 %v4267_v22, %v3856_v15  ;;  %v780_v12 = vpop.f32.mrb[101].mxu0  ;;  %v7140_v21 = vld [vmem:[#allocation38_spill] sm:$0xff] }
 0x1c3   :  { %v2556_v59 = vadd.f32 %v6399_v46, %v2516_v3  ;;  %v1242_v26 = vmin.f32 %v1098_v55, 6.0  ;;  %v1241_v32 = vmin.f32 %v1097_v41, 6.0  ;;  %v781_v1 = vadd.f32 %v4267_v22, %v780_v12  ;;  %v7138_v46 = vld [vmem:[#allocation51_spill] sm:$0xff] }
 0x1c4   :  { %v6496_v47 = vadd.f32 %v6443_v4, %v2557_v37  ;;  %v2543_v27 = vadd.f32 %v2527_v9, %v6360_v40  ;;  %v2526_v25 = vmul.f32 %v6150_v62, %v2247_v20  ;;  %v1100_v13 = vmax.f32 %v786_v56, 0.0  ;;  %v7141_v3 = vld [vmem:[#allocation39_spill] sm:$0xff] }
 0x1c5   :  { %v6500_v2 = vadd.f32 %v2580_v42, %v2556_v59  ;;  %v2250_v31 = vmul.f32 %v7136_v8, %v1242_v26  ;;  %v2249_v34 = vmul.f32 %v7137_v50, %v1241_v32  ;;  %v1099_v19 = vmax.f32 %v781_v1, 0.0  ;;  %v3859_v49 = vpop.f32.mrb[102].mxu0  ;;  %v7142_v56 = vld [vmem:[#allocation55_spill] sm:$0xff]  ;;  %v7143_v59 = vld [vmem:[#allocation56_spill] sm:$0xff]  ;;  %v7144_v1 = vld [vmem:[#allocation61_spill] sm:$0xff] }
 0x1c6   :  { %v2583_v5 = vadd.f32 %v7138_v46, %v2543_v27  ;;  %v2542_v16 = vadd.f32 %v2526_v25, %v6370_v54  ;;  %v1244_v51 = vmin.f32 %v1100_v13, 6.0  ;;  %v796_v4 = vadd.f32 %v4267_v22, %v3859_v49  ;;  %v790_v45 = vpop.f32.mrb[103].mxu0  ;;  %v7145_v8 = vld [vmem:[#allocation13_spill] sm:$0xff]  ;;  %v7148_v46 = vld [vmem:[#allocation60_spill] sm:$0xff] }
 0x1c7   :  { %v2529_v40 = vmul.f32 %v6150_v62, %v2250_v31  ;;  %v2528_v36 = vmul.f32 %v6150_v62, %v2249_v34  ;;  %v1243_v30 = vmin.f32 %v1099_v19, 6.0  ;;  %v791_v42 = vadd.f32 %v4267_v22, %v790_v45  ;;  %v7146_v31 = vld [vmem:[#allocation22_spill] sm:$0xff] }
 0x1c8   :  { %v2623_v38 = vadd.f32 %v6023_v6, %v2583_v5  ;;  %v2582_v60 = vadd.f32 %v7139_v33, %v2542_v16  ;;  %v2252_v24 = vmul.f32 %v7140_v21, %v1244_v51  ;;  %v1102_v23 = vmax.f32 %v796_v4, 0.0  ;;  %v7147_v19 = vld [vmem:[#allocation62_spill] sm:$0xff] }
 0x1c9   :  { %v2545_v43 = vadd.f32 %v2529_v40, %v6377_v10  ;;  %v2544_v54 = vadd.f32 %v2528_v36, %v6380_v17  ;;  %v2251_v55 = vmul.f32 %v7141_v3, %v1243_v30  ;;  %v1101_v41 = vmax.f32 %v791_v42, 0.0  ;;  %v3862_v15 = vpop.f32.mrb[104].mxu0  ;;  %v7150_v30 = vld [vmem:[#allocation23_spill] sm:$0xff] }
 0x1ca   :  { %v2622_v37 = vadd.f32 %v6028_v11, %v2582_v60  ;;  %v2531_v9 = vmul.f32 %v6150_v62, %v2252_v24  ;;  %v1246_v52 = vmin.f32 %v1102_v23, 6.0  ;;  %v806_v20 = vadd.f32 %v4267_v22, %v3862_v15  ;;  %v800_v6 = vpop.f32.mrb[105].mxu0  ;;  %v7151_v60 = vld [vmem:[#allocation80_spill] sm:$0xff]  ;;  %v7152_v23 = vld [vmem:[#allocation34_spill] sm:$0xff] }
 0x1cb   :  { %v2585_v12 = vadd.f32 %v7142_v56, %v2545_v43  ;;  %v2584_v26 = vadd.f32 %v7143_v59, %v2544_v54  ;;  %v2530_v32 = vmul.f32 %v6150_v62, %v2251_v55  ;;  %v1245_v10 = vmin.f32 %v1101_v41, 6.0  ;;  %v7153_v41 = vld [vmem:[#allocation59_spill] sm:$0xff] }
 0x1cc   :  { %v2547_v17 = vadd.f32 %v2531_v9, %v6403_v18  ;;  %v2254_v27 = vmul.f32 %v7144_v1, %v1246_v52  ;;  %v1104_v25 = vmax.f32 %v806_v20, 0.0  ;;  %v801_v13 = vadd.f32 %v4267_v22, %v800_v6  ;;  %v6530_v18 = vld [vmem:[%s6947_s5] ss:$0 sm:$0xff]  ;;  %v7149_v22 = vld [vmem:[#allocation64_spill] sm:$0xff]  ;;  %v7155_v20 = vld [vmem:[#allocation63_spill] sm:$0xff] }
 0x1cd   :  { %v2625_v11 = vadd.f32 %v7145_v8, %v2585_v12  ;;  %v2624_v50 = vadd.f32 %v7146_v31, %v2584_v26  ;;  %v2546_v34 = vadd.f32 %v2530_v32, %v6406_v29  ;;  %v2253_v49 = vmul.f32 %v7147_v19, %v1245_v10  ;;  %v7156_v59 = vld [vmem:[#allocation35_spill] sm:$0xff]  ;;  %v7158_v8 = vld [vmem:[#allocation53_spill] sm:$0xff] }
 0x1ce   :  { %v2587_v5 = vadd.f32 %v7148_v46, %v2547_v17  ;;  %v2533_v16 = vmul.f32 %v6150_v62, %v2254_v27  ;;  %v1248_v51 = vmin.f32 %v1104_v25, 6.0  ;;  %v1103_v4 = vmax.f32 %v801_v13, 0.0  ;;  %v7157_v17 = vld [vmem:[#allocation52_spill] sm:$0xff]  ;;  %v7159_v46 = vld [vmem:[#allocation29_spill] sm:$0xff] }
 0x1cf   :  { %v2586_v45 = vadd.f32 %v7149_v22, %v2546_v34  ;;  %v2532_v40 = vmul.f32 %v6150_v62, %v2253_v49  ;;  %v2645_v36 = vadd.f32 %v6530_v18, %v2622_v37  ;;  %v2646_v29 = vadd.f32 %v6530_v18, %v2623_v38  ;;  %v7154_v37 = vld [vmem:[#allocation81_spill] sm:$0xff] }
 0x1d0   :  { %v2627_v42 = vadd.f32 %v7150_v30, %v2587_v5  ;;  %v2549_v33 = vadd.f32 %v2533_v16, %v6417_v35  ;;  %v2256_v21 = vmul.f32 %v7151_v60, %v1248_v51  ;;  %v1247_v24 = vmin.f32 %v1103_v4, 6.0  ;;  %v7160_v16 = vld [vmem:[#allocation28_spill] sm:$0xff]  ;;  %v7162_v30 = vld [vmem:[#allocation2_spill] sm:$0xff] }
 0x1d1   :  { %v2626_v43 = vadd.f32 %v7152_v23, %v2586_v45  ;;  %v2548_v54 = vadd.f32 %v2532_v40, %v6421_v7  ;;  %v2661_v3 = vmax.f32 %v2645_v36, 0.0  ;;  %v2662_v55 = vmax.f32 %v2646_v29, 0.0 }
 0x1d2   :  { %v2589_v15 = vadd.f32 %v7153_v41, %v2549_v33  ;;  %v2535_v9 = vmul.f32 %v6150_v62, %v2256_v21  ;;  %v2255_v52 = vmul.f32 %v7154_v37, %v1247_v24  ;;  %v2647_v38 = vadd.f32 %v6530_v18, %v2624_v50  ;;  %v7163_v21 = vld [vmem:[#allocation3_spill] sm:$0xff] }
 0x1d3   :  { %v2588_v6 = vadd.f32 %v7155_v20, %v2548_v54  ;;  %v6546_v35 = vmin.f32 %v2661_v3, 6.0  ;;  %v6548_v56 = vmin.f32 %v2662_v55, 6.0  ;;  %v2648_v12 = vadd.f32 %v6530_v18, %v2625_v11 }
 0x1d4   :  { %v2629_v7 = vadd.f32 %v7156_v59, %v2589_v15  ;;  %v2551_v26 = vadd.f32 %v2535_v9, %v6435_v0  ;;  %v2534_v32 = vmul.f32 %v6150_v62, %v2255_v52  ;;  %v2663_v10 = vmax.f32 %v2647_v38, 0.0 }
 0x1d5   :  { %v2628_v1 = vadd.f32 %v7157_v17, %v2588_v6  ;;  %v4140_v27 = vpack.c.bf16 %v6548_v56, %v6546_v35  ;;  %v2664_v25 = vmax.f32 %v2648_v12, 0.0  ;;  %v2649_v13 = vadd.f32 %v6530_v18, %v2626_v43 }
 0x1d6   :  { %v2591_v31 = vadd.f32 %v7158_v8, %v2551_v26  ;;  %v2550_v50 = vadd.f32 %v2534_v32, %v6438_v14  ;;  %v6560_v11 = vmin.f32 %v2663_v10, 6.0  ;;  %v2650_v34 = vadd.f32 %v6530_v18, %v2627_v42 }
 0x1d7   :  { %4141 = vmatpush3.bf16.msra.mxu1 %v4140_v27  ;;  %v6563_v0 = vmin.f32 %v2664_v25, 6.0  ;;  %v2665_v62 = vmax.f32 %v2649_v13, 0.0  ;;  %v2651_v19 = vadd.f32 %v6530_v18, %v2628_v1  ;;  %v2652_v49 = vadd.f32 %v6530_v18, %v2629_v7 }
 0x1d8   :  { %v2631_v5 = vadd.f32 %v7159_v46, %v2591_v31  ;;  %v2590_v51 = vadd.f32 %v7160_v16, %v2550_v50  ;;  %v7161_v4 = vmov 0.0|0.0   ;;  %v2666_v22 = vmax.f32 %v2650_v34, 0.0  ;;  %v2764_v31 = vld [vmem:[%s6948_s6] sm:$0xff]  ;;  %v2765_v50 = vld [vmem:[%s6948_s6 + $0x8] sm:$0xff]  ;;  %v2767_v46 = vld [vmem:[%s6948_s6 + $0x18] sm:$0xff] }
 0x1d9   :  { %4142 = vmatprep.subr.bf16.mxu1 %v7161_v4  ;;  %v2632_v14 = vadd.f32 %v6319_v61, %v6471_v53  ;;  %v4143_v45 = vpack.c.bf16 %v6563_v0, %v6560_v11  ;;  %v6574_v40 = vmin.f32 %v2665_v62, 6.0  ;;  %v2667_v36 = vmax.f32 %v2651_v19, 0.0  ;;  %v4268_v61 = vld [vmem:[%s6946_s4 + $0x8] ss:$0 sm:$0xff]  ;;  %v2693_v62 = vld [vmem:[%s6949_s10] sm:$0x3] }
 0x1da   :  { %v2668_v29 = vmax.f32 %v2652_v49, 0.0  ;;  %v2630_v42 = vadd.f32 %v7162_v30, %v2590_v51  ;;  %v6577_v33 = vmin.f32 %v2666_v22, 6.0  ;;  %v2654_v60 = vadd.f32 %v6530_v18, %v2631_v5  ;;  %v2766_v49 = vld [vmem:[%s6948_s6 + $0x10] sm:$0xff]  ;;  %v2768_v51 = vld [vmem:[%s6948_s6 + $0x20] sm:$0xff]  ;;  %v2769_v22 = vld [vmem:[%s6948_s6 + $0x28] sm:$0xff] }
 0x1db   :  { %v2633_v24 = vadd.f32 %v7163_v21, %v6468_v39  ;;  %v2620_v53 = vmul.f32 %v4268_v61, %v6457_v48  ;;  %4144 = vmatpush3.bf16.msra.mxu1 %v4143_v45  ;;  %v6586_v23 = vmin.f32 %v2667_v36, 6.0  ;;  %v2634_v54 = vadd.f32 %v6431_v57, %v6488_v63  ;;  %v2770_v45 = vld [vmem:[%s6948_s6 + $0x30] sm:$0xff]  ;;  %v2771_v36 = vld [vmem:[%s6948_s6 + $0x38] sm:$0xff]  ;;  %v2772_v30 = vld [vmem:[%s6948_s6 + $0x40] sm:$0xff] }
 0x1dc   :  { %v6588_v43 = vmin.f32 %v2668_v29, 6.0  ;;  %4145 = vmatprep.subr.bf16.mxu1 %v7161_v4  ;;  %v4146_v3 = vpack.c.bf16 %v6577_v33, %v6574_v40  ;;  %v2653_v39 = vadd.f32 %v6530_v18, %v2630_v42  ;;  %v2670_v55 = vmax.f32 %v2654_v60, 0.0  ;;  %v2773_v42 = vld [vmem:[%s6948_s6 + $0x48] sm:$0xff]  ;;  %v2774_v21 = vld [vmem:[%s6948_s6 + $0x50] sm:$0xff] }
 0x1dd   :  { %v2655_v41 = vadd.f32 %v6530_v18, %v2632_v14  ;;  %v2621_v48 = vmul.f32 %v4268_v61, %v6451_v44  ;;  %v2656_v15 = vadd.f32 %v6530_v18, %v2633_v24  ;;  %v2635_v9 = vadd.f32 %v6413_v28, %v6483_v58  ;;  %v2775_v24 = vld [vmem:[%s6948_s6 + $0x58] sm:$0xff] }
 0x1de   :  { %v2669_v37 = vmax.f32 %v2653_v39, 0.0  ;;  %v2636_v57 = vadd.f32 %v2620_v53, %v6500_v2  ;;  %v4149_v63 = vpack.c.bf16 %v6588_v43, %v6586_v23  ;;  %v6604_v52 = vmin.f32 %v2670_v55, 6.0  ;;  %v2776_v53 = vld [vmem:[%s6948_s6 + $0x60] sm:$0xff]  ;;  %v2778_v39 = vld [vmem:[%s6948_s6 + $0x70] sm:$0xff]  ;;  %v2779_v55 = vld [vmem:[%s6948_s6 + $0x78] sm:$0xff] }
 0x1df   :  { %4147 = vmatpush3.bf16.msra.mxu1 %v4146_v3  ;;  %v2637_v38 = vadd.f32 %v2621_v48, %v6496_v47  ;;  %v2671_v44 = vmax.f32 %v2655_v41, 0.0  ;;  %v2657_v6 = vadd.f32 %v6530_v18, %v2634_v54  ;;  %v2672_v12 = vmax.f32 %v2656_v15, 0.0  ;;  %v2777_v54 = vld [vmem:[%s6948_s6 + $0x68] sm:$0xff]  ;;  %v2858_v48 = vld [vmem:[%s6950_s8] sm:$0xff] }
 0x1e0   :  { %4148 = vmatprep.subr.bf16.mxu1 %v7161_v4  ;;  %v6608_v20 = vmin.f32 %v2669_v37, 6.0  ;;  %v2658_v28 = vadd.f32 %v6530_v18, %v2635_v9  ;;  %v2659_v26 = vadd.f32 %v6530_v18, %v2636_v57  ;;  %v4164_v19 = vpack.c.bf16 %v2765_v50, %v2764_v31  ;;  %v2859_v15 = vld [vmem:[%s6950_s8 + $0x8] sm:$0xff]  ;;  %v2860_v37 = vld [vmem:[%s6950_s8 + $0x10] sm:$0xff]  ;;  %v2861_v57 = vld [vmem:[%s6950_s8 + $0x18] sm:$0xff] }
 0x1e1   :  { %v6615_v2 = vmin.f32 %v2671_v44, 6.0  ;;  %v2673_v59 = vmax.f32 %v2657_v6, 0.0  ;;  %v6617_v47 = vmin.f32 %v2672_v12, 6.0  ;;  %v2660_v32 = vadd.f32 %v6530_v18, %v2637_v38  ;;  %v2862_v6 = vld [vmem:[%s6950_s8 + $0x20] sm:$0xff]  ;;  %v2863_v12 = vld [vmem:[%s6950_s8 + $0x28] sm:$0xff] }
 0x1e2   :  { %v4152_v58 = vpack.c.bf16 %v6604_v52, %v6608_v20  ;;  %v2674_v7 = vmax.f32 %v2658_v28, 0.0  ;;  %v2675_v27 = vmax.f32 %v2659_v26, 0.0  ;;  %v4167_v5 = vpack.c.bf16 %v2767_v46, %v2766_v49  ;;  %v2866_v26 = vld [vmem:[%s6950_s8 + $0x40] sm:$0xff]  ;;  %v2871_v50 = vld [vmem:[%s6950_s8 + $0x68] sm:$0xff] }
 0x1e3   :  { %4150 = vmatpush3.bf16.msra.mxu1 %v4149_v63  ;;  %v6622_v10 = vmin.f32 %v2673_v59, 6.0  ;;  %v4155_v17 = vpack.c.bf16 %v6617_v47, %v6615_v2  ;;  %v2676_v25 = vmax.f32 %v2660_v32, 0.0  ;;  %v7164_v16 = vmov 0.0   ;;  %v2865_v59 = vld [vmem:[%s6950_s8 + $0x38] sm:$0xff]  ;;  %v2867_v32 = vld [vmem:[%s6950_s8 + $0x48] sm:$0xff]  ;;  %v2870_v31 = vld [vmem:[%s6950_s8 + $0x60] sm:$0xff] }
 0x1e4   :  { %4151 = vmatprep.subr.bf16.mxu1 %v7161_v4  ;;  %v6626_v1 = vmin.f32 %v2674_v7, 6.0  ;;  %v6631_v8 = vmin.f32 %v2675_v27, 6.0  ;;  %v4170_v14 = vpack.c.bf16 %v2769_v22, %v2768_v51  ;;  %v4173_v29 = vpack.c.bf16 %v2771_v36, %v2770_v45  ;;  %v2868_v27 = vld [vmem:[%s6950_s8 + $0x50] sm:$0xff]  ;;  %v3392_v46 = vld [vmem:[%s6951_s7] ss:$0 sm:$0xff] }
 0x1e5   :  { %v6633_v18 = vmin.f32 %v2676_v25, 6.0  ;;  %v4176_v60 = vpack.c.bf16 %v2773_v42, %v2772_v30  ;;  %v4179_v61 = vpack.c.bf16 %v2775_v24, %v2774_v21  ;;  %v4182_v3 = vpack.c.bf16 %v2777_v54, %v2776_v53  ;;  %v2869_v25 = vld [vmem:[%s6950_s8 + $0x58] sm:$0xff]  ;;  %v3186_v21 = vld [vmem:[%s6954_s12 + $0x8] sm:$0xff] }
 0x1e6   :  { %v4158_v13 = vpack.c.bf16 %v6626_v1, %v6622_v10  ;;  %v4185_v41 = vpack.c.bf16 %v2779_v55, %v2778_v39  ;;  %v4188_v9 = vpack.c.bf16 %v2859_v15, %v2858_v48  ;;  %v4191_v44 = vpack.c.bf16 %v2861_v57, %v2860_v37  ;;  %v3188_v53 = vld [vmem:[%s6954_s12 + $0x18] sm:$0xff]  ;;  %v2956_v39 = vld [vmem:[%s6952_s11 + $0x8] sm:$0xff]  ;;  %v2957_v55 = vld [vmem:[%s6952_s11 + $0x10] sm:$0xff] }
 0x1e7   :  { %4153 = vmatpush3.bf16.msra.mxu1 %v4152_v58  ;;  %v4161_v34 = vpack.c.bf16 %v6633_v18, %v6631_v8  ;;  %v4194_v28 = vpack.c.bf16 %v2863_v12, %v2862_v6  ;;  %v2864_v58 = vld [vmem:[%s6950_s8 + $0x30] sm:$0xff]  ;;  %v3189_v48 = vld [vmem:[%s6954_s12 + $0x20] sm:$0xff]  ;;  %v3190_v15 = vld [vmem:[%s6954_s12 + $0x28] sm:$0xff] }
 0x1e8   :  { %4154 = vmatprep.subr.bf16.mxu1 %v7161_v4  ;;  %v4197_v7 = vpack.c.bf16 %v2865_v59, %v2864_v58  ;;  %v2959_v37 = vld [vmem:[%s6952_s11 + $0x20] sm:$0xff]  ;;  %v4219_v57 = vpack.c.bf16 %v3190_v15, %v3189_v48  ;;  %v2961_v6 = vld [vmem:[%s6952_s11 + $0x30] sm:$0xff]  ;;  %v3194_v58 = vld [vmem:[%s6954_s12 + $0x48] sm:$0xff] }
 0x1e9   :  { %v2962_v59 = vld [vmem:[%s6952_s11 + $0x38] sm:$0xff] }
 0x1eb   :  { %4156 = vmatpush3.bf16.msra.mxu1 %v4155_v17  ;;  %v4200_v17 = vpack.c.bf16 %v2867_v32, %v2866_v26  ;;  %v3195_v32 = vld [vmem:[%s6954_s12 + $0x50] sm:$0xff] }
 0x1ec   :  { %4157 = vmatprep.subr.bf16.mxu1 %v7161_v4 }
 0x1ef   :  { %4159 = vmatpush3.bf16.msra.mxu1 %v4158_v13  ;;  %v4203_v13 = vpack.c.bf16 %v2869_v25, %v2868_v27  ;;  %v2964_v27 = vld [vmem:[%s6952_s11 + $0x48] sm:$0xff]  ;;  %v2965_v25 = vld [vmem:[%s6952_s11 + $0x50] sm:$0xff] }
 0x1f0   :  { %4160 = vmatprep.subr.bf16.mxu1 %v7161_v4 }
 0x1f3   :  { %4162 = vmatpush3.bf16.msra.mxu1 %v4161_v34  ;;  %v4206_v34 = vpack.c.bf16 %v2871_v50, %v2870_v31  ;;  %v3197_v31 = vld [vmem:[%s6954_s12 + $0x60] sm:$0xff]  ;;  %v3198_v50 = vld [vmem:[%s6954_s12 + $0x68] sm:$0xff] }
 0x1f4   :  { %4163 = vmatprep.subr.bf16.mxu1 %v7161_v4 }
 0x1f6   :  { %3953 = vmatmul.mubr.f32.vlgmr.msra.gmra.mrb[38].mxu1 %v2693_v62  ;;  %v2872_v62 = vld [vmem:[%s6950_s8 + $0x70] sm:$0xff] }
 0x1f7   :  { %4165 = vmatpush3.bf16.msra.mxu1 %v4164_v19  ;;  %3987 = vmatprep.mubr.msk.f32.mxu1 %vm4271_vm0, %v7164_v16  ;;  %v2873_v19 = vld [vmem:[%s6950_s8 + $0x78] sm:$0xff] }
 0x1f8   :  { %4166 = vmatprep.subr.bf16.mxu1 %v7161_v4  ;;  %v4209_v49 = vpack.c.bf16 %v2873_v19, %v2872_v62  ;;  %v2967_v62 = vld [vmem:[%s6952_s11 + $0x60] sm:$0xff]  ;;  %v4235_v19 = vpack.c.bf16 %v3198_v50, %v3197_v31 }
 0x1fb   :  { %4168 = vmatpush3.bf16.msra.mxu1 %v4167_v5 }
 0x1fc   :  { %4169 = vmatprep.subr.bf16.mxu1 %v7161_v4 }
 0x1ff   :  { %4171 = vmatpush3.bf16.msra.mxu1 %v4170_v14  ;;  %v3393_v14 = vld [vmem:[%s6953_s9] ss:$0 sm:$0xff] }
 0x200   :  { %4172 = vmatprep.subr.bf16.mxu1 %v7161_v4 }
 0x203   :  { %4174 = vmatpush3.bf16.msra.mxu1 %v4173_v29 }
 0x204   :  { %4175 = vmatprep.subr.bf16.mxu1 %v7161_v4 }
 0x207   :  { %4177 = vmatpush3.bf16.msra.mxu1 %v4176_v60  ;;  %v3185_v60 = vld [vmem:[%s6954_s12] sm:$0xff] }
 0x208   :  { %4178 = vmatprep.subr.bf16.mxu1 %v7161_v4 }
 0x20b   :  { %4180 = vmatpush3.bf16.msra.mxu1 %v4179_v61  ;;  %v3187_v61 = vld [vmem:[%s6954_s12 + $0x10] sm:$0xff] }
 0x20c   :  { %4181 = vmatprep.subr.bf16.mxu1 %v7161_v4 }
 0x20f   :  { %4183 = vmatpush3.bf16.msra.mxu1 %v4182_v3  ;;  %v4211_v3 = vpack.c.bf16 %v3186_v21, %v3185_v60 }
 0x210   :  { %4184 = vmatprep.subr.bf16.mxu1 %v7161_v4 }
 0x213   :  { %4186 = vmatpush3.bf16.msra.mxu1 %v4185_v41  ;;  %v4215_v41 = vpack.c.bf16 %v3188_v53, %v3187_v61 }
 0x214   :  { %4187 = vmatprep.subr.bf16.mxu1 %v7161_v4 }
 0x2c9   :  { %v2760_v63 = vpop.f32.mrb[38].mxu1 }
 0x2ca   :  { %3988 = vmatmul.mubr.f32.vlgmr.msra.gmra.mrb[40].mxu1 %v2760_v63  ;;  %v3954_v38 = vpop.f32.mrb[39].mxu1  ;;  %v3191_v63 = vld [vmem:[%s6954_s12 + $0x30] sm:$0xff] }
 0x2cb   :  { %4189 = vmatpush3.bf16.msra.mxu1 %v4188_v9  ;;  %4022 = vmatprep.mubr.msk.f32.mxu1 %vm4271_vm0, %v7164_v16  ;;  %v2958_v9 = vld [vmem:[%s6952_s11 + $0x18] sm:$0xff] }
 0x2cc   :  { %4190 = vmatprep.subr.bf16.mxu1 %v7161_v4  ;;  %v3192_v38 = vld [vmem:[%s6954_s12 + $0x38] sm:$0xff] }
 0x2cd   :  { %v4223_v12 = vpack.c.bf16 %v3192_v38, %v3191_v63 }
 0x2cf   :  { %4192 = vmatpush3.bf16.msra.mxu1 %v4191_v44  ;;  %v2960_v44 = vld [vmem:[%s6952_s11 + $0x28] sm:$0xff] }
 0x2d0   :  { %4193 = vmatprep.subr.bf16.mxu1 %v7161_v4 }
 0x2d3   :  { %4195 = vmatpush3.bf16.msra.mxu1 %v4194_v28  ;;  %v3193_v28 = vld [vmem:[%s6954_s12 + $0x40] sm:$0xff] }
 0x2d4   :  { %4196 = vmatprep.subr.bf16.mxu1 %v7161_v4  ;;  %v4227_v26 = vpack.c.bf16 %v3194_v58, %v3193_v28 }
 0x2d7   :  { %4198 = vmatpush3.bf16.msra.mxu1 %v4197_v7  ;;  %v2963_v7 = vld [vmem:[%s6952_s11 + $0x40] sm:$0xff] }
 0x2d8   :  { %4199 = vmatprep.subr.bf16.mxu1 %v7161_v4 }
 0x2db   :  { %4201 = vmatpush3.bf16.msra.mxu1 %v4200_v17  ;;  %v3196_v17 = vld [vmem:[%s6954_s12 + $0x58] sm:$0xff] }
 0x2dc   :  { %4202 = vmatprep.subr.bf16.mxu1 %v7161_v4 }
 0x2df   :  { %4204 = vmatpush3.bf16.msra.mxu1 %v4203_v13  ;;  %v4231_v13 = vpack.c.bf16 %v3196_v17, %v3195_v32 }
 0x2e0   :  { %4205 = vmatprep.subr.bf16.mxu1 %v7161_v4 }
 0x2e3   :  { %4207 = vmatpush3.bf16.msra.mxu1 %v4206_v34  ;;  %v2966_v34 = vld [vmem:[%s6952_s11 + $0x58] sm:$0xff] }
 0x2e4   :  { %4208 = vmatprep.subr.bf16.mxu1 %v7161_v4  ;;  %v2955_v4 = vld [vmem:[%s6952_s11] sm:$0xff] }
 0x2e7   :  { %4210 = vmatpush3.bf16.msra.mxu1 %v4209_v49  ;;  %v2968_v49 = vld [vmem:[%s6952_s11 + $0x68] sm:$0xff] }
 0x39d   :  { %v2853_v5 = vpop.f32.mrb[40].mxu1 }
 0x39e   :  { %v2854_v16 = vadd.f32 %v3392_v46, %v2853_v5  ;;  %v3989_v51 = vpop.f32.mrb[41].mxu1  ;;  %v2969_v46 = vld [vmem:[%s6952_s11 + $0x70] sm:$0xff]  ;;  %v2970_v5 = vld [vmem:[%s6952_s11 + $0x78] sm:$0xff] }
 0x39f   :  { %v3200_v51 = vld [vmem:[%s6954_s12 + $0x78] sm:$0xff] }
 0x3a0   :  { %v2857_v22 = vmax.f32 %v2854_v16, 0.0  ;;  %v3199_v16 = vld [vmem:[%s6954_s12 + $0x70] sm:$0xff] }
 0x3a2   :  { %4023 = vmatmul.mubr.f32.vlgmr.msra.gmra.mrb[42].mxu1 %v2857_v22  ;;  %v4239_v22 = vpack.c.bf16 %v3200_v51, %v3199_v16 }
 0x3a3   :  { %4027 = vmatprep.mubr.msk.f32.mxu1 %vm2971_vm1, %v2955_v4 }
 0x475   :  { %v2947_v45 = vpop.f32.mrb[42].mxu1 }
 0x476   :  { %v2948_v36 = vadd.f32 %v3393_v14, %v2947_v45  ;;  %v4024_v29 = vpop.f32.mrb[43].mxu1 }
 0x478   :  { %v2951_v30 = vadd.f32 3.0, %v2948_v36 }
 0x47a   :  { %v2952_v42 = vmax.f32 %v2951_v30, 0.0 }
 0x47c   :  { %v2953_v24 = vmin.f32 %v2952_v42, 6.0 }
 0x47e   :  { %v2954_v54 = vmul.f32 0.16666667, %v2953_v24 }
 0x480   :  { %4025 = vmatprep.subr.msk.mxu1 %vm3020_vm2, %v2954_v54 }
 0x481   :  { %4026 = vmatpush3.msk.msra.mxu1 %vm3020_vm2, %v2954_v54 }
 0x482   :  { %4028 = vmatmul.mubr.msk.f32.vlgmr.msra.gmra.mrb[44].mxu1 %vm2971_vm1, %v2956_v39  ;;  %4212 = vmatprep.subr.bf16.mxu1 %v4211_v3 }
 0x483   :  { %4030 = vmatprep.mubr.msk.f32.mxu1 %vm2971_vm1, %v2957_v55  ;;  %4214 = vmatpush3.bf16.msra.mxu1 %v4211_v3 }
 0x484   :  { %4216 = vmatprep.subr.bf16.mxu1 %v4215_v41 }
 0x486   :  { %4031 = vmatmul.mubr.msk.f32.gmra.mrb[46].mxu1 %vm2971_vm1, %v2958_v9 }
 0x487   :  { %4033 = vmatprep.mubr.msk.f32.mxu1 %vm2971_vm1, %v2959_v37  ;;  %4218 = vmatpush3.bf16.msra.mxu1 %v4215_v41 }
 0x488   :  { %4220 = vmatprep.subr.bf16.mxu1 %v4219_v57 }
 0x48a   :  { %4034 = vmatmul.mubr.msk.f32.gmra.mrb[48].mxu1 %vm2971_vm1, %v2960_v44 }
 0x48b   :  { %4036 = vmatprep.mubr.msk.f32.mxu1 %vm2971_vm1, %v2961_v6  ;;  %4222 = vmatpush3.bf16.msra.mxu1 %v4219_v57 }
 0x48c   :  { %4224 = vmatprep.subr.bf16.mxu1 %v4223_v12 }
 0x48e   :  { %4037 = vmatmul.mubr.msk.f32.gmra.mrb[50].mxu1 %vm2971_vm1, %v2962_v59 }
 0x48f   :  { %4039 = vmatprep.mubr.msk.f32.mxu1 %vm2971_vm1, %v2963_v7  ;;  %4226 = vmatpush3.bf16.msra.mxu1 %v4223_v12 }
 0x490   :  { %4228 = vmatprep.subr.bf16.mxu1 %v4227_v26 }
 0x492   :  { %4040 = vmatmul.mubr.msk.f32.gmra.mrb[52].mxu1 %vm2971_vm1, %v2964_v27 }
 0x493   :  { %4042 = vmatprep.mubr.msk.f32.mxu1 %vm2971_vm1, %v2965_v25  ;;  %4230 = vmatpush3.bf16.msra.mxu1 %v4227_v26 }
 0x494   :  { %4232 = vmatprep.subr.bf16.mxu1 %v4231_v13 }
 0x496   :  { %4043 = vmatmul.mubr.msk.f32.gmra.mrb[54].mxu1 %vm2971_vm1, %v2966_v34 }
 0x497   :  { %4045 = vmatprep.mubr.msk.f32.mxu1 %vm2971_vm1, %v2967_v62  ;;  %4234 = vmatpush3.bf16.msra.mxu1 %v4231_v13 }
 0x498   :  { %4236 = vmatprep.subr.bf16.mxu1 %v4235_v19 }
 0x49a   :  { %4046 = vmatmul.mubr.msk.f32.gmra.mrb[56].mxu1 %vm2971_vm1, %v2968_v49 }
 0x49b   :  { %4048 = vmatprep.mubr.msk.f32.mxu1 %vm2971_vm1, %v2969_v46  ;;  %4238 = vmatpush3.bf16.msra.mxu1 %v4235_v19 }
 0x49c   :  { %4240 = vmatprep.subr.bf16.mxu1 %v4239_v22 }
 0x49e   :  { %4049 = vmatmul.mubr.msk.f32.gmra.mrb[58].mxu1 %vm2971_vm1, %v2970_v5 }
 0x49f   :  { %4242 = vmatpush3.bf16.msra.mxu1 %v4239_v22 }
 0x555   :  { %v4029_v4 = vpop.f32.mrb[44].mxu1 }
 0x556   :  { %v3090_v14 = vpop.f32.mrb[45].mxu1  ;;  %v3170_v36 = vmul.f32 %v4029_v4, %v6548_v56 }
 0x557   :  { %v3169_v45 = vmul.f32 %v3090_v14, %v6546_v35 }
 0x559   :  { %v4032_v29 = vpop.f32.mrb[46].mxu1  ;;  %4083 = vmatprep.mubr.f32.mxu1 %v3169_v45 }
 0x55a   :  { %v3100_v30 = vpop.f32.mrb[47].mxu1  ;;  %4084 = vmatmul.mubr.f32.vlgmr.msra.gmra.mrb[60].mxu1 %v3170_v36  ;;  %v3172_v60 = vmul.f32 %v4032_v29, %v6563_v0 }
 0x55b   :  { %v3171_v42 = vmul.f32 %v3100_v30, %v6560_v11 }
 0x55d   :  { %v4035_v21 = vpop.f32.mrb[48].mxu1  ;;  %4086 = vmatprep.mubr.f32.mxu1 %v3171_v42 }
 0x55e   :  { %v3110_v24 = vpop.f32.mrb[49].mxu1  ;;  %4087 = vmatmul.mubr.f32.gmra.mrb[62].mxu1 %v3172_v60  ;;  %v3174_v53 = vmul.f32 %v4035_v21, %v6577_v33 }
 0x55f   :  { %v3173_v61 = vmul.f32 %v3110_v24, %v6574_v40 }
 0x561   :  { %v4038_v54 = vpop.f32.mrb[50].mxu1  ;;  %4089 = vmatprep.mubr.f32.mxu1 %v3173_v61 }
 0x562   :  { %v3120_v35 = vpop.f32.mrb[51].mxu1  ;;  %4090 = vmatmul.mubr.f32.gmra.mrb[64].mxu1 %v3174_v53  ;;  %v3176_v3 = vmul.f32 %v4038_v54, %v6588_v43 }
 0x563   :  { %v3175_v56 = vmul.f32 %v3120_v35, %v6586_v23 }
 0x565   :  { %v4041_v39 = vpop.f32.mrb[52].mxu1  ;;  %4092 = vmatprep.mubr.f32.mxu1 %v3175_v56 }
 0x566   :  { %v3130_v11 = vpop.f32.mrb[53].mxu1  ;;  %4093 = vmatmul.mubr.f32.gmra.mrb[66].mxu1 %v3176_v3  ;;  %v3178_v55 = vmul.f32 %v4041_v39, %v6604_v52 }
 0x567   :  { %v3177_v0 = vmul.f32 %v3130_v11, %v6608_v20 }
 0x569   :  { %v4044_v41 = vpop.f32.mrb[54].mxu1  ;;  %4095 = vmatprep.mubr.f32.mxu1 %v3177_v0 }
 0x56a   :  { %v3140_v40 = vpop.f32.mrb[55].mxu1  ;;  %4096 = vmatmul.mubr.f32.gmra.mrb[68].mxu1 %v3178_v55  ;;  %v3180_v48 = vmul.f32 %v4044_v41, %v6617_v47 }
 0x56b   :  { %v3179_v33 = vmul.f32 %v3140_v40, %v6615_v2  ;;  %v3411_v2 = vld [vmem:[%s6955_s13] ss:$0 sm:$0xff] }
 0x56d   :  { %v4047_v15 = vpop.f32.mrb[56].mxu1  ;;  %4098 = vmatprep.mubr.f32.mxu1 %v3179_v33 }
 0x56e   :  { %v3150_v23 = vpop.f32.mrb[57].mxu1  ;;  %4099 = vmatmul.mubr.f32.gmra.mrb[70].mxu1 %v3180_v48  ;;  %v3182_v9 = vmul.f32 %v4047_v15, %v6626_v1 }
 0x56f   :  { %v3181_v43 = vmul.f32 %v3150_v23, %v6622_v10 }
 0x571   :  { %v4050_v37 = vpop.f32.mrb[58].mxu1  ;;  %4101 = vmatprep.mubr.f32.mxu1 %v3181_v43 }
 0x572   :  { %v3160_v20 = vpop.f32.mrb[59].mxu1  ;;  %4102 = vmatmul.mubr.f32.gmra.mrb[72].mxu1 %v3182_v9  ;;  %v3184_v57 = vmul.f32 %v4050_v37, %v6633_v18 }
 0x573   :  { %v3183_v52 = vmul.f32 %v3160_v20, %v6631_v8 }
 0x575   :  { %4104 = vmatprep.mubr.f32.mxu1 %v3183_v52 }
 0x576   :  { %4105 = vmatmul.mubr.f32.gmra.mrb[74].mxu1 %v3184_v57 }
 0x62d   :  { %v4085_v47 = vpop.f32.mrb[60].mxu1 }
 0x62e   :  { %v3280_v63 = vadd.f32 %v4085_v47, %v3411_v2  ;;  %v3274_v38 = vpop.f32.mrb[61].mxu1 }
 0x62f   :  { %v3275_v10 = vadd.f32 %v3411_v2, %v3274_v38 }
 0x630   :  { %3354 = vst [vmem:[%s6956_s14 + $0x8] sm:$0xff] %v3280_v63 }
 0x631   :  { %3353 = vst [vmem:[%s6956_s14] sm:$0xff] %v3275_v10  ;;  %v4088_v1 = vpop.f32.mrb[62].mxu1 }
 0x632   :  { %v3290_v8 = vadd.f32 %v4088_v1, %v3411_v2  ;;  %v3284_v18 = vpop.f32.mrb[63].mxu1 }
 0x633   :  { %v3285_v44 = vadd.f32 %v3411_v2, %v3284_v18 }
 0x634   :  { %3356 = vst [vmem:[%s6956_s14 + $0x18] sm:$0xff] %v3290_v8 }
 0x635   :  { %3355 = vst [vmem:[%s6956_s14 + $0x10] sm:$0xff] %v3285_v44  ;;  %v4091_v6 = vpop.f32.mrb[64].mxu1 }
 0x636   :  { %v3300_v12 = vadd.f32 %v4091_v6, %v3411_v2  ;;  %v3294_v28 = vpop.f32.mrb[65].mxu1 }
 0x637   :  { %v3295_v58 = vadd.f32 %v3411_v2, %v3294_v28 }
 0x638   :  { %3358 = vst [vmem:[%s6956_s14 + $0x28] sm:$0xff] %v3300_v12 }
 0x639   :  { %3357 = vst [vmem:[%s6956_s14 + $0x20] sm:$0xff] %v3295_v58  ;;  %v4094_v59 = vpop.f32.mrb[66].mxu1 }
 0x63a   :  { %v3310_v7 = vadd.f32 %v4094_v59, %v3411_v2  ;;  %v3304_v26 = vpop.f32.mrb[67].mxu1 }
 0x63b   :  { %v3305_v32 = vadd.f32 %v3411_v2, %v3304_v26 }
 0x63c   :  { %3360 = vst [vmem:[%s6956_s14 + $0x38] sm:$0xff] %v3310_v7 }
 0x63d   :  { %3359 = vst [vmem:[%s6956_s14 + $0x30] sm:$0xff] %v3305_v32  ;;  %v4097_v17 = vpop.f32.mrb[68].mxu1 }
 0x63e   :  { %v3320_v27 = vadd.f32 %v4097_v17, %v3411_v2  ;;  %v3314_v25 = vpop.f32.mrb[69].mxu1 }
 0x63f   :  { %v3315_v13 = vadd.f32 %v3411_v2, %v3314_v25 }
 0x640   :  { %3362 = vst [vmem:[%s6956_s14 + $0x48] sm:$0xff] %v3320_v27 }
 0x641   :  { %3361 = vst [vmem:[%s6956_s14 + $0x40] sm:$0xff] %v3315_v13  ;;  %v4100_v31 = vpop.f32.mrb[70].mxu1 }
 0x642   :  { %v3330_v50 = vadd.f32 %v4100_v31, %v3411_v2  ;;  %v3324_v34 = vpop.f32.mrb[71].mxu1 }
 0x643   :  { %v3325_v62 = vadd.f32 %v3411_v2, %v3324_v34 }
 0x644   :  { %3364 = vst [vmem:[%s6956_s14 + $0x58] sm:$0xff] %v3330_v50 }
 0x645   :  { %3363 = vst [vmem:[%s6956_s14 + $0x50] sm:$0xff] %v3325_v62  ;;  %v4103_v19 = vpop.f32.mrb[72].mxu1 }
 0x646   :  { %v3340_v49 = vadd.f32 %v4103_v19, %v3411_v2  ;;  %v3334_v46 = vpop.f32.mrb[73].mxu1 }
 0x647   :  { %v3335_v5 = vadd.f32 %v3411_v2, %v3334_v46 }
 0x648   :  { %3366 = vst [vmem:[%s6956_s14 + $0x68] sm:$0xff] %v3340_v49 }
 0x649   :  { %3365 = vst [vmem:[%s6956_s14 + $0x60] sm:$0xff] %v3335_v5  ;;  %v4106_v16 = vpop.f32.mrb[74].mxu1 }
 0x64a   :  { %v3350_v51 = vadd.f32 %v4106_v16, %v3411_v2  ;;  %v3344_v22 = vpop.f32.mrb[75].mxu1 }
 0x64b   :  { %v3345_v4 = vadd.f32 %v3411_v2, %v3344_v22 }
 0x64c   :  { %3368 = vst [vmem:[%s6956_s14 + $0x78] sm:$0xff] %v3350_v51 }
 0x64d   :  { %3367 = vst [vmem:[%s6956_s14 + $0x70] sm:$0xff] %v3345_v4 }

// kernel: mobilenet_v3_like.17
= control target key start
LH: loop header
LB: loop body
LE: loop exit
PB: predicated region body
PF: predicated region fallthrough
CT: control target
= control target key end

     0   :  { %vm26_vm0 = vcmask 64512   ;;  %v808_v2 = vmov 0.0   ;;  %vm809_vm1 = vmmov 0   ;;  %s1254_s0 = inlined_call_operand.vmem [shape: f32[8,128], index: 0, kind: input, shape index: {}]   ;;  %s1255_s1 = inlined_call_operand.vmem [shape: f32[2,8], index: 1, kind: input, shape index: {}]   ;;  %s1256_s2 = inlined_call_operand.vmem [shape: f32[128,512], index: 2, kind: input, shape index: {}]   ;;  %s1257_s3 = inlined_call_operand.vmem [shape: f32[1,512], index: 3, kind: input, shape index: {}]   ;;  %s1258_s4 = inlined_call_operand.vmem [shape: f32[512,128], index: 4, kind: input, shape index: {}]   ;;  %s1259_s5 = inlined_call_operand.vmem [shape: f32[1,128], index: 5, kind: input, shape index: {}]   ;;  %s1260_s6 = inlined_call_operand.hbm [shape: f32[2,128], index: 6, kind: output, shape index: {}]  }
   0x1   :  { %v25_v0 = vld [vmem:[%s1254_s0] sm:$0xff]  ;;  %648 = vmatprep.subr.mxu0 %v808_v2  ;;  %650 = vmatprep.mubr.msk.f32.mxu0 %vm809_vm1, %v808_v2  ;;  %v101_v3 = vld [vmem:[%s1256_s2 + $0x8] sm:$0xff]  ;;  %v103_v5 = vld [vmem:[%s1256_s2 + $0x18] sm:$0xff] }
   0x2   :  { %v24_v1 = vld [vmem:[%s1255_s1] sm:$0x3]  ;;  %v105_v4 = vld [vmem:[%s1256_s2 + $0x28] sm:$0xff]  ;;  %649 = vmatpush3.msra.mxu0 %v25_v0  ;;  %v107_v7 = vld [vmem:[%s1256_s2 + $0x38] sm:$0xff]  ;;  %250 = vmatprep.mubr.f32.mxu1 %v808_v2 }
   0x3   :  { %v653_v6 = vpack.c.bf16 %v105_v4, %v101_v3  ;;  %v100_v8 = vld [vmem:[%s1256_s2] sm:$0xff]  ;;  %651 = vmatmul.mubr.msk.f32.vlgmr.msra.gmra.mrb[0].mxu0 %vm26_vm0, %v24_v1  ;;  %v685_v10 = vpack.c.bf16 %v107_v7, %v103_v5  ;;  %v102_v12 = vld [vmem:[%s1256_s2 + $0x10] sm:$0xff]  ;;  %v109_v14 = vld [vmem:[%s1256_s2 + $0x48] sm:$0xff] }
   0x4   :  { %v104_v9 = vld [vmem:[%s1256_s2 + $0x20] sm:$0xff]  ;;  %v106_v13 = vld [vmem:[%s1256_s2 + $0x30] sm:$0xff]  ;;  %v113_v16 = vld [vmem:[%s1256_s2 + $0x68] sm:$0xff]  ;;  %321 = vmatprep.mubr.f32.mxu0 %v808_v2 }
   0x5   :  { %v655_v11 = vpack.c.bf16 %v104_v9, %v100_v8  ;;  %654 = vmatprep.subr.bf16.mxu1 %v653_v6  ;;  %v687_v15 = vpack.c.bf16 %v106_v13, %v102_v12  ;;  %v111_v17 = vld [vmem:[%s1256_s2 + $0x58] sm:$0xff]  ;;  %686 = vmatprep.subr.bf16.mxu0 %v685_v10  ;;  %v657_v19 = vpack.c.bf16 %v113_v16, %v109_v14  ;;  %v108_v21 = vld [vmem:[%s1256_s2 + $0x40] sm:$0xff]  ;;  %v110_v23 = vld [vmem:[%s1256_s2 + $0x50] sm:$0xff] }
   0x6   :  { %v115_v18 = vld [vmem:[%s1256_s2 + $0x78] sm:$0xff]  ;;  %v112_v22 = vld [vmem:[%s1256_s2 + $0x60] sm:$0xff]  ;;  %v114_v25 = vld [vmem:[%s1256_s2 + $0x70] sm:$0xff] }
   0x7   :  { %656 = vmatpush1.bf16.msra.mxu1 %v655_v11  ;;  %v689_v20 = vpack.c.bf16 %v115_v18, %v111_v17  ;;  %688 = vmatpush1.bf16.msra.mxu0 %v687_v15  ;;  %v659_v24 = vpack.c.bf16 %v112_v22, %v108_v21  ;;  %v117_v26 = vld [vmem:[%s1256_s2 + $0x88] sm:$0xff]  ;;  %v691_v28 = vpack.c.bf16 %v114_v25, %v110_v23  ;;  %v119_v30 = vld [vmem:[%s1256_s2 + $0x98] sm:$0xff]  ;;  %v116_v32 = vld [vmem:[%s1256_s2 + $0x80] sm:$0xff] }
   0x8   :  { %v121_v27 = vld [vmem:[%s1256_s2 + $0xa8] sm:$0xff]  ;;  %658 = vmatprep.subr.bf16.mxu1 %v657_v19  ;;  %v123_v31 = vld [vmem:[%s1256_s2 + $0xb8] sm:$0xff]  ;;  %v120_v34 = vld [vmem:[%s1256_s2 + $0xa0] sm:$0xff] }
   0x9   :  { %690 = vmatprep.subr.bf16.mxu0 %v689_v20  ;;  %v661_v29 = vpack.c.bf16 %v121_v27, %v117_v26  ;;  %v693_v33 = vpack.c.bf16 %v123_v31, %v119_v30  ;;  %v118_v35 = vld [vmem:[%s1256_s2 + $0x90] sm:$0xff]  ;;  %v663_v37 = vpack.c.bf16 %v120_v34, %v116_v32  ;;  %v125_v38 = vld [vmem:[%s1256_s2 + $0xc8] sm:$0xff]  ;;  %v127_v40 = vld [vmem:[%s1256_s2 + $0xd8] sm:$0xff] }
   0xa   :  { %v122_v36 = vld [vmem:[%s1256_s2 + $0xb0] sm:$0xff]  ;;  %v129_v39 = vld [vmem:[%s1256_s2 + $0xe8] sm:$0xff]  ;;  %v131_v43 = vld [vmem:[%s1256_s2 + $0xf8] sm:$0xff] }
   0xb   :  { %660 = vmatpush1.bf16.msra.mxu1 %v659_v24  ;;  %692 = vmatpush1.bf16.msra.mxu0 %v691_v28  ;;  %v695_v41 = vpack.c.bf16 %v122_v36, %v118_v35  ;;  %v665_v42 = vpack.c.bf16 %v129_v39, %v125_v38  ;;  %v124_v44 = vld [vmem:[%s1256_s2 + $0xc0] sm:$0xff]  ;;  %v697_v46 = vpack.c.bf16 %v131_v43, %v127_v40  ;;  %v126_v47 = vld [vmem:[%s1256_s2 + $0xd0] sm:$0xff]  ;;  %v133_v49 = vld [vmem:[%s1256_s2 + $0x108] sm:$0xff] }
   0xc   :  { %662 = vmatprep.subr.bf16.mxu1 %v661_v29  ;;  %v128_v45 = vld [vmem:[%s1256_s2 + $0xe0] sm:$0xff]  ;;  %694 = vmatprep.subr.bf16.mxu0 %v693_v33  ;;  %v130_v48 = vld [vmem:[%s1256_s2 + $0xf0] sm:$0xff]  ;;  %v137_v50 = vld [vmem:[%s1256_s2 + $0x128] sm:$0xff] }
   0xd   :  { %v135_v51 = vld [vmem:[%s1256_s2 + $0x118] sm:$0xff]  ;;  %v667_v53 = vpack.c.bf16 %v128_v45, %v124_v44  ;;  %v699_v54 = vpack.c.bf16 %v130_v48, %v126_v47  ;;  %v669_v55 = vpack.c.bf16 %v137_v50, %v133_v49  ;;  %v132_v56 = vld [vmem:[%s1256_s2 + $0x100] sm:$0xff]  ;;  %v134_v58 = vld [vmem:[%s1256_s2 + $0x110] sm:$0xff] }
   0xe   :  { %v139_v52 = vld [vmem:[%s1256_s2 + $0x138] sm:$0xff]  ;;  %v136_v57 = vld [vmem:[%s1256_s2 + $0x120] sm:$0xff]  ;;  %v138_v60 = vld [vmem:[%s1256_s2 + $0x130] sm:$0xff] }
   0xf   :  { %664 = vmatpush1.bf16.msra.mxu1 %v663_v37  ;;  %696 = vmatpush1.bf16.msra.mxu0 %v695_v41  ;;  %v701_v59 = vpack.c.bf16 %v139_v52, %v135_v51  ;;  %v141_v61 = vld [vmem:[%s1256_s2 + $0x148] sm:$0xff]  ;;  %v143_v63 = vld [vmem:[%s1256_s2 + $0x158] sm:$0xff]  ;;  %v671_v1 = vpack.c.bf16 %v136_v57, %v132_v56  ;;  %v703_v2 = vpack.c.bf16 %v138_v60, %v134_v58  ;;  %v140_v4 = vld [vmem:[%s1256_s2 + $0x140] sm:$0xff] }
  0x10   :  { %666 = vmatprep.subr.bf16.mxu1 %v665_v42  ;;  %698 = vmatprep.subr.bf16.mxu0 %v697_v46  ;;  %v145_v62 = vld [vmem:[%s1256_s2 + $0x168] sm:$0xff]  ;;  %v147_v0 = vld [vmem:[%s1256_s2 + $0x178] sm:$0xff]  ;;  %v144_v5 = vld [vmem:[%s1256_s2 + $0x160] sm:$0xff] }
  0x11   :  { %v673_v3 = vpack.c.bf16 %v145_v62, %v141_v61  ;;  %v142_v6 = vld [vmem:[%s1256_s2 + $0x150] sm:$0xff]  ;;  %v705_v7 = vpack.c.bf16 %v147_v0, %v143_v63  ;;  %v149_v9 = vld [vmem:[%s1256_s2 + $0x188] sm:$0xff]  ;;  %v151_v11 = vld [vmem:[%s1256_s2 + $0x198] sm:$0xff]  ;;  %v675_v13 = vpack.c.bf16 %v144_v5, %v140_v4 }
  0x12   :  { %v146_v8 = vld [vmem:[%s1256_s2 + $0x170] sm:$0xff]  ;;  %v153_v10 = vld [vmem:[%s1256_s2 + $0x1a8] sm:$0xff]  ;;  %v155_v12 = vld [vmem:[%s1256_s2 + $0x1b8] sm:$0xff] }
  0x13   :  { %668 = vmatpush1.bf16.msra.mxu1 %v667_v53  ;;  %700 = vmatpush1.bf16.msra.mxu0 %v699_v54  ;;  %v148_v14 = vld [vmem:[%s1256_s2 + $0x180] sm:$0xff]  ;;  %v707_v15 = vpack.c.bf16 %v146_v8, %v142_v6  ;;  %v677_v16 = vpack.c.bf16 %v153_v10, %v149_v9  ;;  %v150_v18 = vld [vmem:[%s1256_s2 + $0x190] sm:$0xff] }
  0x14   :  { %670 = vmatprep.subr.bf16.mxu1 %v669_v55  ;;  %702 = vmatprep.subr.bf16.mxu0 %v701_v59  ;;  %v152_v17 = vld [vmem:[%s1256_s2 + $0x1a0] sm:$0xff] }
  0x17   :  { %672 = vmatpush1.bf16.msra.mxu1 %v671_v1  ;;  %704 = vmatpush1.bf16.msra.mxu0 %v703_v2 }
  0x18   :  { %674 = vmatprep.subr.bf16.mxu1 %v673_v3 }
  0x19   :  { %11 = vsyncpa [#allocation3], 0  ;;  %706 = vmatprep.subr.bf16.mxu0 %v705_v7  ;;  %v709_v19 = vpack.c.bf16 %v155_v12, %v151_v11  ;;  %v154_v20 = vld [vmem:[%s1256_s2 + $0x1b0] sm:$0xff]  ;;  %v157_v21 = vld [vmem:[%s1256_s2 + $0x1c8] sm:$0xff]  ;;  %v679_v25 = vpack.c.bf16 %v152_v17, %v148_v14  ;;  %s810_s18 = smov [#allocation2]  }
  0x1a   :  { %v161_v22 = vld [vmem:[%s1256_s2 + $0x1e8] sm:$0xff]  ;;  %v159_v23 = vld [vmem:[%s1256_s2 + $0x1d8] sm:$0xff]  ;;  %v711_v26 = vpack.c.bf16 %v154_v20, %v150_v18  ;;  %v156_v28 = vld [vmem:[%s1256_s2 + $0x1c0] sm:$0xff]  ;;  %s566_s19 = sshll.u32 %s810_s18, 4  ;;  %s567_s19 = int_to_ptr.vmem [resolvable:$true] %s566_s19 }
  0x1b   :  { %v163_v24 = vld [vmem:[%s1256_s2 + $0x1f8] sm:$0xff]  ;;  %676 = vmatpush1.bf16.msra.mxu1 %v675_v13  ;;  %708 = vmatpush1.bf16.msra.mxu0 %v707_v15  ;;  %v681_v27 = vpack.c.bf16 %v161_v22, %v157_v21  ;;  %v160_v29 = vld [vmem:[%s1256_s2 + $0x1e0] sm:$0xff]  ;;  %v158_v31 = vld [vmem:[%s1256_s2 + $0x1d0] sm:$0xff]  ;;  %s784_s20 = scalar_lea.vmem %s567_s19, 32  ;;  %p789_p1 = scmp.lt.s32.totalorder %s567_s19, %s567_s19 }
  0x1c   :  { %678 = vmatprep.subr.bf16.mxu1 %v677_v16  ;;  %710 = vmatprep.subr.bf16.mxu0 %v709_v19  ;;  %v713_v30 = vpack.c.bf16 %v163_v24, %v159_v23  ;;  %v162_v32 = vld [vmem:[%s1256_s2 + $0x1f0] sm:$0xff]  ;;  %v683_v33 = vpack.c.bf16 %v160_v29, %v156_v28  ;;  %v364_v35 = vld [vmem:[%s1258_s4 + $0x80] sm:$0xff]  ;;  %v365_v36 = vld [vmem:[%s1258_s4 + $0x88] sm:$0xff]  ;;  %p785_p0 = scmp.ne.s32.totalorder %s567_s19, %s784_s20  ;;  %p790_p2 = scmp.lt.s32.totalorder %s784_s20, %s784_s20 }
  0x1d   :  { %v715_v34 = vpack.c.bf16 %v162_v32, %v158_v31  ;;  %v396_v37 = vld [vmem:[%s1258_s4 + $0x180] sm:$0xff]  ;;  %v717_v38 = vpack.c.bf16 %v365_v36, %v364_v35  ;;  %v397_v39 = vld [vmem:[%s1258_s4 + $0x188] sm:$0xff]  ;;  %v366_v45 = vld [vmem:[%s1258_s4 + $0x90] sm:$0xff] }
  0x1e   :  { %v749_v40 = vpack.c.bf16 %v397_v39, %v396_v37  ;;  %v348_v41 = vld [vmem:[%s1258_s4] sm:$0xff]  ;;  %v349_v42 = vld [vmem:[%s1258_s4 + $0x8] sm:$0xff]  ;;  %v367_v46 = vld [vmem:[%s1258_s4 + $0x98] sm:$0xff]  ;;  %p791_p3 = por %p790_p2, %p789_p1 }
  0x1f   :  { %680 = vmatpush1.bf16.msra.mxu1 %v679_v25  ;;  %712 = vmatpush1.bf16.msra.mxu0 %v711_v26  ;;  %v380_v43 = vld [vmem:[%s1258_s4 + $0x100] sm:$0xff]  ;;  %v381_v44 = vld [vmem:[%s1258_s4 + $0x108] sm:$0xff]  ;;  %v398_v47 = vld [vmem:[%s1258_s4 + $0x190] sm:$0xff]  ;;  %v719_v49 = vpack.c.bf16 %v349_v42, %v348_v41  ;;  %v721_v53 = vpack.c.bf16 %v367_v46, %v366_v45 }
  0x20   :  { %682 = vmatprep.subr.bf16.mxu1 %v681_v27  ;;  %714 = vmatprep.subr.bf16.mxu0 %v713_v30  ;;  %v399_v48 = vld [vmem:[%s1258_s4 + $0x198] sm:$0xff]  ;;  %v751_v50 = vpack.c.bf16 %v381_v44, %v380_v43  ;;  %v350_v51 = vld [vmem:[%s1258_s4 + $0x10] sm:$0xff]  ;;  %v368_v57 = vld [vmem:[%s1258_s4 + $0xa0] sm:$0xff]  ;;  %p792_p4 = pnand %p791_p3, %p785_p0 }
  0x21   :  { %v351_v52 = vld [vmem:[%s1258_s4 + $0x18] sm:$0xff]  ;;  %v753_v54 = vpack.c.bf16 %v399_v48, %v398_v47  ;;  %v382_v55 = vld [vmem:[%s1258_s4 + $0x110] sm:$0xff]  ;;  %v369_v59 = vld [vmem:[%s1258_s4 + $0xa8] sm:$0xff] }
  0x22   :  { %v383_v56 = vld [vmem:[%s1258_s4 + $0x118] sm:$0xff]  ;;  %v400_v60 = vld [vmem:[%s1258_s4 + $0x1a0] sm:$0xff]  ;;  %v401_v61 = vld [vmem:[%s1258_s4 + $0x1a8] sm:$0xff]  ;;  %v723_v63 = vpack.c.bf16 %v351_v52, %v350_v51  ;;  %v725_v3 = vpack.c.bf16 %v369_v59, %v368_v57 }
  0x23   :  { %684 = vmatpush1.bf16.msra.mxu1 %v683_v33  ;;  %716 = vmatpush1.bf16.msra.mxu0 %v715_v34  ;;  %v755_v0 = vpack.c.bf16 %v383_v56, %v382_v55  ;;  %v352_v1 = vld [vmem:[%s1258_s4 + $0x20] sm:$0xff]  ;;  %v353_v2 = vld [vmem:[%s1258_s4 + $0x28] sm:$0xff]  ;;  %v757_v4 = vpack.c.bf16 %v401_v61, %v400_v60  ;;  %v370_v7 = vld [vmem:[%s1258_s4 + $0xb0] sm:$0xff] }
  0x24   :  { %718 = vmatprep.subr.bf16.mxu1 %v717_v38  ;;  %750 = vmatprep.subr.bf16.mxu0 %v749_v40  ;;  %v384_v5 = vld [vmem:[%s1258_s4 + $0x120] sm:$0xff]  ;;  %v385_v6 = vld [vmem:[%s1258_s4 + $0x128] sm:$0xff]  ;;  %v371_v8 = vld [vmem:[%s1258_s4 + $0xb8] sm:$0xff]  ;;  %v727_v11 = vpack.c.bf16 %v353_v2, %v352_v1 }
  0x25   :  { %v402_v9 = vld [vmem:[%s1258_s4 + $0x1b0] sm:$0xff]  ;;  %v403_v10 = vld [vmem:[%s1258_s4 + $0x1b8] sm:$0xff]  ;;  %v759_v12 = vpack.c.bf16 %v385_v6, %v384_v5  ;;  %v729_v15 = vpack.c.bf16 %v371_v8, %v370_v7  ;;  %v372_v19 = vld [vmem:[%s1258_s4 + $0xc0] sm:$0xff]  ;;  %v166_v5 = vlaneseq }
  0x26   :  { %v354_v13 = vld [vmem:[%s1258_s4 + $0x30] sm:$0xff]  ;;  %v355_v14 = vld [vmem:[%s1258_s4 + $0x38] sm:$0xff]  ;;  %v761_v16 = vpack.c.bf16 %v403_v10, %v402_v9  ;;  %v373_v20 = vld [vmem:[%s1258_s4 + $0xc8] sm:$0xff] }
  0x27   :  { %v386_v17 = vld [vmem:[%s1258_s4 + $0x130] sm:$0xff]  ;;  %v387_v18 = vld [vmem:[%s1258_s4 + $0x138] sm:$0xff]  ;;  %v404_v21 = vld [vmem:[%s1258_s4 + $0x1c0] sm:$0xff]  ;;  %v731_v23 = vpack.c.bf16 %v355_v14, %v354_v13  ;;  %v733_v25 = vpack.c.bf16 %v373_v20, %v372_v19  ;;  %v167_v6 = vshrl.u32 %v166_v5, 7 }
  0x28   :  { %v405_v22 = vld [vmem:[%s1258_s4 + $0x1c8] sm:$0xff]  ;;  %v763_v24 = vpack.c.bf16 %v387_v18, %v386_v17  ;;  %v356_v27 = vld [vmem:[%s1258_s4 + $0x40] sm:$0xff]  ;;  %v374_v33 = vld [vmem:[%s1258_s4 + $0xd0] sm:$0xff] }
  0x29   :  { %v765_v26 = vpack.c.bf16 %v405_v22, %v404_v21  ;;  %v357_v28 = vld [vmem:[%s1258_s4 + $0x48] sm:$0xff]  ;;  %v388_v29 = vld [vmem:[%s1258_s4 + $0x140] sm:$0xff]  ;;  %v375_v34 = vld [vmem:[%s1258_s4 + $0xd8] sm:$0xff]  ;;  %v168_v7 = vsub.s32 0, %v167_v6  ;;  %v176_v8 = vsub.s32 2, %v167_v6  ;;  %v172_v10 = vsub.s32 1, %v167_v6 }
  0x2a   :  { %v735_v30 = vpack.c.bf16 %v357_v28, %v356_v27  ;;  %v389_v31 = vld [vmem:[%s1258_s4 + $0x148] sm:$0xff]  ;;  %v406_v35 = vld [vmem:[%s1258_s4 + $0x1d0] sm:$0xff]  ;;  %v737_v36 = vpack.c.bf16 %v375_v34, %v374_v33  ;;  %v407_v37 = vld [vmem:[%s1258_s4 + $0x1d8] sm:$0xff] }
  0x2b   :  { %v767_v32 = vpack.c.bf16 %v389_v31, %v388_v29  ;;  %v358_v38 = vld [vmem:[%s1258_s4 + $0x50] sm:$0xff]  ;;  %v359_v39 = vld [vmem:[%s1258_s4 + $0x58] sm:$0xff]  ;;  %v769_v40 = vpack.c.bf16 %v407_v37, %v406_v35  ;;  %v376_v45 = vld [vmem:[%s1258_s4 + $0xe0] sm:$0xff] }
  0x2c   :  { %v739_v41 = vpack.c.bf16 %v359_v39, %v358_v38  ;;  %v390_v42 = vld [vmem:[%s1258_s4 + $0x150] sm:$0xff]  ;;  %v391_v43 = vld [vmem:[%s1258_s4 + $0x158] sm:$0xff]  ;;  %v377_v46 = vld [vmem:[%s1258_s4 + $0xe8] sm:$0xff] }
  0x2d   :  { %v771_v44 = vpack.c.bf16 %v391_v43, %v390_v42  ;;  %v408_v47 = vld [vmem:[%s1258_s4 + $0x1e0] sm:$0xff]  ;;  %v741_v48 = vpack.c.bf16 %v377_v46, %v376_v45  ;;  %v361_v51 = vld [vmem:[%s1258_s4 + $0x68] sm:$0xff]  ;;  %v378_v57 = vld [vmem:[%s1258_s4 + $0xf0] sm:$0xff] }
  0x2e   :  { %v393_v55 = vld [vmem:[%s1258_s4 + $0x168] sm:$0xff]  ;;  %v410_v59 = vld [vmem:[%s1258_s4 + $0x1f0] sm:$0xff]  ;;  %v411_v61 = vld [vmem:[%s1258_s4 + $0x1f8] sm:$0xff] }
  0x2f   :  { %v394_v2 = vld [vmem:[%s1258_s4 + $0x170] sm:$0xff]  ;;  %v164_v9 = vld [vmem:[%s1257_s3] sm:$0xf] }
  0x30   :  { %v177_v13 = vrot.slane %v164_v9, %v176_v8  ;;  %v173_v14 = vrot.slane %v164_v9, %v172_v10  ;;  %v575_v46 = vld [vmem:[%s1259_s5] ss:$0 sm:$0xff] }
  0xd6   :  { %v96_v58 = vpop.f32.mrb[0].mxu0 }
  0xd7   :  { %v652_v62 = vpop.f32.mrb[1].mxu0  ;;  %251 = vmatmul.mubr.f32.vlgmr.msra.gmra.mrb[0].mxu1 %v96_v58  ;;  %322 = vmatmul.mubr.f32.vlgmr.msra.gmra.mrb[2].mxu0 %v96_v58  ;;  %v379_v58 = vld [vmem:[%s1258_s4 + $0xf8] sm:$0xff] }
  0xd8   :  { %720 = vmatpush3.bf16.msra.mxu1 %v719_v49  ;;  %752 = vmatpush3.bf16.msra.mxu0 %v751_v50  ;;  %v409_v49 = vld [vmem:[%s1258_s4 + $0x1e8] sm:$0xff]  ;;  %v360_v50 = vld [vmem:[%s1258_s4 + $0x60] sm:$0xff]  ;;  %v745_v60 = vpack.c.bf16 %v379_v58, %v378_v57  ;;  %v362_v62 = vld [vmem:[%s1258_s4 + $0x70] sm:$0xff] }
  0xd9   :  { %722 = vmatprep.subr.bf16.mxu1 %v721_v53  ;;  %754 = vmatprep.subr.bf16.mxu0 %v753_v54  ;;  %v773_v52 = vpack.c.bf16 %v409_v49, %v408_v47  ;;  %v743_v53 = vpack.c.bf16 %v361_v51, %v360_v50  ;;  %v392_v54 = vld [vmem:[%s1258_s4 + $0x160] sm:$0xff] }
  0xda   :  { %v775_v56 = vpack.c.bf16 %v393_v55, %v392_v54 }
  0xdc   :  { %724 = vmatpush3.bf16.msra.mxu1 %v723_v63  ;;  %756 = vmatpush3.bf16.msra.mxu0 %v755_v0  ;;  %v363_v63 = vld [vmem:[%s1258_s4 + $0x78] sm:$0xff]  ;;  %v777_v0 = vpack.c.bf16 %v411_v61, %v410_v59 }
  0xdd   :  { %726 = vmatprep.subr.bf16.mxu1 %v725_v3  ;;  %758 = vmatprep.subr.bf16.mxu0 %v757_v4  ;;  %v747_v1 = vpack.c.bf16 %v363_v63, %v362_v62  ;;  %v395_v3 = vld [vmem:[%s1258_s4 + $0x178] sm:$0xff] }
  0xde   :  { %v779_v4 = vpack.c.bf16 %v395_v3, %v394_v2 }
  0xe0   :  { %728 = vmatpush3.bf16.msra.mxu1 %v727_v11  ;;  %760 = vmatpush3.bf16.msra.mxu0 %v759_v12  ;;  %v180_v11 = vsub.s32 3, %v167_v6  ;;  %v169_v12 = vrot.slane %v164_v9, %v168_v7 }
  0xe1   :  { %730 = vmatprep.subr.bf16.mxu1 %v729_v15  ;;  %762 = vmatprep.subr.bf16.mxu0 %v761_v16 }
  0xe2   :  { %v181_v15 = vrot.slane %v164_v9, %v180_v11 }
  0xe4   :  { %732 = vmatpush3.bf16.msra.mxu1 %v731_v23  ;;  %764 = vmatpush3.bf16.msra.mxu0 %v763_v24 }
  0xe5   :  { %734 = vmatprep.subr.bf16.mxu1 %v733_v25  ;;  %766 = vmatprep.subr.bf16.mxu0 %v765_v26 }
  0xe8   :  { %736 = vmatpush3.bf16.msra.mxu1 %v735_v30  ;;  %768 = vmatpush3.bf16.msra.mxu0 %v767_v32 }
  0xe9   :  { %738 = vmatprep.subr.bf16.mxu1 %v737_v36  ;;  %770 = vmatprep.subr.bf16.mxu0 %v769_v40 }
  0xec   :  { %740 = vmatpush3.bf16.msra.mxu1 %v739_v41  ;;  %772 = vmatpush3.bf16.msra.mxu0 %v771_v44 }
  0xed   :  { %742 = vmatprep.subr.bf16.mxu1 %v741_v48  ;;  %774 = vmatprep.subr.bf16.mxu0 %v773_v52 }
  0xf0   :  { %744 = vmatpush3.bf16.msra.mxu1 %v743_v53  ;;  %776 = vmatpush3.bf16.msra.mxu0 %v775_v56 }
  0xf1   :  { %746 = vmatprep.subr.bf16.mxu1 %v745_v60  ;;  %778 = vmatprep.subr.bf16.mxu0 %v777_v0 }
  0xf4   :  { %748 = vmatpush3.bf16.msra.mxu1 %v747_v1  ;;  %780 = vmatpush3.bf16.msra.mxu0 %v779_v4 }
 0x1aa   :  { %v252_v16 = vpop.f32.mrb[0].mxu1  ;;  %v323_v17 = vpop.f32.mrb[2].mxu0 }
 0x1ab   :  { %v253_v18 = vadd.f32 %v252_v16, %v169_v12  ;;  %v324_v19 = vadd.f32 %v323_v17, %v177_v13  ;;  %v254_v20 = vpop.f32.mrb[1].mxu1  ;;  %v325_v21 = vpop.f32.mrb[3].mxu0 }
 0x1ac   :  { %v255_v22 = vadd.f32 %v254_v20, %v173_v14  ;;  %v326_v23 = vadd.f32 %v325_v21, %v181_v15 }
 0x1ad   :  { %v328_v24 = vadd.f32 3.0, %v253_v18  ;;  %v330_v25 = vadd.f32 3.0, %v324_v19 }
 0x1ae   :  { %v329_v26 = vadd.f32 3.0, %v255_v22  ;;  %v331_v27 = vadd.f32 3.0, %v326_v23 }
 0x1af   :  { %v332_v28 = vmax.f32 %v328_v24, 0.0  ;;  %v334_v29 = vmax.f32 %v330_v25, 0.0 }
 0x1b0   :  { %v333_v30 = vmax.f32 %v329_v26, 0.0  ;;  %v335_v31 = vmax.f32 %v331_v27, 0.0 }
 0x1b1   :  { %v336_v32 = vmin.f32 %v332_v28, 6.0  ;;  %v338_v33 = vmin.f32 %v334_v29, 6.0 }
 0x1b2   :  { %v337_v34 = vmin.f32 %v333_v30, 6.0  ;;  %v339_v35 = vmin.f32 %v335_v31, 6.0 }
 0x1b3   :  { %v340_v36 = vmul.f32 0.16666667, %v336_v32  ;;  %v342_v37 = vmul.f32 0.16666667, %v338_v33 }
 0x1b4   :  { %v341_v38 = vmul.f32 0.16666667, %v337_v34  ;;  %v343_v39 = vmul.f32 0.16666667, %v339_v35 }
 0x1b5   :  { %v344_v42 = vmul.f32 %v340_v36, %v253_v18  ;;  %v346_v43 = vmul.f32 %v342_v37, %v324_v19 }
 0x1b6   :  { %v345_v40 = vmul.f32 %v341_v38, %v255_v22  ;;  %v347_v41 = vmul.f32 %v343_v39, %v326_v23 }
 0x1b8   :  { %483 = vmatprep.mubr.f32.mxu1 %v345_v40  ;;  %553 = vmatprep.mubr.f32.mxu0 %v347_v41 }
 0x1b9   :  { %484 = vmatmul.mubr.f32.vlgmr.msra.gmra.mrb[2].mxu1 %v344_v42  ;;  %554 = vmatmul.mubr.f32.vlgmr.msra.gmra.mrb[4].mxu0 %v346_v43 }
 0x28c   :  { %v610_v44 = vpop.f32.mrb[2].mxu1  ;;  %v645_v45 = vpop.f32.mrb[4].mxu0 }
 0x28d   :  { %v611_v47 = vpop.f32.mrb[3].mxu1  ;;  %v646_v48 = vpop.f32.mrb[5].mxu0 }
 0x28e   :  { %v612_v49 = vadd.f32 %v611_v47, %v610_v44  ;;  %v647_v50 = vadd.f32 %v646_v48, %v645_v45 }
 0x290   :  { %v486_v51 = vadd.f32 %v612_v49, %v575_v46 }
 0x292   :  { %v556_v52 = vadd.f32 %v647_v50, %v486_v51 }
 0x294   :  { %559 = vst [vmem:[#allocation2] sm:$0x3] %v556_v52 }
 0x295   :  { %795 = shalt.err (!%p792_p4)
}
 0x296   :  { %s796_s5 = scalar_lea.hbm %s1260_s6, 32 }
 0x297   :  { %p797_p5 = scmp.ne.s32.totalorder %s1260_s6, %s796_s5  ;;  %p800_p6 = scmp.lt.u32.totalorder %s796_s5, %s1260_s6 }
 0x299   :  { %p802_p7 = pnand %p800_p6, %p797_p5 }
 0x29b   :  { %805 = shalt.err (!%p802_p7)
}
 0x29c   :  { %569 = dma.vmem_to_hbm [thread:$0]  %s567_s19, 32, %s1260_s6, [#allocation3]  }
 0x29d   :  { %806 = dma.done.wait [#allocation3], 32  }
 0x29e   :  { %807 = vsyncadd [#allocation3], 4294967264 }
 0x29f   :  { %573 = vsyncpa [#allocation3], 1 }

// kernel: mobilenet_v3_like.13
= control target key start
LH: loop header
LB: loop body
LE: loop exit
PB: predicated region body
PF: predicated region fallthrough
CT: control target
= control target key end

     0   :  { %v1689_v0 = vmov 0.0|0.0   ;;  %vm1690_vm0 = vmmov 0   ;;  %v1691_v4 = vmov 0.0   ;;  %v1692_v7 = vmov 0   ;;  %s2334_s2 = inlined_call_operand.vmem [shape: f32[128,128], index: 2, kind: input, shape index: {}]   ;;  %s2335_s1 = inlined_call_operand.vmem [shape: f32[200,1], index: 1, kind: input, shape index: {}]   ;;  %s2336_s0 = inlined_call_operand.vmem [shape: f32[200,128], index: 0, kind: input, shape index: {}]   ;;  %s2337_s3 = inlined_call_operand.vmem [shape: f32[1,128], index: 3, kind: input, shape index: {}]   ;;  %s2338_s4 = inlined_call_operand.vmem [shape: f32[25,1,128], index: 4, kind: input, shape index: {}]   ;;  %s2339_s5 = inlined_call_operand.vmem [shape: f32[1,128], index: 5, kind: input, shape index: {}]   ;;  %s2340_s6 = inlined_call_operand.vmem [shape: f32[128,128], index: 6, kind: input, shape index: {}]   ;;  %s2341_s10 = inlined_call_operand.vmem [shape: f32[2,8], index: 10, kind: input, shape index: {}]   ;;  %s2342_s8 = inlined_call_operand.vmem [shape: f32[128,128], index: 8, kind: input, shape index: {}]   ;;  %s2343_s7 = inlined_call_operand.vmem [shape: f32[1,128], index: 7, kind: input, shape index: {}]   ;;  %s2344_s9 = inlined_call_operand.vmem [shape: f32[1,128], index: 9, kind: input, shape index: {}]   ;;  %s2345_s12 = inlined_call_operand.vmem [shape: f32[128,128], index: 12, kind: input, shape index: {}]   ;;  %s2346_s11 = inlined_call_operand.vmem [shape: f32[8,2], index: 11, kind: input, shape index: {}]   ;;  %s2347_s13 = inlined_call_operand.vmem [shape: f32[1,128], index: 13, kind: input, shape index: {}]   ;;  %s2348_s14 = inlined_call_operand.vmem [shape: f32[8,128], index: 14, kind: output, shape index: {}]  }
   0x1   :  { %1587 = vmatprep.subr.bf16.mxu0 %v1689_v0  ;;  %v72_v1 = vld [vmem:[%s2334_s2] sm:$0xff]  ;;  %v73_v2 = vld [vmem:[%s2334_s2 + $0x8] sm:$0xff]  ;;  %v74_v3 = vld [vmem:[%s2334_s2 + $0x10] sm:$0xff]  ;;  %1397 = vmatprep.mubr.msk.f32.mxu0 %vm1690_vm0, %v1691_v4  ;;  %vm769_vm1 = vcmask 64512   ;;  %vm1039_vm2 = vcmask 1041408   ;;  %vm1035_vm3 = vcmask 15360  }
   0x2   :  { %v1588_v5 = vpack.c.bf16 %v73_v2, %v72_v1  ;;  %v75_v6 = vld [vmem:[%s2334_s2 + $0x18] sm:$0xff]  ;;  %1687 = vset.pattern.permute.xlu0 %v1692_v7  ;;  %1688 = vset.pattern.permute.xlu1 %v1692_v7  ;;  %v76_v9 = vld [vmem:[%s2334_s2 + $0x20] sm:$0xff]  ;;  %v77_v10 = vld [vmem:[%s2334_s2 + $0x28] sm:$0xff] }
   0x3   :  { %1472 = vmatprep.subr.mxu1 %v1691_v4  ;;  %1474 = vmatprep.mubr.msk.f32.mxu1 %vm1690_vm0, %v1691_v4  ;;  %v1591_v8 = vpack.c.bf16 %v75_v6, %v74_v3  ;;  %v1594_v11 = vpack.c.bf16 %v77_v10, %v76_v9  ;;  %v78_v12 = vld [vmem:[%s2334_s2 + $0x30] sm:$0xff]  ;;  %v79_v13 = vld [vmem:[%s2334_s2 + $0x38] sm:$0xff]  ;;  %v80_v15 = vld [vmem:[%s2334_s2 + $0x40] sm:$0xff] }
   0x4   :  { %1589 = vmatpush3.bf16.msra.mxu0 %v1588_v5  ;;  %v1597_v14 = vpack.c.bf16 %v79_v13, %v78_v12  ;;  %v81_v16 = vld [vmem:[%s2334_s2 + $0x48] sm:$0xff]  ;;  %v335_v17 = vld [vmem:[%s2335_s1] sm:$0xff]  ;;  %v337_v19 = vld [vmem:[%s2335_s1 + $0x10] sm:$0xff] }
   0x5   :  { %1590 = vmatprep.subr.bf16.mxu0 %v1689_v0  ;;  %362 = vperm.xlu0 %1687, %v335_v17   ;;  %v336_v18 = vld [vmem:[%s2335_s1 + $0x8] sm:$0xff]  ;;  %v1600_v20 = vpack.c.bf16 %v81_v16, %v80_v15  ;;  %v82_v21 = vld [vmem:[%s2334_s2 + $0x50] sm:$0xff]  ;;  %v83_v22 = vld [vmem:[%s2334_s2 + $0x58] sm:$0xff] }
   0x6   :  { %372 = vperm.xlu1 %1688, %v337_v19   ;;  %v338_v23 = vld [vmem:[%s2335_s1 + $0x18] sm:$0xff]  ;;  %v339_v24 = vld [vmem:[%s2335_s1 + $0x20] sm:$0xff]  ;;  %v1603_v25 = vpack.c.bf16 %v83_v22, %v82_v21  ;;  %v85_v27 = vld [vmem:[%s2334_s2 + $0x68] sm:$0xff] }
   0x7   :  { %v84_v26 = vld [vmem:[%s2334_s2 + $0x60] sm:$0xff]  ;;  %v340_v28 = vld [vmem:[%s2335_s1 + $0x28] sm:$0xff]  ;;  %v341_v29 = vld [vmem:[%s2335_s1 + $0x30] sm:$0xff] }
   0x8   :  { %1592 = vmatpush3.bf16.msra.mxu0 %v1591_v8  ;;  %v1606_v30 = vpack.c.bf16 %v85_v27, %v84_v26  ;;  %v86_v31 = vld [vmem:[%s2334_s2 + $0x70] sm:$0xff]  ;;  %v87_v32 = vld [vmem:[%s2334_s2 + $0x78] sm:$0xff]  ;;  %v343_v34 = vld [vmem:[%s2335_s1 + $0x40] sm:$0xff] }
   0x9   :  { %1593 = vmatprep.subr.bf16.mxu0 %v1689_v0  ;;  %367 = vperm.xlu0 %1687, %v336_v18   ;;  %v342_v33 = vld [vmem:[%s2335_s1 + $0x38] sm:$0xff]  ;;  %v1609_v35 = vpack.c.bf16 %v87_v32, %v86_v31  ;;  %v344_v36 = vld [vmem:[%s2335_s1 + $0x48] sm:$0xff]  ;;  %v345_v37 = vld [vmem:[%s2335_s1 + $0x50] sm:$0xff] }
   0xa   :  { %377 = vperm.xlu1 %1688, %v338_v23   ;;  %v47_v38 = vld [vmem:[%s2336_s0] sm:$0xff]  ;;  %v346_v39 = vld [vmem:[%s2335_s1 + $0x58] sm:$0xff]  ;;  %v48_v41 = vld [vmem:[%s2336_s0 + $0x8] sm:$0xff] }
   0xb   :  { %v347_v40 = vld [vmem:[%s2335_s1 + $0x60] sm:$0xff]  ;;  %v348_v42 = vld [vmem:[%s2335_s1 + $0x68] sm:$0xff]  ;;  %v349_v43 = vld [vmem:[%s2335_s1 + $0x70] sm:$0xff] }
   0xc   :  { %1595 = vmatpush3.bf16.msra.mxu0 %v1594_v11  ;;  %v49_v44 = vld [vmem:[%s2336_s0 + $0x10] sm:$0xff]  ;;  %v350_v45 = vld [vmem:[%s2335_s1 + $0x78] sm:$0xff]  ;;  %v351_v46 = vld [vmem:[%s2335_s1 + $0x80] sm:$0xff] }
   0xd   :  { %1596 = vmatprep.subr.bf16.mxu0 %v1689_v0  ;;  %382 = vperm.xlu0 %1687, %v339_v24   ;;  %v50_v47 = vld [vmem:[%s2336_s0 + $0x18] sm:$0xff]  ;;  %v352_v48 = vld [vmem:[%s2335_s1 + $0x88] sm:$0xff]  ;;  %v353_v49 = vld [vmem:[%s2335_s1 + $0x90] sm:$0xff] }
   0xe   :  { %387 = vperm.xlu1 %1688, %v340_v28   ;;  %v51_v50 = vld [vmem:[%s2336_s0 + $0x20] sm:$0xff]  ;;  %v354_v51 = vld [vmem:[%s2335_s1 + $0x98] sm:$0xff]  ;;  %v52_v53 = vld [vmem:[%s2336_s0 + $0x28] sm:$0xff] }
   0xf   :  { %v355_v52 = vld [vmem:[%s2335_s1 + $0xa0] sm:$0xff]  ;;  %v356_v54 = vld [vmem:[%s2335_s1 + $0xa8] sm:$0xff]  ;;  %v357_v55 = vld [vmem:[%s2335_s1 + $0xb0] sm:$0xff] }
  0x10   :  { %1598 = vmatpush3.bf16.msra.mxu0 %v1597_v14  ;;  %v53_v56 = vld [vmem:[%s2336_s0 + $0x30] sm:$0xff]  ;;  %v358_v57 = vld [vmem:[%s2335_s1 + $0xb8] sm:$0xff]  ;;  %v359_v58 = vld [vmem:[%s2335_s1 + $0xc0] sm:$0xff] }
  0x11   :  { %1599 = vmatprep.subr.bf16.mxu0 %v1689_v0  ;;  %392 = vperm.xlu0 %1687, %v341_v29   ;;  %v54_v59 = vld [vmem:[%s2336_s0 + $0x38] sm:$0xff]  ;;  %v55_v60 = vld [vmem:[%s2336_s0 + $0x40] sm:$0xff]  ;;  %v56_v61 = vld [vmem:[%s2336_s0 + $0x48] sm:$0xff] }
  0x12   :  { %397 = vperm.xlu1 %1688, %v342_v33   ;;  %v57_v62 = vld [vmem:[%s2336_s0 + $0x50] sm:$0xff]  ;;  %v58_v63 = vld [vmem:[%s2336_s0 + $0x58] sm:$0xff]  ;;  %v59_v1 = vld [vmem:[%s2336_s0 + $0x60] sm:$0xff] }
  0x13   :  { %v60_v2 = vld [vmem:[%s2336_s0 + $0x68] sm:$0xff]  ;;  %v61_v3 = vld [vmem:[%s2336_s0 + $0x70] sm:$0xff]  ;;  %v62_v5 = vld [vmem:[%s2336_s0 + $0x78] sm:$0xff] }
  0x14   :  { %1601 = vmatpush3.bf16.msra.mxu0 %v1600_v20  ;;  %v63_v6 = vld [vmem:[%s2336_s0 + $0x80] sm:$0xff]  ;;  %v64_v7 = vld [vmem:[%s2336_s0 + $0x88] sm:$0xff]  ;;  %v65_v8 = vld [vmem:[%s2336_s0 + $0x90] sm:$0xff] }
  0x15   :  { %1602 = vmatprep.subr.bf16.mxu0 %v1689_v0  ;;  %402 = vperm.xlu0 %1687, %v343_v34   ;;  %v66_v9 = vld [vmem:[%s2336_s0 + $0x98] sm:$0xff]  ;;  %v67_v10 = vld [vmem:[%s2336_s0 + $0xa0] sm:$0xff]  ;;  %v68_v11 = vld [vmem:[%s2336_s0 + $0xa8] sm:$0xff] }
  0x16   :  { %407 = vperm.xlu1 %1688, %v344_v36   ;;  %v69_v12 = vld [vmem:[%s2336_s0 + $0xb0] sm:$0xff]  ;;  %v70_v13 = vld [vmem:[%s2336_s0 + $0xb8] sm:$0xff]  ;;  %v71_v14 = vld [vmem:[%s2336_s0 + $0xc0] sm:$0xff] }
  0x17   :  { %v2030_v15 = vld [vmem:[%s2337_s3] ss:$0 sm:$0xff]  ;;  %v1215_v32 = vld [vmem:[%s2338_s4 + $0x1] ss:$0 sm:$0xff] }
  0x18   :  { %1604 = vmatpush3.bf16.msra.mxu0 %v1603_v25  ;;  %v1213_v31 = vld [vmem:[%s2338_s4] ss:$0 sm:$0xff] }
  0x19   :  { %1605 = vmatprep.subr.bf16.mxu0 %v1689_v0  ;;  %412 = vperm.xlu0 %1687, %v345_v37  }
  0x1a   :  { %417 = vperm.xlu1 %1688, %v346_v39  }
  0x1c   :  { %1607 = vmatpush3.bf16.msra.mxu0 %v1606_v30 }
  0x1d   :  { %1608 = vmatprep.subr.bf16.mxu0 %v1689_v0  ;;  %422 = vperm.xlu0 %1687, %v347_v40  }
  0x1e   :  { %427 = vperm.xlu1 %1688, %v348_v42  }
  0x20   :  { %1610 = vmatpush3.bf16.msra.mxu0 %v1609_v35 }
  0x21   :  { %432 = vperm.xlu0 %1687, %v349_v43   ;;  %v1217_v43 = vld [vmem:[%s2338_s4 + $0x2] ss:$0 sm:$0xff] }
  0x22   :  { %437 = vperm.xlu1 %1688, %v350_v45  }
  0x23   :  { %1398 = vmatmul.mubr.f32.vlgmr.msra.gmra.mrb[0].mxu0 %v47_v38 }
  0x24   :  { %1400 = vmatprep.mubr.msk.f32.mxu0 %vm1690_vm0, %v1691_v4 }
  0x25   :  { %442 = vperm.xlu0 %1687, %v351_v46  }
  0x26   :  { %447 = vperm.xlu1 %1688, %v352_v48  }
  0x27   :  { %1401 = vmatmul.mubr.f32.gmra.mrb[2].mxu0 %v48_v41 }
  0x28   :  { %1403 = vmatprep.mubr.msk.f32.mxu0 %vm1690_vm0, %v1691_v4 }
  0x29   :  { %452 = vperm.xlu0 %1687, %v353_v49  }
  0x2a   :  { %457 = vperm.xlu1 %1688, %v354_v51  }
  0x2b   :  { %1404 = vmatmul.mubr.f32.gmra.mrb[4].mxu0 %v49_v44 }
  0x2c   :  { %1406 = vmatprep.mubr.msk.f32.mxu0 %vm1690_vm0, %v1691_v4 }
  0x2d   :  { %462 = vperm.xlu0 %1687, %v355_v52   ;;  %v1219_v52 = vld [vmem:[%s2338_s4 + $0x3] ss:$0 sm:$0xff] }
  0x2e   :  { %467 = vperm.xlu1 %1688, %v356_v54  }
  0x2f   :  { %1407 = vmatmul.mubr.f32.gmra.mrb[6].mxu0 %v50_v47 }
  0x30   :  { %1409 = vmatprep.mubr.msk.f32.mxu0 %vm1690_vm0, %v1691_v4 }
  0x31   :  { %472 = vperm.xlu0 %1687, %v357_v55  }
  0x32   :  { %477 = vperm.xlu1 %1688, %v358_v57  }
  0x33   :  { %1410 = vmatmul.mubr.f32.gmra.mrb[8].mxu0 %v51_v50 }
  0x34   :  { %1412 = vmatprep.mubr.msk.f32.mxu0 %vm1690_vm0, %v1691_v4 }
  0x35   :  { %482 = vperm.xlu0 %1687, %v359_v58  }
  0x37   :  { %1413 = vmatmul.mubr.f32.gmra.mrb[10].mxu0 %v52_v53 }
  0x38   :  { %1415 = vmatprep.mubr.msk.f32.mxu0 %vm1690_vm0, %v1691_v4 }
  0x3b   :  { %1416 = vmatmul.mubr.f32.gmra.mrb[12].mxu0 %v53_v56 }
  0x3c   :  { %1418 = vmatprep.mubr.msk.f32.mxu0 %vm1690_vm0, %v1691_v4 }
  0x3f   :  { %1419 = vmatmul.mubr.f32.gmra.mrb[14].mxu0 %v54_v59 }
  0x40   :  { %1421 = vmatprep.mubr.msk.f32.mxu0 %vm1690_vm0, %v1691_v4 }
  0x43   :  { %1422 = vmatmul.mubr.f32.gmra.mrb[16].mxu0 %v55_v60 }
  0x44   :  { %1424 = vmatprep.mubr.msk.f32.mxu0 %vm1690_vm0, %v1691_v4 }
  0x47   :  { %1425 = vmatmul.mubr.f32.gmra.mrb[18].mxu0 %v56_v61 }
  0x48   :  { %1427 = vmatprep.mubr.msk.f32.mxu0 %vm1690_vm0, %v1691_v4 }
  0x4b   :  { %1428 = vmatmul.mubr.f32.gmra.mrb[20].mxu0 %v57_v62 }
  0x4c   :  { %1430 = vmatprep.mubr.msk.f32.mxu0 %vm1690_vm0, %v1691_v4 }
  0x4f   :  { %1431 = vmatmul.mubr.f32.gmra.mrb[22].mxu0 %v58_v63  ;;  %v1221_v63 = vld [vmem:[%s2338_s4 + $0x4] ss:$0 sm:$0xff] }
  0x50   :  { %1433 = vmatprep.mubr.msk.f32.mxu0 %vm1690_vm0, %v1691_v4 }
  0x53   :  { %1434 = vmatmul.mubr.f32.gmra.mrb[24].mxu0 %v59_v1 }
  0x54   :  { %1436 = vmatprep.mubr.msk.f32.mxu0 %vm1690_vm0, %v1691_v4 }
  0x57   :  { %1437 = vmatmul.mubr.f32.gmra.mrb[26].mxu0 %v60_v2 }
  0x58   :  { %1439 = vmatprep.mubr.msk.f32.mxu0 %vm1690_vm0, %v1691_v4 }
  0x5b   :  { %1440 = vmatmul.mubr.f32.gmra.mrb[28].mxu0 %v61_v3 }
  0x5c   :  { %1442 = vmatprep.mubr.msk.f32.mxu0 %vm1690_vm0, %v1691_v4 }
  0x5f   :  { %1443 = vmatmul.mubr.f32.gmra.mrb[30].mxu0 %v62_v5 }
  0x60   :  { %1445 = vmatprep.mubr.msk.f32.mxu0 %vm1690_vm0, %v1691_v4 }
  0x63   :  { %1446 = vmatmul.mubr.f32.gmra.mrb[32].mxu0 %v63_v6 }
  0x64   :  { %1448 = vmatprep.mubr.msk.f32.mxu0 %vm1690_vm0, %v1691_v4 }
  0x67   :  { %1449 = vmatmul.mubr.f32.gmra.mrb[34].mxu0 %v64_v7 }
  0x68   :  { %1451 = vmatprep.mubr.msk.f32.mxu0 %vm1690_vm0, %v1691_v4 }
  0x6b   :  { %1452 = vmatmul.mubr.f32.gmra.mrb[36].mxu0 %v65_v8 }
  0x6c   :  { %1454 = vmatprep.mubr.msk.f32.mxu0 %vm1690_vm0, %v1691_v4 }
  0x6f   :  { %1455 = vmatmul.mubr.f32.gmra.mrb[38].mxu0 %v66_v9 }
  0x70   :  { %1457 = vmatprep.mubr.msk.f32.mxu0 %vm1690_vm0, %v1691_v4 }
  0x73   :  { %1458 = vmatmul.mubr.f32.gmra.mrb[40].mxu0 %v67_v10 }
  0x74   :  { %1460 = vmatprep.mubr.msk.f32.mxu0 %vm1690_vm0, %v1691_v4 }
  0x77   :  { %1461 = vmatmul.mubr.f32.gmra.mrb[42].mxu0 %v68_v11  ;;  %v1223_v11 = vld [vmem:[%s2338_s4 + $0x5] ss:$0 sm:$0xff] }
  0x78   :  { %1463 = vmatprep.mubr.msk.f32.mxu0 %vm1690_vm0, %v1691_v4 }
  0x7b   :  { %1464 = vmatmul.mubr.f32.gmra.mrb[44].mxu0 %v69_v12 }
  0x7c   :  { %1466 = vmatprep.mubr.msk.f32.mxu0 %vm1690_vm0, %v1691_v4 }
  0x7f   :  { %1467 = vmatmul.mubr.f32.gmra.mrb[46].mxu0 %v70_v13 }
  0x80   :  { %1469 = vmatprep.mubr.msk.f32.mxu0 %vm1690_vm0, %v1691_v4 }
  0x83   :  { %1470 = vmatmul.mubr.f32.gmra.mrb[48].mxu0 %v71_v14 }
  0x84   :  { %v363_v20 = vpop.permute.xlu0 %362 }
  0x85   :  { %v373_v36 = vpop.permute.xlu1 %372 }
  0x88   :  { %v368_v33 = vpop.permute.xlu0 %367 }
  0x89   :  { %v378_v53 = vpop.permute.xlu1 %377 }
  0x8c   :  { %v383_v62 = vpop.permute.xlu0 %382 }
  0x8d   :  { %v388_v10 = vpop.permute.xlu1 %387 }
  0xf6   :  { %v161_v16 = vpop.f32.mrb[0].mxu0 }
  0xf7   :  { %v162_v17 = vadd.f32 %v2030_v15, %v161_v16  ;;  %v1399_v18 = vpop.f32.mrb[1].mxu0 }
  0xf9   :  { %v285_v19 = vmax.f32 %v162_v17, 0.0 }
  0xfa   :  { %v166_v21 = vpop.f32.mrb[2].mxu0 }
  0xfb   :  { %v310_v22 = vmin.f32 %v285_v19, 6.0  ;;  %v167_v23 = vadd.f32 %v2030_v15, %v166_v21  ;;  %v1402_v24 = vpop.f32.mrb[3].mxu0  ;;  %v393_v21 = vpop.permute.xlu0 %392 }
  0xfd   :  { %v286_v25 = vmax.f32 %v167_v23, 0.0  ;;  %v485_v27 = vmul.f32 %v363_v20, %v310_v22  ;;  %v1225_v22 = vld [vmem:[%s2338_s4 + $0x6] ss:$0 sm:$0xff] }
  0xfe   :  { %v171_v26 = vpop.f32.mrb[4].mxu0 }
  0xff   :  { %v311_v28 = vmin.f32 %v286_v25, 6.0  ;;  %v172_v29 = vadd.f32 %v2030_v15, %v171_v26  ;;  %v1405_v30 = vpop.f32.mrb[5].mxu0  ;;  %v517_v38 = vmul.f32 %v1213_v31, %v485_v27  ;;  %v398_v31 = vpop.permute.xlu1 %397 }
 0x101   :  { %v486_v34 = vmul.f32 %v368_v33, %v311_v28  ;;  %v287_v35 = vmax.f32 %v172_v29, 0.0 }
 0x102   :  { %v176_v37 = vpop.f32.mrb[6].mxu0 }
 0x103   :  { %v526_v39 = vmul.f32 %v1215_v32, %v486_v34  ;;  %v312_v40 = vmin.f32 %v287_v35, 6.0  ;;  %v177_v41 = vadd.f32 %v2030_v15, %v176_v37  ;;  %v1408_v42 = vpop.f32.mrb[7].mxu0  ;;  %v1227_v32 = vld [vmem:[%s2338_s4 + $0x7] ss:$0 sm:$0xff] }
 0x104   :  { %v1229_v42 = vld [vmem:[%s2338_s4 + $0x8] ss:$0 sm:$0xff] }
 0x105   :  { %v527_v44 = vadd.f32 %v526_v39, %v517_v38  ;;  %v487_v45 = vmul.f32 %v373_v36, %v312_v40  ;;  %v288_v46 = vmax.f32 %v177_v41, 0.0  ;;  %v403_v41 = vpop.permute.xlu0 %402 }
 0x106   :  { %v181_v47 = vpop.f32.mrb[8].mxu0 }
 0x107   :  { %v536_v48 = vmul.f32 %v1217_v43, %v487_v45  ;;  %v313_v49 = vmin.f32 %v288_v46, 6.0  ;;  %v182_v50 = vadd.f32 %v2030_v15, %v181_v47  ;;  %v1411_v51 = vpop.f32.mrb[9].mxu0 }
 0x108   :  { %v408_v51 = vpop.permute.xlu1 %407 }
 0x109   :  { %v537_v54 = vadd.f32 %v536_v48, %v527_v44  ;;  %v488_v55 = vmul.f32 %v378_v53, %v313_v49  ;;  %v289_v56 = vmax.f32 %v182_v50, 0.0 }
 0x10a   :  { %v186_v57 = vpop.f32.mrb[10].mxu0 }
 0x10b   :  { %v546_v58 = vmul.f32 %v1219_v52, %v488_v55  ;;  %v314_v59 = vmin.f32 %v289_v56, 6.0  ;;  %v187_v60 = vadd.f32 %v2030_v15, %v186_v57  ;;  %v1414_v61 = vpop.f32.mrb[11].mxu0  ;;  %v1231_v52 = vld [vmem:[%s2338_s4 + $0x9] ss:$0 sm:$0xff] }
 0x10c   :  { %v413_v61 = vpop.permute.xlu0 %412 }
 0x10d   :  { %v547_v1 = vadd.f32 %v546_v58, %v537_v54  ;;  %v489_v2 = vmul.f32 %v383_v62, %v314_v59  ;;  %v290_v3 = vmax.f32 %v187_v60, 0.0  ;;  %v1233_v62 = vld [vmem:[%s2338_s4 + $0xa] ss:$0 sm:$0xff] }
 0x10e   :  { %v191_v5 = vpop.f32.mrb[12].mxu0 }
 0x10f   :  { %v556_v6 = vmul.f32 %v1221_v63, %v489_v2  ;;  %v315_v7 = vmin.f32 %v290_v3, 6.0  ;;  %v192_v8 = vadd.f32 %v2030_v15, %v191_v5  ;;  %v1417_v9 = vpop.f32.mrb[13].mxu0 }
 0x110   :  { %v418_v9 = vpop.permute.xlu1 %417 }
 0x111   :  { %v557_v12 = vadd.f32 %v556_v6, %v547_v1  ;;  %v490_v13 = vmul.f32 %v388_v10, %v315_v7  ;;  %v291_v14 = vmax.f32 %v192_v8, 0.0  ;;  %v1235_v10 = vld [vmem:[%s2338_s4 + $0xb] ss:$0 sm:$0xff] }
 0x112   :  { %v196_v16 = vpop.f32.mrb[14].mxu0 }
 0x113   :  { %v566_v17 = vmul.f32 %v1223_v11, %v490_v13  ;;  %v316_v18 = vmin.f32 %v291_v14, 6.0  ;;  %v197_v19 = vadd.f32 %v2030_v15, %v196_v16  ;;  %v1420_v20 = vpop.f32.mrb[15].mxu0 }
 0x114   :  { %v423_v20 = vpop.permute.xlu0 %422 }
 0x115   :  { %v567_v23 = vadd.f32 %v566_v17, %v557_v12  ;;  %v491_v24 = vmul.f32 %v393_v21, %v316_v18  ;;  %v292_v25 = vmax.f32 %v197_v19, 0.0  ;;  %v1237_v21 = vld [vmem:[%s2338_s4 + $0xc] ss:$0 sm:$0xff] }
 0x116   :  { %v201_v26 = vpop.f32.mrb[16].mxu0 }
 0x117   :  { %v576_v27 = vmul.f32 %v1225_v22, %v491_v24  ;;  %v317_v28 = vmin.f32 %v292_v25, 6.0  ;;  %v202_v29 = vadd.f32 %v2030_v15, %v201_v26  ;;  %v1423_v30 = vpop.f32.mrb[17].mxu0 }
 0x118   :  { %v428_v30 = vpop.permute.xlu1 %427 }
 0x119   :  { %v577_v33 = vadd.f32 %v576_v27, %v567_v23  ;;  %v492_v34 = vmul.f32 %v398_v31, %v317_v28  ;;  %v293_v35 = vmax.f32 %v202_v29, 0.0  ;;  %v1239_v31 = vld [vmem:[%s2338_s4 + $0xd] ss:$0 sm:$0xff] }
 0x11a   :  { %v206_v36 = vpop.f32.mrb[18].mxu0 }
 0x11b   :  { %v586_v37 = vmul.f32 %v1227_v32, %v492_v34  ;;  %v318_v38 = vmin.f32 %v293_v35, 6.0  ;;  %v207_v39 = vadd.f32 %v2030_v15, %v206_v36  ;;  %v1426_v40 = vpop.f32.mrb[19].mxu0 }
 0x11c   :  { %v433_v40 = vpop.permute.xlu0 %432 }
 0x11d   :  { %v587_v43 = vadd.f32 %v586_v37, %v577_v33  ;;  %v493_v44 = vmul.f32 %v403_v41, %v318_v38  ;;  %v294_v45 = vmax.f32 %v207_v39, 0.0  ;;  %v1241_v41 = vld [vmem:[%s2338_s4 + $0xe] ss:$0 sm:$0xff] }
 0x11e   :  { %v211_v46 = vpop.f32.mrb[20].mxu0 }
 0x11f   :  { %v596_v47 = vmul.f32 %v1229_v42, %v493_v44  ;;  %v319_v48 = vmin.f32 %v294_v45, 6.0  ;;  %v212_v49 = vadd.f32 %v2030_v15, %v211_v46  ;;  %v1429_v50 = vpop.f32.mrb[21].mxu0 }
 0x120   :  { %v438_v50 = vpop.permute.xlu1 %437 }
 0x121   :  { %v597_v53 = vadd.f32 %v596_v47, %v587_v43  ;;  %v494_v54 = vmul.f32 %v408_v51, %v319_v48  ;;  %v295_v55 = vmax.f32 %v212_v49, 0.0  ;;  %v1243_v51 = vld [vmem:[%s2338_s4 + $0xf] ss:$0 sm:$0xff] }
 0x122   :  { %v216_v56 = vpop.f32.mrb[22].mxu0 }
 0x123   :  { %v606_v57 = vmul.f32 %v1231_v52, %v494_v54  ;;  %v320_v58 = vmin.f32 %v295_v55, 6.0  ;;  %v217_v59 = vadd.f32 %v2030_v15, %v216_v56  ;;  %v1432_v60 = vpop.f32.mrb[23].mxu0 }
 0x124   :  { %v443_v60 = vpop.permute.xlu0 %442 }
 0x125   :  { %v607_v63 = vadd.f32 %v606_v57, %v597_v53  ;;  %v495_v1 = vmul.f32 %v413_v61, %v320_v58  ;;  %v296_v2 = vmax.f32 %v217_v59, 0.0  ;;  %v1245_v61 = vld [vmem:[%s2338_s4 + $0x10] ss:$0 sm:$0xff] }
 0x126   :  { %v221_v3 = vpop.f32.mrb[24].mxu0 }
 0x127   :  { %v616_v5 = vmul.f32 %v1233_v62, %v495_v1  ;;  %v321_v6 = vmin.f32 %v296_v2, 6.0  ;;  %v222_v7 = vadd.f32 %v2030_v15, %v221_v3  ;;  %v1435_v8 = vpop.f32.mrb[25].mxu0 }
 0x128   :  { %v448_v8 = vpop.permute.xlu1 %447 }
 0x129   :  { %v617_v11 = vadd.f32 %v616_v5, %v607_v63  ;;  %v496_v12 = vmul.f32 %v418_v9, %v321_v6  ;;  %v297_v13 = vmax.f32 %v222_v7, 0.0  ;;  %v1247_v9 = vld [vmem:[%s2338_s4 + $0x11] ss:$0 sm:$0xff] }
 0x12a   :  { %v226_v14 = vpop.f32.mrb[26].mxu0 }
 0x12b   :  { %v626_v16 = vmul.f32 %v1235_v10, %v496_v12  ;;  %v322_v17 = vmin.f32 %v297_v13, 6.0  ;;  %v227_v18 = vadd.f32 %v2030_v15, %v226_v14  ;;  %v1438_v19 = vpop.f32.mrb[27].mxu0 }
 0x12c   :  { %v453_v19 = vpop.permute.xlu0 %452 }
 0x12d   :  { %v627_v22 = vadd.f32 %v626_v16, %v617_v11  ;;  %v497_v23 = vmul.f32 %v423_v20, %v322_v17  ;;  %v298_v24 = vmax.f32 %v227_v18, 0.0  ;;  %v1249_v20 = vld [vmem:[%s2338_s4 + $0x12] ss:$0 sm:$0xff] }
 0x12e   :  { %v231_v25 = vpop.f32.mrb[28].mxu0 }
 0x12f   :  { %v636_v26 = vmul.f32 %v1237_v21, %v497_v23  ;;  %v323_v27 = vmin.f32 %v298_v24, 6.0  ;;  %v232_v28 = vadd.f32 %v2030_v15, %v231_v25  ;;  %v1441_v29 = vpop.f32.mrb[29].mxu0 }
 0x130   :  { %v458_v29 = vpop.permute.xlu1 %457 }
 0x131   :  { %v637_v32 = vadd.f32 %v636_v26, %v627_v22  ;;  %v498_v33 = vmul.f32 %v428_v30, %v323_v27  ;;  %v299_v34 = vmax.f32 %v232_v28, 0.0  ;;  %v1251_v30 = vld [vmem:[%s2338_s4 + $0x13] ss:$0 sm:$0xff] }
 0x132   :  { %v236_v35 = vpop.f32.mrb[30].mxu0 }
 0x133   :  { %v646_v36 = vmul.f32 %v1239_v31, %v498_v33  ;;  %v324_v37 = vmin.f32 %v299_v34, 6.0  ;;  %v237_v38 = vadd.f32 %v2030_v15, %v236_v35  ;;  %v1444_v39 = vpop.f32.mrb[31].mxu0 }
 0x134   :  { %v463_v39 = vpop.permute.xlu0 %462 }
 0x135   :  { %v647_v42 = vadd.f32 %v646_v36, %v637_v32  ;;  %v499_v43 = vmul.f32 %v433_v40, %v324_v37  ;;  %v300_v44 = vmax.f32 %v237_v38, 0.0  ;;  %v1253_v40 = vld [vmem:[%s2338_s4 + $0x14] ss:$0 sm:$0xff] }
 0x136   :  { %v241_v45 = vpop.f32.mrb[32].mxu0 }
 0x137   :  { %v656_v46 = vmul.f32 %v1241_v41, %v499_v43  ;;  %v325_v47 = vmin.f32 %v300_v44, 6.0  ;;  %v242_v48 = vadd.f32 %v2030_v15, %v241_v45  ;;  %v1447_v49 = vpop.f32.mrb[33].mxu0 }
 0x138   :  { %v468_v49 = vpop.permute.xlu1 %467 }
 0x139   :  { %v657_v52 = vadd.f32 %v656_v46, %v647_v42  ;;  %v500_v53 = vmul.f32 %v438_v50, %v325_v47  ;;  %v301_v54 = vmax.f32 %v242_v48, 0.0  ;;  %v1255_v50 = vld [vmem:[%s2338_s4 + $0x15] ss:$0 sm:$0xff] }
 0x13a   :  { %v246_v55 = vpop.f32.mrb[34].mxu0 }
 0x13b   :  { %v666_v56 = vmul.f32 %v1243_v51, %v500_v53  ;;  %v326_v57 = vmin.f32 %v301_v54, 6.0  ;;  %v247_v58 = vadd.f32 %v2030_v15, %v246_v55  ;;  %v1450_v59 = vpop.f32.mrb[35].mxu0 }
 0x13c   :  { %v473_v59 = vpop.permute.xlu0 %472 }
 0x13d   :  { %v667_v62 = vadd.f32 %v666_v56, %v657_v52  ;;  %v501_v63 = vmul.f32 %v443_v60, %v326_v57  ;;  %v302_v1 = vmax.f32 %v247_v58, 0.0  ;;  %v1257_v60 = vld [vmem:[%s2338_s4 + $0x16] ss:$0 sm:$0xff] }
 0x13e   :  { %v251_v2 = vpop.f32.mrb[36].mxu0 }
 0x13f   :  { %v676_v3 = vmul.f32 %v1245_v61, %v501_v63  ;;  %v327_v5 = vmin.f32 %v302_v1, 6.0  ;;  %v252_v6 = vadd.f32 %v2030_v15, %v251_v2  ;;  %v1453_v7 = vpop.f32.mrb[37].mxu0 }
 0x140   :  { %v478_v7 = vpop.permute.xlu1 %477 }
 0x141   :  { %v677_v10 = vadd.f32 %v676_v3, %v667_v62  ;;  %v502_v11 = vmul.f32 %v448_v8, %v327_v5  ;;  %v303_v12 = vmax.f32 %v252_v6, 0.0  ;;  %v1259_v8 = vld [vmem:[%s2338_s4 + $0x17] ss:$0 sm:$0xff] }
 0x142   :  { %v256_v13 = vpop.f32.mrb[38].mxu0 }
 0x143   :  { %v686_v14 = vmul.f32 %v1247_v9, %v502_v11  ;;  %v328_v16 = vmin.f32 %v303_v12, 6.0  ;;  %v257_v17 = vadd.f32 %v2030_v15, %v256_v13  ;;  %v1456_v18 = vpop.f32.mrb[39].mxu0 }
 0x145   :  { %v687_v21 = vadd.f32 %v686_v14, %v677_v10  ;;  %v503_v22 = vmul.f32 %v453_v19, %v328_v16  ;;  %v304_v23 = vmax.f32 %v257_v17, 0.0  ;;  %v483_v14 = vpop.permute.xlu0 %482  ;;  %v1261_v16 = vld [vmem:[%s2338_s4 + $0x18] ss:$0 sm:$0xff] }
 0x146   :  { %v261_v24 = vpop.f32.mrb[40].mxu0 }
 0x147   :  { %v696_v25 = vmul.f32 %v1249_v20, %v503_v22  ;;  %v329_v26 = vmin.f32 %v304_v23, 6.0  ;;  %v262_v27 = vadd.f32 %v2030_v15, %v261_v24  ;;  %v1459_v28 = vpop.f32.mrb[41].mxu0  ;;  %v843_v22 = vld [vmem:[%s2340_s6] sm:$0xff]  ;;  %v844_v23 = vld [vmem:[%s2340_s6 + $0x8] sm:$0xff] }
 0x148   :  { %v845_v28 = vld [vmem:[%s2340_s6 + $0x10] sm:$0xff] }
 0x149   :  { %v697_v31 = vadd.f32 %v696_v25, %v687_v21  ;;  %v504_v32 = vmul.f32 %v458_v29, %v329_v26  ;;  %v305_v33 = vmax.f32 %v262_v27, 0.0  ;;  %v768_v26 = vld [vmem:[%s2341_s10] sm:$0x3]  ;;  %v1612_v27 = vpack.c.bf16 %v844_v23, %v843_v22  ;;  %v846_v29 = vld [vmem:[%s2340_s6 + $0x18] sm:$0xff] }
 0x14a   :  { %v266_v34 = vpop.f32.mrb[42].mxu0 }
 0x14b   :  { %v706_v35 = vmul.f32 %v1251_v30, %v504_v32  ;;  %v330_v36 = vmin.f32 %v305_v33, 6.0  ;;  %v267_v37 = vadd.f32 %v2030_v15, %v266_v34  ;;  %v1462_v38 = vpop.f32.mrb[43].mxu0  ;;  %v1615_v30 = vpack.c.bf16 %v846_v29, %v845_v28  ;;  %v848_v32 = vld [vmem:[%s2340_s6 + $0x28] sm:$0xff]  ;;  %v849_v34 = vld [vmem:[%s2340_s6 + $0x30] sm:$0xff]  ;;  %v1034_v29 = vld [vmem:[%s2346_s11] sm:$0xff] }
 0x14c   :  { %v852_v38 = vld [vmem:[%s2340_s6 + $0x48] sm:$0xff] }
 0x14d   :  { %v707_v41 = vadd.f32 %v706_v35, %v697_v31  ;;  %v505_v42 = vmul.f32 %v463_v39, %v330_v36  ;;  %v306_v43 = vmax.f32 %v267_v37, 0.0  ;;  %v847_v31 = vld [vmem:[%s2340_s6 + $0x20] sm:$0xff]  ;;  %v850_v35 = vld [vmem:[%s2340_s6 + $0x38] sm:$0xff] }
 0x14e   :  { %v271_v44 = vpop.f32.mrb[44].mxu0  ;;  %v1618_v33 = vpack.c.bf16 %v848_v32, %v847_v31  ;;  %v1621_v36 = vpack.c.bf16 %v850_v35, %v849_v34  ;;  %v851_v37 = vld [vmem:[%s2340_s6 + $0x40] sm:$0xff]  ;;  %v1116_v31 = vld [vmem:[%s2345_s12 + $0x10] sm:$0xff]  ;;  %v1117_v32 = vld [vmem:[%s2345_s12 + $0x18] sm:$0xff] }
 0x14f   :  { %v716_v45 = vmul.f32 %v1253_v40, %v505_v42  ;;  %v331_v46 = vmin.f32 %v306_v43, 6.0  ;;  %v272_v47 = vadd.f32 %v2030_v15, %v271_v44  ;;  %v1465_v48 = vpop.f32.mrb[45].mxu0  ;;  %v1624_v39 = vpack.c.bf16 %v852_v38, %v851_v37  ;;  %v853_v40 = vld [vmem:[%s2340_s6 + $0x50] sm:$0xff]  ;;  %v855_v43 = vld [vmem:[%s2340_s6 + $0x60] sm:$0xff]  ;;  %v856_v44 = vld [vmem:[%s2340_s6 + $0x68] sm:$0xff] }
 0x150   :  { %v1118_v34 = vld [vmem:[%s2345_s12 + $0x20] sm:$0xff]  ;;  %v1119_v35 = vld [vmem:[%s2345_s12 + $0x28] sm:$0xff]  ;;  %v1120_v37 = vld [vmem:[%s2345_s12 + $0x30] sm:$0xff] }
 0x151   :  { %v717_v51 = vadd.f32 %v716_v45, %v707_v41  ;;  %v506_v52 = vmul.f32 %v468_v49, %v331_v46  ;;  %v307_v53 = vmax.f32 %v272_v47, 0.0  ;;  %v854_v41 = vld [vmem:[%s2340_s6 + $0x58] sm:$0xff]  ;;  %v1630_v45 = vpack.c.bf16 %v856_v44, %v855_v43  ;;  %v857_v46 = vld [vmem:[%s2340_s6 + $0x70] sm:$0xff]  ;;  %v937_v49 = vld [vmem:[%s2342_s8] sm:$0xff] }
 0x152   :  { %v276_v54 = vpop.f32.mrb[46].mxu0  ;;  %v1627_v42 = vpack.c.bf16 %v854_v41, %v853_v40  ;;  %v858_v47 = vld [vmem:[%s2340_s6 + $0x78] sm:$0xff]  ;;  %v1123_v40 = vld [vmem:[%s2345_s12 + $0x48] sm:$0xff] }
 0x153   :  { %v726_v55 = vmul.f32 %v1255_v50, %v506_v52  ;;  %v332_v56 = vmin.f32 %v307_v53, 6.0  ;;  %v277_v57 = vadd.f32 %v2030_v15, %v276_v54  ;;  %v1468_v58 = vpop.f32.mrb[47].mxu0  ;;  %v1633_v48 = vpack.c.bf16 %v858_v47, %v857_v46  ;;  %v938_v50 = vld [vmem:[%s2342_s8 + $0x8] sm:$0xff]  ;;  %v939_v52 = vld [vmem:[%s2342_s8 + $0x10] sm:$0xff]  ;;  %v940_v53 = vld [vmem:[%s2342_s8 + $0x18] sm:$0xff] }
 0x154   :  { %v942_v58 = vld [vmem:[%s2342_s8 + $0x28] sm:$0xff]  ;;  %v1125_v43 = vld [vmem:[%s2345_s12 + $0x58] sm:$0xff] }
 0x155   :  { %v727_v61 = vadd.f32 %v726_v55, %v717_v51  ;;  %v507_v62 = vmul.f32 %v473_v59, %v332_v56  ;;  %v308_v63 = vmax.f32 %v277_v57, 0.0  ;;  %v1636_v51 = vpack.c.bf16 %v938_v50, %v937_v49  ;;  %v941_v57 = vld [vmem:[%s2342_s8 + $0x20] sm:$0xff]  ;;  %v1127_v46 = vld [vmem:[%s2345_s12 + $0x68] sm:$0xff]  ;;  %v1129_v49 = vld [vmem:[%s2345_s12 + $0x78] sm:$0xff] }
 0x156   :  { %v281_v1 = vpop.f32.mrb[48].mxu0  ;;  %v1639_v56 = vpack.c.bf16 %v940_v53, %v939_v52  ;;  %v1642_v59 = vpack.c.bf16 %v942_v58, %v941_v57 }
 0x157   :  { %v736_v2 = vmul.f32 %v1257_v60, %v507_v62  ;;  %v333_v3 = vmin.f32 %v308_v63, 6.0  ;;  %v282_v5 = vadd.f32 %v2030_v15, %v281_v1  ;;  %v1471_v6 = vpop.f32.mrb[49].mxu0  ;;  %v1262_v15 = vld [vmem:[%s2339_s5] ss:$0 sm:$0xff]  ;;  %v943_v60 = vld [vmem:[%s2342_s8 + $0x30] sm:$0xff]  ;;  %v946_v1 = vld [vmem:[%s2342_s8 + $0x48] sm:$0xff] }
 0x158   :  { %v945_v63 = vld [vmem:[%s2342_s8 + $0x40] sm:$0xff] }
 0x159   :  { %v737_v9 = vadd.f32 %v736_v2, %v727_v61  ;;  %v508_v10 = vmul.f32 %v478_v7, %v333_v3  ;;  %v309_v11 = vmax.f32 %v282_v5, 0.0  ;;  %v944_v61 = vld [vmem:[%s2342_s8 + $0x38] sm:$0xff]  ;;  %v1648_v2 = vpack.c.bf16 %v946_v1, %v945_v63  ;;  %v947_v3 = vld [vmem:[%s2342_s8 + $0x50] sm:$0xff]  ;;  %v949_v7 = vld [vmem:[%s2342_s8 + $0x60] sm:$0xff] }
 0x15a   :  { %v1645_v62 = vpack.c.bf16 %v944_v61, %v943_v60  ;;  %v948_v5 = vld [vmem:[%s2342_s8 + $0x58] sm:$0xff] }
 0x15b   :  { %v746_v12 = vmul.f32 %v1259_v8, %v508_v10  ;;  %v334_v13 = vmin.f32 %v309_v11, 6.0  ;;  %v1651_v6 = vpack.c.bf16 %v948_v5, %v947_v3  ;;  %v950_v8 = vld [vmem:[%s2342_s8 + $0x68] sm:$0xff]  ;;  %v951_v10 = vld [vmem:[%s2342_s8 + $0x70] sm:$0xff]  ;;  %v952_v11 = vld [vmem:[%s2342_s8 + $0x78] sm:$0xff] }
 0x15d   :  { %v509_v17 = vmul.f32 %v483_v14, %v334_v13  ;;  %v747_v18 = vadd.f32 %v746_v12, %v737_v9  ;;  %v1654_v9 = vpack.c.bf16 %v950_v8, %v949_v7  ;;  %v1657_v12 = vpack.c.bf16 %v952_v11, %v951_v10  ;;  %v1264_v13 = vld [vmem:[%s2343_s7] ss:$0 sm:$0xff] }
 0x15f   :  { %v756_v19 = vmul.f32 %v1261_v16, %v509_v17 }
 0x161   :  { %v757_v20 = vadd.f32 %v756_v19, %v747_v18  ;;  %v1265_v19 = vld [vmem:[%s2344_s9] ss:$0 sm:$0xff] }
 0x163   :  { %v765_v21 = vadd.f32 %v1262_v15, %v757_v20 }
 0x165   :  { %v766_v24 = vmax.f32 %v765_v21, 0.0 }
 0x167   :  { %v2141_v25 = vmin.f32 %v766_v24, 6.0  ;;  %v1114_v24 = vld [vmem:[%s2345_s12] sm:$0xff] }
 0x169   :  { %1473 = vmatpush3.msra.mxu1 %v2141_v25 }
 0x16a   :  { %1475 = vmatmul.mubr.msk.f32.vlgmr.msra.gmra.mrb[0].mxu1 %vm769_vm1, %v768_v26  ;;  %1611 = vmatprep.subr.bf16.mxu1 %v1689_v0  ;;  %v1115_v26 = vld [vmem:[%s2345_s12 + $0x8] sm:$0xff] }
 0x16b   :  { %1613 = vmatpush3.bf16.msra.mxu1 %v1612_v27  ;;  %1509 = vmatprep.mubr.msk.f32.mxu1 %vm1690_vm0, %v1691_v4 }
 0x16c   :  { %1614 = vmatprep.subr.bf16.mxu1 %v1689_v0 }
 0x16f   :  { %1616 = vmatpush3.bf16.msra.mxu1 %v1615_v30  ;;  %v1660_v30 = vpack.c.bf16 %v1115_v26, %v1114_v24 }
 0x170   :  { %1617 = vmatprep.subr.bf16.mxu1 %v1689_v0 }
 0x173   :  { %1619 = vmatpush3.bf16.msra.mxu1 %v1618_v33  ;;  %v1663_v33 = vpack.c.bf16 %v1117_v32, %v1116_v31 }
 0x174   :  { %1620 = vmatprep.subr.bf16.mxu1 %v1689_v0 }
 0x177   :  { %1622 = vmatpush3.bf16.msra.mxu1 %v1621_v36  ;;  %v1666_v36 = vpack.c.bf16 %v1119_v35, %v1118_v34 }
 0x178   :  { %1623 = vmatprep.subr.bf16.mxu1 %v1689_v0 }
 0x17b   :  { %1625 = vmatpush3.bf16.msra.mxu1 %v1624_v39  ;;  %v1122_v39 = vld [vmem:[%s2345_s12 + $0x40] sm:$0xff] }
 0x17c   :  { %1626 = vmatprep.subr.bf16.mxu1 %v1689_v0  ;;  %v1672_v41 = vpack.c.bf16 %v1123_v40, %v1122_v39 }
 0x17f   :  { %1628 = vmatpush3.bf16.msra.mxu1 %v1627_v42  ;;  %v1124_v42 = vld [vmem:[%s2345_s12 + $0x50] sm:$0xff] }
 0x180   :  { %1629 = vmatprep.subr.bf16.mxu1 %v1689_v0  ;;  %v1675_v44 = vpack.c.bf16 %v1125_v43, %v1124_v42 }
 0x183   :  { %1631 = vmatpush3.bf16.msra.mxu1 %v1630_v45  ;;  %v1126_v45 = vld [vmem:[%s2345_s12 + $0x60] sm:$0xff] }
 0x184   :  { %1632 = vmatprep.subr.bf16.mxu1 %v1689_v0  ;;  %v1678_v47 = vpack.c.bf16 %v1127_v46, %v1126_v45 }
 0x187   :  { %1634 = vmatpush3.bf16.msra.mxu1 %v1633_v48  ;;  %v1128_v48 = vld [vmem:[%s2345_s12 + $0x70] sm:$0xff] }
 0x188   :  { %1635 = vmatprep.subr.bf16.mxu1 %v1689_v0  ;;  %v1681_v50 = vpack.c.bf16 %v1129_v49, %v1128_v48 }
 0x23d   :  { %v839_v54 = vpop.f32.mrb[0].mxu1 }
 0x23e   :  { %v1476_v55 = vpop.f32.mrb[1].mxu1  ;;  %1510 = vmatmul.mubr.f32.vlgmr.msra.gmra.mrb[2].mxu1 %v839_v54  ;;  %v1268_v54 = vld [vmem:[%s2347_s13] ss:$0 sm:$0xff] }
 0x23f   :  { %1637 = vmatpush3.bf16.msra.mxu1 %v1636_v51  ;;  %1544 = vmatprep.mubr.msk.f32.mxu1 %vm1690_vm0, %v1691_v4 }
 0x240   :  { %1638 = vmatprep.subr.bf16.mxu1 %v1689_v0 }
 0x243   :  { %1640 = vmatpush3.bf16.msra.mxu1 %v1639_v56 }
 0x244   :  { %1641 = vmatprep.subr.bf16.mxu1 %v1689_v0 }
 0x247   :  { %1643 = vmatpush3.bf16.msra.mxu1 %v1642_v59 }
 0x248   :  { %1644 = vmatprep.subr.bf16.mxu1 %v1689_v0 }
 0x24b   :  { %1646 = vmatpush3.bf16.msra.mxu1 %v1645_v62 }
 0x24c   :  { %1647 = vmatprep.subr.bf16.mxu1 %v1689_v0 }
 0x24f   :  { %1649 = vmatpush3.bf16.msra.mxu1 %v1648_v2 }
 0x250   :  { %1650 = vmatprep.subr.bf16.mxu1 %v1689_v0 }
 0x253   :  { %1652 = vmatpush3.bf16.msra.mxu1 %v1651_v6 }
 0x254   :  { %1653 = vmatprep.subr.bf16.mxu1 %v1689_v0 }
 0x257   :  { %1655 = vmatpush3.bf16.msra.mxu1 %v1654_v9 }
 0x258   :  { %1656 = vmatprep.subr.bf16.mxu1 %v1689_v0 }
 0x25b   :  { %1658 = vmatpush3.bf16.msra.mxu1 %v1657_v12 }
 0x25c   :  { %1547 = vmatprep.subr.mxu1 %v1691_v4 }
 0x311   :  { %v932_v14 = vpop.f32.mrb[2].mxu1 }
 0x312   :  { %v933_v16 = vadd.f32 %v1264_v13, %v932_v14  ;;  %v1511_v17 = vpop.f32.mrb[3].mxu1 }
 0x314   :  { %v936_v18 = vmax.f32 %v933_v16, 0.0 }
 0x316   :  { %1545 = vmatmul.mubr.f32.vlgmr.msra.gmra.mrb[4].mxu1 %v936_v18 }
 0x317   :  { %1549 = vmatprep.mubr.msk.f32.mxu1 %vm1690_vm0, %v1691_v4 }
 0x3e9   :  { %v1026_v15 = vpop.f32.mrb[4].mxu1 }
 0x3ea   :  { %v1027_v20 = vadd.f32 %v1265_v19, %v1026_v15  ;;  %v1546_v21 = vpop.f32.mrb[5].mxu1 }
 0x3ec   :  { %v1030_v22 = vadd.f32 3.0, %v1027_v20 }
 0x3ee   :  { %v1031_v23 = vmax.f32 %v1030_v22, 0.0 }
 0x3f0   :  { %v1032_v27 = vmin.f32 %v1031_v23, 6.0 }
 0x3f2   :  { %v1033_v28 = vmul.f32 0.16666667, %v1032_v27 }
 0x3f4   :  { %1548 = vmatpush3.msk.msra.mxu1 %vm1039_vm2, %v1033_v28 }
 0x3f5   :  { %1550 = vmatmul.mubr.msk.f32.vlgmr.msra.gmra.mrb[6].mxu1 %vm1035_vm3, %v1034_v29  ;;  %1659 = vmatprep.subr.bf16.mxu1 %v1689_v0 }
 0x3f6   :  { %1661 = vmatpush3.bf16.msra.mxu1 %v1660_v30  ;;  %1584 = vmatprep.mubr.msk.f32.mxu1 %vm1690_vm0, %v1691_v4  ;;  %v1121_v4 = vld [vmem:[%s2345_s12 + $0x38] sm:$0xff] }
 0x3f7   :  { %1662 = vmatprep.subr.bf16.mxu1 %v1689_v0  ;;  %v1669_v38 = vpack.c.bf16 %v1121_v4, %v1120_v37 }
 0x3fa   :  { %1664 = vmatpush3.bf16.msra.mxu1 %v1663_v33 }
 0x3fb   :  { %1665 = vmatprep.subr.bf16.mxu1 %v1689_v0 }
 0x3fe   :  { %1667 = vmatpush3.bf16.msra.mxu1 %v1666_v36 }
 0x3ff   :  { %1668 = vmatprep.subr.bf16.mxu1 %v1689_v0 }
 0x402   :  { %1670 = vmatpush3.bf16.msra.mxu1 %v1669_v38 }
 0x403   :  { %1671 = vmatprep.subr.bf16.mxu1 %v1689_v0 }
 0x406   :  { %1673 = vmatpush3.bf16.msra.mxu1 %v1672_v41 }
 0x407   :  { %1674 = vmatprep.subr.bf16.mxu1 %v1689_v0 }
 0x40a   :  { %1676 = vmatpush3.bf16.msra.mxu1 %v1675_v44 }
 0x40b   :  { %1677 = vmatprep.subr.bf16.mxu1 %v1689_v0 }
 0x40e   :  { %1679 = vmatpush3.bf16.msra.mxu1 %v1678_v47 }
 0x40f   :  { %1680 = vmatprep.subr.bf16.mxu1 %v1689_v0 }
 0x412   :  { %1682 = vmatpush3.bf16.msra.mxu1 %v1681_v50 }
 0x4c8   :  { %v1109_v51 = vpop.f32.mrb[6].mxu1 }
 0x4c9   :  { %v1113_v52 = vmul.f32 %v1109_v51, %v2141_v25  ;;  %v1551_v53 = vpop.f32.mrb[7].mxu1 }
 0x4cb   :  { %1585 = vmatmul.mubr.f32.vlgmr.msra.gmra.mrb[8].mxu1 %v1113_v52 }
 0x59e   :  { %v1203_v0 = vpop.f32.mrb[8].mxu1 }
 0x59f   :  { %v1204_v55 = vadd.f32 %v1268_v54, %v1203_v0  ;;  %v1586_v56 = vpop.f32.mrb[9].mxu1 }
 0x5a1   :  { %1207 = vst [vmem:[%s2348_s14] sm:$0xff] %v1204_v55 }

// kernel: mobilenet_v3_like.14
= control target key start
LH: loop header
LB: loop body
LE: loop exit
PB: predicated region body
PF: predicated region fallthrough
CT: control target
= control target key end

     0   :  { %v1813_v3 = vmov 0.0   ;;  %v1814_v4 = vmov 0   ;;  %vm1072_vm0 = vcmask 64512   ;;  %vm1385_vm1 = vcmask 1041408   ;;  %s2676_s2 = inlined_call_operand.vmem [shape: f32[128,256], index: 2, kind: input, shape index: {}]   ;;  %s2677_s1 = inlined_call_operand.vmem [shape: f32[200,1], index: 1, kind: input, shape index: {}]   ;;  %s2678_s0 = inlined_call_operand.vmem [shape: f32[200,128], index: 0, kind: input, shape index: {}]   ;;  %s2679_s3 = inlined_call_operand.vmem [shape: f32[1,256], index: 3, kind: input, shape index: {}]   ;;  %s2680_s4 = inlined_call_operand.vmem [shape: f32[25,1,256], index: 4, kind: input, shape index: {}]   ;;  %s2681_s5 = inlined_call_operand.vmem [shape: f32[1,256], index: 5, kind: input, shape index: {}]   ;;  %s2682_s6 = inlined_call_operand.vmem [shape: f32[256,128], index: 6, kind: input, shape index: {}]   ;;  %s2683_s10 = inlined_call_operand.vmem [shape: f32[2,8], index: 10, kind: input, shape index: {}]   ;;  %s2684_s8 = inlined_call_operand.vmem [shape: f32[128,256], index: 8, kind: input, shape index: {}]   ;;  %s2685_s7 = inlined_call_operand.vmem [shape: f32[1,128], index: 7, kind: input, shape index: {}]   ;;  %s2686_s9 = inlined_call_operand.vmem [shape: f32[1,256], index: 9, kind: input, shape index: {}]   ;;  %s2687_s12 = inlined_call_operand.vmem [shape: f32[256,128], index: 12, kind: input, shape index: {}]   ;;  %s2688_s11 = inlined_call_operand.vmem [shape: f32[8,2], index: 11, kind: input, shape index: {}]   ;;  %s2689_s13 = inlined_call_operand.vmem [shape: f32[1,128], index: 13, kind: input, shape index: {}]   ;;  %s2690_s14 = inlined_call_operand.vmem [shape: f32[8,128], index: 14, kind: output, shape index: {}]  }
   0x1   :  { %v73_v0 = vld [vmem:[%s2676_s2 + $0x8] sm:$0xff]  ;;  %v75_v1 = vld [vmem:[%s2676_s2 + $0x18] sm:$0xff]  ;;  %v72_v2 = vld [vmem:[%s2676_s2] sm:$0xff]  ;;  %180 = vmatprep.mubr.f32.mxu0 %v1813_v3  ;;  %1811 = vset.pattern.permute.xlu0 %v1814_v4  ;;  %vm1381_vm2 = vcmask 15360  }
   0x2   :  { %v1681_v5 = vpack.c.bf16 %v75_v1, %v73_v0  ;;  %v74_v6 = vld [vmem:[%s2676_s2 + $0x10] sm:$0xff]  ;;  %v77_v7 = vld [vmem:[%s2676_s2 + $0x28] sm:$0xff]  ;;  %v79_v8 = vld [vmem:[%s2676_s2 + $0x38] sm:$0xff]  ;;  %1812 = vset.pattern.permute.xlu1 %v1814_v4  ;;  %1140 = vmatprep.mubr.f32.mxu1 %v1813_v3 }
   0x3   :  { %v1683_v9 = vpack.c.bf16 %v74_v6, %v72_v2  ;;  %v1685_v10 = vpack.c.bf16 %v79_v8, %v77_v7  ;;  %v76_v11 = vld [vmem:[%s2676_s2 + $0x20] sm:$0xff]  ;;  %v78_v12 = vld [vmem:[%s2676_s2 + $0x30] sm:$0xff]  ;;  %v81_v13 = vld [vmem:[%s2676_s2 + $0x48] sm:$0xff] }
   0x4   :  { %1682 = vmatprep.subr.bf16.mxu0 %v1681_v5  ;;  %v83_v14 = vld [vmem:[%s2676_s2 + $0x58] sm:$0xff]  ;;  %v1687_v15 = vpack.c.bf16 %v78_v12, %v76_v11  ;;  %v80_v17 = vld [vmem:[%s2676_s2 + $0x40] sm:$0xff]  ;;  %v82_v18 = vld [vmem:[%s2676_s2 + $0x50] sm:$0xff] }
   0x5   :  { %1684 = vmatpush1.bf16.msra.mxu0 %v1683_v9  ;;  %v1689_v16 = vpack.c.bf16 %v83_v14, %v81_v13  ;;  %v85_v19 = vld [vmem:[%s2676_s2 + $0x68] sm:$0xff]  ;;  %v87_v20 = vld [vmem:[%s2676_s2 + $0x78] sm:$0xff]  ;;  %v1691_v21 = vpack.c.bf16 %v82_v18, %v80_v17  ;;  %v84_v23 = vld [vmem:[%s2676_s2 + $0x60] sm:$0xff] }
   0x6   :  { %1686 = vmatprep.subr.bf16.mxu0 %v1685_v10  ;;  %v1693_v22 = vpack.c.bf16 %v87_v20, %v85_v19  ;;  %v86_v24 = vld [vmem:[%s2676_s2 + $0x70] sm:$0xff]  ;;  %v89_v25 = vld [vmem:[%s2676_s2 + $0x88] sm:$0xff]  ;;  %v91_v26 = vld [vmem:[%s2676_s2 + $0x98] sm:$0xff] }
   0x7   :  { %v1695_v27 = vpack.c.bf16 %v86_v24, %v84_v23  ;;  %v1697_v28 = vpack.c.bf16 %v91_v26, %v89_v25  ;;  %v88_v29 = vld [vmem:[%s2676_s2 + $0x80] sm:$0xff]  ;;  %v90_v30 = vld [vmem:[%s2676_s2 + $0x90] sm:$0xff]  ;;  %v93_v31 = vld [vmem:[%s2676_s2 + $0xa8] sm:$0xff] }
   0x8   :  { %v95_v32 = vld [vmem:[%s2676_s2 + $0xb8] sm:$0xff]  ;;  %v1699_v33 = vpack.c.bf16 %v90_v30, %v88_v29  ;;  %v92_v35 = vld [vmem:[%s2676_s2 + $0xa0] sm:$0xff]  ;;  %v94_v36 = vld [vmem:[%s2676_s2 + $0xb0] sm:$0xff] }
   0x9   :  { %1688 = vmatpush1.bf16.msra.mxu0 %v1687_v15  ;;  %v1701_v34 = vpack.c.bf16 %v95_v32, %v93_v31  ;;  %v97_v37 = vld [vmem:[%s2676_s2 + $0xc8] sm:$0xff]  ;;  %v99_v38 = vld [vmem:[%s2676_s2 + $0xd8] sm:$0xff]  ;;  %v431_v39 = vld [vmem:[%s2677_s1] sm:$0xff]  ;;  %v1703_v41 = vpack.c.bf16 %v94_v36, %v92_v35 }
   0xa   :  { %1690 = vmatprep.subr.bf16.mxu0 %v1689_v16  ;;  %458 = vperm.xlu0 %1811, %v431_v39   ;;  %v433_v40 = vld [vmem:[%s2677_s1 + $0x10] sm:$0xff]  ;;  %v432_v42 = vld [vmem:[%s2677_s1 + $0x8] sm:$0xff]  ;;  %v1705_v43 = vpack.c.bf16 %v99_v38, %v97_v37  ;;  %v96_v44 = vld [vmem:[%s2676_s2 + $0xc0] sm:$0xff]  ;;  %v106_v37 = vlaneseq }
   0xb   :  { %468 = vperm.xlu1 %1812, %v433_v40   ;;  %v98_v45 = vld [vmem:[%s2676_s2 + $0xd0] sm:$0xff]  ;;  %v434_v46 = vld [vmem:[%s2677_s1 + $0x18] sm:$0xff]  ;;  %v101_v47 = vld [vmem:[%s2676_s2 + $0xe8] sm:$0xff] }
   0xc   :  { %v103_v48 = vld [vmem:[%s2676_s2 + $0xf8] sm:$0xff]  ;;  %v1707_v49 = vpack.c.bf16 %v98_v45, %v96_v44  ;;  %v435_v50 = vld [vmem:[%s2677_s1 + $0x20] sm:$0xff]  ;;  %v102_v53 = vld [vmem:[%s2676_s2 + $0xf0] sm:$0xff]  ;;  %v107_v38 = vshrl.u32 %v106_v37, 7 }
   0xd   :  { %1692 = vmatpush1.bf16.msra.mxu0 %v1691_v21  ;;  %v1709_v51 = vpack.c.bf16 %v103_v48, %v101_v47  ;;  %v100_v52 = vld [vmem:[%s2676_s2 + $0xe0] sm:$0xff]  ;;  %v436_v54 = vld [vmem:[%s2677_s1 + $0x28] sm:$0xff]  ;;  %v437_v56 = vld [vmem:[%s2677_s1 + $0x30] sm:$0xff] }
   0xe   :  { %1694 = vmatprep.subr.bf16.mxu0 %v1693_v22  ;;  %463 = vperm.xlu0 %1811, %v432_v42   ;;  %v1711_v55 = vpack.c.bf16 %v102_v53, %v100_v52  ;;  %v438_v57 = vld [vmem:[%s2677_s1 + $0x38] sm:$0xff]  ;;  %v47_v58 = vld [vmem:[%s2678_s0] sm:$0xff]  ;;  %v440_v60 = vld [vmem:[%s2677_s1 + $0x48] sm:$0xff]  ;;  %v2162_v39 = vsub.s32 0, %v107_v38 }
   0xf   :  { %473 = vperm.xlu1 %1812, %v434_v46   ;;  %v439_v59 = vld [vmem:[%s2677_s1 + $0x40] sm:$0xff]  ;;  %v48_v61 = vld [vmem:[%s2678_s0 + $0x8] sm:$0xff]  ;;  %v441_v62 = vld [vmem:[%s2677_s1 + $0x50] sm:$0xff] }
  0x10   :  { %v442_v63 = vld [vmem:[%s2677_s1 + $0x58] sm:$0xff]  ;;  %v49_v0 = vld [vmem:[%s2678_s0 + $0x10] sm:$0xff]  ;;  %v443_v1 = vld [vmem:[%s2677_s1 + $0x60] sm:$0xff] }
  0x11   :  { %1696 = vmatpush1.bf16.msra.mxu0 %v1695_v27  ;;  %v444_v2 = vld [vmem:[%s2677_s1 + $0x68] sm:$0xff]  ;;  %v50_v4 = vld [vmem:[%s2678_s0 + $0x18] sm:$0xff]  ;;  %v445_v5 = vld [vmem:[%s2677_s1 + $0x70] sm:$0xff] }
  0x12   :  { %1698 = vmatprep.subr.bf16.mxu0 %v1697_v28  ;;  %478 = vperm.xlu0 %1811, %v435_v50   ;;  %v446_v6 = vld [vmem:[%s2677_s1 + $0x78] sm:$0xff]  ;;  %v51_v7 = vld [vmem:[%s2678_s0 + $0x20] sm:$0xff]  ;;  %v448_v9 = vld [vmem:[%s2677_s1 + $0x88] sm:$0xff] }
  0x13   :  { %483 = vperm.xlu1 %1812, %v436_v54   ;;  %v447_v8 = vld [vmem:[%s2677_s1 + $0x80] sm:$0xff]  ;;  %v52_v10 = vld [vmem:[%s2678_s0 + $0x28] sm:$0xff]  ;;  %v449_v11 = vld [vmem:[%s2677_s1 + $0x90] sm:$0xff] }
  0x14   :  { %v450_v12 = vld [vmem:[%s2677_s1 + $0x98] sm:$0xff]  ;;  %v53_v13 = vld [vmem:[%s2678_s0 + $0x30] sm:$0xff]  ;;  %v451_v14 = vld [vmem:[%s2677_s1 + $0xa0] sm:$0xff] }
  0x15   :  { %1700 = vmatpush1.bf16.msra.mxu0 %v1699_v33  ;;  %v452_v15 = vld [vmem:[%s2677_s1 + $0xa8] sm:$0xff]  ;;  %v54_v16 = vld [vmem:[%s2678_s0 + $0x38] sm:$0xff]  ;;  %v453_v17 = vld [vmem:[%s2677_s1 + $0xb0] sm:$0xff] }
  0x16   :  { %1702 = vmatprep.subr.bf16.mxu0 %v1701_v34  ;;  %488 = vperm.xlu0 %1811, %v437_v56   ;;  %v454_v18 = vld [vmem:[%s2677_s1 + $0xb8] sm:$0xff]  ;;  %v55_v19 = vld [vmem:[%s2678_s0 + $0x40] sm:$0xff]  ;;  %v56_v21 = vld [vmem:[%s2678_s0 + $0x48] sm:$0xff] }
  0x17   :  { %493 = vperm.xlu1 %1812, %v438_v57   ;;  %v455_v20 = vld [vmem:[%s2677_s1 + $0xc0] sm:$0xff]  ;;  %v57_v22 = vld [vmem:[%s2678_s0 + $0x50] sm:$0xff]  ;;  %v58_v23 = vld [vmem:[%s2678_s0 + $0x58] sm:$0xff] }
  0x18   :  { %v59_v24 = vld [vmem:[%s2678_s0 + $0x60] sm:$0xff]  ;;  %v60_v25 = vld [vmem:[%s2678_s0 + $0x68] sm:$0xff]  ;;  %v61_v26 = vld [vmem:[%s2678_s0 + $0x70] sm:$0xff] }
  0x19   :  { %1704 = vmatpush1.bf16.msra.mxu0 %v1703_v41  ;;  %v62_v27 = vld [vmem:[%s2678_s0 + $0x78] sm:$0xff]  ;;  %v63_v28 = vld [vmem:[%s2678_s0 + $0x80] sm:$0xff]  ;;  %v64_v29 = vld [vmem:[%s2678_s0 + $0x88] sm:$0xff]  ;;  %v2167_v41 = vsub.s32 1, %v107_v38 }
  0x1a   :  { %1706 = vmatprep.subr.bf16.mxu0 %v1705_v43  ;;  %498 = vperm.xlu0 %1811, %v439_v59   ;;  %v65_v30 = vld [vmem:[%s2678_s0 + $0x90] sm:$0xff]  ;;  %v66_v31 = vld [vmem:[%s2678_s0 + $0x98] sm:$0xff]  ;;  %v67_v32 = vld [vmem:[%s2678_s0 + $0xa0] sm:$0xff] }
  0x1b   :  { %503 = vperm.xlu1 %1812, %v440_v60   ;;  %v68_v33 = vld [vmem:[%s2678_s0 + $0xa8] sm:$0xff]  ;;  %v69_v34 = vld [vmem:[%s2678_s0 + $0xb0] sm:$0xff]  ;;  %v70_v35 = vld [vmem:[%s2678_s0 + $0xb8] sm:$0xff] }
  0x1c   :  { %v71_v36 = vld [vmem:[%s2678_s0 + $0xc0] sm:$0xff] }
  0x1d   :  { %1708 = vmatpush1.bf16.msra.mxu0 %v1707_v49  ;;  %v104_v40 = vld [vmem:[%s2679_s3] sm:$0x3] }
  0x1e   :  { %1710 = vmatprep.subr.bf16.mxu0 %v1709_v51  ;;  %508 = vperm.xlu0 %1811, %v441_v62   ;;  %v2170_v42 = vrot.slane %v104_v40, %v2162_v39  ;;  %v2173_v43 = vrot.slane %v104_v40, %v2167_v41  ;;  %v631_v54 = vld [vmem:[%s2680_s4] sm:$0x3] }
  0x1f   :  { %513 = vperm.xlu1 %1812, %v442_v63   ;;  %v636_v60 = vrot.slane %v631_v54, %v2162_v39 }
  0x21   :  { %1712 = vmatpush1.bf16.msra.mxu0 %v1711_v55 }
  0x22   :  { %518 = vperm.xlu0 %1811, %v443_v1  }
  0x23   :  { %523 = vperm.xlu1 %1812, %v444_v2  }
  0x24   :  { %181 = vmatmul.mubr.f32.vlgmr.msra.gmra.mrb[0].mxu0 %v47_v58  ;;  %v1581_v58 = vld [vmem:[%s2680_s4 + $0x2] sm:$0x3] }
  0x25   :  { %186 = vmatprep.mubr.f32.mxu0 %v1813_v3 }
  0x26   :  { %528 = vperm.xlu0 %1811, %v445_v5   ;;  %v651_v5 = vrot.slane %v1581_v58, %v2162_v39 }
  0x27   :  { %533 = vperm.xlu1 %1812, %v446_v6  }
  0x28   :  { %187 = vmatmul.mubr.f32.gmra.mrb[2].mxu0 %v48_v61  ;;  %v640_v61 = vrot.slane %v631_v54, %v2167_v41 }
  0x29   :  { %192 = vmatprep.mubr.f32.mxu0 %v1813_v3 }
  0x2a   :  { %538 = vperm.xlu0 %1811, %v447_v8  }
  0x2b   :  { %543 = vperm.xlu1 %1812, %v448_v9  }
  0x2c   :  { %193 = vmatmul.mubr.f32.gmra.mrb[4].mxu0 %v49_v0 }
  0x2d   :  { %198 = vmatprep.mubr.f32.mxu0 %v1813_v3 }
  0x2e   :  { %548 = vperm.xlu0 %1811, %v449_v11  }
  0x2f   :  { %553 = vperm.xlu1 %1812, %v450_v12  }
  0x30   :  { %199 = vmatmul.mubr.f32.gmra.mrb[6].mxu0 %v50_v4 }
  0x31   :  { %204 = vmatprep.mubr.f32.mxu0 %v1813_v3 }
  0x32   :  { %558 = vperm.xlu0 %1811, %v451_v14  }
  0x33   :  { %563 = vperm.xlu1 %1812, %v452_v15  }
  0x34   :  { %205 = vmatmul.mubr.f32.gmra.mrb[8].mxu0 %v51_v7  ;;  %v1582_v7 = vld [vmem:[%s2680_s4 + $0x4] sm:$0x3] }
  0x35   :  { %210 = vmatprep.mubr.f32.mxu0 %v1813_v3 }
  0x36   :  { %568 = vperm.xlu0 %1811, %v453_v17  }
  0x37   :  { %573 = vperm.xlu1 %1812, %v454_v18   ;;  %v668_v18 = vrot.slane %v1582_v7, %v2162_v39 }
  0x38   :  { %211 = vmatmul.mubr.f32.gmra.mrb[10].mxu0 %v52_v10  ;;  %v655_v10 = vrot.slane %v1581_v58, %v2167_v41 }
  0x39   :  { %216 = vmatprep.mubr.f32.mxu0 %v1813_v3 }
  0x3a   :  { %578 = vperm.xlu0 %1811, %v455_v20  }
  0x3c   :  { %217 = vmatmul.mubr.f32.gmra.mrb[12].mxu0 %v53_v13 }
  0x3d   :  { %222 = vmatprep.mubr.f32.mxu0 %v1813_v3 }
  0x40   :  { %223 = vmatmul.mubr.f32.gmra.mrb[14].mxu0 %v54_v16 }
  0x41   :  { %228 = vmatprep.mubr.f32.mxu0 %v1813_v3 }
  0x44   :  { %229 = vmatmul.mubr.f32.gmra.mrb[16].mxu0 %v55_v19  ;;  %v672_v19 = vrot.slane %v1582_v7, %v2167_v41 }
  0x45   :  { %234 = vmatprep.mubr.f32.mxu0 %v1813_v3 }
  0x48   :  { %235 = vmatmul.mubr.f32.gmra.mrb[18].mxu0 %v56_v21 }
  0x49   :  { %240 = vmatprep.mubr.f32.mxu0 %v1813_v3 }
  0x4c   :  { %241 = vmatmul.mubr.f32.gmra.mrb[20].mxu0 %v57_v22 }
  0x4d   :  { %246 = vmatprep.mubr.f32.mxu0 %v1813_v3 }
  0x50   :  { %247 = vmatmul.mubr.f32.gmra.mrb[22].mxu0 %v58_v23 }
  0x51   :  { %252 = vmatprep.mubr.f32.mxu0 %v1813_v3 }
  0x54   :  { %253 = vmatmul.mubr.f32.gmra.mrb[24].mxu0 %v59_v24 }
  0x55   :  { %258 = vmatprep.mubr.f32.mxu0 %v1813_v3 }
  0x58   :  { %259 = vmatmul.mubr.f32.gmra.mrb[26].mxu0 %v60_v25 }
  0x59   :  { %264 = vmatprep.mubr.f32.mxu0 %v1813_v3 }
  0x5c   :  { %265 = vmatmul.mubr.f32.gmra.mrb[28].mxu0 %v61_v26 }
  0x5d   :  { %270 = vmatprep.mubr.f32.mxu0 %v1813_v3 }
  0x60   :  { %271 = vmatmul.mubr.f32.gmra.mrb[30].mxu0 %v62_v27 }
  0x61   :  { %276 = vmatprep.mubr.f32.mxu0 %v1813_v3 }
  0x64   :  { %277 = vmatmul.mubr.f32.gmra.mrb[32].mxu0 %v63_v28 }
  0x65   :  { %282 = vmatprep.mubr.f32.mxu0 %v1813_v3 }
  0x68   :  { %283 = vmatmul.mubr.f32.gmra.mrb[34].mxu0 %v64_v29  ;;  %v1583_v29 = vld [vmem:[%s2680_s4 + $0x6] sm:$0x3] }
  0x69   :  { %288 = vmatprep.mubr.f32.mxu0 %v1813_v3 }
  0x6c   :  { %289 = vmatmul.mubr.f32.gmra.mrb[36].mxu0 %v65_v30 }
  0x6d   :  { %294 = vmatprep.mubr.f32.mxu0 %v1813_v3 }
  0x70   :  { %295 = vmatmul.mubr.f32.gmra.mrb[38].mxu0 %v66_v31 }
  0x71   :  { %300 = vmatprep.mubr.f32.mxu0 %v1813_v3 }
  0x74   :  { %301 = vmatmul.mubr.f32.gmra.mrb[40].mxu0 %v67_v32 }
  0x75   :  { %306 = vmatprep.mubr.f32.mxu0 %v1813_v3 }
  0x78   :  { %307 = vmatmul.mubr.f32.gmra.mrb[42].mxu0 %v68_v33 }
  0x79   :  { %312 = vmatprep.mubr.f32.mxu0 %v1813_v3 }
  0x7c   :  { %313 = vmatmul.mubr.f32.gmra.mrb[44].mxu0 %v69_v34 }
  0x7d   :  { %318 = vmatprep.mubr.f32.mxu0 %v1813_v3 }
  0x80   :  { %319 = vmatmul.mubr.f32.gmra.mrb[46].mxu0 %v70_v35 }
  0x81   :  { %324 = vmatprep.mubr.f32.mxu0 %v1813_v3 }
  0x84   :  { %325 = vmatmul.mubr.f32.gmra.mrb[48].mxu0 %v71_v36 }
  0x89   :  { %v459_v48 = vpop.permute.xlu0 %458 }
  0x8a   :  { %v469_v12 = vpop.permute.xlu1 %468 }
  0x8d   :  { %v464_v0 = vpop.permute.xlu0 %463 }
  0x8e   :  { %v474_v37 = vpop.permute.xlu1 %473 }
  0xf7   :  { %v182_v44 = vpop.f32.mrb[0].mxu0 }
  0xf8   :  { %v183_v45 = vadd.f32 %v182_v44, %v2170_v42  ;;  %v184_v46 = vpop.f32.mrb[1].mxu0 }
  0xf9   :  { %v185_v47 = vadd.f32 %v184_v46, %v2173_v43 }
  0xfa   :  { %v331_v49 = vmax.f32 %v183_v45, 0.0  ;;  %v685_v45 = vrot.slane %v1583_v29, %v2162_v39 }
  0xfb   :  { %v332_v50 = vmax.f32 %v185_v47, 0.0  ;;  %v188_v51 = vpop.f32.mrb[2].mxu0 }
  0xfc   :  { %v381_v52 = vmin.f32 %v331_v49, 6.0  ;;  %v189_v53 = vadd.f32 %v188_v51, %v2170_v42  ;;  %v190_v55 = vpop.f32.mrb[3].mxu0  ;;  %v1584_v49 = vld [vmem:[%s2680_s4 + $0x8] sm:$0x3] }
  0xfd   :  { %v382_v56 = vmin.f32 %v332_v50, 6.0  ;;  %v191_v57 = vadd.f32 %v190_v55, %v2173_v43  ;;  %v689_v50 = vrot.slane %v1583_v29, %v2167_v41 }
  0xfe   :  { %v333_v59 = vmax.f32 %v189_v53, 0.0  ;;  %v581_v2 = vmul.f32 %v459_v48, %v381_v52 }
  0xff   :  { %v334_v62 = vmax.f32 %v191_v57, 0.0  ;;  %v194_v63 = vpop.f32.mrb[4].mxu0  ;;  %v582_v8 = vmul.f32 %v459_v48, %v382_v56 }
 0x100   :  { %v383_v1 = vmin.f32 %v333_v59, 6.0  ;;  %v195_v4 = vadd.f32 %v194_v63, %v2170_v42  ;;  %v196_v6 = vpop.f32.mrb[5].mxu0  ;;  %v643_v20 = vmul.f32 %v636_v60, %v581_v2  ;;  %v702_v60 = vrot.slane %v1584_v49, %v2162_v39 }
 0x101   :  { %v384_v9 = vmin.f32 %v334_v62, 6.0  ;;  %v197_v11 = vadd.f32 %v196_v6, %v2173_v43  ;;  %v644_v25 = vmul.f32 %v640_v61, %v582_v8 }
 0x102   :  { %v335_v13 = vmax.f32 %v195_v4, 0.0  ;;  %v583_v14 = vmul.f32 %v464_v0, %v383_v1  ;;  %v706_v4 = vrot.slane %v1584_v49, %v2167_v41 }
 0x103   :  { %v584_v15 = vmul.f32 %v464_v0, %v384_v9  ;;  %v336_v16 = vmax.f32 %v197_v11, 0.0  ;;  %v200_v17 = vpop.f32.mrb[6].mxu0  ;;  %v479_v0 = vpop.permute.xlu0 %478 }
 0x104   :  { %v385_v21 = vmin.f32 %v335_v13, 6.0  ;;  %v658_v22 = vmul.f32 %v651_v5, %v583_v14  ;;  %v201_v23 = vadd.f32 %v200_v17, %v2170_v42  ;;  %v202_v24 = vpop.f32.mrb[7].mxu0  ;;  %v1585_v5 = vld [vmem:[%s2680_s4 + $0xa] sm:$0x3] }
 0x105   :  { %v659_v26 = vmul.f32 %v655_v10, %v584_v15  ;;  %v386_v27 = vmin.f32 %v336_v16, 6.0  ;;  %v203_v28 = vadd.f32 %v202_v24, %v2173_v43  ;;  %v719_v16 = vrot.slane %v1585_v5, %v2162_v39 }
 0x106   :  { %v660_v30 = vadd.f32 %v658_v22, %v643_v20  ;;  %v337_v31 = vmax.f32 %v201_v23, 0.0  ;;  %v585_v32 = vmul.f32 %v469_v12, %v385_v21  ;;  %v484_v20 = vpop.permute.xlu1 %483  ;;  %v723_v22 = vrot.slane %v1585_v5, %v2167_v41  ;;  %v1586_v23 = vld [vmem:[%s2680_s4 + $0xc] sm:$0x3] }
 0x107   :  { %v661_v33 = vadd.f32 %v659_v26, %v644_v25  ;;  %v586_v34 = vmul.f32 %v469_v12, %v386_v27  ;;  %v338_v35 = vmax.f32 %v203_v28, 0.0  ;;  %v206_v36 = vpop.f32.mrb[8].mxu0 }
 0x108   :  { %v387_v38 = vmin.f32 %v337_v31, 6.0  ;;  %v675_v40 = vmul.f32 %v668_v18, %v585_v32  ;;  %v207_v44 = vadd.f32 %v206_v36, %v2170_v42  ;;  %v208_v46 = vpop.f32.mrb[9].mxu0 }
 0x109   :  { %v676_v47 = vmul.f32 %v672_v19, %v586_v34  ;;  %v388_v48 = vmin.f32 %v338_v35, 6.0  ;;  %v209_v51 = vadd.f32 %v208_v46, %v2173_v43  ;;  %v736_v34 = vrot.slane %v1586_v23, %v2162_v39 }
 0x10a   :  { %v677_v52 = vadd.f32 %v675_v40, %v660_v30  ;;  %v339_v53 = vmax.f32 %v207_v44, 0.0  ;;  %v587_v54 = vmul.f32 %v474_v37, %v387_v38  ;;  %v740_v44 = vrot.slane %v1586_v23, %v2167_v41 }
 0x10b   :  { %v678_v55 = vadd.f32 %v676_v47, %v661_v33  ;;  %v588_v56 = vmul.f32 %v474_v37, %v388_v48  ;;  %v340_v57 = vmax.f32 %v209_v51, 0.0  ;;  %v212_v58 = vpop.f32.mrb[10].mxu0  ;;  %v489_v37 = vpop.permute.xlu0 %488 }
 0x10c   :  { %v389_v59 = vmin.f32 %v339_v53, 6.0  ;;  %v692_v61 = vmul.f32 %v685_v45, %v587_v54  ;;  %v213_v62 = vadd.f32 %v212_v58, %v2170_v42  ;;  %v214_v63 = vpop.f32.mrb[11].mxu0  ;;  %v1587_v45 = vld [vmem:[%s2680_s4 + $0xe] sm:$0x3] }
 0x10d   :  { %v693_v1 = vmul.f32 %v689_v50, %v588_v56  ;;  %v390_v2 = vmin.f32 %v340_v57, 6.0  ;;  %v215_v6 = vadd.f32 %v214_v63, %v2173_v43  ;;  %v753_v56 = vrot.slane %v1587_v45, %v2162_v39  ;;  %v1588_v63 = vld [vmem:[%s2680_s4 + $0x10] sm:$0x3] }
 0x10e   :  { %v589_v7 = vmul.f32 %v479_v0, %v389_v59  ;;  %v694_v8 = vadd.f32 %v692_v61, %v677_v52  ;;  %v341_v9 = vmax.f32 %v213_v62, 0.0  ;;  %v494_v59 = vpop.permute.xlu1 %493  ;;  %v757_v62 = vrot.slane %v1587_v45, %v2167_v41 }
 0x10f   :  { %v695_v10 = vadd.f32 %v693_v1, %v678_v55  ;;  %v590_v11 = vmul.f32 %v479_v0, %v390_v2  ;;  %v342_v12 = vmax.f32 %v215_v6, 0.0  ;;  %v218_v13 = vpop.f32.mrb[12].mxu0 }
 0x110   :  { %v709_v14 = vmul.f32 %v702_v60, %v589_v7  ;;  %v391_v15 = vmin.f32 %v341_v9, 6.0  ;;  %v219_v17 = vadd.f32 %v218_v13, %v2170_v42  ;;  %v220_v18 = vpop.f32.mrb[13].mxu0 }
 0x111   :  { %v710_v19 = vmul.f32 %v706_v4, %v590_v11  ;;  %v392_v21 = vmin.f32 %v342_v12, 6.0  ;;  %v221_v24 = vadd.f32 %v220_v18, %v2173_v43  ;;  %v770_v11 = vrot.slane %v1588_v63, %v2162_v39  ;;  %v1589_v18 = vld [vmem:[%s2680_s4 + $0x12] sm:$0x3] }
 0x112   :  { %v591_v25 = vmul.f32 %v484_v20, %v391_v15  ;;  %v711_v26 = vadd.f32 %v709_v14, %v694_v8  ;;  %v343_v27 = vmax.f32 %v219_v17, 0.0  ;;  %v499_v14 = vpop.permute.xlu0 %498  ;;  %v774_v17 = vrot.slane %v1588_v63, %v2167_v41 }
 0x113   :  { %v712_v28 = vadd.f32 %v710_v19, %v695_v10  ;;  %v592_v29 = vmul.f32 %v484_v20, %v392_v21  ;;  %v344_v30 = vmax.f32 %v221_v24, 0.0  ;;  %v224_v31 = vpop.f32.mrb[14].mxu0 }
 0x114   :  { %v726_v32 = vmul.f32 %v719_v16, %v591_v25  ;;  %v393_v33 = vmin.f32 %v343_v27, 6.0  ;;  %v225_v35 = vadd.f32 %v224_v31, %v2170_v42  ;;  %v226_v36 = vpop.f32.mrb[15].mxu0 }
 0x115   :  { %v727_v38 = vmul.f32 %v723_v22, %v592_v29  ;;  %v394_v40 = vmin.f32 %v344_v30, 6.0  ;;  %v227_v46 = vadd.f32 %v226_v36, %v2173_v43  ;;  %v787_v29 = vrot.slane %v1589_v18, %v2162_v39  ;;  %v1590_v36 = vld [vmem:[%s2680_s4 + $0x14] sm:$0x3] }
 0x116   :  { %v728_v47 = vadd.f32 %v726_v32, %v711_v26  ;;  %v593_v48 = vmul.f32 %v489_v37, %v393_v33  ;;  %v345_v49 = vmax.f32 %v225_v35, 0.0  ;;  %v504_v32 = vpop.permute.xlu1 %503  ;;  %v791_v35 = vrot.slane %v1589_v18, %v2167_v41 }
 0x117   :  { %v729_v50 = vadd.f32 %v727_v38, %v712_v28  ;;  %v594_v51 = vmul.f32 %v489_v37, %v394_v40  ;;  %v346_v52 = vmax.f32 %v227_v46, 0.0  ;;  %v230_v53 = vpop.f32.mrb[16].mxu0 }
 0x118   :  { %v743_v54 = vmul.f32 %v736_v34, %v593_v48  ;;  %v395_v55 = vmin.f32 %v345_v49, 6.0  ;;  %v231_v57 = vadd.f32 %v230_v53, %v2170_v42  ;;  %v232_v58 = vpop.f32.mrb[17].mxu0 }
 0x119   :  { %v744_v60 = vmul.f32 %v740_v44, %v594_v51  ;;  %v396_v61 = vmin.f32 %v346_v52, 6.0  ;;  %v233_v0 = vadd.f32 %v232_v58, %v2173_v43  ;;  %v804_v51 = vrot.slane %v1590_v36, %v2162_v39  ;;  %v1591_v58 = vld [vmem:[%s2680_s4 + $0x16] sm:$0x3] }
 0x11a   :  { %v745_v1 = vadd.f32 %v743_v54, %v728_v47  ;;  %v595_v2 = vmul.f32 %v494_v59, %v395_v55  ;;  %v347_v4 = vmax.f32 %v231_v57, 0.0  ;;  %v509_v54 = vpop.permute.xlu0 %508  ;;  %v808_v57 = vrot.slane %v1590_v36, %v2167_v41 }
 0x11b   :  { %v746_v5 = vadd.f32 %v744_v60, %v729_v50  ;;  %v596_v6 = vmul.f32 %v494_v59, %v396_v61  ;;  %v348_v7 = vmax.f32 %v233_v0, 0.0  ;;  %v236_v8 = vpop.f32.mrb[18].mxu0 }
 0x11c   :  { %v760_v9 = vmul.f32 %v753_v56, %v595_v2  ;;  %v397_v10 = vmin.f32 %v347_v4, 6.0  ;;  %v237_v12 = vadd.f32 %v236_v8, %v2170_v42  ;;  %v238_v13 = vpop.f32.mrb[19].mxu0 }
 0x11d   :  { %v761_v15 = vmul.f32 %v757_v62, %v596_v6  ;;  %v398_v16 = vmin.f32 %v348_v7, 6.0  ;;  %v239_v19 = vadd.f32 %v238_v13, %v2173_v43  ;;  %v821_v6 = vrot.slane %v1591_v58, %v2162_v39  ;;  %v1592_v13 = vld [vmem:[%s2680_s4 + $0x18] sm:$0x3] }
 0x11e   :  { %v762_v20 = vadd.f32 %v760_v9, %v745_v1  ;;  %v597_v21 = vmul.f32 %v499_v14, %v397_v10  ;;  %v349_v22 = vmax.f32 %v237_v12, 0.0  ;;  %v514_v9 = vpop.permute.xlu1 %513  ;;  %v825_v12 = vrot.slane %v1591_v58, %v2167_v41 }
 0x11f   :  { %v763_v23 = vadd.f32 %v761_v15, %v746_v5  ;;  %v598_v24 = vmul.f32 %v499_v14, %v398_v16  ;;  %v350_v25 = vmax.f32 %v239_v19, 0.0  ;;  %v242_v26 = vpop.f32.mrb[20].mxu0 }
 0x120   :  { %v777_v27 = vmul.f32 %v770_v11, %v597_v21  ;;  %v399_v28 = vmin.f32 %v349_v22, 6.0  ;;  %v243_v30 = vadd.f32 %v242_v26, %v2170_v42  ;;  %v244_v31 = vpop.f32.mrb[21].mxu0 }
 0x121   :  { %v778_v33 = vmul.f32 %v774_v17, %v598_v24  ;;  %v400_v34 = vmin.f32 %v350_v25, 6.0  ;;  %v245_v37 = vadd.f32 %v244_v31, %v2173_v43  ;;  %v838_v24 = vrot.slane %v1592_v13, %v2162_v39  ;;  %v1593_v31 = vld [vmem:[%s2680_s4 + $0x1a] sm:$0x3] }
 0x122   :  { %v779_v38 = vadd.f32 %v777_v27, %v762_v20  ;;  %v599_v40 = vmul.f32 %v504_v32, %v399_v28  ;;  %v351_v44 = vmax.f32 %v243_v30, 0.0  ;;  %v519_v27 = vpop.permute.xlu0 %518  ;;  %v842_v30 = vrot.slane %v1592_v13, %v2167_v41 }
 0x123   :  { %v780_v45 = vadd.f32 %v778_v33, %v763_v23  ;;  %v600_v46 = vmul.f32 %v504_v32, %v400_v34  ;;  %v352_v47 = vmax.f32 %v245_v37, 0.0  ;;  %v248_v48 = vpop.f32.mrb[22].mxu0 }
 0x124   :  { %v794_v49 = vmul.f32 %v787_v29, %v599_v40  ;;  %v401_v50 = vmin.f32 %v351_v44, 6.0  ;;  %v249_v52 = vadd.f32 %v248_v48, %v2170_v42  ;;  %v250_v53 = vpop.f32.mrb[23].mxu0 }
 0x125   :  { %v795_v55 = vmul.f32 %v791_v35, %v600_v46  ;;  %v402_v56 = vmin.f32 %v352_v47, 6.0  ;;  %v251_v59 = vadd.f32 %v250_v53, %v2173_v43  ;;  %v855_v46 = vrot.slane %v1593_v31, %v2162_v39  ;;  %v1594_v53 = vld [vmem:[%s2680_s4 + $0x1c] sm:$0x3] }
 0x126   :  { %v796_v60 = vadd.f32 %v794_v49, %v779_v38  ;;  %v601_v61 = vmul.f32 %v509_v54, %v401_v50  ;;  %v353_v62 = vmax.f32 %v249_v52, 0.0  ;;  %v524_v49 = vpop.permute.xlu1 %523  ;;  %v859_v52 = vrot.slane %v1593_v31, %v2167_v41 }
 0x127   :  { %v797_v63 = vadd.f32 %v795_v55, %v780_v45  ;;  %v602_v0 = vmul.f32 %v509_v54, %v402_v56  ;;  %v354_v1 = vmax.f32 %v251_v59, 0.0  ;;  %v254_v2 = vpop.f32.mrb[24].mxu0 }
 0x128   :  { %v811_v4 = vmul.f32 %v804_v51, %v601_v61  ;;  %v403_v5 = vmin.f32 %v353_v62, 6.0  ;;  %v255_v7 = vadd.f32 %v254_v2, %v2170_v42  ;;  %v256_v8 = vpop.f32.mrb[25].mxu0 }
 0x129   :  { %v812_v10 = vmul.f32 %v808_v57, %v602_v0  ;;  %v404_v11 = vmin.f32 %v354_v1, 6.0  ;;  %v257_v14 = vadd.f32 %v256_v8, %v2173_v43  ;;  %v872_v0 = vrot.slane %v1594_v53, %v2162_v39  ;;  %v1595_v8 = vld [vmem:[%s2680_s4 + $0x1e] sm:$0x3] }
 0x12a   :  { %v813_v15 = vadd.f32 %v811_v4, %v796_v60  ;;  %v603_v16 = vmul.f32 %v514_v9, %v403_v5  ;;  %v355_v17 = vmax.f32 %v255_v7, 0.0  ;;  %v529_v4 = vpop.permute.xlu0 %528  ;;  %v876_v7 = vrot.slane %v1594_v53, %v2167_v41 }
 0x12b   :  { %v814_v18 = vadd.f32 %v812_v10, %v797_v63  ;;  %v604_v19 = vmul.f32 %v514_v9, %v404_v11  ;;  %v356_v20 = vmax.f32 %v257_v14, 0.0  ;;  %v260_v21 = vpop.f32.mrb[26].mxu0 }
 0x12c   :  { %v828_v22 = vmul.f32 %v821_v6, %v603_v16  ;;  %v405_v23 = vmin.f32 %v355_v17, 6.0  ;;  %v261_v25 = vadd.f32 %v260_v21, %v2170_v42  ;;  %v262_v26 = vpop.f32.mrb[27].mxu0 }
 0x12d   :  { %v829_v28 = vmul.f32 %v825_v12, %v604_v19  ;;  %v406_v29 = vmin.f32 %v356_v20, 6.0  ;;  %v263_v32 = vadd.f32 %v262_v26, %v2173_v43  ;;  %v889_v19 = vrot.slane %v1595_v8, %v2162_v39  ;;  %v1596_v26 = vld [vmem:[%s2680_s4 + $0x20] sm:$0x3] }
 0x12e   :  { %v830_v33 = vadd.f32 %v828_v22, %v813_v15  ;;  %v605_v34 = vmul.f32 %v519_v27, %v405_v23  ;;  %v357_v35 = vmax.f32 %v261_v25, 0.0  ;;  %v534_v22 = vpop.permute.xlu1 %533  ;;  %v893_v25 = vrot.slane %v1595_v8, %v2167_v41 }
 0x12f   :  { %v831_v36 = vadd.f32 %v829_v28, %v814_v18  ;;  %v606_v37 = vmul.f32 %v519_v27, %v406_v29  ;;  %v358_v38 = vmax.f32 %v263_v32, 0.0  ;;  %v266_v40 = vpop.f32.mrb[28].mxu0 }
 0x130   :  { %v845_v44 = vmul.f32 %v838_v24, %v605_v34  ;;  %v407_v45 = vmin.f32 %v357_v35, 6.0  ;;  %v267_v47 = vadd.f32 %v266_v40, %v2170_v42  ;;  %v268_v48 = vpop.f32.mrb[29].mxu0 }
 0x131   :  { %v846_v50 = vmul.f32 %v842_v30, %v606_v37  ;;  %v408_v51 = vmin.f32 %v358_v38, 6.0  ;;  %v269_v54 = vadd.f32 %v268_v48, %v2173_v43  ;;  %v906_v37 = vrot.slane %v1596_v26, %v2162_v39  ;;  %v1597_v48 = vld [vmem:[%s2680_s4 + $0x22] sm:$0x3] }
 0x132   :  { %v847_v55 = vadd.f32 %v845_v44, %v830_v33  ;;  %v607_v56 = vmul.f32 %v524_v49, %v407_v45  ;;  %v359_v57 = vmax.f32 %v267_v47, 0.0  ;;  %v539_v44 = vpop.permute.xlu0 %538  ;;  %v910_v47 = vrot.slane %v1596_v26, %v2167_v41 }
 0x133   :  { %v848_v58 = vadd.f32 %v846_v50, %v831_v36  ;;  %v608_v59 = vmul.f32 %v524_v49, %v408_v51  ;;  %v360_v60 = vmax.f32 %v269_v54, 0.0  ;;  %v272_v61 = vpop.f32.mrb[30].mxu0 }
 0x134   :  { %v862_v62 = vmul.f32 %v855_v46, %v607_v56  ;;  %v409_v63 = vmin.f32 %v359_v57, 6.0  ;;  %v273_v1 = vadd.f32 %v272_v61, %v2170_v42  ;;  %v274_v2 = vpop.f32.mrb[31].mxu0 }
 0x135   :  { %v863_v5 = vmul.f32 %v859_v52, %v608_v59  ;;  %v410_v6 = vmin.f32 %v360_v60, 6.0  ;;  %v275_v9 = vadd.f32 %v274_v2, %v2173_v43  ;;  %v923_v59 = vrot.slane %v1597_v48, %v2162_v39  ;;  %v1598_v2 = vld [vmem:[%s2680_s4 + $0x24] sm:$0x3] }
 0x136   :  { %v864_v10 = vadd.f32 %v862_v62, %v847_v55  ;;  %v609_v11 = vmul.f32 %v529_v4, %v409_v63  ;;  %v361_v12 = vmax.f32 %v273_v1, 0.0  ;;  %v544_v62 = vpop.permute.xlu1 %543  ;;  %v927_v1 = vrot.slane %v1597_v48, %v2167_v41 }
 0x137   :  { %v865_v13 = vadd.f32 %v863_v5, %v848_v58  ;;  %v610_v14 = vmul.f32 %v529_v4, %v410_v6  ;;  %v362_v15 = vmax.f32 %v275_v9, 0.0  ;;  %v278_v16 = vpop.f32.mrb[32].mxu0 }
 0x138   :  { %v879_v17 = vmul.f32 %v872_v0, %v609_v11  ;;  %v411_v18 = vmin.f32 %v361_v12, 6.0  ;;  %v279_v20 = vadd.f32 %v278_v16, %v2170_v42  ;;  %v280_v21 = vpop.f32.mrb[33].mxu0 }
 0x139   :  { %v880_v23 = vmul.f32 %v876_v7, %v610_v14  ;;  %v412_v24 = vmin.f32 %v362_v15, 6.0  ;;  %v281_v27 = vadd.f32 %v280_v21, %v2173_v43  ;;  %v940_v14 = vrot.slane %v1598_v2, %v2162_v39  ;;  %v1599_v21 = vld [vmem:[%s2680_s4 + $0x26] sm:$0x3] }
 0x13a   :  { %v881_v28 = vadd.f32 %v879_v17, %v864_v10  ;;  %v611_v29 = vmul.f32 %v534_v22, %v411_v18  ;;  %v363_v30 = vmax.f32 %v279_v20, 0.0  ;;  %v549_v17 = vpop.permute.xlu0 %548  ;;  %v944_v20 = vrot.slane %v1598_v2, %v2167_v41 }
 0x13b   :  { %v882_v31 = vadd.f32 %v880_v23, %v865_v13  ;;  %v612_v32 = vmul.f32 %v534_v22, %v412_v24  ;;  %v364_v33 = vmax.f32 %v281_v27, 0.0  ;;  %v284_v34 = vpop.f32.mrb[34].mxu0 }
 0x13c   :  { %v896_v35 = vmul.f32 %v889_v19, %v611_v29  ;;  %v413_v36 = vmin.f32 %v363_v30, 6.0  ;;  %v285_v38 = vadd.f32 %v284_v34, %v2170_v42  ;;  %v286_v40 = vpop.f32.mrb[35].mxu0 }
 0x13d   :  { %v897_v45 = vmul.f32 %v893_v25, %v612_v32  ;;  %v414_v46 = vmin.f32 %v364_v33, 6.0  ;;  %v287_v49 = vadd.f32 %v286_v40, %v2173_v43  ;;  %v957_v32 = vrot.slane %v1599_v21, %v2162_v39  ;;  %v1600_v40 = vld [vmem:[%s2680_s4 + $0x28] sm:$0x3] }
 0x13e   :  { %v898_v50 = vadd.f32 %v896_v35, %v881_v28  ;;  %v613_v51 = vmul.f32 %v539_v44, %v413_v36  ;;  %v365_v52 = vmax.f32 %v285_v38, 0.0  ;;  %v554_v35 = vpop.permute.xlu1 %553  ;;  %v961_v38 = vrot.slane %v1599_v21, %v2167_v41 }
 0x13f   :  { %v899_v53 = vadd.f32 %v897_v45, %v882_v31  ;;  %v614_v54 = vmul.f32 %v539_v44, %v414_v46  ;;  %v366_v55 = vmax.f32 %v287_v49, 0.0  ;;  %v290_v56 = vpop.f32.mrb[36].mxu0 }
 0x140   :  { %v913_v57 = vmul.f32 %v906_v37, %v613_v51  ;;  %v415_v58 = vmin.f32 %v365_v52, 6.0  ;;  %v291_v60 = vadd.f32 %v290_v56, %v2170_v42  ;;  %v292_v61 = vpop.f32.mrb[37].mxu0 }
 0x141   :  { %v914_v63 = vmul.f32 %v910_v47, %v614_v54  ;;  %v416_v0 = vmin.f32 %v366_v55, 6.0  ;;  %v293_v4 = vadd.f32 %v292_v61, %v2173_v43  ;;  %v974_v54 = vrot.slane %v1600_v40, %v2162_v39  ;;  %v1601_v61 = vld [vmem:[%s2680_s4 + $0x2a] sm:$0x3] }
 0x142   :  { %v915_v5 = vadd.f32 %v913_v57, %v898_v50  ;;  %v615_v6 = vmul.f32 %v544_v62, %v415_v58  ;;  %v367_v7 = vmax.f32 %v291_v60, 0.0  ;;  %v559_v57 = vpop.permute.xlu0 %558  ;;  %v978_v60 = vrot.slane %v1600_v40, %v2167_v41 }
 0x143   :  { %v916_v8 = vadd.f32 %v914_v63, %v899_v53  ;;  %v616_v9 = vmul.f32 %v544_v62, %v416_v0  ;;  %v368_v10 = vmax.f32 %v293_v4, 0.0  ;;  %v296_v11 = vpop.f32.mrb[38].mxu0 }
 0x144   :  { %v930_v12 = vmul.f32 %v923_v59, %v615_v6  ;;  %v417_v13 = vmin.f32 %v367_v7, 6.0  ;;  %v297_v15 = vadd.f32 %v296_v11, %v2170_v42  ;;  %v298_v16 = vpop.f32.mrb[39].mxu0 }
 0x145   :  { %v931_v18 = vmul.f32 %v927_v1, %v616_v9  ;;  %v418_v19 = vmin.f32 %v368_v10, 6.0  ;;  %v299_v22 = vadd.f32 %v298_v16, %v2173_v43  ;;  %v991_v9 = vrot.slane %v1601_v61, %v2162_v39  ;;  %v1602_v16 = vld [vmem:[%s2680_s4 + $0x2c] sm:$0x3] }
 0x146   :  { %v932_v23 = vadd.f32 %v930_v12, %v915_v5  ;;  %v617_v24 = vmul.f32 %v549_v17, %v417_v13  ;;  %v369_v25 = vmax.f32 %v297_v15, 0.0  ;;  %v564_v12 = vpop.permute.xlu1 %563  ;;  %v995_v15 = vrot.slane %v1601_v61, %v2167_v41 }
 0x147   :  { %v933_v26 = vadd.f32 %v931_v18, %v916_v8  ;;  %v618_v27 = vmul.f32 %v549_v17, %v418_v19  ;;  %v370_v28 = vmax.f32 %v299_v22, 0.0  ;;  %v302_v29 = vpop.f32.mrb[40].mxu0 }
 0x148   :  { %v947_v30 = vmul.f32 %v940_v14, %v617_v24  ;;  %v419_v31 = vmin.f32 %v369_v25, 6.0  ;;  %v303_v33 = vadd.f32 %v302_v29, %v2170_v42  ;;  %v304_v34 = vpop.f32.mrb[41].mxu0 }
 0x149   :  { %v948_v36 = vmul.f32 %v944_v20, %v618_v27  ;;  %v420_v37 = vmin.f32 %v370_v28, 6.0  ;;  %v305_v44 = vadd.f32 %v304_v34, %v2173_v43  ;;  %v1008_v27 = vrot.slane %v1602_v16, %v2162_v39  ;;  %v1603_v34 = vld [vmem:[%s2680_s4 + $0x2e] sm:$0x3] }
 0x14a   :  { %v949_v45 = vadd.f32 %v947_v30, %v932_v23  ;;  %v619_v46 = vmul.f32 %v554_v35, %v419_v31  ;;  %v371_v47 = vmax.f32 %v303_v33, 0.0  ;;  %v569_v30 = vpop.permute.xlu0 %568  ;;  %v1012_v33 = vrot.slane %v1602_v16, %v2167_v41 }
 0x14b   :  { %v950_v48 = vadd.f32 %v948_v36, %v933_v26  ;;  %v620_v49 = vmul.f32 %v554_v35, %v420_v37  ;;  %v372_v50 = vmax.f32 %v305_v44, 0.0  ;;  %v308_v51 = vpop.f32.mrb[42].mxu0 }
 0x14c   :  { %v964_v52 = vmul.f32 %v957_v32, %v619_v46  ;;  %v421_v53 = vmin.f32 %v371_v47, 6.0  ;;  %v309_v55 = vadd.f32 %v308_v51, %v2170_v42  ;;  %v310_v56 = vpop.f32.mrb[43].mxu0 }
 0x14d   :  { %v965_v58 = vmul.f32 %v961_v38, %v620_v49  ;;  %v422_v59 = vmin.f32 %v372_v50, 6.0  ;;  %v311_v62 = vadd.f32 %v310_v56, %v2173_v43  ;;  %v1025_v49 = vrot.slane %v1603_v34, %v2162_v39  ;;  %v1604_v56 = vld [vmem:[%s2680_s4 + $0x30] sm:$0x3] }
 0x14e   :  { %v966_v63 = vadd.f32 %v964_v52, %v949_v45  ;;  %v621_v0 = vmul.f32 %v559_v57, %v421_v53  ;;  %v373_v1 = vmax.f32 %v309_v55, 0.0  ;;  %v574_v52 = vpop.permute.xlu1 %573  ;;  %v1029_v55 = vrot.slane %v1603_v34, %v2167_v41  ;;  %v1150_v34 = vld [vmem:[%s2682_s6 + $0x18] sm:$0xff] }
 0x14f   :  { %v967_v2 = vadd.f32 %v965_v58, %v950_v48  ;;  %v622_v4 = vmul.f32 %v559_v57, %v422_v59  ;;  %v374_v5 = vmax.f32 %v311_v62, 0.0  ;;  %v314_v6 = vpop.f32.mrb[44].mxu0 }
 0x150   :  { %v981_v7 = vmul.f32 %v974_v54, %v621_v0  ;;  %v423_v8 = vmin.f32 %v373_v1, 6.0  ;;  %v315_v10 = vadd.f32 %v314_v6, %v2170_v42  ;;  %v316_v11 = vpop.f32.mrb[45].mxu0  ;;  %v1042_v1 = vrot.slane %v1604_v56, %v2162_v39 }
 0x151   :  { %v982_v13 = vmul.f32 %v978_v60, %v622_v4  ;;  %v424_v14 = vmin.f32 %v374_v5, 6.0  ;;  %v317_v17 = vadd.f32 %v316_v11, %v2173_v43  ;;  %v1046_v6 = vrot.slane %v1604_v56, %v2167_v41  ;;  %v1156_v56 = vld [vmem:[%s2682_s6 + $0x48] sm:$0xff] }
 0x152   :  { %v983_v18 = vadd.f32 %v981_v7, %v966_v63  ;;  %v623_v19 = vmul.f32 %v564_v12, %v423_v8  ;;  %v375_v20 = vmax.f32 %v315_v10, 0.0  ;;  %v1053_v7 = vld [vmem:[%s2681_s5] sm:$0x3] }
 0x153   :  { %v984_v21 = vadd.f32 %v982_v13, %v967_v2  ;;  %v624_v22 = vmul.f32 %v564_v12, %v424_v14  ;;  %v376_v23 = vmax.f32 %v317_v17, 0.0  ;;  %v320_v24 = vpop.f32.mrb[46].mxu0  ;;  %v579_v2 = vpop.permute.xlu0 %578  ;;  %v1058_v12 = vrot.slane %v1053_v7, %v2162_v39 }
 0x154   :  { %v998_v25 = vmul.f32 %v991_v9, %v623_v19  ;;  %v425_v26 = vmin.f32 %v375_v20, 6.0  ;;  %v321_v28 = vadd.f32 %v320_v24, %v2170_v42  ;;  %v322_v29 = vpop.f32.mrb[47].mxu0  ;;  %v1062_v14 = vrot.slane %v1053_v7, %v2167_v41  ;;  %v1163_v20 = vld [vmem:[%s2682_s6 + $0x80] sm:$0xff]  ;;  %v1148_v24 = vld [vmem:[%s2682_s6 + $0x8] sm:$0xff] }
 0x155   :  { %v999_v31 = vmul.f32 %v995_v15, %v624_v22  ;;  %v426_v32 = vmin.f32 %v376_v23, 6.0  ;;  %v323_v35 = vadd.f32 %v322_v29, %v2173_v43  ;;  %v1147_v23 = vld [vmem:[%s2682_s6] sm:$0xff] }
 0x156   :  { %v1000_v36 = vadd.f32 %v998_v25, %v983_v18  ;;  %v625_v37 = vmul.f32 %v569_v30, %v425_v26  ;;  %v377_v38 = vmax.f32 %v321_v28, 0.0  ;;  %v1165_v25 = vld [vmem:[%s2682_s6 + $0x90] sm:$0xff]  ;;  %v1166_v26 = vld [vmem:[%s2682_s6 + $0x98] sm:$0xff] }
 0x157   :  { %v1001_v40 = vadd.f32 %v999_v31, %v984_v21  ;;  %v626_v44 = vmul.f32 %v569_v30, %v426_v32  ;;  %v378_v45 = vmax.f32 %v323_v35, 0.0  ;;  %v326_v46 = vpop.f32.mrb[48].mxu0  ;;  %v1164_v21 = vld [vmem:[%s2682_s6 + $0x88] sm:$0xff]  ;;  %v1071_v30 = vld [vmem:[%s2683_s10] sm:$0x3]  ;;  %v1715_v31 = vpack.c.bf16 %v1148_v24, %v1147_v23  ;;  %v1263_v23 = vld [vmem:[%s2684_s8 + $0x30] sm:$0xff] }
 0x158   :  { %v1015_v47 = vmul.f32 %v1008_v27, %v625_v37  ;;  %v427_v48 = vmin.f32 %v377_v38, 6.0  ;;  %v327_v50 = vadd.f32 %v326_v46, %v2170_v42  ;;  %v328_v51 = vpop.f32.mrb[49].mxu0  ;;  %v1713_v28 = vpack.c.bf16 %v1164_v21, %v1163_v20  ;;  %v1167_v35 = vld [vmem:[%s2682_s6 + $0xa0] sm:$0xff]  ;;  %v1170_v46 = vld [vmem:[%s2682_s6 + $0xb8] sm:$0xff]  ;;  %v1266_v24 = vld [vmem:[%s2684_s8 + $0x48] sm:$0xff] }
 0x159   :  { %v1016_v53 = vmul.f32 %v1012_v33, %v626_v44  ;;  %v428_v54 = vmin.f32 %v378_v45, 6.0  ;;  %v329_v57 = vadd.f32 %v328_v51, %v2173_v43  ;;  %v1717_v32 = vpack.c.bf16 %v1166_v26, %v1165_v25  ;;  %v1149_v33 = vld [vmem:[%s2682_s6 + $0x10] sm:$0xff]  ;;  %v1152_v44 = vld [vmem:[%s2682_s6 + $0x28] sm:$0xff]  ;;  %v1171_v51 = vld [vmem:[%s2682_s6 + $0xc0] sm:$0xff] }
 0x15a   :  { %v1017_v58 = vadd.f32 %v1015_v47, %v1000_v36  ;;  %v627_v59 = vmul.f32 %v574_v52, %v427_v48  ;;  %v379_v60 = vmax.f32 %v327_v50, 0.0  ;;  %v1168_v36 = vld [vmem:[%s2682_s6 + $0xa8] sm:$0xff]  ;;  %v1719_v37 = vpack.c.bf16 %v1150_v34, %v1149_v33  ;;  %v1169_v45 = vld [vmem:[%s2682_s6 + $0xb0] sm:$0xff]  ;;  %v1154_v50 = vld [vmem:[%s2682_s6 + $0x38] sm:$0xff] }
 0x15b   :  { %v1018_v61 = vadd.f32 %v1016_v53, %v1001_v40  ;;  %v628_v62 = vmul.f32 %v574_v52, %v428_v54  ;;  %v380_v63 = vmax.f32 %v329_v57, 0.0  ;;  %v1721_v38 = vpack.c.bf16 %v1168_v36, %v1167_v35  ;;  %v1151_v40 = vld [vmem:[%s2682_s6 + $0x20] sm:$0xff]  ;;  %v1172_v52 = vld [vmem:[%s2682_s6 + $0xc8] sm:$0xff]  ;;  %v1173_v57 = vld [vmem:[%s2682_s6 + $0xd0] sm:$0xff] }
 0x15c   :  { %v1032_v0 = vmul.f32 %v1025_v49, %v627_v59  ;;  %v429_v42 = vmin.f32 %v379_v60, 6.0  ;;  %v1723_v47 = vpack.c.bf16 %v1152_v44, %v1151_v40  ;;  %v1725_v48 = vpack.c.bf16 %v1170_v46, %v1169_v45  ;;  %v1153_v49 = vld [vmem:[%s2682_s6 + $0x30] sm:$0xff]  ;;  %v1268_v25 = vld [vmem:[%s2684_s8 + $0x58] sm:$0xff]  ;;  %v1269_v36 = vld [vmem:[%s2684_s8 + $0x60] sm:$0xff] }
 0x15d   :  { %v1033_v4 = vmul.f32 %v1029_v55, %v628_v62  ;;  %v430_v5 = vmin.f32 %v380_v63, 6.0  ;;  %v1727_v53 = vpack.c.bf16 %v1154_v50, %v1153_v49  ;;  %v1729_v54 = vpack.c.bf16 %v1172_v52, %v1171_v51  ;;  %v1155_v55 = vld [vmem:[%s2682_s6 + $0x40] sm:$0xff]  ;;  %v1158_v62 = vld [vmem:[%s2682_s6 + $0x58] sm:$0xff] }
 0x15e   :  { %v629_v43 = vmul.f32 %v579_v2, %v429_v42  ;;  %v1034_v8 = vadd.f32 %v1032_v0, %v1017_v58  ;;  %v1174_v58 = vld [vmem:[%s2682_s6 + $0xd8] sm:$0xff]  ;;  %v1731_v59 = vpack.c.bf16 %v1156_v56, %v1155_v55  ;;  %v1175_v63 = vld [vmem:[%s2682_s6 + $0xe0] sm:$0xff]  ;;  %v1176_v0 = vld [vmem:[%s2682_s6 + $0xe8] sm:$0xff] }
 0x15f   :  { %v630_v9 = vmul.f32 %v579_v2, %v430_v5  ;;  %v1035_v10 = vadd.f32 %v1033_v4, %v1018_v61  ;;  %v1733_v60 = vpack.c.bf16 %v1174_v58, %v1173_v57  ;;  %v1157_v61 = vld [vmem:[%s2682_s6 + $0x50] sm:$0xff]  ;;  %v1159_v2 = vld [vmem:[%s2682_s6 + $0x60] sm:$0xff]  ;;  %v1160_v4 = vld [vmem:[%s2682_s6 + $0x68] sm:$0xff] }
 0x160   :  { %v1049_v11 = vmul.f32 %v1042_v1, %v629_v43  ;;  %v1735_v42 = vpack.c.bf16 %v1158_v62, %v1157_v61  ;;  %v1737_v1 = vpack.c.bf16 %v1176_v0, %v1175_v63  ;;  %v1177_v5 = vld [vmem:[%s2682_s6 + $0xf0] sm:$0xff]  ;;  %v1739_v7 = vpack.c.bf16 %v1160_v4, %v1159_v2  ;;  %v1272_v33 = vld [vmem:[%s2684_s8 + $0x78] sm:$0xff]  ;;  %v1273_v46 = vld [vmem:[%s2684_s8 + $0x80] sm:$0xff] }
 0x161   :  { %v1050_v13 = vmul.f32 %v1046_v6, %v630_v9  ;;  %v1178_v6 = vld [vmem:[%s2682_s6 + $0xf8] sm:$0xff]  ;;  %v1277_v52 = vld [vmem:[%s2684_s8 + $0xa0] sm:$0xff]  ;;  %v1282_v55 = vld [vmem:[%s2684_s8 + $0xc8] sm:$0xff] }
 0x162   :  { %v1051_v15 = vadd.f32 %v1049_v11, %v1034_v8  ;;  %v1741_v43 = vpack.c.bf16 %v1178_v6, %v1177_v5  ;;  %v1161_v8 = vld [vmem:[%s2682_s6 + $0x70] sm:$0xff]  ;;  %v1162_v9 = vld [vmem:[%s2682_s6 + $0x78] sm:$0xff]  ;;  %v1258_v11 = vld [vmem:[%s2684_s8 + $0x8] sm:$0xff] }
 0x163   :  { %v1052_v16 = vadd.f32 %v1050_v13, %v1035_v10  ;;  %v1743_v10 = vpack.c.bf16 %v1162_v9, %v1161_v8  ;;  %v1276_v40 = vld [vmem:[%s2684_s8 + $0x98] sm:$0xff]  ;;  %v1281_v58 = vld [vmem:[%s2684_s8 + $0xc0] sm:$0xff]  ;;  %v1286_v61 = vld [vmem:[%s2684_s8 + $0xe8] sm:$0xff] }
 0x164   :  { %v1065_v17 = vadd.f32 %v1058_v12, %v1051_v15  ;;  %v1260_v12 = vld [vmem:[%s2684_s8 + $0x18] sm:$0xff]  ;;  %v1259_v15 = vld [vmem:[%s2684_s8 + $0x10] sm:$0xff]  ;;  %v1285_v0 = vld [vmem:[%s2684_s8 + $0xe0] sm:$0xff] }
 0x165   :  { %v1066_v18 = vadd.f32 %v1062_v14, %v1052_v16  ;;  %v1745_v13 = vpack.c.bf16 %v1260_v12, %v1258_v11  ;;  %v1257_v14 = vld [vmem:[%s2684_s8] sm:$0xff]  ;;  %v1262_v16 = vld [vmem:[%s2684_s8 + $0x28] sm:$0xff]  ;;  %v1280_v49 = vld [vmem:[%s2684_s8 + $0xb8] sm:$0xff] }
 0x166   :  { %v1067_v19 = vmax.f32 %v1065_v17, 0.0  ;;  %v1264_v17 = vld [vmem:[%s2684_s8 + $0x38] sm:$0xff]  ;;  %v1606_v4 = vld [vmem:[%s2685_s7] ss:$0 sm:$0xff] }
 0x167   :  { %v1068_v22 = vmax.f32 %v1066_v18, 0.0  ;;  %v1749_v21 = vpack.c.bf16 %v1264_v17, %v1262_v16  ;;  %v1284_v56 = vld [vmem:[%s2684_s8 + $0xd8] sm:$0xff]  ;;  %v1289_v8 = vld [vmem:[%s2686_s9] sm:$0x3] }
 0x168   :  { %v2375_v29 = vmin.f32 %v1067_v19, 6.0  ;;  %v1747_v19 = vpack.c.bf16 %v1259_v15, %v1257_v14  ;;  %v1769_v57 = vpack.c.bf16 %v1284_v56, %v1282_v55  ;;  %v1288_v62 = vld [vmem:[%s2684_s8 + $0xf8] sm:$0xff]  ;;  %v1294_v9 = vrot.slane %v1289_v8, %v2162_v39  ;;  %v1474_v55 = vld [vmem:[%s2687_s12 + $0x48] sm:$0xff]  ;;  %v1491_v56 = vld [vmem:[%s2687_s12 + $0xd0] sm:$0xff] }
 0x169   :  { %v2373_v27 = vmin.f32 %v1068_v22, 6.0  ;;  %v1261_v22 = vld [vmem:[%s2684_s8 + $0x20] sm:$0xff]  ;;  %v1773_v63 = vpack.c.bf16 %v1288_v62, %v1286_v61  ;;  %v1476_v61 = vld [vmem:[%s2687_s12 + $0x58] sm:$0xff] }
 0x16a   :  { %v1751_v26 = vpack.c.bf16 %v1263_v23, %v1261_v22  ;;  %v1483_v22 = vld [vmem:[%s2687_s12 + $0x90] sm:$0xff]  ;;  %v1484_v23 = vld [vmem:[%s2687_s12 + $0x98] sm:$0xff]  ;;  %v1493_v62 = vld [vmem:[%s2687_s12 + $0xe0] sm:$0xff] }
 0x16b   :  { %1076 = vmatprep.subr.mxu1 %v2373_v27 }
 0x16c   :  { %1077 = vmatpush1.msra.mxu1 %v2375_v29 }
 0x16d   :  { %1605 = vmatmul.mubr.msk.f32.vlgmr.msra.gmra.mrb[0].mxu1 %vm1072_vm0, %v1071_v30  ;;  %1714 = vmatprep.subr.bf16.mxu1 %v1713_v28  ;;  %v1753_v28 = vpack.c.bf16 %v1268_v25, %v1266_v24  ;;  %v1265_v30 = vld [vmem:[%s2684_s8 + $0x40] sm:$0xff] }
 0x16e   :  { %1716 = vmatpush3.bf16.msra.mxu1 %v1715_v31  ;;  %v1267_v31 = vld [vmem:[%s2684_s8 + $0x50] sm:$0xff] }
 0x16f   :  { %1718 = vmatprep.subr.bf16.mxu1 %v1717_v32  ;;  %v1270_v32 = vld [vmem:[%s2684_s8 + $0x68] sm:$0xff]  ;;  %v1755_v34 = vpack.c.bf16 %v1267_v31, %v1265_v30  ;;  %v1781_v31 = vpack.c.bf16 %v1484_v23, %v1483_v22 }
 0x170   :  { %v1757_v35 = vpack.c.bf16 %v1272_v33, %v1270_v32  ;;  %v1467_v32 = vld [vmem:[%s2687_s12 + $0x10] sm:$0xff]  ;;  %v1468_v33 = vld [vmem:[%s2687_s12 + $0x18] sm:$0xff] }
 0x172   :  { %1720 = vmatpush3.bf16.msra.mxu1 %v1719_v37  ;;  %v1271_v37 = vld [vmem:[%s2684_s8 + $0x70] sm:$0xff] }
 0x173   :  { %1722 = vmatprep.subr.bf16.mxu1 %v1721_v38  ;;  %v1274_v38 = vld [vmem:[%s2684_s8 + $0x88] sm:$0xff]  ;;  %v1759_v44 = vpack.c.bf16 %v1271_v37, %v1269_v36  ;;  %v1783_v36 = vpack.c.bf16 %v1468_v33, %v1467_v32 }
 0x174   :  { %v1761_v45 = vpack.c.bf16 %v1276_v40, %v1274_v38  ;;  %v1469_v38 = vld [vmem:[%s2687_s12 + $0x20] sm:$0xff]  ;;  %v1470_v40 = vld [vmem:[%s2687_s12 + $0x28] sm:$0xff] }
 0x176   :  { %1724 = vmatpush3.bf16.msra.mxu1 %v1723_v47  ;;  %v1275_v47 = vld [vmem:[%s2684_s8 + $0x90] sm:$0xff] }
 0x177   :  { %1726 = vmatprep.subr.bf16.mxu1 %v1725_v48  ;;  %v1278_v48 = vld [vmem:[%s2684_s8 + $0xa8] sm:$0xff]  ;;  %v1763_v50 = vpack.c.bf16 %v1275_v47, %v1273_v46  ;;  %v1787_v46 = vpack.c.bf16 %v1470_v40, %v1469_v38 }
 0x178   :  { %v1765_v51 = vpack.c.bf16 %v1280_v49, %v1278_v48  ;;  %v1471_v48 = vld [vmem:[%s2687_s12 + $0x30] sm:$0xff]  ;;  %v1472_v49 = vld [vmem:[%s2687_s12 + $0x38] sm:$0xff] }
 0x17a   :  { %1728 = vmatpush3.bf16.msra.mxu1 %v1727_v53  ;;  %v1279_v53 = vld [vmem:[%s2684_s8 + $0xb0] sm:$0xff] }
 0x17b   :  { %1730 = vmatprep.subr.bf16.mxu1 %v1729_v54  ;;  %v1767_v54 = vpack.c.bf16 %v1279_v53, %v1277_v52  ;;  %v1791_v52 = vpack.c.bf16 %v1472_v49, %v1471_v48 }
 0x17e   :  { %1732 = vmatpush3.bf16.msra.mxu1 %v1731_v59  ;;  %v1283_v59 = vld [vmem:[%s2684_s8 + $0xd0] sm:$0xff] }
 0x17f   :  { %1734 = vmatprep.subr.bf16.mxu1 %v1733_v60  ;;  %v1771_v60 = vpack.c.bf16 %v1283_v59, %v1281_v58 }
 0x182   :  { %1736 = vmatpush3.bf16.msra.mxu1 %v1735_v42  ;;  %v1287_v42 = vld [vmem:[%s2684_s8 + $0xf0] sm:$0xff] }
 0x183   :  { %1738 = vmatprep.subr.bf16.mxu1 %v1737_v1  ;;  %v1775_v1 = vpack.c.bf16 %v1287_v42, %v1285_v0 }
 0x186   :  { %1740 = vmatpush3.bf16.msra.mxu1 %v1739_v7 }
 0x187   :  { %1742 = vmatprep.subr.bf16.mxu1 %v1741_v43 }
 0x18a   :  { %1744 = vmatpush3.bf16.msra.mxu1 %v1743_v10  ;;  %v1298_v10 = vrot.slane %v1289_v8, %v2167_v41  ;;  %v1465_v41 = vld [vmem:[%s2687_s12] sm:$0xff]  ;;  %v1480_v8 = vld [vmem:[%s2687_s12 + $0x78] sm:$0xff] }
 0x18b   :  { %1746 = vmatprep.subr.bf16.mxu1 %v1745_v13 }
 0x240   :  { %v1142_v18 = vpop.f32.mrb[0].mxu1 }
 0x241   :  { %v1144_v20 = vpop.f32.mrb[1].mxu1 }
 0x242   :  { %1250 = vmatprep.mubr.f32.mxu1 %v1144_v20  ;;  %v1482_v20 = vld [vmem:[%s2687_s12 + $0x88] sm:$0xff] }
 0x243   :  { %1251 = vmatmul.mubr.f32.vlgmr.msra.gmra.mrb[2].mxu1 %v1142_v18 }
 0x244   :  { %1748 = vmatpush1.bf16.msra.mxu1 %v1747_v19  ;;  %1365 = vmatprep.mubr.f32.mxu1 %v1813_v3 }
 0x245   :  { %1750 = vmatprep.subr.bf16.mxu1 %v1749_v21  ;;  %v1466_v21 = vld [vmem:[%s2687_s12 + $0x8] sm:$0xff] }
 0x246   :  { %v1779_v30 = vpack.c.bf16 %v1466_v21, %v1465_v41 }
 0x248   :  { %1752 = vmatpush1.bf16.msra.mxu1 %v1751_v26 }
 0x249   :  { %1754 = vmatprep.subr.bf16.mxu1 %v1753_v28  ;;  %v1380_v28 = vld [vmem:[%s2688_s11] sm:$0xff] }
 0x24c   :  { %1756 = vmatpush1.bf16.msra.mxu1 %v1755_v34  ;;  %v1485_v34 = vld [vmem:[%s2687_s12 + $0xa0] sm:$0xff] }
 0x24d   :  { %1758 = vmatprep.subr.bf16.mxu1 %v1757_v35  ;;  %v1486_v35 = vld [vmem:[%s2687_s12 + $0xa8] sm:$0xff] }
 0x24e   :  { %v1785_v37 = vpack.c.bf16 %v1486_v35, %v1485_v34 }
 0x250   :  { %1760 = vmatpush1.bf16.msra.mxu1 %v1759_v44  ;;  %v1487_v44 = vld [vmem:[%s2687_s12 + $0xb0] sm:$0xff] }
 0x251   :  { %1762 = vmatprep.subr.bf16.mxu1 %v1761_v45  ;;  %v1488_v45 = vld [vmem:[%s2687_s12 + $0xb8] sm:$0xff] }
 0x252   :  { %v1789_v47 = vpack.c.bf16 %v1488_v45, %v1487_v44 }
 0x254   :  { %1764 = vmatpush1.bf16.msra.mxu1 %v1763_v50  ;;  %v1489_v50 = vld [vmem:[%s2687_s12 + $0xc0] sm:$0xff] }
 0x255   :  { %1766 = vmatprep.subr.bf16.mxu1 %v1765_v51  ;;  %v1490_v51 = vld [vmem:[%s2687_s12 + $0xc8] sm:$0xff] }
 0x256   :  { %v1793_v53 = vpack.c.bf16 %v1490_v51, %v1489_v50 }
 0x258   :  { %1768 = vmatpush1.bf16.msra.mxu1 %v1767_v54  ;;  %v1473_v54 = vld [vmem:[%s2687_s12 + $0x40] sm:$0xff] }
 0x259   :  { %1770 = vmatprep.subr.bf16.mxu1 %v1769_v57  ;;  %v1492_v57 = vld [vmem:[%s2687_s12 + $0xd8] sm:$0xff]  ;;  %v1795_v58 = vpack.c.bf16 %v1474_v55, %v1473_v54 }
 0x25a   :  { %v1797_v59 = vpack.c.bf16 %v1492_v57, %v1491_v56 }
 0x25c   :  { %1772 = vmatpush1.bf16.msra.mxu1 %v1771_v60  ;;  %v1475_v60 = vld [vmem:[%s2687_s12 + $0x50] sm:$0xff] }
 0x25d   :  { %1774 = vmatprep.subr.bf16.mxu1 %v1773_v63  ;;  %v1494_v63 = vld [vmem:[%s2687_s12 + $0xe8] sm:$0xff]  ;;  %v1799_v0 = vpack.c.bf16 %v1476_v61, %v1475_v60 }
 0x25e   :  { %v1801_v42 = vpack.c.bf16 %v1494_v63, %v1493_v62 }
 0x260   :  { %1776 = vmatpush1.bf16.msra.mxu1 %v1775_v1  ;;  %v1477_v1 = vld [vmem:[%s2687_s12 + $0x60] sm:$0xff] }
 0x316   :  { %v1643_v2 = vpop.f32.mrb[2].mxu1 }
 0x317   :  { %v1644_v5 = vpop.f32.mrb[3].mxu1 }
 0x318   :  { %v1645_v6 = vadd.f32 %v1644_v5, %v1643_v2  ;;  %v1478_v2 = vld [vmem:[%s2687_s12 + $0x68] sm:$0xff]  ;;  %v1495_v5 = vld [vmem:[%s2687_s12 + $0xf0] sm:$0xff] }
 0x31a   :  { %v1253_v7 = vadd.f32 %v1645_v6, %v1606_v4  ;;  %v1803_v4 = vpack.c.bf16 %v1478_v2, %v1477_v1  ;;  %v1496_v6 = vld [vmem:[%s2687_s12 + $0xf8] sm:$0xff] }
 0x31c   :  { %v1256_v43 = vmax.f32 %v1253_v7, 0.0  ;;  %v1805_v7 = vpack.c.bf16 %v1496_v6, %v1495_v5 }
 0x31e   :  { %1366 = vmatmul.mubr.f32.vlgmr.msra.gmra.mrb[4].mxu1 %v1256_v43  ;;  %v1479_v43 = vld [vmem:[%s2687_s12 + $0x70] sm:$0xff] }
 0x31f   :  { %1456 = vmatprep.mubr.f32.mxu1 %v1813_v3  ;;  %v1481_v3 = vld [vmem:[%s2687_s12 + $0x80] sm:$0xff] }
 0x320   :  { %v1777_v25 = vpack.c.bf16 %v1482_v20, %v1481_v3 }
 0x3f1   :  { %v1367_v11 = vpop.f32.mrb[4].mxu1 }
 0x3f2   :  { %v1368_v12 = vadd.f32 %v1367_v11, %v1294_v9  ;;  %v1369_v13 = vpop.f32.mrb[5].mxu1  ;;  %v1807_v9 = vpack.c.bf16 %v1480_v8, %v1479_v43 }
 0x3f3   :  { %v1370_v14 = vadd.f32 %v1369_v13, %v1298_v10 }
 0x3f4   :  { %v1372_v15 = vadd.f32 3.0, %v1368_v12 }
 0x3f5   :  { %v1373_v16 = vadd.f32 3.0, %v1370_v14 }
 0x3f6   :  { %v1374_v17 = vmax.f32 %v1372_v15, 0.0  ;;  %v1610_v15 = vld [vmem:[%s2689_s13] ss:$0 sm:$0xff] }
 0x3f7   :  { %v1375_v18 = vmax.f32 %v1373_v16, 0.0 }
 0x3f8   :  { %v1376_v19 = vmin.f32 %v1374_v17, 6.0 }
 0x3f9   :  { %v1377_v39 = vmin.f32 %v1375_v18, 6.0  ;;  %v1574_v18 = vld [vmem:[%s2678_s0 + $0x60] sm:$0xff] }
 0x3fa   :  { %v1378_v26 = vmul.f32 0.16666667, %v1376_v19 }
 0x3fb   :  { %v1379_v24 = vmul.f32 0.16666667, %v1377_v39 }
 0x3fd   :  { %1607 = vmatprep.subr.msk.mxu1 %vm1385_vm1, %v1379_v24 }
 0x3fe   :  { %1608 = vmatpush1.msk.msra.mxu1 %vm1385_vm1, %v1378_v26 }
 0x3ff   :  { %1609 = vmatmul.mubr.msk.f32.vlgmr.msra.gmra.mrb[6].mxu1 %vm1381_vm2, %v1380_v28  ;;  %1778 = vmatprep.subr.bf16.mxu1 %v1777_v25 }
 0x400   :  { %1780 = vmatpush3.bf16.msra.mxu1 %v1779_v30 }
 0x401   :  { %1782 = vmatprep.subr.bf16.mxu1 %v1781_v31 }
 0x404   :  { %1784 = vmatpush3.bf16.msra.mxu1 %v1783_v36 }
 0x405   :  { %1786 = vmatprep.subr.bf16.mxu1 %v1785_v37 }
 0x408   :  { %1788 = vmatpush3.bf16.msra.mxu1 %v1787_v46 }
 0x409   :  { %1790 = vmatprep.subr.bf16.mxu1 %v1789_v47 }
 0x40c   :  { %1792 = vmatpush3.bf16.msra.mxu1 %v1791_v52 }
 0x40d   :  { %1794 = vmatprep.subr.bf16.mxu1 %v1793_v53 }
 0x410   :  { %1796 = vmatpush3.bf16.msra.mxu1 %v1795_v58 }
 0x411   :  { %1798 = vmatprep.subr.bf16.mxu1 %v1797_v59 }
 0x414   :  { %1800 = vmatpush3.bf16.msra.mxu1 %v1799_v0 }
 0x415   :  { %1802 = vmatprep.subr.bf16.mxu1 %v1801_v42 }
 0x418   :  { %1804 = vmatpush3.bf16.msra.mxu1 %v1803_v4 }
 0x419   :  { %1806 = vmatprep.subr.bf16.mxu1 %v1805_v7 }
 0x41c   :  { %1808 = vmatpush3.bf16.msra.mxu1 %v1807_v9 }
 0x4d2   :  { %v1458_v10 = vpop.f32.mrb[6].mxu1 }
 0x4d3   :  { %v1460_v11 = vpop.f32.mrb[7].mxu1  ;;  %v1463_v13 = vmul.f32 %v1458_v10, %v2375_v29 }
 0x4d4   :  { %v1464_v12 = vmul.f32 %v1460_v11, %v2373_v27 }
 0x4d6   :  { %1568 = vmatprep.mubr.f32.mxu1 %v1464_v12 }
 0x4d7   :  { %1569 = vmatmul.mubr.f32.vlgmr.msra.gmra.mrb[8].mxu1 %v1463_v13 }
 0x5aa   :  { %v1678_v14 = vpop.f32.mrb[8].mxu1 }
 0x5ab   :  { %v1679_v16 = vpop.f32.mrb[9].mxu1 }
 0x5ac   :  { %v1680_v17 = vadd.f32 %v1679_v16, %v1678_v14 }
 0x5ae   :  { %v1571_v19 = vadd.f32 %v1680_v17, %v1610_v15 }
 0x5b0   :  { %v1575_v3 = vadd.f32 %v1574_v18, %v1571_v19 }
 0x5b2   :  { %1576 = vst [vmem:[%s2690_s14] sm:$0xff] %v1575_v3 }

</bundles_post_ra>
